<compile_context>
chip_gen: v7x
topology: tpu7x:2x2x1
jax: 0.10.0
libtpu: 0.0.40
codegen_flags: <defaults>
</compile_context>

<pallas_src>
import jax
import jax.numpy as jnp
from jax import lax
from jax.experimental import pallas as pl
from jax.experimental.pallas import tpu as pltpu

LANE = 128   # TPU lane width — channel dims are zero-padded to a multiple of this
_EPS = 1e-5


def _round_up(v, m):
    return ((v + m - 1) // m) * m


def _pad_axis(a, axis, target):
    pad = target - a.shape[axis]
    if pad <= 0:
        return a
    cfg = [(0, 0)] * a.ndim
    cfg[axis] = (0, pad)
    return jnp.pad(a, cfg)


# ----------------------------- Pallas kernels ------------------------------

def _matmul_bias_kernel(x_ref, w_ref, b_ref, o_ref):
    # (tm, K) @ (K, C) + (1, C)  — the ConvTranspose2d 2x2 taps as one matmul.
    o_ref[...] = (
        jnp.dot(x_ref[...], w_ref[...], preferred_element_type=jnp.float32)
        + b_ref[...]
    )


def _fused_double_conv_kernel(cat_ref, w1_ref, b1_ref, g1_ref, be1_ref,
                              w2_ref, b2_ref, g2_ref, be2_ref,
                              o_ref, hpad_ref):
    """Fused Conv3x3 -> BN -> ReLU -> Conv3x3 -> BN -> ReLU.

    cat_ref : (N, H+2, W+2, Cip)   halo-padded, lane-padded NHWC input (VMEM)
    w1_ref  : (9, Cip, Cop)        conv1 taps as 9 (Cin, Cout) matrices
    w2_ref  : (9, Cop, Cop)        conv2 taps
    b*/g*/be*: (1, Cop)            conv bias / BN gamma / BN beta (lane-padded)
    o_ref   : (N*H*W, Cop)         lane-dense output slab
    hpad_ref: (N, H+2, W+2, Cop)   VMEM scratch for the halo-padded intermediate
    """
    N, Hp, Wp, _ = cat_ref.shape
    H, W = Hp - 2, Wp - 2
    M = N * H * W

    def conv3x3(src_ref, w_ref, bias):
        # In-kernel "im2col": 9 shifted-window loads, each fed to an
        # (M, Cin) x (Cin, Cout) MXU matmul accumulated in f32.  No 9x
        # expanded patches array ever touches HBM.
        cin = src_ref.shape[-1]
        acc = None
        for t in range(9):
            dy, dx = divmod(t, 3)
            slab = src_ref[:, dy:dy + H, dx:dx + W, :]          # (N, H, W, cin)
            part = jnp.dot(slab.reshape(M, cin), w_ref[t],
                           preferred_element_type=jnp.float32)
            acc = part if acc is None else acc + part
        return acc + bias

    def bn_relu(y, gamma, beta):
        # Training-mode BatchNorm: biased batch stats over all N*H*W rows.
        # (Two-pass form keeps it numerically identical to the reference.)
        mean = jnp.mean(y, axis=0, keepdims=True)
        var = jnp.mean((y - mean) ** 2, axis=0, keepdims=True)
        y = (y - mean) * lax.rsqrt(var + _EPS)
        return jnp.maximum(y * gamma + beta, 0.0)

    h = bn_relu(conv3x3(cat_ref, w1_ref, b1_ref[...]),
                g1_ref[...], be1_ref[...])

    # Keep the intermediate activation in VMEM, halo-padded for conv2's taps.
    hpad_ref[...] = jnp.zeros_like(hpad_ref)
    hpad_ref[:, 1:H + 1, 1:W + 1, :] = h.reshape(N, H, W, hpad_ref.shape[-1])

    o_ref[...] = bn_relu(conv3x3(hpad_ref, w2_ref, b2_ref[...]),
                         g2_ref[...], be2_ref[...])


# --------------------------- pallas_call wrappers ---------------------------

def _pallas_matmul_bias(x, w, b, row_tile=256):
    """Row-tiled (M, K) @ (K, C) + b with lane-dense (128-multiple) K and C."""
    M, K = x.shape
    _, C = w.shape
    tm = max(8, min(row_tile, _round_up(M, 8)))
    Mp = _round_up(M, tm)
    xp = _pad_axis(x, 0, Mp)
    out = pl.pallas_call(
        _matmul_bias_kernel,
        out_shape=jax.ShapeDtypeStruct((Mp, C), jnp.float32),
        grid=(Mp // tm,),
        in_specs=[pl.BlockSpec((tm, K), lambda i: (i, 0)),
                  pl.BlockSpec((K, C), lambda i: (0, 0)),
                  pl.BlockSpec((1, C), lambda i: (0, 0))],
        out_specs=pl.BlockSpec((tm, C), lambda i: (i, 0)),
        compiler_params=pltpu.CompilerParams(
            dimension_semantics=("parallel",)),
    )(xp, w, b)
    return out[:M]


def _pallas_fused_double_conv(cat_p, w1, b1, g1, be1, w2, b2, g2, be2):
    N, Hp, Wp, Cip = cat_p.shape
    H, W = Hp - 2, Wp - 2
    M = N * H * W
    Cop = w1.shape[-1]

    cat_spec = pl.BlockSpec(cat_p.shape, lambda i: (0, 0, 0, 0))
    w1_spec = pl.BlockSpec((9, Cip, Cop), lambda i: (0, 0, 0))
    w2_spec = pl.BlockSpec((9, Cop, Cop), lambda i: (0, 0, 0))
    v_spec = pl.BlockSpec((1, Cop), lambda i: (0, 0))

    # BN needs global batch statistics, so the whole activation stays
    # VMEM-resident inside this single-step kernel (~2 MiB at these sizes).
    # TODO(synk): for activations larger than VMEM, switch to a row-tiled grid
    # with a cross-tile sum/sumsq accumulation pass for the BN statistics.
    return pl.pallas_call(
        _fused_double_conv_kernel,
        out_shape=jax.ShapeDtypeStruct((M, Cop), jnp.float32),
        grid=(1,),
        in_specs=[cat_spec, w1_spec, v_spec, v_spec, v_spec,
                  w2_spec, v_spec, v_spec, v_spec],
        out_specs=pl.BlockSpec((M, Cop), lambda i: (0, 0)),
        scratch_shapes=[pltpu.VMEM((N, Hp, Wp, Cop), jnp.float32)],
        compiler_params=pltpu.CompilerParams(
            dimension_semantics=("arbitrary",)),
    )(cat_p, w1, b1, g1, be1, w2, b2, g2, be2)


# ------------------------------- forward pass -------------------------------

def unet_block_b_forward(params, x, x2):
    """x, x2: NCHW float32.  Returns NCHW float32."""
    N, Ci, Hin, Win = x.shape
    _, _, H2, W2 = x2.shape
    Co2 = Ci // 2
    Co = params["conv1_w"].shape[0]
    Cip = _round_up(Ci, LANE)
    Cop = _round_up(Co, LANE)

    # ---- up = ConvTranspose2d(Ci, Ci//2, 2, stride=2, padding=1)(x) --------
    # All FLOPs in the tiled Pallas matmul; interleave / crop / pad are
    # pure layout glue done on the JAX side.
    x_flat = jnp.transpose(x, (0, 2, 3, 1)).reshape(N * Hin * Win, Ci)
    wt_mat = jnp.transpose(params["up_w"], (0, 2, 3, 1)).reshape(Ci, 4 * Co2)
    bt = jnp.tile(params["up_b"], 4).reshape(1, 4 * Co2)

    Cup = _round_up(4 * Co2, LANE)
    x_flat_p = _pad_axis(x_flat, 1, Cip)
    wt_mat_p = _pad_axis(_pad_axis(wt_mat, 0, Cip), 1, Cup)
    bt_p = _pad_axis(bt, 1, Cup)

    y = _pallas_matmul_bias(x_flat_p, wt_mat_p, bt_p)          # (M, Cup)
    y = y[:, :4 * Co2].reshape(N, Hin, Win, 2, 2, Co2)
    full = jnp.transpose(y, (0, 1, 3, 2, 4, 5)).reshape(N, 2 * Hin, 2 * Win, Co2)
    up = full[:, 1:2 * Hin - 1, 1:2 * Win - 1, :]              # output padding=1
    dY, dX = H2 - up.shape[1], W2 - up.shape[2]
    up = jnp.pad(up, ((0, 0), (dY // 2, dY - dY // 2),
                      (dX // 2, dX - dX // 2), (0, 0)))
    cat = jnp.concatenate([up, jnp.transpose(x2, (0, 2, 3, 1))], axis=-1)

    # ---- fused conv1+bn1+relu+conv2+bn2+relu (single Pallas kernel) --------
    # Halo pad (+1 spatial) and lane pad (channels -> 128) in one jnp.pad.
    cat_p = jnp.pad(cat, ((0, 0), (1, 1), (1, 1), (0, Cip - Ci)))

    def prep_w(w, cip, cop):    # (Cout, Cin, 3, 3) -> (9, cip, cop), zero pad
        cout, cin = w.shape[0], w.shape[1]
        wm = jnp.transpose(w, (2, 3, 1, 0)).reshape(9, cin, cout)
        return jnp.pad(wm, ((0, 0), (0, cip - cin), (0, cop - cout)))

    def prep_v(v):              # (C,) -> (1, Cop), zero pad
        return _pad_axis(v.reshape(1, -1), 1, Cop)

    out2d = _pallas_fused_double_conv(
        cat_p,
        prep_w(params["conv1_w"], Cip, Cop), prep_v(params["conv1_b"]),
        prep_v(params["bn1_g"]), prep_v(params["bn1_b"]),
        prep_w(params["conv2_w"], Cop, Cop), prep_v(params["conv2_b"]),
        prep_v(params["bn2_g"]), prep_v(params["bn2_b"]))

    out = out2d[:, :Co].reshape(N, H2, W2, Co)
    return jnp.transpose(out, (0, 3, 1, 2))                    # back to NCHW


# --------------------------- params & reference -----------------------------

def init_params(key, channel_in, channel_out):
    Ci, Co, Co2 = channel_in, channel_out, channel_in // 2
    ks = jax.random.split(key, 8)
    return {
        "up_w":    jax.random.normal(ks[0], (Ci, Co2, 2, 2), jnp.float32) * 0.2,
        "up_b":    jax.random.normal(ks[1], (Co2,), jnp.float32) * 0.1,
        "conv1_w": jax.random.normal(ks[2], (Co, Ci, 3, 3), jnp.float32) * 0.2,
        "conv1_b": jax.random.normal(ks[3], (Co,), jnp.float32) * 0.1,
        "bn1_g":   1.0 + 0.1 * jax.random.normal(ks[4], (Co,), jnp.float32),
        "bn1_b":   0.05 * jax.random.normal(ks[5], (Co,), jnp.float32),
        "conv2_w": jax.random.normal(ks[6], (Co, Co, 3, 3), jnp.float32) * 0.2,
        "conv2_b": jax.random.normal(ks[7], (Co,), jnp.float32) * 0.1,
        "bn2_g":   jnp.ones((Co,), jnp.float32),
        "bn2_b":   jnp.zeros((Co,), jnp.float32),
    }


def reference_forward(params, x, x2):
    """Pure-JAX (lax.conv) reference of the PyTorch forward, for checking."""
    wt = params["up_w"]
    # ConvTranspose2d(k=2, s=2, p=1) == dilated conv with flipped kernel.
    w_t = jnp.flip(jnp.transpose(wt, (1, 0, 2, 3)), axis=(2, 3))
    up = lax.conv_general_dilated(
        x, w_t, window_strides=(1, 1), padding=((0, 0), (0, 0)),
        lhs_dilation=(2, 2), dimension_numbers=("NCHW", "OIHW", "NCHW"),
        precision=lax.Precision.HIGHEST)
    up = up + params["up_b"][None, :, None, None]
    dY = x2.shape[2] - up.shape[2]
    dX = x2.shape[3] - up.shape[3]
    up = jnp.pad(up, ((0, 0), (0, 0),
                      (dY // 2, dY - dY // 2), (dX // 2, dX - dX // 2)))
    h = jnp.concatenate([up, x2], axis=1)

    def conv_bn_relu(h, w, b, g, beta):
        y = lax.conv_general_dilated(
            h, w, (1, 1), ((1, 1), (1, 1)),
            dimension_numbers=("NCHW", "OIHW", "NCHW"),
            precision=lax.Precision.HIGHEST)
        y = y + b[None, :, None, None]
        mean = jnp.mean(y, axis=(0, 2, 3), keepdims=True)
        var = jnp.mean((y - mean) ** 2, axis=(0, 2, 3), keepdims=True)
        y = (y - mean) * lax.rsqrt(var + _EPS)
        y = y * g[None, :, None, None] + beta[None, :, None, None]
        return jnp.maximum(y, 0.0)

    h = conv_bn_relu(h, params["conv1_w"], params["conv1_b"],
                     params["bn1_g"], params["bn1_b"])
    h = conv_bn_relu(h, params["conv2_w"], params["conv2_b"],
                     params["bn2_g"], params["bn2_b"])
    return h


# ----------------------------------- main ------------------------------------

if __name__ == "__main__":
    key = jax.random.PRNGKey(0)
    k1, k2, k3 = jax.random.split(key, 3)

    channel_in, channel_out = 4, 4
    # x: (2, 4, 8, 8) -> up -> (2, 2, 14, 14) -> pad -> (2, 2, 16, 16)
    # x2: (2, 2, 16, 16) ; concat -> (2, 4, 16, 16) ; output -> (2, 4, 16, 16)
    x = jax.random.normal(k1, (2, channel_in, 8, 8), jnp.float32)
    x2 = jax.random.normal(k2, (2, channel_in // 2, 16, 16), jnp.float32)
    params = init_params(k3, channel_in, channel_out)

    out = jax.jit(unet_block_b_forward)(params, x, x2)
    out = jax.block_until_ready(out)

    ref = reference_forward(params, x, x2)
    assert out.shape == (2, channel_out, 16, 16), out.shape
    max_err = float(jnp.max(jnp.abs(out - ref)))
    assert max_err < 2e-2, f"mismatch vs reference: {max_err}"

    print("KERNEL_OK")
</pallas_src>

<mosaic_0001>
module attributes {stable_mosaic.version = 11 : i64} {
  func.func @_matmul_bias_kernel(%arg0: i32, %arg1: memref<128x128xf32, #tpu.memory_space<vmem>>, %arg2: memref<128x128xf32, #tpu.memory_space<vmem>>, %arg3: memref<1x128xf32, #tpu.memory_space<vmem>>, %arg4: memref<128x128xf32, #tpu.memory_space<vmem>>) attributes {dimension_semantics = [#tpu.dimension_semantics<parallel>], iteration_bounds = array<i64: 1>, scalar_prefetch = 0 : i64, scratch_operands = 0 : i64, tpu.core_type = #tpu.core_type<tc>, window_params = [{transform_indices = @transform_0, window_bounds = array<i64: 128, 128>}, {pipeline_mode = #tpu.pipeline_mode<synchronous>, transform_indices = @transform_1, window_bounds = array<i64: 128, 128>}, {pipeline_mode = #tpu.pipeline_mode<synchronous>, transform_indices = @transform_2, window_bounds = array<i64: 1, 128>}, {transform_indices = @transform_3, window_bounds = array<i64: 128, 128>}]} {
    %c0 = arith.constant 0 : index
    %c0_0 = arith.constant 0 : index
    %0 = vector.load %arg1[%c0, %c0_0] : memref<128x128xf32, #tpu.memory_space<vmem>>, vector<128x128xf32>
    %c0_1 = arith.constant 0 : index
    %c0_2 = arith.constant 0 : index
    %1 = vector.load %arg2[%c0_1, %c0_2] : memref<128x128xf32, #tpu.memory_space<vmem>>, vector<128x128xf32>
    %cst = arith.constant dense<0.000000e+00> : vector<128x128xf32>
    %2 = tpu.matmul %0, %1, %cst {dimension_numbers = #tpu.dot_dimension_numbers<[1], [0], [0], [1], [0, 0, 1, 1], [], []>} : vector<128x128xf32>, vector<128x128xf32>, vector<128x128xf32> -> vector<128x128xf32>
    %c0_3 = arith.constant 0 : index
    %c0_4 = arith.constant 0 : index
    %3 = vector.load %arg3[%c0_3, %c0_4] : memref<1x128xf32, #tpu.memory_space<vmem>>, vector<1x128xf32>
    %4 = vector.broadcast %3 : vector<1x128xf32> to vector<128x128xf32>
    %5 = arith.addf %2, %4 : vector<128x128xf32>
    %c0_5 = arith.constant 0 : index
    %c0_6 = arith.constant 0 : index
    %6 = vector.load %arg4[%c0_5, %c0_6] : memref<128x128xf32, #tpu.memory_space<vmem>>, vector<128x128xf32>
    tpu.vector_store %arg4[%c0_5, %c0_6], %5 {strides = array<i32>} : memref<128x128xf32, #tpu.memory_space<vmem>>, vector<128x128xf32>,
    return
  }
  func.func @transform_0(%arg0: i32) -> (i32, i32) {
    %c0_i32 = arith.constant 0 : i32
    %c0_i32_0 = arith.constant 0 : i32
    return %arg0, %c0_i32 : i32, i32
  }
  func.func @transform_1(%arg0: i32) -> (i32, i32) {
    %c0_i32 = arith.constant 0 : i32
    %c0_i32_0 = arith.constant 0 : i32
    %c0_i32_1 = arith.constant 0 : i32
    return %c0_i32, %c0_i32_0 : i32, i32
  }
  func.func @transform_2(%arg0: i32) -> (i32, i32) {
    %c0_i32 = arith.constant 0 : i32
    %c0_i32_0 = arith.constant 0 : i32
    %c0_i32_1 = arith.constant 0 : i32
    return %c0_i32, %c0_i32_0 : i32, i32
  }
  func.func @transform_3(%arg0: i32) -> (i32, i32) {
    %c0_i32 = arith.constant 0 : i32
    %c0_i32_0 = arith.constant 0 : i32
    return %arg0, %c0_i32 : i32, i32
  }
}

module attributes {stable_mosaic.version = 11 : i64} {
  func.func @_fused_double_conv_kernel(%arg0: i32, %arg1: memref<2x18x18x128xf32, #tpu.memory_space<vmem>>, %arg2: memref<9x128x128xf32, #tpu.memory_space<vmem>>, %arg3: memref<1x128xf32, #tpu.memory_space<vmem>>, %arg4: memref<1x128xf32, #tpu.memory_space<vmem>>, %arg5: memref<1x128xf32, #tpu.memory_space<vmem>>, %arg6: memref<9x128x128xf32, #tpu.memory_space<vmem>>, %arg7: memref<1x128xf32, #tpu.memory_space<vmem>>, %arg8: memref<1x128xf32, #tpu.memory_space<vmem>>, %arg9: memref<1x128xf32, #tpu.memory_space<vmem>>, %arg10: memref<512x128xf32, #tpu.memory_space<vmem>>, %arg11: memref<2x18x18x128xf32, #tpu.memory_space<vmem>>) attributes {dimension_semantics = [#tpu.dimension_semantics<arbitrary>], iteration_bounds = array<i64: 1>, scalar_prefetch = 0 : i64, scratch_operands = 1 : i64, tpu.core_type = #tpu.core_type<tc>, window_params = [{pipeline_mode = #tpu.pipeline_mode<synchronous>, transform_indices = @transform_0, window_bounds = array<i64: 2, 18, 18, 128>}, {pipeline_mode = #tpu.pipeline_mode<synchronous>, transform_indices = @transform_1, window_bounds = array<i64: 9, 128, 128>}, {pipeline_mode = #tpu.pipeline_mode<synchronous>, transform_indices = @transform_2, window_bounds = array<i64: 1, 128>}, {pipeline_mode = #tpu.pipeline_mode<synchronous>, transform_indices = @transform_3, window_bounds = array<i64: 1, 128>}, {pipeline_mode = #tpu.pipeline_mode<synchronous>, transform_indices = @transform_4, window_bounds = array<i64: 1, 128>}, {pipeline_mode = #tpu.pipeline_mode<synchronous>, transform_indices = @transform_5, window_bounds = array<i64: 9, 128, 128>}, {pipeline_mode = #tpu.pipeline_mode<synchronous>, transform_indices = @transform_6, window_bounds = array<i64: 1, 128>}, {pipeline_mode = #tpu.pipeline_mode<synchronous>, transform_indices = @transform_7, window_bounds = array<i64: 1, 128>}, {pipeline_mode = #tpu.pipeline_mode<synchronous>, transform_indices = @transform_8, window_bounds = array<i64: 1, 128>}, {pipeline_mode = #tpu.pipeline_mode<synchronous>, transform_indices = @transform_9, window_bounds = array<i64: 512, 128>}]} {
    %c0 = arith.constant 0 : index
    %c0_0 = arith.constant 0 : index
    %0 = vector.load %arg3[%c0, %c0_0] : memref<1x128xf32, #tpu.memory_space<vmem>>, vector<1x128xf32>
    %c0_1 = arith.constant 0 : index
    %c0_2 = arith.constant 0 : index
    %c0_3 = arith.constant 0 : index
    %c0_4 = arith.constant 0 : index
    %1 = vector.load %arg1[%c0_1, %c0_2, %c0_3, %c0_4] : memref<2x18x18x128xf32, #tpu.memory_space<vmem>>, vector<2x16x16x128xf32>
    %2 = vector.shape_cast %1 : vector<2x16x16x128xf32> to vector<512x128xf32>
    %c0_5 = arith.constant 0 : index
    %c0_6 = arith.constant 0 : index
    %c0_7 = arith.constant 0 : index
    %3 = vector.load %arg2[%c0_5, %c0_6, %c0_7] : memref<9x128x128xf32, #tpu.memory_space<vmem>>, vector<1x128x128xf32>
    %4 = vector.shape_cast %3 : vector<1x128x128xf32> to vector<128x128xf32>
    %cst = arith.constant dense<0.000000e+00> : vector<512x128xf32>
    %5 = tpu.matmul %2, %4, %cst {dimension_numbers = #tpu.dot_dimension_numbers<[1], [0], [0], [1], [0, 0, 1, 1], [], []>} : vector<512x128xf32>, vector<128x128xf32>, vector<512x128xf32> -> vector<512x128xf32>
    %c0_8 = arith.constant 0 : index
    %c0_9 = arith.constant 0 : index
    %c1 = arith.constant 1 : index
    %c0_10 = arith.constant 0 : index
    %6 = vector.load %arg1[%c0_8, %c0_9, %c1, %c0_10] : memref<2x18x18x128xf32, #tpu.memory_space<vmem>>, vector<2x16x16x128xf32>
    %7 = vector.shape_cast %6 : vector<2x16x16x128xf32> to vector<512x128xf32>
    %c1_11 = arith.constant 1 : index
    %c0_12 = arith.constant 0 : index
    %c0_13 = arith.constant 0 : index
    %8 = vector.load %arg2[%c1_11, %c0_12, %c0_13] : memref<9x128x128xf32, #tpu.memory_space<vmem>>, vector<1x128x128xf32>
    %9 = vector.shape_cast %8 : vector<1x128x128xf32> to vector<128x128xf32>
    %cst_14 = arith.constant dense<0.000000e+00> : vector<512x128xf32>
    %10 = tpu.matmul %7, %9, %cst_14 {dimension_numbers = #tpu.dot_dimension_numbers<[1], [0], [0], [1], [0, 0, 1, 1], [], []>} : vector<512x128xf32>, vector<128x128xf32>, vector<512x128xf32> -> vector<512x128xf32>
    %11 = arith.addf %5, %10 : vector<512x128xf32>
    %c0_15 = arith.constant 0 : index
    %c0_16 = arith.constant 0 : index
    %c2 = arith.constant 2 : index
    %c0_17 = arith.constant 0 : index
    %12 = vector.load %arg1[%c0_15, %c0_16, %c2, %c0_17] : memref<2x18x18x128xf32, #tpu.memory_space<vmem>>, vector<2x16x16x128xf32>
    %13 = vector.shape_cast %12 : vector<2x16x16x128xf32> to vector<512x128xf32>
    %c2_18 = arith.constant 2 : index
    %c0_19 = arith.constant 0 : index
    %c0_20 = arith.constant 0 : index
    %14 = vector.load %arg2[%c2_18, %c0_19, %c0_20] : memref<9x128x128xf32, #tpu.memory_space<vmem>>, vector<1x128x128xf32>
    %15 = vector.shape_cast %14 : vector<1x128x128xf32> to vector<128x128xf32>
    %cst_21 = arith.constant dense<0.000000e+00> : vector<512x128xf32>
    %16 = tpu.matmul %13, %15, %cst_21 {dimension_numbers = #tpu.dot_dimension_numbers<[1], [0], [0], [1], [0, 0, 1, 1], [], []>} : vector<512x128xf32>, vector<128x128xf32>, vector<512x128xf32> -> vector<512x128xf32>
    %17 = arith.addf %11, %16 : vector<512x128xf32>
    %c0_22 = arith.constant 0 : index
    %c1_23 = arith.constant 1 : index
    %c0_24 = arith.constant 0 : index
    %c0_25 = arith.constant 0 : index
    %18 = vector.load %arg1[%c0_22, %c1_23, %c0_24, %c0_25] : memref<2x18x18x128xf32, #tpu.memory_space<vmem>>, vector<2x16x16x128xf32>
    %19 = vector.shape_cast %18 : vector<2x16x16x128xf32> to vector<512x128xf32>
    %c3 = arith.constant 3 : index
    %c0_26 = arith.constant 0 : index
    %c0_27 = arith.constant 0 : index
    %20 = vector.load %arg2[%c3, %c0_26, %c0_27] : memref<9x128x128xf32, #tpu.memory_space<vmem>>, vector<1x128x128xf32>
    %21 = vector.shape_cast %20 : vector<1x128x128xf32> to vector<128x128xf32>
    %cst_28 = arith.constant dense<0.000000e+00> : vector<512x128xf32>
    %22 = tpu.matmul %19, %21, %cst_28 {dimension_numbers = #tpu.dot_dimension_numbers<[1], [0], [0], [1], [0, 0, 1, 1], [], []>} : vector<512x128xf32>, vector<128x128xf32>, vector<512x128xf32> -> vector<512x128xf32>
    %23 = arith.addf %17, %22 : vector<512x128xf32>
    %c0_29 = arith.constant 0 : index
    %c1_30 = arith.constant 1 : index
    %c1_31 = arith.constant 1 : index
    %c0_32 = arith.constant 0 : index
    %24 = vector.load %arg1[%c0_29, %c1_30, %c1_31, %c0_32] : memref<2x18x18x128xf32, #tpu.memory_space<vmem>>, vector<2x16x16x128xf32>
    %25 = vector.shape_cast %24 : vector<2x16x16x128xf32> to vector<512x128xf32>
    %c4 = arith.constant 4 : index
    %c0_33 = arith.constant 0 : index
    %c0_34 = arith.constant 0 : index
    %26 = vector.load %arg2[%c4, %c0_33, %c0_34] : memref<9x128x128xf32, #tpu.memory_space<vmem>>, vector<1x128x128xf32>
    %27 = vector.shape_cast %26 : vector<1x128x128xf32> to vector<128x128xf32>
    %cst_35 = arith.constant dense<0.000000e+00> : vector<512x128xf32>
    %28 = tpu.matmul %25, %27, %cst_35 {dimension_numbers = #tpu.dot_dimension_numbers<[1], [0], [0], [1], [0, 0, 1, 1], [], []>} : vector<512x128xf32>, vector<128x128xf32>, vector<512x128xf32> -> vector<512x128xf32>
    %29 = arith.addf %23, %28 : vector<512x128xf32>
    %c0_36 = arith.constant 0 : index
    %c1_37 = arith.constant 1 : index
    %c2_38 = arith.constant 2 : index
    %c0_39 = arith.constant 0 : index
    %30 = vector.load %arg1[%c0_36, %c1_37, %c2_38, %c0_39] : memref<2x18x18x128xf32, #tpu.memory_space<vmem>>, vector<2x16x16x128xf32>
    %31 = vector.shape_cast %30 : vector<2x16x16x128xf32> to vector<512x128xf32>
    %c5 = arith.constant 5 : index
    %c0_40 = arith.constant 0 : index
    %c0_41 = arith.constant 0 : index
    %32 = vector.load %arg2[%c5, %c0_40, %c0_41] : memref<9x128x128xf32, #tpu.memory_space<vmem>>, vector<1x128x128xf32>
    %33 = vector.shape_cast %32 : vector<1x128x128xf32> to vector<128x128xf32>
    %cst_42 = arith.constant dense<0.000000e+00> : vector<512x128xf32>
    %34 = tpu.matmul %31, %33, %cst_42 {dimension_numbers = #tpu.dot_dimension_numbers<[1], [0], [0], [1], [0, 0, 1, 1], [], []>} : vector<512x128xf32>, vector<128x128xf32>, vector<512x128xf32> -> vector<512x128xf32>
    %35 = arith.addf %29, %34 : vector<512x128xf32>
    %c0_43 = arith.constant 0 : index
    %c2_44 = arith.constant 2 : index
    %c0_45 = arith.constant 0 : index
    %c0_46 = arith.constant 0 : index
    %36 = vector.load %arg1[%c0_43, %c2_44, %c0_45, %c0_46] : memref<2x18x18x128xf32, #tpu.memory_space<vmem>>, vector<2x16x16x128xf32>
    %37 = vector.shape_cast %36 : vector<2x16x16x128xf32> to vector<512x128xf32>
    %c6 = arith.constant 6 : index
    %c0_47 = arith.constant 0 : index
    %c0_48 = arith.constant 0 : index
    %38 = vector.load %arg2[%c6, %c0_47, %c0_48] : memref<9x128x128xf32, #tpu.memory_space<vmem>>, vector<1x128x128xf32>
    %39 = vector.shape_cast %38 : vector<1x128x128xf32> to vector<128x128xf32>
    %cst_49 = arith.constant dense<0.000000e+00> : vector<512x128xf32>
    %40 = tpu.matmul %37, %39, %cst_49 {dimension_numbers = #tpu.dot_dimension_numbers<[1], [0], [0], [1], [0, 0, 1, 1], [], []>} : vector<512x128xf32>, vector<128x128xf32>, vector<512x128xf32> -> vector<512x128xf32>
    %41 = arith.addf %35, %40 : vector<512x128xf32>
    %c0_50 = arith.constant 0 : index
    %c2_51 = arith.constant 2 : index
    %c1_52 = arith.constant 1 : index
    %c0_53 = arith.constant 0 : index
    %42 = vector.load %arg1[%c0_50, %c2_51, %c1_52, %c0_53] : memref<2x18x18x128xf32, #tpu.memory_space<vmem>>, vector<2x16x16x128xf32>
    %43 = vector.shape_cast %42 : vector<2x16x16x128xf32> to vector<512x128xf32>
    %c7 = arith.constant 7 : index
    %c0_54 = arith.constant 0 : index
    %c0_55 = arith.constant 0 : index
    %44 = vector.load %arg2[%c7, %c0_54, %c0_55] : memref<9x128x128xf32, #tpu.memory_space<vmem>>, vector<1x128x128xf32>
    %45 = vector.shape_cast %44 : vector<1x128x128xf32> to vector<128x128xf32>
    %cst_56 = arith.constant dense<0.000000e+00> : vector<512x128xf32>
    %46 = tpu.matmul %43, %45, %cst_56 {dimension_numbers = #tpu.dot_dimension_numbers<[1], [0], [0], [1], [0, 0, 1, 1], [], []>} : vector<512x128xf32>, vector<128x128xf32>, vector<512x128xf32> -> vector<512x128xf32>
    %47 = arith.addf %41, %46 : vector<512x128xf32>
    %c0_57 = arith.constant 0 : index
    %c2_58 = arith.constant 2 : index
    %c2_59 = arith.constant 2 : index
    %c0_60 = arith.constant 0 : index
    %48 = vector.load %arg1[%c0_57, %c2_58, %c2_59, %c0_60] : memref<2x18x18x128xf32, #tpu.memory_space<vmem>>, vector<2x16x16x128xf32>
    %49 = vector.shape_cast %48 : vector<2x16x16x128xf32> to vector<512x128xf32>
    %c8 = arith.constant 8 : index
    %c0_61 = arith.constant 0 : index
    %c0_62 = arith.constant 0 : index
    %50 = vector.load %arg2[%c8, %c0_61, %c0_62] : memref<9x128x128xf32, #tpu.memory_space<vmem>>, vector<1x128x128xf32>
    %51 = vector.shape_cast %50 : vector<1x128x128xf32> to vector<128x128xf32>
    %cst_63 = arith.constant dense<0.000000e+00> : vector<512x128xf32>
    %52 = tpu.matmul %49, %51, %cst_63 {dimension_numbers = #tpu.dot_dimension_numbers<[1], [0], [0], [1], [0, 0, 1, 1], [], []>} : vector<512x128xf32>, vector<128x128xf32>, vector<512x128xf32> -> vector<512x128xf32>
    %53 = arith.addf %47, %52 : vector<512x128xf32>
    %54 = vector.broadcast %0 : vector<1x128xf32> to vector<512x128xf32>
    %55 = arith.addf %53, %54 : vector<512x128xf32>
    %c0_64 = arith.constant 0 : index
    %c0_65 = arith.constant 0 : index
    %56 = vector.load %arg4[%c0_64, %c0_65] : memref<1x128xf32, #tpu.memory_space<vmem>>, vector<1x128xf32>
    %c0_66 = arith.constant 0 : index
    %c0_67 = arith.constant 0 : index
    %57 = vector.load %arg5[%c0_66, %c0_67] : memref<1x128xf32, #tpu.memory_space<vmem>>, vector<1x128xf32>
    %cst_68 = arith.constant dense<0.000000e+00> : vector<128xf32>
    %58 = vector.multi_reduction <add>, %55, %cst_68 [0] : vector<512x128xf32> to vector<128xf32>
    %59 = vector.shape_cast %58 : vector<128xf32> to vector<1x128xf32>
    %cst_69 = arith.constant 5.120000e+02 : f32
    %60 = vector.broadcast %cst_69 : f32 to vector<1x128xf32>
    %61 = arith.divf %59, %60 : vector<1x128xf32>
    %62 = vector.broadcast %61 : vector<1x128xf32> to vector<512x128xf32>
    %63 = arith.subf %55, %62 : vector<512x128xf32>
    %64 = arith.mulf %63, %63 : vector<512x128xf32>
    %cst_70 = arith.constant dense<0.000000e+00> : vector<128xf32>
    %65 = vector.multi_reduction <add>, %64, %cst_70 [0] : vector<512x128xf32> to vector<128xf32>
    %66 = vector.shape_cast %65 : vector<128xf32> to vector<1x128xf32>
    %cst_71 = arith.constant 5.120000e+02 : f32
    %67 = vector.broadcast %cst_71 : f32 to vector<1x128xf32>
    %68 = arith.divf %66, %67 : vector<1x128xf32>
    %69 = vector.broadcast %61 : vector<1x128xf32> to vector<512x128xf32>
    %70 = arith.subf %55, %69 : vector<512x128xf32>
    %cst_72 = arith.constant 9.99999974E-6 : f32
    %71 = vector.broadcast %cst_72 : f32 to vector<1x128xf32>
    %72 = arith.addf %68, %71 : vector<1x128xf32>
    %73 = math.rsqrt %72 : vector<1x128xf32>
    %74 = vector.broadcast %73 : vector<1x128xf32> to vector<512x128xf32>
    %75 = arith.mulf %70, %74 : vector<512x128xf32>
    %76 = vector.broadcast %56 : vector<1x128xf32> to vector<512x128xf32>
    %77 = arith.mulf %75, %76 : vector<512x128xf32>
    %78 = vector.broadcast %57 : vector<1x128xf32> to vector<512x128xf32>
    %79 = arith.addf %77, %78 : vector<512x128xf32>
    %cst_73 = arith.constant 0.000000e+00 : f32
    %80 = vector.broadcast %cst_73 : f32 to vector<512x128xf32>
    %81 = arith.maximumf %79, %80 : vector<512x128xf32>
    %cst_74 = arith.constant 0.000000e+00 : f32
    %82 = vector.broadcast %cst_74 : f32 to vector<2x18x18x128xf32>
    %c0_75 = arith.constant 0 : index
    %c0_76 = arith.constant 0 : index
    %c0_77 = arith.constant 0 : index
    %c0_78 = arith.constant 0 : index
    %83 = vector.load %arg11[%c0_75, %c0_76, %c0_77, %c0_78] : memref<2x18x18x128xf32, #tpu.memory_space<vmem>>, vector<2x18x18x128xf32>
    tpu.vector_store %arg11[%c0_75, %c0_76, %c0_77, %c0_78], %82 {strides = array<i32>} : memref<2x18x18x128xf32, #tpu.memory_space<vmem>>, vector<2x18x18x128xf32>,
    %84 = vector.shape_cast %81 : vector<512x128xf32> to vector<2x16x16x128xf32>
    %c0_79 = arith.constant 0 : index
    %c1_80 = arith.constant 1 : index
    %c1_81 = arith.constant 1 : index
    %c0_82 = arith.constant 0 : index
    %85 = vector.load %arg11[%c0_79, %c1_80, %c1_81, %c0_82] : memref<2x18x18x128xf32, #tpu.memory_space<vmem>>, vector<2x16x16x128xf32>
    tpu.vector_store %arg11[%c0_79, %c1_80, %c1_81, %c0_82], %84 {strides = array<i32>} : memref<2x18x18x128xf32, #tpu.memory_space<vmem>>, vector<2x16x16x128xf32>,
    %c0_83 = arith.constant 0 : index
    %c0_84 = arith.constant 0 : index
    %86 = vector.load %arg7[%c0_83, %c0_84] : memref<1x128xf32, #tpu.memory_space<vmem>>, vector<1x128xf32>
    %c0_85 = arith.constant 0 : index
    %c0_86 = arith.constant 0 : index
    %c0_87 = arith.constant 0 : index
    %c0_88 = arith.constant 0 : index
    %87 = vector.load %arg11[%c0_85, %c0_86, %c0_87, %c0_88] : memref<2x18x18x128xf32, #tpu.memory_space<vmem>>, vector<2x16x16x128xf32>
    %88 = vector.shape_cast %87 : vector<2x16x16x128xf32> to vector<512x128xf32>
    %c0_89 = arith.constant 0 : index
    %c0_90 = arith.constant 0 : index
    %c0_91 = arith.constant 0 : index
    %89 = vector.load %arg6[%c0_89, %c0_90, %c0_91] : memref<9x128x128xf32, #tpu.memory_space<vmem>>, vector<1x128x128xf32>
    %90 = vector.shape_cast %89 : vector<1x128x128xf32> to vector<128x128xf32>
    %cst_92 = arith.constant dense<0.000000e+00> : vector<512x128xf32>
    %91 = tpu.matmul %88, %90, %cst_92 {dimension_numbers = #tpu.dot_dimension_numbers<[1], [0], [0], [1], [0, 0, 1, 1], [], []>} : vector<512x128xf32>, vector<128x128xf32>, vector<512x128xf32> -> vector<512x128xf32>
    %c0_93 = arith.constant 0 : index
    %c0_94 = arith.constant 0 : index
    %c1_95 = arith.constant 1 : index
    %c0_96 = arith.constant 0 : index
    %92 = vector.load %arg11[%c0_93, %c0_94, %c1_95, %c0_96] : memref<2x18x18x128xf32, #tpu.memory_space<vmem>>, vector<2x16x16x128xf32>
    %93 = vector.shape_cast %92 : vector<2x16x16x128xf32> to vector<512x128xf32>
    %c1_97 = arith.constant 1 : index
    %c0_98 = arith.constant 0 : index
    %c0_99 = arith.constant 0 : index
    %94 = vector.load %arg6[%c1_97, %c0_98, %c0_99] : memref<9x128x128xf32, #tpu.memory_space<vmem>>, vector<1x128x128xf32>
    %95 = vector.shape_cast %94 : vector<1x128x128xf32> to vector<128x128xf32>
    %cst_100 = arith.constant dense<0.000000e+00> : vector<512x128xf32>
    %96 = tpu.matmul %93, %95, %cst_100 {dimension_numbers = #tpu.dot_dimension_numbers<[1], [0], [0], [1], [0, 0, 1, 1], [], []>} : vector<512x128xf32>, vector<128x128xf32>, vector<512x128xf32> -> vector<512x128xf32>
    %97 = arith.addf %91, %96 : vector<512x128xf32>
    %c0_101 = arith.constant 0 : index
    %c0_102 = arith.constant 0 : index
    %c2_103 = arith.constant 2 : index
    %c0_104 = arith.constant 0 : index
    %98 = vector.load %arg11[%c0_101, %c0_102, %c2_103, %c0_104] : memref<2x18x18x128xf32, #tpu.memory_space<vmem>>, vector<2x16x16x128xf32>
    %99 = vector.shape_cast %98 : vector<2x16x16x128xf32> to vector<512x128xf32>
    %c2_105 = arith.constant 2 : index
    %c0_106 = arith.constant 0 : index
    %c0_107 = arith.constant 0 : index
    %100 = vector.load %arg6[%c2_105, %c0_106, %c0_107] : memref<9x128x128xf32, #tpu.memory_space<vmem>>, vector<1x128x128xf32>
    %101 = vector.shape_cast %100 : vector<1x128x128xf32> to vector<128x128xf32>
    %cst_108 = arith.constant dense<0.000000e+00> : vector<512x128xf32>
    %102 = tpu.matmul %99, %101, %cst_108 {dimension_numbers = #tpu.dot_dimension_numbers<[1], [0], [0], [1], [0, 0, 1, 1], [], []>} : vector<512x128xf32>, vector<128x128xf32>, vector<512x128xf32> -> vector<512x128xf32>
    %103 = arith.addf %97, %102 : vector<512x128xf32>
    %c0_109 = arith.constant 0 : index
    %c1_110 = arith.constant 1 : index
    %c0_111 = arith.constant 0 : index
    %c0_112 = arith.constant 0 : index
    %104 = vector.load %arg11[%c0_109, %c1_110, %c0_111, %c0_112] : memref<2x18x18x128xf32, #tpu.memory_space<vmem>>, vector<2x16x16x128xf32>
    %105 = vector.shape_cast %104 : vector<2x16x16x128xf32> to vector<512x128xf32>
    %c3_113 = arith.constant 3 : index
    %c0_114 = arith.constant 0 : index
    %c0_115 = arith.constant 0 : index
    %106 = vector.load %arg6[%c3_113, %c0_114, %c0_115] : memref<9x128x128xf32, #tpu.memory_space<vmem>>, vector<1x128x128xf32>
    %107 = vector.shape_cast %106 : vector<1x128x128xf32> to vector<128x128xf32>
    %cst_116 = arith.constant dense<0.000000e+00> : vector<512x128xf32>
    %108 = tpu.matmul %105, %107, %cst_116 {dimension_numbers = #tpu.dot_dimension_numbers<[1], [0], [0], [1], [0, 0, 1, 1], [], []>} : vector<512x128xf32>, vector<128x128xf32>, vector<512x128xf32> -> vector<512x128xf32>
    %109 = arith.addf %103, %108 : vector<512x128xf32>
    %c0_117 = arith.constant 0 : index
    %c1_118 = arith.constant 1 : index
    %c1_119 = arith.constant 1 : index
    %c0_120 = arith.constant 0 : index
    %110 = vector.load %arg11[%c0_117, %c1_118, %c1_119, %c0_120] : memref<2x18x18x128xf32, #tpu.memory_space<vmem>>, vector<2x16x16x128xf32>
    %111 = vector.shape_cast %110 : vector<2x16x16x128xf32> to vector<512x128xf32>
    %c4_121 = arith.constant 4 : index
    %c0_122 = arith.constant 0 : index
    %c0_123 = arith.constant 0 : index
    %112 = vector.load %arg6[%c4_121, %c0_122, %c0_123] : memref<9x128x128xf32, #tpu.memory_space<vmem>>, vector<1x128x128xf32>
    %113 = vector.shape_cast %112 : vector<1x128x128xf32> to vector<128x128xf32>
    %cst_124 = arith.constant dense<0.000000e+00> : vector<512x128xf32>
    %114 = tpu.matmul %111, %113, %cst_124 {dimension_numbers = #tpu.dot_dimension_numbers<[1], [0], [0], [1], [0, 0, 1, 1], [], []>} : vector<512x128xf32>, vector<128x128xf32>, vector<512x128xf32> -> vector<512x128xf32>
    %115 = arith.addf %109, %114 : vector<512x128xf32>
    %c0_125 = arith.constant 0 : index
    %c1_126 = arith.constant 1 : index
    %c2_127 = arith.constant 2 : index
    %c0_128 = arith.constant 0 : index
    %116 = vector.load %arg11[%c0_125, %c1_126, %c2_127, %c0_128] : memref<2x18x18x128xf32, #tpu.memory_space<vmem>>, vector<2x16x16x128xf32>
    %117 = vector.shape_cast %116 : vector<2x16x16x128xf32> to vector<512x128xf32>
    %c5_129 = arith.constant 5 : index
    %c0_130 = arith.constant 0 : index
    %c0_131 = arith.constant 0 : index
    %118 = vector.load %arg6[%c5_129, %c0_130, %c0_131] : memref<9x128x128xf32, #tpu.memory_space<vmem>>, vector<1x128x128xf32>
    %119 = vector.shape_cast %118 : vector<1x128x128xf32> to vector<128x128xf32>
    %cst_132 = arith.constant dense<0.000000e+00> : vector<512x128xf32>
    %120 = tpu.matmul %117, %119, %cst_132 {dimension_numbers = #tpu.dot_dimension_numbers<[1], [0], [0], [1], [0, 0, 1, 1], [], []>} : vector<512x128xf32>, vector<128x128xf32>, vector<512x128xf32> -> vector<512x128xf32>
    %121 = arith.addf %115, %120 : vector<512x128xf32>
    %c0_133 = arith.constant 0 : index
    %c2_134 = arith.constant 2 : index
    %c0_135 = arith.constant 0 : index
    %c0_136 = arith.constant 0 : index
    %122 = vector.load %arg11[%c0_133, %c2_134, %c0_135, %c0_136] : memref<2x18x18x128xf32, #tpu.memory_space<vmem>>, vector<2x16x16x128xf32>
    %123 = vector.shape_cast %122 : vector<2x16x16x128xf32> to vector<512x128xf32>
    %c6_137 = arith.constant 6 : index
    %c0_138 = arith.constant 0 : index
    %c0_139 = arith.constant 0 : index
    %124 = vector.load %arg6[%c6_137, %c0_138, %c0_139] : memref<9x128x128xf32, #tpu.memory_space<vmem>>, vector<1x128x128xf32>
    %125 = vector.shape_cast %124 : vector<1x128x128xf32> to vector<128x128xf32>
    %cst_140 = arith.constant dense<0.000000e+00> : vector<512x128xf32>
    %126 = tpu.matmul %123, %125, %cst_140 {dimension_numbers = #tpu.dot_dimension_numbers<[1], [0], [0], [1], [0, 0, 1, 1], [], []>} : vector<512x128xf32>, vector<128x128xf32>, vector<512x128xf32> -> vector<512x128xf32>
    %127 = arith.addf %121, %126 : vector<512x128xf32>
    %c0_141 = arith.constant 0 : index
    %c2_142 = arith.constant 2 : index
    %c1_143 = arith.constant 1 : index
    %c0_144 = arith.constant 0 : index
    %128 = vector.load %arg11[%c0_141, %c2_142, %c1_143, %c0_144] : memref<2x18x18x128xf32, #tpu.memory_space<vmem>>, vector<2x16x16x128xf32>
    %129 = vector.shape_cast %128 : vector<2x16x16x128xf32> to vector<512x128xf32>
    %c7_145 = arith.constant 7 : index
    %c0_146 = arith.constant 0 : index
    %c0_147 = arith.constant 0 : index
    %130 = vector.load %arg6[%c7_145, %c0_146, %c0_147] : memref<9x128x128xf32, #tpu.memory_space<vmem>>, vector<1x128x128xf32>
    %131 = vector.shape_cast %130 : vector<1x128x128xf32> to vector<128x128xf32>
    %cst_148 = arith.constant dense<0.000000e+00> : vector<512x128xf32>
    %132 = tpu.matmul %129, %131, %cst_148 {dimension_numbers = #tpu.dot_dimension_numbers<[1], [0], [0], [1], [0, 0, 1, 1], [], []>} : vector<512x128xf32>, vector<128x128xf32>, vector<512x128xf32> -> vector<512x128xf32>
    %133 = arith.addf %127, %132 : vector<512x128xf32>
    %c0_149 = arith.constant 0 : index
    %c2_150 = arith.constant 2 : index
    %c2_151 = arith.constant 2 : index
    %c0_152 = arith.constant 0 : index
    %134 = vector.load %arg11[%c0_149, %c2_150, %c2_151, %c0_152] : memref<2x18x18x128xf32, #tpu.memory_space<vmem>>, vector<2x16x16x128xf32>
    %135 = vector.shape_cast %134 : vector<2x16x16x128xf32> to vector<512x128xf32>
    %c8_153 = arith.constant 8 : index
    %c0_154 = arith.constant 0 : index
    %c0_155 = arith.constant 0 : index
    %136 = vector.load %arg6[%c8_153, %c0_154, %c0_155] : memref<9x128x128xf32, #tpu.memory_space<vmem>>, vector<1x128x128xf32>
    %137 = vector.shape_cast %136 : vector<1x128x128xf32> to vector<128x128xf32>
    %cst_156 = arith.constant dense<0.000000e+00> : vector<512x128xf32>
    %138 = tpu.matmul %135, %137, %cst_156 {dimension_numbers = #tpu.dot_dimension_numbers<[1], [0], [0], [1], [0, 0, 1, 1], [], []>} : vector<512x128xf32>, vector<128x128xf32>, vector<512x128xf32> -> vector<512x128xf32>
    %139 = arith.addf %133, %138 : vector<512x128xf32>
    %140 = vector.broadcast %86 : vector<1x128xf32> to vector<512x128xf32>
    %141 = arith.addf %139, %140 : vector<512x128xf32>
    %c0_157 = arith.constant 0 : index
    %c0_158 = arith.constant 0 : index
    %142 = vector.load %arg8[%c0_157, %c0_158] : memref<1x128xf32, #tpu.memory_space<vmem>>, vector<1x128xf32>
    %c0_159 = arith.constant 0 : index
    %c0_160 = arith.constant 0 : index
    %143 = vector.load %arg9[%c0_159, %c0_160] : memref<1x128xf32, #tpu.memory_space<vmem>>, vector<1x128xf32>
    %cst_161 = arith.constant dense<0.000000e+00> : vector<128xf32>
    %144 = vector.multi_reduction <add>, %141, %cst_161 [0] : vector<512x128xf32> to vector<128xf32>
    %145 = vector.shape_cast %144 : vector<128xf32> to vector<1x128xf32>
    %cst_162 = arith.constant 5.120000e+02 : f32
    %146 = vector.broadcast %cst_162 : f32 to vector<1x128xf32>
    %147 = arith.divf %145, %146 : vector<1x128xf32>
    %148 = vector.broadcast %147 : vector<1x128xf32> to vector<512x128xf32>
    %149 = arith.subf %141, %148 : vector<512x128xf32>
    %150 = arith.mulf %149, %149 : vector<512x128xf32>
    %cst_163 = arith.constant dense<0.000000e+00> : vector<128xf32>
    %151 = vector.multi_reduction <add>, %150, %cst_163 [0] : vector<512x128xf32> to vector<128xf32>
    %152 = vector.shape_cast %151 : vector<128xf32> to vector<1x128xf32>
    %cst_164 = arith.constant 5.120000e+02 : f32
    %153 = vector.broadcast %cst_164 : f32 to vector<1x128xf32>
    %154 = arith.divf %152, %153 : vector<1x128xf32>
    %155 = vector.broadcast %147 : vector<1x128xf32> to vector<512x128xf32>
    %156 = arith.subf %141, %155 : vector<512x128xf32>
    %cst_165 = arith.constant 9.99999974E-6 : f32
    %157 = vector.broadcast %cst_165 : f32 to vector<1x128xf32>
    %158 = arith.addf %154, %157 : vector<1x128xf32>
    %159 = math.rsqrt %158 : vector<1x128xf32>
    %160 = vector.broadcast %159 : vector<1x128xf32> to vector<512x128xf32>
    %161 = arith.mulf %156, %160 : vector<512x128xf32>
    %162 = vector.broadcast %142 : vector<1x128xf32> to vector<512x128xf32>
    %163 = arith.mulf %161, %162 : vector<512x128xf32>
    %164 = vector.broadcast %143 : vector<1x128xf32> to vector<512x128xf32>
    %165 = arith.addf %163, %164 : vector<512x128xf32>
    %cst_166 = arith.constant 0.000000e+00 : f32
    %166 = vector.broadcast %cst_166 : f32 to vector<512x128xf32>
    %167 = arith.maximumf %165, %166 : vector<512x128xf32>
    %c0_167 = arith.constant 0 : index
    %c0_168 = arith.constant 0 : index
    %168 = vector.load %arg10[%c0_167, %c0_168] : memref<512x128xf32, #tpu.memory_space<vmem>>, vector<512x128xf32>
    tpu.vector_store %arg10[%c0_167, %c0_168], %167 {strides = array<i32>} : memref<512x128xf32, #tpu.memory_space<vmem>>, vector<512x128xf32>,
    return
  }
  func.func @transform_0(%arg0: i32) -> (i32, i32, i32, i32) {
    %c0_i32 = arith.constant 0 : i32
    %c0_i32_0 = arith.constant 0 : i32
    %c0_i32_1 = arith.constant 0 : i32
    %c0_i32_2 = arith.constant 0 : i32
    %c0_i32_3 = arith.constant 0 : i32
    return %c0_i32, %c0_i32_0, %c0_i32_1, %c0_i32_2 : i32, i32, i32, i32
  }
  func.func @transform_1(%arg0: i32) -> (i32, i32, i32) {
    %c0_i32 = arith.constant 0 : i32
    %c0_i32_0 = arith.constant 0 : i32
    %c0_i32_1 = arith.constant 0 : i32
    %c0_i32_2 = arith.constant 0 : i32
    return %c0_i32, %c0_i32_0, %c0_i32_1 : i32, i32, i32
  }
  func.func @transform_2(%arg0: i32) -> (i32, i32) {
    %c0_i32 = arith.constant 0 : i32
    %c0_i32_0 = arith.constant 0 : i32
    %c0_i32_1 = arith.constant 0 : i32
    return %c0_i32, %c0_i32_0 : i32, i32
  }
  func.func @transform_3(%arg0: i32) -> (i32, i32) {
    %c0_i32 = arith.constant 0 : i32
    %c0_i32_0 = arith.constant 0 : i32
    %c0_i32_1 = arith.constant 0 : i32
    return %c0_i32, %c0_i32_0 : i32, i32
  }
  func.func @transform_4(%arg0: i32) -> (i32, i32) {
    %c0_i32 = arith.constant 0 : i32
    %c0_i32_0 = arith.constant 0 : i32
    %c0_i32_1 = arith.constant 0 : i32
    return %c0_i32, %c0_i32_0 : i32, i32
  }
  func.func @transform_5(%arg0: i32) -> (i32, i32, i32) {
    %c0_i32 = arith.constant 0 : i32
    %c0_i32_0 = arith.constant 0 : i32
    %c0_i32_1 = arith.constant 0 : i32
    %c0_i32_2 = arith.constant 0 : i32
    return %c0_i32, %c0_i32_0, %c0_i32_1 : i32, i32, i32
  }
  func.func @transform_6(%arg0: i32) -> (i32, i32) {
    %c0_i32 = arith.constant 0 : i32
    %c0_i32_0 = arith.constant 0 : i32
    %c0_i32_1 = arith.constant 0 : i32
    return %c0_i32, %c0_i32_0 : i32, i32
  }
  func.func @transform_7(%arg0: i32) -> (i32, i32) {
    %c0_i32 = arith.constant 0 : i32
    %c0_i32_0 = arith.constant 0 : i32
    %c0_i32_1 = arith.constant 0 : i32
    return %c0_i32, %c0_i32_0 : i32, i32
  }
  func.func @transform_8(%arg0: i32) -> (i32, i32) {
    %c0_i32 = arith.constant 0 : i32
    %c0_i32_0 = arith.constant 0 : i32
    %c0_i32_1 = arith.constant 0 : i32
    return %c0_i32, %c0_i32_0 : i32, i32
  }
  func.func @transform_9(%arg0: i32) -> (i32, i32) {
    %c0_i32 = arith.constant 0 : i32
    %c0_i32_0 = arith.constant 0 : i32
    %c0_i32_1 = arith.constant 0 : i32
    return %c0_i32, %c0_i32_0 : i32, i32
  }
}

</mosaic_0001>

<bundles_post_ra>
// kernel: tile.8
= control target key start
LH: loop header
LB: loop body
LE: loop exit
PB: predicated region body
PF: predicated region fallthrough
CT: control target
= control target key end

     0   :  { %s22_s0 = inlined_call_operand.vmem [shape: f32[2], index: 0, kind: input, shape index: {}]   ;;  %s23_s1 = inlined_call_operand.vmem [shape: f32[4,2], index: 1, kind: output, shape index: {}]  }
   0x1   :  { %v4_v0 = vld [vmem:[%s22_s0] ss:$0 sm:$0xff] }
   0x2   :  { %5 = vst [vmem:[%s23_s1] sm:$0xf] %v4_v0 }

// kernel: tile.9
= control target key start
LH: loop header
LB: loop body
LE: loop exit
PB: predicated region body
PF: predicated region fallthrough
CT: control target
= control target key end

     0   :  { %vm7_vm0 = vcmask 15360   ;;  %s37_s8 = smov 2   ;;  %s38_s9 = smov 4   ;;  %vm13_vm1 = vcmask 64560   ;;  %vm19_vm2 = vcmask 48160   ;;  %vm25_vm3 = vcmask 31760   ;;  %s55_s0 = inlined_call_operand.vmem [shape: f32[4,2], index: 0, kind: input, shape index: {}]   ;;  %s56_s1 = inlined_call_operand.vmem [shape: f32[1,8], index: 1, kind: output, shape index: {}]  }
   0x1   :  { %v4_v0 = vld [vmem:[%s55_s0] sm:$0xf]  ;;  %s36_s0 = smov 6  }
   0x2   :  { %5 = vst [vmem:[#allocation1] sm:$0xf] %v4_v0 }
   0x9   :  { %v10_v1 = vld [vmem:[#allocation1 + $0x3] sm:$0x1]   ;;  %v22_v2 = vld [vmem:[#allocation1 + $0x1] sm:$0x1]   ;;  %v6_v3 = vld [vmem:[#allocation1] sm:$0x1]  }
   0xa   :  { %11 = vrot.lane.b32.xlu0 %v10_v1, %s36_s0  ;;  %23 = vrot.lane.b32.xlu1 %v22_v2, %s37_s8  ;;  %v16_v4 = vld [vmem:[#allocation1 + $0x2] sm:$0x1]   ;;  %8 = vst.msk [vmem:[#allocation0] sm:$0x1] %vm7_vm0, %v6_v3  }
   0xe   :  { %17 = vrot.lane.b32.xlu0 %v16_v4, %s38_s9 }
  0x7c   :  { %v12_v5 = vpop.permute.xlu0 %11   ;;  %v24_v6 = vpop.permute.xlu1 %23  }
  0x7d   :  { %14 = vst.msk [vmem:[#allocation0] sm:$0x1] %vm13_vm1, %v12_v5  }
  0x80   :  { %v18_v7 = vpop.permute.xlu0 %17  }
  0x81   :  { %20 = vst.msk [vmem:[#allocation0] sm:$0x1] %vm19_vm2, %v18_v7  }
  0x82   :  { %26 = vst.msk [vmem:[#allocation0] sm:$0x1] %vm25_vm3, %v24_v6  }
  0x89   :  { %v30_v8 = vld [vmem:[#allocation0] sm:$0x1] }
  0x8a   :  { %32 = vst [vmem:[%s56_s1] sm:$0x1] %v30_v8 }

// kernel: unet_block_b_forward.2
= control target key start
LH: loop header
LB: loop body
LE: loop exit
PB: predicated region body
PF: predicated region fallthrough
CT: control target
= control target key end

     0   :  { %s522_s1 = inlined_call_operand.vmem [shape: f32[128,128], index: 1, kind: input, shape index: {}]   ;;  %s523_s0 = inlined_call_operand.vmem [shape: f32[128,128], index: 0, kind: input, shape index: {}]   ;;  %s524_s2 = inlined_call_operand.vmem [shape: f32[1,128], index: 2, kind: input, shape index: {}]   ;;  %s525_s3 = inlined_call_operand.vmem [shape: f32[128,128], index: 3, kind: output, shape index: {}]  }
   0x1   :  { %v30_v0 = vld [vmem:[%s522_s1] sm:$0xff]  ;;  %v31_v1 = vld [vmem:[%s522_s1 + $0x8] sm:$0xff]  ;;  %v32_v2 = vld [vmem:[%s522_s1 + $0x10] sm:$0xff] }
   0x2   :  { %v307_v3 = vpack.c.bf16 %v31_v1, %v30_v0  ;;  %v33_v4 = vld [vmem:[%s522_s1 + $0x18] sm:$0xff]  ;;  %v34_v6 = vld [vmem:[%s522_s1 + $0x20] sm:$0xff]  ;;  %v35_v7 = vld [vmem:[%s522_s1 + $0x28] sm:$0xff] }
   0x3   :  { %v311_v5 = vpack.c.bf16 %v33_v4, %v32_v2  ;;  %v315_v8 = vpack.c.bf16 %v35_v7, %v34_v6  ;;  %v14_v9 = vld [vmem:[%s523_s0] sm:$0xff]  ;;  %v36_v11 = vld [vmem:[%s522_s1 + $0x30] sm:$0xff]  ;;  %v37_v12 = vld [vmem:[%s522_s1 + $0x38] sm:$0xff] }
   0x4   :  { %308 = vmatprep.subr.bf16.mxu0 %v307_v3  ;;  %339 = vmatprep.subr.bf16.mxu1 %v307_v3  ;;  %v22_v10 = vld [vmem:[%s523_s0 + $0x40] sm:$0xff]  ;;  %v319_v13 = vpack.c.bf16 %v37_v12, %v36_v11  ;;  %v39_v15 = vld [vmem:[%s522_s1 + $0x48] sm:$0xff]  ;;  %v40_v17 = vld [vmem:[%s522_s1 + $0x50] sm:$0xff] }
   0x5   :  { %310 = vmatpush3.bf16.msra.mxu0 %v307_v3  ;;  %347 = vmatpush3.bf16.msra.mxu1 %v307_v3  ;;  %v38_v14 = vld [vmem:[%s522_s1 + $0x40] sm:$0xff]  ;;  %v41_v18 = vld [vmem:[%s522_s1 + $0x58] sm:$0xff]  ;;  %v43_v21 = vld [vmem:[%s522_s1 + $0x68] sm:$0xff] }
   0x6   :  { %312 = vmatprep.subr.bf16.mxu0 %v311_v5  ;;  %340 = vmatprep.subr.bf16.mxu1 %v311_v5  ;;  %v323_v16 = vpack.c.bf16 %v39_v15, %v38_v14  ;;  %v327_v19 = vpack.c.bf16 %v41_v18, %v40_v17  ;;  %v42_v20 = vld [vmem:[%s522_s1 + $0x60] sm:$0xff]  ;;  %v44_v23 = vld [vmem:[%s522_s1 + $0x70] sm:$0xff]  ;;  %v45_v24 = vld [vmem:[%s522_s1 + $0x78] sm:$0xff] }
   0x7   :  { %283 = vmatprep.mubr.f32.mxu0 %v14_v9  ;;  %295 = vmatprep.mubr.f32.mxu1 %v22_v10  ;;  %v331_v22 = vpack.c.bf16 %v43_v21, %v42_v20  ;;  %v335_v25 = vpack.c.bf16 %v45_v24, %v44_v23  ;;  %v15_v26 = vld [vmem:[%s523_s0 + $0x8] sm:$0xff]  ;;  %v16_v28 = vld [vmem:[%s523_s0 + $0x10] sm:$0xff]  ;;  %v17_v30 = vld [vmem:[%s523_s0 + $0x18] sm:$0xff] }
   0x8   :  { %v23_v27 = vld [vmem:[%s523_s0 + $0x48] sm:$0xff]  ;;  %v24_v29 = vld [vmem:[%s523_s0 + $0x50] sm:$0xff]  ;;  %v25_v31 = vld [vmem:[%s523_s0 + $0x58] sm:$0xff] }
   0x9   :  { %314 = vmatpush3.bf16.msra.mxu0 %v311_v5  ;;  %348 = vmatpush3.bf16.msra.mxu1 %v311_v5  ;;  %v18_v32 = vld [vmem:[%s523_s0 + $0x20] sm:$0xff]  ;;  %v19_v34 = vld [vmem:[%s523_s0 + $0x28] sm:$0xff]  ;;  %v20_v36 = vld [vmem:[%s523_s0 + $0x30] sm:$0xff] }
   0xa   :  { %316 = vmatprep.subr.bf16.mxu0 %v315_v8  ;;  %341 = vmatprep.subr.bf16.mxu1 %v315_v8  ;;  %v26_v33 = vld [vmem:[%s523_s0 + $0x60] sm:$0xff]  ;;  %v27_v35 = vld [vmem:[%s523_s0 + $0x68] sm:$0xff]  ;;  %v28_v37 = vld [vmem:[%s523_s0 + $0x70] sm:$0xff] }
   0xb   :  { %v21_v38 = vld [vmem:[%s523_s0 + $0x38] sm:$0xff]  ;;  %v218_v40 = vld [vmem:[%s524_s2] ss:$0 sm:$0xff] }
   0xc   :  { %v29_v39 = vld [vmem:[%s523_s0 + $0x78] sm:$0xff] }
   0xd   :  { %318 = vmatpush3.bf16.msra.mxu0 %v315_v8  ;;  %349 = vmatpush3.bf16.msra.mxu1 %v315_v8 }
   0xe   :  { %320 = vmatprep.subr.bf16.mxu0 %v319_v13  ;;  %342 = vmatprep.subr.bf16.mxu1 %v319_v13 }
  0x11   :  { %322 = vmatpush3.bf16.msra.mxu0 %v319_v13  ;;  %350 = vmatpush3.bf16.msra.mxu1 %v319_v13 }
  0x12   :  { %324 = vmatprep.subr.bf16.mxu0 %v323_v16  ;;  %343 = vmatprep.subr.bf16.mxu1 %v323_v16 }
  0x15   :  { %326 = vmatpush3.bf16.msra.mxu0 %v323_v16  ;;  %351 = vmatpush3.bf16.msra.mxu1 %v323_v16 }
  0x16   :  { %328 = vmatprep.subr.bf16.mxu0 %v327_v19  ;;  %344 = vmatprep.subr.bf16.mxu1 %v327_v19 }
  0x19   :  { %330 = vmatpush3.bf16.msra.mxu0 %v327_v19  ;;  %352 = vmatpush3.bf16.msra.mxu1 %v327_v19 }
  0x1a   :  { %332 = vmatprep.subr.bf16.mxu0 %v331_v22  ;;  %345 = vmatprep.subr.bf16.mxu1 %v331_v22 }
  0x1d   :  { %334 = vmatpush3.bf16.msra.mxu0 %v331_v22  ;;  %353 = vmatpush3.bf16.msra.mxu1 %v331_v22 }
  0x1e   :  { %336 = vmatprep.subr.bf16.mxu0 %v335_v25  ;;  %346 = vmatprep.subr.bf16.mxu1 %v335_v25 }
  0x21   :  { %338 = vmatpush3.bf16.msra.mxu0 %v335_v25  ;;  %354 = vmatpush3.bf16.msra.mxu1 %v335_v25 }
  0x24   :  { %284 = vmatmul.mubr.f32.vlgmr.msra.gmra.mrb[0].mxu0 %v15_v26  ;;  %296 = vmatmul.mubr.f32.vlgmr.msra.gmra.mrb[0].mxu1 %v23_v27 }
  0x25   :  { %286 = vmatprep.mubr.f32.mxu0 %v16_v28  ;;  %298 = vmatprep.mubr.f32.mxu1 %v24_v29 }
  0x28   :  { %287 = vmatmul.mubr.f32.gmra.mrb[2].mxu0 %v17_v30  ;;  %299 = vmatmul.mubr.f32.gmra.mrb[2].mxu1 %v25_v31 }
  0x29   :  { %289 = vmatprep.mubr.f32.mxu0 %v18_v32  ;;  %301 = vmatprep.mubr.f32.mxu1 %v26_v33 }
  0x2c   :  { %290 = vmatmul.mubr.f32.gmra.mrb[4].mxu0 %v19_v34  ;;  %302 = vmatmul.mubr.f32.gmra.mrb[4].mxu1 %v27_v35 }
  0x2d   :  { %292 = vmatprep.mubr.f32.mxu0 %v20_v36  ;;  %304 = vmatprep.mubr.f32.mxu1 %v28_v37 }
  0x30   :  { %293 = vmatmul.mubr.f32.gmra.mrb[6].mxu0 %v21_v38  ;;  %305 = vmatmul.mubr.f32.gmra.mrb[6].mxu1 %v29_v39 }
  0xf7   :  { %v285_v41 = vpop.f32.mrb[0].mxu0  ;;  %v297_v42 = vpop.f32.mrb[0].mxu1 }
  0xf8   :  { %v125_v43 = vadd.f32 %v285_v41, %v218_v40  ;;  %v165_v44 = vadd.f32 %v297_v42, %v218_v40  ;;  %v119_v45 = vpop.f32.mrb[1].mxu0  ;;  %v159_v46 = vpop.f32.mrb[1].mxu1 }
  0xf9   :  { %v120_v47 = vadd.f32 %v218_v40, %v119_v45  ;;  %v160_v48 = vadd.f32 %v218_v40, %v159_v46 }
  0xfa   :  { %199 = vst [vmem:[%s525_s3 + $0x8] sm:$0xff] %v125_v43  ;;  %207 = vst [vmem:[%s525_s3 + $0x48] sm:$0xff] %v165_v44 }
  0xfb   :  { %198 = vst [vmem:[%s525_s3] sm:$0xff] %v120_v47  ;;  %206 = vst [vmem:[%s525_s3 + $0x40] sm:$0xff] %v160_v48  ;;  %v288_v49 = vpop.f32.mrb[2].mxu0  ;;  %v300_v50 = vpop.f32.mrb[2].mxu1 }
  0xfc   :  { %v135_v51 = vadd.f32 %v288_v49, %v218_v40  ;;  %v175_v52 = vadd.f32 %v300_v50, %v218_v40  ;;  %v129_v53 = vpop.f32.mrb[3].mxu0  ;;  %v169_v54 = vpop.f32.mrb[3].mxu1 }
  0xfd   :  { %v130_v55 = vadd.f32 %v218_v40, %v129_v53  ;;  %v170_v56 = vadd.f32 %v218_v40, %v169_v54 }
  0xfe   :  { %201 = vst [vmem:[%s525_s3 + $0x18] sm:$0xff] %v135_v51  ;;  %209 = vst [vmem:[%s525_s3 + $0x58] sm:$0xff] %v175_v52 }
  0xff   :  { %200 = vst [vmem:[%s525_s3 + $0x10] sm:$0xff] %v130_v55  ;;  %208 = vst [vmem:[%s525_s3 + $0x50] sm:$0xff] %v170_v56  ;;  %v291_v57 = vpop.f32.mrb[4].mxu0  ;;  %v303_v58 = vpop.f32.mrb[4].mxu1 }
 0x100   :  { %v145_v59 = vadd.f32 %v291_v57, %v218_v40  ;;  %v185_v60 = vadd.f32 %v303_v58, %v218_v40  ;;  %v139_v61 = vpop.f32.mrb[5].mxu0  ;;  %v179_v62 = vpop.f32.mrb[5].mxu1 }
 0x101   :  { %v140_v63 = vadd.f32 %v218_v40, %v139_v61  ;;  %v180_v0 = vadd.f32 %v218_v40, %v179_v62 }
 0x102   :  { %203 = vst [vmem:[%s525_s3 + $0x28] sm:$0xff] %v145_v59  ;;  %211 = vst [vmem:[%s525_s3 + $0x68] sm:$0xff] %v185_v60 }
 0x103   :  { %202 = vst [vmem:[%s525_s3 + $0x20] sm:$0xff] %v140_v63  ;;  %210 = vst [vmem:[%s525_s3 + $0x60] sm:$0xff] %v180_v0  ;;  %v294_v1 = vpop.f32.mrb[6].mxu0  ;;  %v306_v2 = vpop.f32.mrb[6].mxu1 }
 0x104   :  { %v155_v3 = vadd.f32 %v294_v1, %v218_v40  ;;  %v195_v4 = vadd.f32 %v306_v2, %v218_v40  ;;  %v149_v5 = vpop.f32.mrb[7].mxu0  ;;  %v189_v6 = vpop.f32.mrb[7].mxu1 }
 0x105   :  { %v150_v7 = vadd.f32 %v218_v40, %v149_v5  ;;  %v190_v8 = vadd.f32 %v218_v40, %v189_v6 }
 0x106   :  { %205 = vst [vmem:[%s525_s3 + $0x38] sm:$0xff] %v155_v3  ;;  %213 = vst [vmem:[%s525_s3 + $0x78] sm:$0xff] %v195_v4 }
 0x107   :  { %204 = vst [vmem:[%s525_s3 + $0x30] sm:$0xff] %v150_v7  ;;  %212 = vst [vmem:[%s525_s3 + $0x70] sm:$0xff] %v190_v8 }

// kernel: unet_block_b_forward.3
= control target key start
LH: loop header
LB: loop body
LE: loop exit
PB: predicated region body
PF: predicated region fallthrough
CT: control target
= control target key end

     0   :  { %s23781_s1 = inlined_call_operand.vmem [shape: f32[9,128,128], index: 1, kind: input, shape index: {}]   ;;  %s23782_s0 = inlined_call_operand.vmem [shape: f32[2,18,18,128], index: 0, kind: input, shape index: {}]   ;;  %s23783_s2 = inlined_call_operand.vmem [shape: f32[1,128], index: 2, kind: input, shape index: {}]   ;;  %s23784_s5 = inlined_call_operand.vmem [shape: f32[9,128,128], index: 5, kind: input, shape index: {}]   ;;  %s23785_s3 = inlined_call_operand.vmem [shape: f32[1,128], index: 3, kind: input, shape index: {}]   ;;  %s23786_s4 = inlined_call_operand.vmem [shape: f32[1,128], index: 4, kind: input, shape index: {}]   ;;  %s23787_s6 = inlined_call_operand.vmem [shape: f32[1,128], index: 6, kind: input, shape index: {}]   ;;  %s23788_s7 = inlined_call_operand.vmem [shape: f32[1,128], index: 7, kind: input, shape index: {}]   ;;  %s23789_s8 = inlined_call_operand.vmem [shape: f32[1,128], index: 8, kind: input, shape index: {}]   ;;  %s23790_s9 = inlined_call_operand.vmem [shape: f32[512,128], index: 9, kind: output, shape index: {}]  }
   0x1   :  { %v10781_v0 = vld [vmem:[%s23781_s1 + $0x80] sm:$0xff]  ;;  %v10782_v1 = vld [vmem:[%s23781_s1 + $0x88] sm:$0xff]  ;;  %v10783_v2 = vld [vmem:[%s23781_s1 + $0x90] sm:$0xff] }
   0x2   :  { %v15171_v3 = vpack.c.bf16 %v10782_v1, %v10781_v0  ;;  %v10784_v4 = vld [vmem:[%s23781_s1 + $0x98] sm:$0xff]  ;;  %v10785_v6 = vld [vmem:[%s23781_s1 + $0xa0] sm:$0xff]  ;;  %v10786_v7 = vld [vmem:[%s23781_s1 + $0xa8] sm:$0xff] }
   0x3   :  { %v15175_v5 = vpack.c.bf16 %v10784_v4, %v10783_v2  ;;  %v15179_v8 = vpack.c.bf16 %v10786_v7, %v10785_v6  ;;  %v113_v9 = vld [vmem:[%s23782_s0 + $0x1] sm:$0xff]  ;;  %v10787_v10 = vld [vmem:[%s23781_s1 + $0xb0] sm:$0xff]  ;;  %v10788_v11 = vld [vmem:[%s23781_s1 + $0xb8] sm:$0xff] }
   0x4   :  { %15172 = vmatprep.subr.bf16.mxu0 %v15171_v3  ;;  %12899 = vmatprep.mubr.f32.mxu0 %v113_v9  ;;  %v15183_v12 = vpack.c.bf16 %v10788_v11, %v10787_v10  ;;  %v10789_v13 = vld [vmem:[%s23781_s1 + $0xc0] sm:$0xff]  ;;  %v10790_v14 = vld [vmem:[%s23781_s1 + $0xc8] sm:$0xff]  ;;  %v10791_v16 = vld [vmem:[%s23781_s1 + $0xd0] sm:$0xff] }
   0x5   :  { %15174 = vmatpush3.bf16.msra.mxu0 %v15171_v3  ;;  %v15187_v15 = vpack.c.bf16 %v10790_v14, %v10789_v13  ;;  %v10792_v17 = vld [vmem:[%s23781_s1 + $0xd8] sm:$0xff]  ;;  %v10793_v19 = vld [vmem:[%s23781_s1 + $0xe0] sm:$0xff]  ;;  %v10794_v20 = vld [vmem:[%s23781_s1 + $0xe8] sm:$0xff] }
   0x6   :  { %15176 = vmatprep.subr.bf16.mxu0 %v15175_v5  ;;  %v15191_v18 = vpack.c.bf16 %v10792_v17, %v10791_v16  ;;  %v15195_v21 = vpack.c.bf16 %v10794_v20, %v10793_v19  ;;  %v10795_v22 = vld [vmem:[%s23781_s1 + $0xf0] sm:$0xff]  ;;  %v10796_v23 = vld [vmem:[%s23781_s1 + $0xf8] sm:$0xff]  ;;  %v97_v25 = vld [vmem:[%s23781_s1] sm:$0xff] }
   0x7   :  { %v15199_v24 = vpack.c.bf16 %v10796_v23, %v10795_v22  ;;  %v98_v26 = vld [vmem:[%s23781_s1 + $0x8] sm:$0xff]  ;;  %v99_v28 = vld [vmem:[%s23781_s1 + $0x10] sm:$0xff]  ;;  %v100_v29 = vld [vmem:[%s23781_s1 + $0x18] sm:$0xff] }
   0x8   :  { %v15203_v27 = vpack.c.bf16 %v98_v26, %v97_v25  ;;  %v114_v30 = vld [vmem:[%s23782_s0 + $0x9] sm:$0xff]  ;;  %v115_v31 = vld [vmem:[%s23782_s0 + $0x19] sm:$0xff]  ;;  %v15207_v32 = vpack.c.bf16 %v100_v29, %v99_v28  ;;  %v116_v35 = vld [vmem:[%s23782_s0 + $0x21] sm:$0xff] }
   0x9   :  { %15178 = vmatpush3.bf16.msra.mxu0 %v15175_v5  ;;  %v101_v33 = vld [vmem:[%s23781_s1 + $0x20] sm:$0xff]  ;;  %v102_v34 = vld [vmem:[%s23781_s1 + $0x28] sm:$0xff]  ;;  %v117_v36 = vld [vmem:[%s23782_s0 + $0x31] sm:$0xff] }
   0xa   :  { %15180 = vmatprep.subr.bf16.mxu0 %v15179_v8  ;;  %v15211_v37 = vpack.c.bf16 %v102_v34, %v101_v33  ;;  %v103_v38 = vld [vmem:[%s23781_s1 + $0x30] sm:$0xff]  ;;  %v104_v39 = vld [vmem:[%s23781_s1 + $0x38] sm:$0xff]  ;;  %v105_v43 = vld [vmem:[%s23781_s1 + $0x40] sm:$0xff] }
   0xb   :  { %v118_v40 = vld [vmem:[%s23782_s0 + $0x39] sm:$0xff]  ;;  %v119_v41 = vld [vmem:[%s23782_s0 + $0x49] sm:$0xff]  ;;  %v15215_v42 = vpack.c.bf16 %v104_v39, %v103_v38  ;;  %v120_v45 = vld [vmem:[%s23782_s0 + $0x51] sm:$0xff] }
   0xc   :  { %v106_v44 = vld [vmem:[%s23781_s1 + $0x48] sm:$0xff]  ;;  %v107_v48 = vld [vmem:[%s23781_s1 + $0x50] sm:$0xff]  ;;  %v108_v49 = vld [vmem:[%s23781_s1 + $0x58] sm:$0xff] }
   0xd   :  { %15182 = vmatpush3.bf16.msra.mxu0 %v15179_v8  ;;  %v121_v46 = vld [vmem:[%s23782_s0 + $0x61] sm:$0xff]  ;;  %v15219_v47 = vpack.c.bf16 %v106_v44, %v105_v43  ;;  %v122_v50 = vld [vmem:[%s23782_s0 + $0x69] sm:$0xff]  ;;  %v123_v51 = vld [vmem:[%s23782_s0 + $0x79] sm:$0xff]  ;;  %v15223_v52 = vpack.c.bf16 %v108_v49, %v107_v48 }
   0xe   :  { %15184 = vmatprep.subr.bf16.mxu0 %v15183_v12  ;;  %v109_v53 = vld [vmem:[%s23781_s1 + $0x60] sm:$0xff]  ;;  %v110_v54 = vld [vmem:[%s23781_s1 + $0x68] sm:$0xff]  ;;  %v125_v56 = vld [vmem:[%s23782_s0 + $0x91] sm:$0xff] }
   0xf   :  { %v124_v55 = vld [vmem:[%s23782_s0 + $0x81] sm:$0xff]  ;;  %v15227_v57 = vpack.c.bf16 %v110_v54, %v109_v53  ;;  %v111_v58 = vld [vmem:[%s23781_s1 + $0x70] sm:$0xff]  ;;  %v112_v59 = vld [vmem:[%s23781_s1 + $0x78] sm:$0xff] }
  0x10   :  { %v126_v60 = vld [vmem:[%s23782_s0 + $0x99] sm:$0xff]  ;;  %v127_v61 = vld [vmem:[%s23782_s0 + $0xa9] sm:$0xff]  ;;  %v15231_v62 = vpack.c.bf16 %v112_v59, %v111_v58  ;;  %v128_v1 = vld [vmem:[%s23782_s0 + $0xb1] sm:$0xff] }
  0x11   :  { %15186 = vmatpush3.bf16.msra.mxu0 %v15183_v12  ;;  %v10797_v63 = vld [vmem:[%s23781_s1 + $0x100] sm:$0xff]  ;;  %v10798_v0 = vld [vmem:[%s23781_s1 + $0x108] sm:$0xff]  ;;  %v133_v7 = vld [vmem:[%s23782_s0 + $0xf1] sm:$0xff] }
  0x12   :  { %15188 = vmatprep.subr.bf16.mxu0 %v15187_v15  ;;  %v129_v2 = vld [vmem:[%s23782_s0 + $0xc1] sm:$0xff]  ;;  %v16982_v3 = vpack.c.bf16 %v10798_v0, %v10797_v63  ;;  %v130_v4 = vld [vmem:[%s23782_s0 + $0xc9] sm:$0xff]  ;;  %v131_v5 = vld [vmem:[%s23782_s0 + $0xd9] sm:$0xff] }
  0x13   :  { %v132_v6 = vld [vmem:[%s23782_s0 + $0xe1] sm:$0xff]  ;;  %v134_v8 = vld [vmem:[%s23782_s0 + $0xf9] sm:$0xff]  ;;  %v135_v9 = vld [vmem:[%s23782_s0 + $0x109] sm:$0xff] }
  0x14   :  { %v136_v10 = vld [vmem:[%s23782_s0 + $0x111] sm:$0xff]  ;;  %v137_v11 = vld [vmem:[%s23782_s0 + $0x121] sm:$0xff]  ;;  %v138_v12 = vld [vmem:[%s23782_s0 + $0x129] sm:$0xff] }
  0x15   :  { %15190 = vmatpush3.bf16.msra.mxu0 %v15187_v15  ;;  %v139_v13 = vld [vmem:[%s23782_s0 + $0x139] sm:$0xff]  ;;  %v140_v14 = vld [vmem:[%s23782_s0 + $0x141] sm:$0xff]  ;;  %v141_v15 = vld [vmem:[%s23782_s0 + $0x151] sm:$0xff] }
  0x16   :  { %15192 = vmatprep.subr.bf16.mxu0 %v15191_v18  ;;  %v142_v16 = vld [vmem:[%s23782_s0 + $0x159] sm:$0xff]  ;;  %v143_v17 = vld [vmem:[%s23782_s0 + $0x169] sm:$0xff]  ;;  %v145_v19 = vld [vmem:[%s23782_s0 + $0x1b1] sm:$0xff] }
  0x17   :  { %v146_v20 = vld [vmem:[%s23782_s0 + $0x1b9] sm:$0xff]  ;;  %v148_v22 = vld [vmem:[%s23782_s0 + $0x1d1] sm:$0xff]  ;;  %v149_v23 = vld [vmem:[%s23782_s0 + $0x1e1] sm:$0xff] }
  0x18   :  { %v151_v25 = vld [vmem:[%s23782_s0 + $0x1f9] sm:$0xff]  ;;  %v152_v26 = vld [vmem:[%s23782_s0 + $0x201] sm:$0xff]  ;;  %v155_v29 = vld [vmem:[%s23782_s0 + $0x229] sm:$0xff] }
  0x19   :  { %15194 = vmatpush3.bf16.msra.mxu0 %v15191_v18  ;;  %v144_v18 = vld [vmem:[%s23782_s0 + $0x171] sm:$0xff]  ;;  %v154_v28 = vld [vmem:[%s23782_s0 + $0x219] sm:$0xff]  ;;  %v160_v34 = vld [vmem:[%s23782_s0 + $0x261] sm:$0xff] }
  0x1a   :  { %15196 = vmatprep.subr.bf16.mxu0 %v15195_v21  ;;  %v159_v33 = vld [vmem:[%s23782_s0 + $0x259] sm:$0xff]  ;;  %v164_v38 = vld [vmem:[%s23782_s0 + $0x291] sm:$0xff]  ;;  %v165_v39 = vld [vmem:[%s23782_s0 + $0x2a1] sm:$0xff] }
  0x1b   :  { %v169_v43 = vld [vmem:[%s23782_s0 + $0x2d1] sm:$0xff]  ;;  %v170_v44 = vld [vmem:[%s23782_s0 + $0x2d9] sm:$0xff]  ;;  %v174_v48 = vld [vmem:[%s23782_s0 + $0x309] sm:$0xff] }
  0x1c   :  { %v175_v49 = vld [vmem:[%s23782_s0 + $0x319] sm:$0xff]  ;;  %v34_v54 = vld [vmem:[%s23782_s0 + $0x8] sm:$0xff] }
  0x1d   :  { %15198 = vmatpush3.bf16.msra.mxu0 %v15195_v21  ;;  %v147_v21 = vld [vmem:[%s23782_s0 + $0x1c9] sm:$0xff]  ;;  %v10800_v53 = vld [vmem:[%s23781_s1 + $0x118] sm:$0xff]  ;;  %v17154_v59 = vld [vmem:[%s23782_s0 + $0x20] sm:$0xff] }
  0x1e   :  { %15200 = vmatprep.subr.bf16.mxu0 %v15199_v24  ;;  %v10802_v58 = vld [vmem:[%s23781_s1 + $0x128] sm:$0xff]  ;;  %v10804_v63 = vld [vmem:[%s23781_s1 + $0x138] sm:$0xff] }
  0x1f   :  { %v17172_v0 = vld [vmem:[%s23782_s0 + $0x38] sm:$0xff] }
  0x21   :  { %15202 = vmatpush3.bf16.msra.mxu0 %v15199_v24  ;;  %v150_v24 = vld [vmem:[%s23782_s0 + $0x1e9] sm:$0xff] }
  0x22   :  { %15204 = vmatprep.subr.bf16.mxu0 %v15203_v27 }
  0x24   :  { %12900 = vmatmul.mubr.f32.vlgmr.msra.gmra.mrb[0].mxu0 %v114_v30  ;;  %v156_v30 = vld [vmem:[%s23782_s0 + $0x231] sm:$0xff] }
  0x25   :  { %15206 = vmatpush3.bf16.msra.mxu0 %v15203_v27  ;;  %12902 = vmatprep.mubr.f32.mxu0 %v115_v31  ;;  %v153_v27 = vld [vmem:[%s23782_s0 + $0x211] sm:$0xff]  ;;  %v157_v31 = vld [vmem:[%s23782_s0 + $0x241] sm:$0xff] }
  0x26   :  { %15208 = vmatprep.subr.bf16.mxu0 %v15207_v32 }
  0x28   :  { %12903 = vmatmul.mubr.f32.gmra.mrb[2].mxu0 %v116_v35  ;;  %v161_v35 = vld [vmem:[%s23782_s0 + $0x271] sm:$0xff] }
  0x29   :  { %12905 = vmatprep.mubr.f32.mxu0 %v117_v36  ;;  %15210 = vmatpush3.bf16.msra.mxu0 %v15207_v32  ;;  %v158_v32 = vld [vmem:[%s23782_s0 + $0x249] sm:$0xff]  ;;  %v162_v36 = vld [vmem:[%s23782_s0 + $0x279] sm:$0xff] }
  0x2a   :  { %15212 = vmatprep.subr.bf16.mxu0 %v15211_v37 }
  0x2c   :  { %12906 = vmatmul.mubr.f32.gmra.mrb[4].mxu0 %v118_v40  ;;  %v166_v40 = vld [vmem:[%s23782_s0 + $0x2a9] sm:$0xff] }
  0x2d   :  { %12908 = vmatprep.mubr.f32.mxu0 %v119_v41  ;;  %15214 = vmatpush3.bf16.msra.mxu0 %v15211_v37  ;;  %v163_v37 = vld [vmem:[%s23782_s0 + $0x289] sm:$0xff]  ;;  %v167_v41 = vld [vmem:[%s23782_s0 + $0x2b9] sm:$0xff] }
  0x2e   :  { %15216 = vmatprep.subr.bf16.mxu0 %v15215_v42 }
  0x30   :  { %12909 = vmatmul.mubr.f32.gmra.mrb[6].mxu0 %v120_v45  ;;  %v171_v45 = vld [vmem:[%s23782_s0 + $0x2e9] sm:$0xff] }
  0x31   :  { %12911 = vmatprep.mubr.f32.mxu0 %v121_v46  ;;  %15218 = vmatpush3.bf16.msra.mxu0 %v15215_v42  ;;  %v168_v42 = vld [vmem:[%s23782_s0 + $0x2c1] sm:$0xff]  ;;  %v172_v46 = vld [vmem:[%s23782_s0 + $0x2f1] sm:$0xff] }
  0x32   :  { %15220 = vmatprep.subr.bf16.mxu0 %v15219_v47 }
  0x34   :  { %12912 = vmatmul.mubr.f32.gmra.mrb[8].mxu0 %v122_v50  ;;  %v176_v50 = vld [vmem:[%s23782_s0 + $0x321] sm:$0xff] }
  0x35   :  { %12914 = vmatprep.mubr.f32.mxu0 %v123_v51  ;;  %15222 = vmatpush3.bf16.msra.mxu0 %v15219_v47  ;;  %v173_v47 = vld [vmem:[%s23782_s0 + $0x301] sm:$0xff] }
  0x36   :  { %15224 = vmatprep.subr.bf16.mxu0 %v15223_v52  ;;  %v33_v51 = vld [vmem:[%s23782_s0] sm:$0xff] }
  0x38   :  { %12915 = vmatmul.mubr.f32.gmra.mrb[10].mxu0 %v124_v55  ;;  %v17141_v55 = vld [vmem:[%s23782_s0 + $0x18] sm:$0xff] }
  0x39   :  { %12917 = vmatprep.mubr.f32.mxu0 %v125_v56  ;;  %15226 = vmatpush3.bf16.msra.mxu0 %v15223_v52  ;;  %v10799_v52 = vld [vmem:[%s23781_s1 + $0x110] sm:$0xff] }
  0x3a   :  { %15228 = vmatprep.subr.bf16.mxu0 %v15227_v57  ;;  %v15239_v56 = vpack.c.bf16 %v10800_v53, %v10799_v52  ;;  %v17415_v52 = vld [vmem:[%s23782_s0 + $0x218] sm:$0xff]  ;;  %v17420_v53 = vld [vmem:[%s23782_s0 + $0x228] sm:$0xff] }
  0x3c   :  { %12918 = vmatmul.mubr.f32.gmra.mrb[12].mxu0 %v126_v60  ;;  %v17159_v60 = vld [vmem:[%s23782_s0 + $0x30] sm:$0xff] }
  0x3d   :  { %12920 = vmatprep.mubr.f32.mxu0 %v127_v61  ;;  %15230 = vmatpush3.bf16.msra.mxu0 %v15227_v57  ;;  %v10801_v57 = vld [vmem:[%s23781_s1 + $0x120] sm:$0xff] }
  0x3e   :  { %15232 = vmatprep.subr.bf16.mxu0 %v15231_v62  ;;  %v15243_v61 = vpack.c.bf16 %v10802_v58, %v10801_v57  ;;  %v17439_v57 = vld [vmem:[%s23782_s0 + $0x248] sm:$0xff]  ;;  %v17444_v58 = vld [vmem:[%s23782_s0 + $0x258] sm:$0xff] }
  0x40   :  { %12921 = vmatmul.mubr.f32.gmra.mrb[14].mxu0 %v128_v1  ;;  %v17177_v1 = vld [vmem:[%s23782_s0 + $0x48] sm:$0xff] }
  0x41   :  { %12923 = vmatprep.mubr.f32.mxu0 %v129_v2  ;;  %15234 = vmatpush3.bf16.msra.mxu0 %v15231_v62  ;;  %v10803_v62 = vld [vmem:[%s23781_s1 + $0x130] sm:$0xff] }
  0x42   :  { %15236 = vmatprep.subr.bf16.mxu0 %v16982_v3  ;;  %v15247_v2 = vpack.c.bf16 %v10804_v63, %v10803_v62  ;;  %v17456_v62 = vld [vmem:[%s23782_s0 + $0x270] sm:$0xff]  ;;  %v17463_v63 = vld [vmem:[%s23782_s0 + $0x278] sm:$0xff] }
  0x44   :  { %12924 = vmatmul.mubr.f32.gmra.mrb[16].mxu0 %v130_v4  ;;  %v10806_v4 = vld [vmem:[%s23781_s1 + $0x148] sm:$0xff] }
  0x45   :  { %12926 = vmatprep.mubr.f32.mxu0 %v131_v5  ;;  %v17190_v5 = vld [vmem:[%s23782_s0 + $0x50] sm:$0xff] }
  0x48   :  { %12927 = vmatmul.mubr.f32.gmra.mrb[18].mxu0 %v132_v6  ;;  %v17195_v6 = vld [vmem:[%s23782_s0 + $0x60] sm:$0xff] }
  0x49   :  { %12929 = vmatprep.mubr.f32.mxu0 %v133_v7 }
  0x4c   :  { %12930 = vmatmul.mubr.f32.gmra.mrb[20].mxu0 %v134_v8  ;;  %v10807_v8 = vld [vmem:[%s23781_s1 + $0x150] sm:$0xff] }
  0x4d   :  { %12932 = vmatprep.mubr.f32.mxu0 %v135_v9  ;;  %v10808_v9 = vld [vmem:[%s23781_s1 + $0x158] sm:$0xff] }
  0x50   :  { %12933 = vmatmul.mubr.f32.gmra.mrb[22].mxu0 %v136_v10  ;;  %v17208_v10 = vld [vmem:[%s23782_s0 + $0x68] sm:$0xff] }
  0x51   :  { %12935 = vmatprep.mubr.f32.mxu0 %v137_v11  ;;  %v17213_v11 = vld [vmem:[%s23782_s0 + $0x78] sm:$0xff] }
  0x54   :  { %12936 = vmatmul.mubr.f32.gmra.mrb[24].mxu0 %v138_v12  ;;  %v15255_v12 = vpack.c.bf16 %v10808_v9, %v10807_v8  ;;  %v17492_v8 = vld [vmem:[%s23782_s0 + $0x2b8] sm:$0xff]  ;;  %v17499_v9 = vld [vmem:[%s23782_s0 + $0x2c0] sm:$0xff] }
  0x55   :  { %12938 = vmatprep.mubr.f32.mxu0 %v139_v13  ;;  %v10809_v13 = vld [vmem:[%s23781_s1 + $0x160] sm:$0xff] }
  0x58   :  { %12939 = vmatmul.mubr.f32.gmra.mrb[26].mxu0 %v140_v14  ;;  %v10810_v14 = vld [vmem:[%s23781_s1 + $0x168] sm:$0xff] }
  0x59   :  { %12941 = vmatprep.mubr.f32.mxu0 %v141_v15  ;;  %v17226_v15 = vld [vmem:[%s23782_s0 + $0x80] sm:$0xff] }
  0x5c   :  { %12942 = vmatmul.mubr.f32.gmra.mrb[28].mxu0 %v142_v16  ;;  %v17231_v16 = vld [vmem:[%s23782_s0 + $0x90] sm:$0xff] }
  0x5d   :  { %12944 = vmatprep.mubr.f32.mxu0 %v143_v17  ;;  %v15259_v17 = vpack.c.bf16 %v10810_v14, %v10809_v13  ;;  %v17511_v13 = vld [vmem:[%s23782_s0 + $0x2d8] sm:$0xff]  ;;  %v17516_v14 = vld [vmem:[%s23782_s0 + $0x2e8] sm:$0xff] }
  0x5e   :  { %24062 = vst [vmem:[#allocation3_spill] sm:$0xff] %v17516_v14 }
  0x60   :  { %12945 = vmatmul.mubr.f32.gmra.mrb[30].mxu0 %v144_v18  ;;  %v10811_v18 = vld [vmem:[%s23781_s1 + $0x170] sm:$0xff] }
  0x61   :  { %12947 = vmatprep.mubr.f32.mxu0 %v145_v19  ;;  %v10812_v19 = vld [vmem:[%s23781_s1 + $0x178] sm:$0xff] }
  0x64   :  { %12948 = vmatmul.mubr.f32.gmra.mrb[32].mxu0 %v146_v20  ;;  %v17244_v20 = vld [vmem:[%s23782_s0 + $0x98] sm:$0xff] }
  0x65   :  { %12950 = vmatprep.mubr.f32.mxu0 %v147_v21  ;;  %v17249_v21 = vld [vmem:[%s23782_s0 + $0xa8] sm:$0xff] }
  0x68   :  { %12951 = vmatmul.mubr.f32.gmra.mrb[34].mxu0 %v148_v22  ;;  %v15263_v22 = vpack.c.bf16 %v10812_v19, %v10811_v18  ;;  %v17528_v18 = vld [vmem:[%s23782_s0 + $0x300] sm:$0xff]  ;;  %v17535_v19 = vld [vmem:[%s23782_s0 + $0x308] sm:$0xff] }
  0x69   :  { %12953 = vmatprep.mubr.f32.mxu0 %v149_v23  ;;  %v10877_v23 = vld [vmem:[%s23781_s1 + $0x180] sm:$0xff]  ;;  %24064 = vst [vmem:[#allocation5_spill] sm:$0xff] %v17528_v18  ;;  %24065 = vst [vmem:[#allocation6_spill] sm:$0xff] %v17535_v19 }
  0x6c   :  { %12954 = vmatmul.mubr.f32.gmra.mrb[36].mxu0 %v150_v24  ;;  %v10878_v24 = vld [vmem:[%s23781_s1 + $0x188] sm:$0xff] }
  0x6d   :  { %12956 = vmatprep.mubr.f32.mxu0 %v151_v25  ;;  %v17262_v25 = vld [vmem:[%s23782_s0 + $0xb0] sm:$0xff] }
  0x70   :  { %12957 = vmatmul.mubr.f32.gmra.mrb[38].mxu0 %v152_v26  ;;  %v17267_v26 = vld [vmem:[%s23782_s0 + $0xc0] sm:$0xff] }
  0x71   :  { %12959 = vmatprep.mubr.f32.mxu0 %v153_v27  ;;  %v17269_v27 = vpack.c.bf16 %v10878_v24, %v10877_v23  ;;  %v17547_v23 = vld [vmem:[%s23782_s0 + $0x320] sm:$0xff] }
  0x72   :  { %24067 = vst [vmem:[#allocation8_spill] sm:$0xff] %v17547_v23  ;;  %v964_v24 = vld [vmem:[%s23782_s0 + $0x2] sm:$0xff] }
  0x74   :  { %12960 = vmatmul.mubr.f32.gmra.mrb[40].mxu0 %v154_v28  ;;  %v17276_v28 = vld [vmem:[%s23782_s0 + $0xc8] sm:$0xff] }
  0x75   :  { %12962 = vmatprep.mubr.f32.mxu0 %v155_v29  ;;  %v17281_v29 = vld [vmem:[%s23782_s0 + $0xd8] sm:$0xff] }
  0x78   :  { %12963 = vmatmul.mubr.f32.gmra.mrb[42].mxu0 %v156_v30  ;;  %v17289_v30 = vld [vmem:[%s23782_s0 + $0xe0] sm:$0xff] }
  0x79   :  { %12965 = vmatprep.mubr.f32.mxu0 %v157_v31  ;;  %v17294_v31 = vld [vmem:[%s23782_s0 + $0xf0] sm:$0xff] }
  0x7c   :  { %12966 = vmatmul.mubr.f32.gmra.mrb[44].mxu0 %v158_v32  ;;  %v17301_v32 = vld [vmem:[%s23782_s0 + $0xf8] sm:$0xff] }
  0x7d   :  { %12968 = vmatprep.mubr.f32.mxu0 %v159_v33  ;;  %v17306_v33 = vld [vmem:[%s23782_s0 + $0x108] sm:$0xff] }
  0x80   :  { %12969 = vmatmul.mubr.f32.gmra.mrb[46].mxu0 %v160_v34  ;;  %v17313_v34 = vld [vmem:[%s23782_s0 + $0x110] sm:$0xff] }
  0x81   :  { %12971 = vmatprep.mubr.f32.mxu0 %v161_v35  ;;  %v17318_v35 = vld [vmem:[%s23782_s0 + $0x120] sm:$0xff] }
  0x84   :  { %12972 = vmatmul.mubr.f32.gmra.mrb[48].mxu0 %v162_v36  ;;  %v17325_v36 = vld [vmem:[%s23782_s0 + $0x128] sm:$0xff] }
  0x85   :  { %12974 = vmatprep.mubr.f32.mxu0 %v163_v37  ;;  %v17330_v37 = vld [vmem:[%s23782_s0 + $0x138] sm:$0xff] }
  0x88   :  { %12975 = vmatmul.mubr.f32.gmra.mrb[50].mxu0 %v164_v38  ;;  %v17337_v38 = vld [vmem:[%s23782_s0 + $0x140] sm:$0xff] }
  0x89   :  { %12977 = vmatprep.mubr.f32.mxu0 %v165_v39  ;;  %v17342_v39 = vld [vmem:[%s23782_s0 + $0x150] sm:$0xff] }
  0x8c   :  { %12978 = vmatmul.mubr.f32.gmra.mrb[52].mxu0 %v166_v40  ;;  %v17349_v40 = vld [vmem:[%s23782_s0 + $0x158] sm:$0xff] }
  0x8d   :  { %12980 = vmatprep.mubr.f32.mxu0 %v167_v41  ;;  %v17354_v41 = vld [vmem:[%s23782_s0 + $0x168] sm:$0xff] }
  0x90   :  { %12981 = vmatmul.mubr.f32.gmra.mrb[54].mxu0 %v168_v42  ;;  %v17361_v42 = vld [vmem:[%s23782_s0 + $0x170] sm:$0xff] }
  0x91   :  { %12983 = vmatprep.mubr.f32.mxu0 %v169_v43  ;;  %v65_v43 = vld [vmem:[%s23782_s0 + $0x1b0] sm:$0xff] }
  0x94   :  { %12984 = vmatmul.mubr.f32.gmra.mrb[56].mxu0 %v170_v44  ;;  %v66_v44 = vld [vmem:[%s23782_s0 + $0x1b8] sm:$0xff] }
  0x95   :  { %12986 = vmatprep.mubr.f32.mxu0 %v171_v45  ;;  %v17373_v45 = vld [vmem:[%s23782_s0 + $0x1c8] sm:$0xff] }
  0x98   :  { %12987 = vmatmul.mubr.f32.gmra.mrb[58].mxu0 %v172_v46  ;;  %v17379_v46 = vld [vmem:[%s23782_s0 + $0x1d0] sm:$0xff] }
  0x99   :  { %12989 = vmatprep.mubr.f32.mxu0 %v173_v47  ;;  %v17384_v47 = vld [vmem:[%s23782_s0 + $0x1e0] sm:$0xff] }
  0x9c   :  { %12990 = vmatmul.mubr.f32.gmra.mrb[60].mxu0 %v174_v48  ;;  %v17391_v48 = vld [vmem:[%s23782_s0 + $0x1e8] sm:$0xff] }
  0x9d   :  { %12992 = vmatprep.mubr.f32.mxu0 %v175_v49  ;;  %v17396_v49 = vld [vmem:[%s23782_s0 + $0x1f8] sm:$0xff] }
  0xa0   :  { %12993 = vmatmul.mubr.f32.gmra.mrb[62].mxu0 %v176_v50  ;;  %v17403_v50 = vld [vmem:[%s23782_s0 + $0x200] sm:$0xff] }
  0xa1   :  { %13027 = vmatprep.mubr.f32.mxu0 %v33_v51  ;;  %v17408_v51 = vld [vmem:[%s23782_s0 + $0x210] sm:$0xff] }
  0xa4   :  { %13028 = vmatmul.mubr.f32.vlgmr.msra.gmra.mrb[0].mxu0 %v34_v54  ;;  %v17427_v54 = vld [vmem:[%s23782_s0 + $0x230] sm:$0xff] }
  0xa5   :  { %15238 = vmatpush3.bf16.msra.mxu0 %v16982_v3  ;;  %13030 = vmatprep.mubr.f32.mxu0 %v17141_v55  ;;  %v10805_v3 = vld [vmem:[%s23781_s1 + $0x140] sm:$0xff] }
  0xa6   :  { %15240 = vmatprep.subr.bf16.mxu0 %v15239_v56  ;;  %v15251_v7 = vpack.c.bf16 %v10806_v4, %v10805_v3  ;;  %v17475_v3 = vld [vmem:[%s23782_s0 + $0x290] sm:$0xff]  ;;  %v17480_v4 = vld [vmem:[%s23782_s0 + $0x2a0] sm:$0xff] }
  0xa8   :  { %13031 = vmatmul.mubr.f32.gmra.mrb[2].mxu0 %v17154_v59 }
  0xa9   :  { %13033 = vmatprep.mubr.f32.mxu0 %v17159_v60  ;;  %15242 = vmatpush3.bf16.msra.mxu0 %v15239_v56  ;;  %v17432_v56 = vld [vmem:[%s23782_s0 + $0x240] sm:$0xff] }
  0xaa   :  { %15244 = vmatprep.subr.bf16.mxu0 %v15243_v61 }
  0xac   :  { %13034 = vmatmul.mubr.f32.gmra.mrb[4].mxu0 %v17172_v0 }
  0xad   :  { %13036 = vmatprep.mubr.f32.mxu0 %v17177_v1  ;;  %15246 = vmatpush3.bf16.msra.mxu0 %v15243_v61  ;;  %v17451_v61 = vld [vmem:[%s23782_s0 + $0x260] sm:$0xff] }
  0xae   :  { %15248 = vmatprep.subr.bf16.mxu0 %v15247_v2 }
  0xb0   :  { %13037 = vmatmul.mubr.f32.gmra.mrb[6].mxu0 %v17190_v5 }
  0xb1   :  { %13039 = vmatprep.mubr.f32.mxu0 %v17195_v6  ;;  %15250 = vmatpush3.bf16.msra.mxu0 %v15247_v2  ;;  %v17468_v2 = vld [vmem:[%s23782_s0 + $0x288] sm:$0xff] }
  0xb2   :  { %15252 = vmatprep.subr.bf16.mxu0 %v15251_v7 }
  0xb4   :  { %13040 = vmatmul.mubr.f32.gmra.mrb[8].mxu0 %v17208_v10 }
  0xb5   :  { %13042 = vmatprep.mubr.f32.mxu0 %v17213_v11  ;;  %15254 = vmatpush3.bf16.msra.mxu0 %v15251_v7  ;;  %v17487_v7 = vld [vmem:[%s23782_s0 + $0x2a8] sm:$0xff] }
  0xb6   :  { %15256 = vmatprep.subr.bf16.mxu0 %v15255_v12 }
  0xb8   :  { %13043 = vmatmul.mubr.f32.gmra.mrb[10].mxu0 %v17226_v15 }
  0xb9   :  { %13045 = vmatprep.mubr.f32.mxu0 %v17231_v16  ;;  %15258 = vmatpush3.bf16.msra.mxu0 %v15255_v12  ;;  %v17504_v12 = vld [vmem:[%s23782_s0 + $0x2d0] sm:$0xff] }
  0xba   :  { %15260 = vmatprep.subr.bf16.mxu0 %v15259_v17 }
  0xbc   :  { %13046 = vmatmul.mubr.f32.gmra.mrb[12].mxu0 %v17244_v20 }
  0xbd   :  { %13048 = vmatprep.mubr.f32.mxu0 %v17249_v21  ;;  %15262 = vmatpush3.bf16.msra.mxu0 %v15259_v17  ;;  %v17523_v17 = vld [vmem:[%s23782_s0 + $0x2f0] sm:$0xff] }
  0xbe   :  { %15264 = vmatprep.subr.bf16.mxu0 %v15263_v22  ;;  %24063 = vst [vmem:[#allocation4_spill] sm:$0xff] %v17523_v17 }
  0xc0   :  { %13049 = vmatmul.mubr.f32.gmra.mrb[14].mxu0 %v17262_v25 }
  0xc1   :  { %13051 = vmatprep.mubr.f32.mxu0 %v17267_v26  ;;  %15266 = vmatpush3.bf16.msra.mxu0 %v15263_v22  ;;  %v17540_v22 = vld [vmem:[%s23782_s0 + $0x318] sm:$0xff] }
  0xc2   :  { %15268 = vmatprep.subr.bf16.mxu0 %v17269_v27  ;;  %24066 = vst [vmem:[#allocation7_spill] sm:$0xff] %v17540_v22 }
  0xc4   :  { %13052 = vmatmul.mubr.f32.gmra.mrb[16].mxu0 %v17276_v28 }
  0xc5   :  { %13054 = vmatprep.mubr.f32.mxu0 %v17281_v29 }
  0xc8   :  { %13055 = vmatmul.mubr.f32.gmra.mrb[18].mxu0 %v17289_v30 }
  0xc9   :  { %13057 = vmatprep.mubr.f32.mxu0 %v17294_v31 }
  0xcc   :  { %13058 = vmatmul.mubr.f32.gmra.mrb[20].mxu0 %v17301_v32 }
  0xcd   :  { %13060 = vmatprep.mubr.f32.mxu0 %v17306_v33 }
  0xd0   :  { %13061 = vmatmul.mubr.f32.gmra.mrb[22].mxu0 %v17313_v34 }
  0xd1   :  { %13063 = vmatprep.mubr.f32.mxu0 %v17318_v35 }
  0xd4   :  { %13064 = vmatmul.mubr.f32.gmra.mrb[24].mxu0 %v17325_v36 }
  0xd5   :  { %13066 = vmatprep.mubr.f32.mxu0 %v17330_v37 }
  0xd8   :  { %13067 = vmatmul.mubr.f32.gmra.mrb[26].mxu0 %v17337_v38 }
  0xd9   :  { %13069 = vmatprep.mubr.f32.mxu0 %v17342_v39 }
  0xdc   :  { %13070 = vmatmul.mubr.f32.gmra.mrb[28].mxu0 %v17349_v40 }
  0xdd   :  { %13072 = vmatprep.mubr.f32.mxu0 %v17354_v41 }
  0xe0   :  { %13073 = vmatmul.mubr.f32.gmra.mrb[30].mxu0 %v17361_v42 }
  0xe1   :  { %13075 = vmatprep.mubr.f32.mxu0 %v65_v43  ;;  %v10879_v43 = vld [vmem:[%s23781_s1 + $0x190] sm:$0xff] }
  0xe4   :  { %13076 = vmatmul.mubr.f32.gmra.mrb[32].mxu0 %v66_v44  ;;  %v10880_v44 = vld [vmem:[%s23781_s1 + $0x198] sm:$0xff] }
  0xe5   :  { %13078 = vmatprep.mubr.f32.mxu0 %v17373_v45 }
  0xe8   :  { %13079 = vmatmul.mubr.f32.gmra.mrb[34].mxu0 %v17379_v46 }
  0xe9   :  { %13081 = vmatprep.mubr.f32.mxu0 %v17384_v47 }
  0xec   :  { %13082 = vmatmul.mubr.f32.gmra.mrb[36].mxu0 %v17391_v48 }
  0xed   :  { %13084 = vmatprep.mubr.f32.mxu0 %v17396_v49 }
  0xf0   :  { %13085 = vmatmul.mubr.f32.gmra.mrb[38].mxu0 %v17403_v50 }
  0xf1   :  { %13087 = vmatprep.mubr.f32.mxu0 %v17408_v51 }
  0xf4   :  { %13088 = vmatmul.mubr.f32.gmra.mrb[40].mxu0 %v17415_v52 }
  0xf5   :  { %13090 = vmatprep.mubr.f32.mxu0 %v17420_v53 }
  0xf8   :  { %13091 = vmatmul.mubr.f32.gmra.mrb[42].mxu0 %v17427_v54 }
  0xf9   :  { %13093 = vmatprep.mubr.f32.mxu0 %v17432_v56 }
  0xfc   :  { %13094 = vmatmul.mubr.f32.gmra.mrb[44].mxu0 %v17439_v57 }
  0xfd   :  { %13096 = vmatprep.mubr.f32.mxu0 %v17444_v58 }
 0x100   :  { %13097 = vmatmul.mubr.f32.gmra.mrb[46].mxu0 %v17451_v61 }
 0x101   :  { %13099 = vmatprep.mubr.f32.mxu0 %v17456_v62 }
 0x104   :  { %13100 = vmatmul.mubr.f32.gmra.mrb[48].mxu0 %v17463_v63 }
 0x105   :  { %13102 = vmatprep.mubr.f32.mxu0 %v17468_v2 }
 0x108   :  { %13103 = vmatmul.mubr.f32.gmra.mrb[50].mxu0 %v17475_v3 }
 0x109   :  { %13105 = vmatprep.mubr.f32.mxu0 %v17480_v4 }
 0x10c   :  { %13106 = vmatmul.mubr.f32.gmra.mrb[52].mxu0 %v17487_v7 }
 0x10d   :  { %13108 = vmatprep.mubr.f32.mxu0 %v17492_v8 }
 0x110   :  { %13109 = vmatmul.mubr.f32.gmra.mrb[54].mxu0 %v17499_v9 }
 0x111   :  { %13111 = vmatprep.mubr.f32.mxu0 %v17504_v12 }
 0x114   :  { %13112 = vmatmul.mubr.f32.gmra.mrb[56].mxu0 %v17511_v13 }
 0x115   :  { %13114 = vmatprep.mubr.f32.mxu0 %v17516_v14  ;;  %v10882_v14 = vld [vmem:[%s23781_s1 + $0x1a8] sm:$0xff] }
 0x118   :  { %13115 = vmatmul.mubr.f32.gmra.mrb[58].mxu0 %v17523_v17  ;;  %v10881_v17 = vld [vmem:[%s23781_s1 + $0x1a0] sm:$0xff] }
 0x119   :  { %13117 = vmatprep.mubr.f32.mxu0 %v17528_v18  ;;  %v15271_v18 = vpack.c.bf16 %v10880_v44, %v10879_v43  ;;  %v17583_v43 = vld [vmem:[%s23782_s0 + $0x32] sm:$0xff]  ;;  %v15275_v44 = vpack.c.bf16 %v10882_v14, %v10881_v17  ;;  %v17601_v14 = vld [vmem:[%s23782_s0 + $0x4a] sm:$0xff] }
 0x11a   :  { %24070 = vst [vmem:[#allocation11_spill] sm:$0xff] %v17583_v43  ;;  %24072 = vst [vmem:[#allocation13_spill] sm:$0xff] %v17601_v14 }
 0x11c   :  { %13118 = vmatmul.mubr.f32.gmra.mrb[60].mxu0 %v17535_v19  ;;  %v17565_v19 = vld [vmem:[%s23782_s0 + $0x1a] sm:$0xff] }
 0x11d   :  { %13120 = vmatprep.mubr.f32.mxu0 %v17540_v22  ;;  %v965_v22 = vld [vmem:[%s23782_s0 + $0xa] sm:$0xff]  ;;  %24068 = vst [vmem:[#allocation9_spill] sm:$0xff] %v17565_v19 }
 0x120   :  { %13121 = vmatmul.mubr.f32.gmra.mrb[62].mxu0 %v17547_v23  ;;  %v10885_v23 = vld [vmem:[%s23781_s1 + $0x1c0] sm:$0xff] }
 0x121   :  { %13155 = vmatprep.mubr.f32.mxu0 %v964_v24  ;;  %v17578_v24 = vld [vmem:[%s23782_s0 + $0x22] sm:$0xff] }
 0x122   :  { %24069 = vst [vmem:[#allocation10_spill] sm:$0xff] %v17578_v24 }
 0x124   :  { %13156 = vmatmul.mubr.f32.vlgmr.msra.gmra.mrb[0].mxu0 %v965_v22  ;;  %v10883_v22 = vld [vmem:[%s23781_s1 + $0x1b0] sm:$0xff] }
 0x125   :  { %15270 = vmatpush3.bf16.msra.mxu0 %v17269_v27  ;;  %13158 = vmatprep.mubr.f32.mxu0 %v17565_v19  ;;  %v10884_v27 = vld [vmem:[%s23781_s1 + $0x1b8] sm:$0xff] }
 0x126   :  { %15272 = vmatprep.subr.bf16.mxu0 %v15271_v18  ;;  %v17596_v19 = vld [vmem:[%s23782_s0 + $0x3a] sm:$0xff]  ;;  %v15279_v17 = vpack.c.bf16 %v10884_v27, %v10883_v22  ;;  %v17619_v22 = vld [vmem:[%s23782_s0 + $0x62] sm:$0xff] }
 0x127   :  { %24071 = vst [vmem:[#allocation12_spill] sm:$0xff] %v17596_v19  ;;  %24074 = vst [vmem:[#allocation15_spill] sm:$0xff] %v17619_v22 }
 0x128   :  { %13159 = vmatmul.mubr.f32.gmra.mrb[2].mxu0 %v17578_v24  ;;  %v10887_v24 = vld [vmem:[%s23781_s1 + $0x1d0] sm:$0xff] }
 0x129   :  { %13161 = vmatprep.mubr.f32.mxu0 %v17583_v43  ;;  %15274 = vmatpush3.bf16.msra.mxu0 %v15271_v18  ;;  %v10886_v43 = vld [vmem:[%s23781_s1 + $0x1c8] sm:$0xff]  ;;  %v17614_v18 = vld [vmem:[%s23782_s0 + $0x52] sm:$0xff] }
 0x12a   :  { %15276 = vmatprep.subr.bf16.mxu0 %v15275_v44  ;;  %24073 = vst [vmem:[#allocation14_spill] sm:$0xff] %v17614_v18  ;;  %v15283_v27 = vpack.c.bf16 %v10886_v43, %v10885_v23  ;;  %v17637_v23 = vld [vmem:[%s23782_s0 + $0x7a] sm:$0xff] }
 0x12b   :  { %24076 = vst [vmem:[#allocation17_spill] sm:$0xff] %v17637_v23 }
 0x12c   :  { %13162 = vmatmul.mubr.f32.gmra.mrb[4].mxu0 %v17596_v19  ;;  %v10889_v19 = vld [vmem:[%s23781_s1 + $0x1e0] sm:$0xff] }
 0x12d   :  { %13164 = vmatprep.mubr.f32.mxu0 %v17601_v14  ;;  %15278 = vmatpush3.bf16.msra.mxu0 %v15275_v44  ;;  %v10888_v14 = vld [vmem:[%s23781_s1 + $0x1d8] sm:$0xff]  ;;  %v17632_v44 = vld [vmem:[%s23782_s0 + $0x6a] sm:$0xff] }
 0x12e   :  { %15280 = vmatprep.subr.bf16.mxu0 %v15279_v17  ;;  %24075 = vst [vmem:[#allocation16_spill] sm:$0xff] %v17632_v44  ;;  %v15287_v43 = vpack.c.bf16 %v10888_v14, %v10887_v24  ;;  %v17655_v24 = vld [vmem:[%s23782_s0 + $0x92] sm:$0xff] }
 0x12f   :  { %24077 = vst [vmem:[#allocation18_spill] sm:$0xff] %v17655_v24 }
 0x130   :  { %13165 = vmatmul.mubr.f32.gmra.mrb[6].mxu0 %v17614_v18  ;;  %v10891_v18 = vld [vmem:[%s23781_s1 + $0x1f0] sm:$0xff] }
 0x131   :  { %13167 = vmatprep.mubr.f32.mxu0 %v17619_v22  ;;  %15282 = vmatpush3.bf16.msra.mxu0 %v15279_v17  ;;  %v10890_v22 = vld [vmem:[%s23781_s1 + $0x1e8] sm:$0xff] }
 0x132   :  { %15284 = vmatprep.subr.bf16.mxu0 %v15283_v27  ;;  %v17650_v17 = vld [vmem:[%s23782_s0 + $0x82] sm:$0xff]  ;;  %v15291_v14 = vpack.c.bf16 %v10890_v22, %v10889_v19  ;;  %v17673_v19 = vld [vmem:[%s23782_s0 + $0xaa] sm:$0xff] }
 0x133   :  { %24078 = vst [vmem:[#allocation19_spill] sm:$0xff] %v17673_v19 }
 0x134   :  { %13168 = vmatmul.mubr.f32.gmra.mrb[8].mxu0 %v17632_v44  ;;  %v10957_v44 = vld [vmem:[%s23781_s1 + $0x200] sm:$0xff] }
 0x135   :  { %13170 = vmatprep.mubr.f32.mxu0 %v17637_v23  ;;  %15286 = vmatpush3.bf16.msra.mxu0 %v15283_v27  ;;  %v10892_v23 = vld [vmem:[%s23781_s1 + $0x1f8] sm:$0xff] }
 0x136   :  { %15288 = vmatprep.subr.bf16.mxu0 %v15287_v43  ;;  %v17668_v27 = vld [vmem:[%s23782_s0 + $0x9a] sm:$0xff]  ;;  %v15295_v22 = vpack.c.bf16 %v10892_v23, %v10891_v18  ;;  %v17691_v18 = vld [vmem:[%s23782_s0 + $0xc2] sm:$0xff] }
 0x137   :  { %24080 = vst [vmem:[#allocation21_spill] sm:$0xff] %v17691_v18 }
 0x138   :  { %13171 = vmatmul.mubr.f32.gmra.mrb[10].mxu0 %v17650_v17 }
 0x139   :  { %13173 = vmatprep.mubr.f32.mxu0 %v17655_v24  ;;  %15290 = vmatpush3.bf16.msra.mxu0 %v15287_v43  ;;  %v10958_v24 = vld [vmem:[%s23781_s1 + $0x208] sm:$0xff]  ;;  %v17686_v43 = vld [vmem:[%s23782_s0 + $0xb2] sm:$0xff] }
 0x13a   :  { %15292 = vmatprep.subr.bf16.mxu0 %v15291_v14  ;;  %24079 = vst [vmem:[#allocation20_spill] sm:$0xff] %v17686_v43  ;;  %v17693_v23 = vpack.c.bf16 %v10958_v24, %v10957_v44  ;;  %v17713_v44 = vld [vmem:[%s23782_s0 + $0xe2] sm:$0xff]  ;;  %v17718_v24 = vld [vmem:[%s23782_s0 + $0xf2] sm:$0xff] }
 0x13b   :  { %24083 = vst [vmem:[#allocation24_spill] sm:$0xff] %v17713_v44  ;;  %24084 = vst [vmem:[#allocation25_spill] sm:$0xff] %v17718_v24 }
 0x13c   :  { %13174 = vmatmul.mubr.f32.gmra.mrb[12].mxu0 %v17668_v27 }
 0x13d   :  { %13176 = vmatprep.mubr.f32.mxu0 %v17673_v19  ;;  %15294 = vmatpush3.bf16.msra.mxu0 %v15291_v14  ;;  %v17700_v19 = vld [vmem:[%s23782_s0 + $0xca] sm:$0xff]  ;;  %v17705_v14 = vld [vmem:[%s23782_s0 + $0xda] sm:$0xff] }
 0x13e   :  { %15296 = vmatprep.subr.bf16.mxu0 %v15295_v22  ;;  %24081 = vst [vmem:[#allocation22_spill] sm:$0xff] %v17700_v19  ;;  %24082 = vst [vmem:[#allocation23_spill] sm:$0xff] %v17705_v14 }
 0x140   :  { %13177 = vmatmul.mubr.f32.gmra.mrb[14].mxu0 %v17686_v43 }
 0x141   :  { %13179 = vmatprep.mubr.f32.mxu0 %v17691_v18  ;;  %15298 = vmatpush3.bf16.msra.mxu0 %v15295_v22  ;;  %v17725_v22 = vld [vmem:[%s23782_s0 + $0xfa] sm:$0xff]  ;;  %v10962_v18 = vld [vmem:[%s23781_s1 + $0x228] sm:$0xff] }
 0x142   :  { %15300 = vmatprep.subr.bf16.mxu0 %v17693_v23  ;;  %24085 = vst [vmem:[#allocation26_spill] sm:$0xff] %v17725_v22 }
 0x144   :  { %13180 = vmatmul.mubr.f32.gmra.mrb[16].mxu0 %v17700_v19  ;;  %v997_v19 = vld [vmem:[%s23782_s0 + $0x1ba] sm:$0xff] }
 0x145   :  { %13182 = vmatprep.mubr.f32.mxu0 %v17705_v14  ;;  %v17730_v14 = vld [vmem:[%s23782_s0 + $0x10a] sm:$0xff] }
 0x146   :  { %24086 = vst [vmem:[#allocation27_spill] sm:$0xff] %v17730_v14 }
 0x148   :  { %13183 = vmatmul.mubr.f32.gmra.mrb[18].mxu0 %v17713_v44  ;;  %v17737_v44 = vld [vmem:[%s23782_s0 + $0x112] sm:$0xff] }
 0x149   :  { %13185 = vmatprep.mubr.f32.mxu0 %v17718_v24  ;;  %24087 = vst [vmem:[#allocation28_spill] sm:$0xff] %v17737_v44  ;;  %v17742_v24 = vld [vmem:[%s23782_s0 + $0x122] sm:$0xff] }
 0x14a   :  { %24088 = vst [vmem:[#allocation29_spill] sm:$0xff] %v17742_v24 }
 0x14c   :  { %13186 = vmatmul.mubr.f32.gmra.mrb[20].mxu0 %v17725_v22  ;;  %v17749_v22 = vld [vmem:[%s23782_s0 + $0x12a] sm:$0xff] }
 0x14d   :  { %13188 = vmatprep.mubr.f32.mxu0 %v17730_v14  ;;  %24089 = vst [vmem:[#allocation30_spill] sm:$0xff] %v17749_v22  ;;  %v17754_v14 = vld [vmem:[%s23782_s0 + $0x13a] sm:$0xff] }
 0x14e   :  { %24090 = vst [vmem:[#allocation31_spill] sm:$0xff] %v17754_v14 }
 0x150   :  { %13189 = vmatmul.mubr.f32.gmra.mrb[22].mxu0 %v17737_v44  ;;  %v17761_v44 = vld [vmem:[%s23782_s0 + $0x142] sm:$0xff] }
 0x151   :  { %13191 = vmatprep.mubr.f32.mxu0 %v17742_v24  ;;  %24091 = vst [vmem:[#allocation32_spill] sm:$0xff] %v17761_v44  ;;  %v17766_v24 = vld [vmem:[%s23782_s0 + $0x152] sm:$0xff] }
 0x152   :  { %24092 = vst [vmem:[#allocation33_spill] sm:$0xff] %v17766_v24 }
 0x154   :  { %13192 = vmatmul.mubr.f32.gmra.mrb[24].mxu0 %v17749_v22  ;;  %v17773_v22 = vld [vmem:[%s23782_s0 + $0x15a] sm:$0xff] }
 0x155   :  { %13194 = vmatprep.mubr.f32.mxu0 %v17754_v14  ;;  %24093 = vst [vmem:[#allocation34_spill] sm:$0xff] %v17773_v22  ;;  %v17778_v14 = vld [vmem:[%s23782_s0 + $0x16a] sm:$0xff] }
 0x156   :  { %24094 = vst [vmem:[#allocation35_spill] sm:$0xff] %v17778_v14 }
 0x158   :  { %13195 = vmatmul.mubr.f32.gmra.mrb[26].mxu0 %v17761_v44  ;;  %v17785_v44 = vld [vmem:[%s23782_s0 + $0x172] sm:$0xff] }
 0x159   :  { %13197 = vmatprep.mubr.f32.mxu0 %v17766_v24  ;;  %24095 = vst [vmem:[#allocation36_spill] sm:$0xff] %v17785_v44  ;;  %v996_v24 = vld [vmem:[%s23782_s0 + $0x1b2] sm:$0xff] }
 0x15c   :  { %13198 = vmatmul.mubr.f32.gmra.mrb[28].mxu0 %v17773_v22  ;;  %v17803_v22 = vld [vmem:[%s23782_s0 + $0x1d2] sm:$0xff] }
 0x15d   :  { %13200 = vmatprep.mubr.f32.mxu0 %v17778_v14  ;;  %v17797_v14 = vld [vmem:[%s23782_s0 + $0x1ca] sm:$0xff]  ;;  %24097 = vst [vmem:[#allocation38_spill] sm:$0xff] %v17803_v22 }
 0x15e   :  { %24096 = vst [vmem:[#allocation37_spill] sm:$0xff] %v17797_v14 }
 0x160   :  { %13201 = vmatmul.mubr.f32.gmra.mrb[30].mxu0 %v17785_v44  ;;  %v10960_v44 = vld [vmem:[%s23781_s1 + $0x218] sm:$0xff] }
 0x161   :  { %13203 = vmatprep.mubr.f32.mxu0 %v996_v24  ;;  %v17808_v24 = vld [vmem:[%s23782_s0 + $0x1e2] sm:$0xff] }
 0x162   :  { %24098 = vst [vmem:[#allocation39_spill] sm:$0xff] %v17808_v24 }
 0x164   :  { %13204 = vmatmul.mubr.f32.gmra.mrb[32].mxu0 %v997_v19  ;;  %v17815_v19 = vld [vmem:[%s23782_s0 + $0x1ea] sm:$0xff] }
 0x165   :  { %13206 = vmatprep.mubr.f32.mxu0 %v17797_v14  ;;  %24099 = vst [vmem:[#allocation40_spill] sm:$0xff] %v17815_v19  ;;  %v17820_v14 = vld [vmem:[%s23782_s0 + $0x1fa] sm:$0xff] }
 0x166   :  { %24100 = vst [vmem:[#allocation41_spill] sm:$0xff] %v17820_v14 }
 0x168   :  { %13207 = vmatmul.mubr.f32.gmra.mrb[34].mxu0 %v17803_v22  ;;  %v17827_v22 = vld [vmem:[%s23782_s0 + $0x202] sm:$0xff] }
 0x169   :  { %13209 = vmatprep.mubr.f32.mxu0 %v17808_v24  ;;  %24101 = vst [vmem:[#allocation42_spill] sm:$0xff] %v17827_v22  ;;  %v17832_v24 = vld [vmem:[%s23782_s0 + $0x212] sm:$0xff] }
 0x16a   :  { %24102 = vst [vmem:[#allocation43_spill] sm:$0xff] %v17832_v24 }
 0x16c   :  { %13210 = vmatmul.mubr.f32.gmra.mrb[36].mxu0 %v17815_v19  ;;  %v17839_v19 = vld [vmem:[%s23782_s0 + $0x21a] sm:$0xff] }
 0x16d   :  { %13212 = vmatprep.mubr.f32.mxu0 %v17820_v14  ;;  %24103 = vst [vmem:[#allocation44_spill] sm:$0xff] %v17839_v19  ;;  %v17844_v14 = vld [vmem:[%s23782_s0 + $0x22a] sm:$0xff] }
 0x16e   :  { %24104 = vst [vmem:[#allocation45_spill] sm:$0xff] %v17844_v14 }
 0x170   :  { %13213 = vmatmul.mubr.f32.gmra.mrb[38].mxu0 %v17827_v22  ;;  %v17851_v22 = vld [vmem:[%s23782_s0 + $0x232] sm:$0xff] }
 0x171   :  { %13215 = vmatprep.mubr.f32.mxu0 %v17832_v24  ;;  %24105 = vst [vmem:[#allocation46_spill] sm:$0xff] %v17851_v22  ;;  %v17856_v24 = vld [vmem:[%s23782_s0 + $0x242] sm:$0xff] }
 0x172   :  { %24106 = vst [vmem:[#allocation47_spill] sm:$0xff] %v17856_v24 }
 0x174   :  { %13216 = vmatmul.mubr.f32.gmra.mrb[40].mxu0 %v17839_v19  ;;  %v17863_v19 = vld [vmem:[%s23782_s0 + $0x24a] sm:$0xff] }
 0x175   :  { %13218 = vmatprep.mubr.f32.mxu0 %v17844_v14  ;;  %24107 = vst [vmem:[#allocation48_spill] sm:$0xff] %v17863_v19  ;;  %v17868_v14 = vld [vmem:[%s23782_s0 + $0x25a] sm:$0xff] }
 0x176   :  { %24108 = vst [vmem:[#allocation49_spill] sm:$0xff] %v17868_v14 }
 0x178   :  { %13219 = vmatmul.mubr.f32.gmra.mrb[42].mxu0 %v17851_v22  ;;  %v17875_v22 = vld [vmem:[%s23782_s0 + $0x262] sm:$0xff] }
 0x179   :  { %13221 = vmatprep.mubr.f32.mxu0 %v17856_v24  ;;  %24109 = vst [vmem:[#allocation50_spill] sm:$0xff] %v17875_v22  ;;  %v17880_v24 = vld [vmem:[%s23782_s0 + $0x272] sm:$0xff] }
 0x17a   :  { %24110 = vst [vmem:[#allocation51_spill] sm:$0xff] %v17880_v24 }
 0x17c   :  { %13222 = vmatmul.mubr.f32.gmra.mrb[44].mxu0 %v17863_v19  ;;  %v17887_v19 = vld [vmem:[%s23782_s0 + $0x27a] sm:$0xff] }
 0x17d   :  { %13224 = vmatprep.mubr.f32.mxu0 %v17868_v14  ;;  %24111 = vst [vmem:[#allocation52_spill] sm:$0xff] %v17887_v19  ;;  %v17892_v14 = vld [vmem:[%s23782_s0 + $0x28a] sm:$0xff] }
 0x17e   :  { %24112 = vst [vmem:[#allocation53_spill] sm:$0xff] %v17892_v14 }
 0x180   :  { %13225 = vmatmul.mubr.f32.gmra.mrb[46].mxu0 %v17875_v22  ;;  %v17899_v22 = vld [vmem:[%s23782_s0 + $0x292] sm:$0xff] }
 0x181   :  { %13227 = vmatprep.mubr.f32.mxu0 %v17880_v24  ;;  %24113 = vst [vmem:[#allocation54_spill] sm:$0xff] %v17899_v22  ;;  %v17904_v24 = vld [vmem:[%s23782_s0 + $0x2a2] sm:$0xff] }
 0x182   :  { %24114 = vst [vmem:[#allocation55_spill] sm:$0xff] %v17904_v24 }
 0x184   :  { %13228 = vmatmul.mubr.f32.gmra.mrb[48].mxu0 %v17887_v19  ;;  %v17911_v19 = vld [vmem:[%s23782_s0 + $0x2aa] sm:$0xff] }
 0x185   :  { %13230 = vmatprep.mubr.f32.mxu0 %v17892_v14  ;;  %24115 = vst [vmem:[#allocation56_spill] sm:$0xff] %v17911_v19  ;;  %v17916_v14 = vld [vmem:[%s23782_s0 + $0x2ba] sm:$0xff] }
 0x186   :  { %24116 = vst [vmem:[#allocation57_spill] sm:$0xff] %v17916_v14 }
 0x188   :  { %13231 = vmatmul.mubr.f32.gmra.mrb[50].mxu0 %v17899_v22  ;;  %v17923_v22 = vld [vmem:[%s23782_s0 + $0x2c2] sm:$0xff] }
 0x189   :  { %13233 = vmatprep.mubr.f32.mxu0 %v17904_v24  ;;  %24117 = vst [vmem:[#allocation58_spill] sm:$0xff] %v17923_v22  ;;  %v17928_v24 = vld [vmem:[%s23782_s0 + $0x2d2] sm:$0xff] }
 0x18a   :  { %24118 = vst [vmem:[#allocation59_spill] sm:$0xff] %v17928_v24 }
 0x18c   :  { %13234 = vmatmul.mubr.f32.gmra.mrb[52].mxu0 %v17911_v19  ;;  %v17935_v19 = vld [vmem:[%s23782_s0 + $0x2da] sm:$0xff] }
 0x18d   :  { %13236 = vmatprep.mubr.f32.mxu0 %v17916_v14  ;;  %24119 = vst [vmem:[#allocation60_spill] sm:$0xff] %v17935_v19  ;;  %v17940_v14 = vld [vmem:[%s23782_s0 + $0x2ea] sm:$0xff] }
 0x18e   :  { %24120 = vst [vmem:[#allocation61_spill] sm:$0xff] %v17940_v14 }
 0x190   :  { %13237 = vmatmul.mubr.f32.gmra.mrb[54].mxu0 %v17923_v22  ;;  %v17947_v22 = vld [vmem:[%s23782_s0 + $0x2f2] sm:$0xff] }
 0x191   :  { %13239 = vmatprep.mubr.f32.mxu0 %v17928_v24  ;;  %24121 = vst [vmem:[#allocation62_spill] sm:$0xff] %v17947_v22  ;;  %v17952_v24 = vld [vmem:[%s23782_s0 + $0x302] sm:$0xff] }
 0x192   :  { %24122 = vst [vmem:[#allocation63_spill] sm:$0xff] %v17952_v24 }
 0x194   :  { %13240 = vmatmul.mubr.f32.gmra.mrb[56].mxu0 %v17935_v19  ;;  %v17959_v19 = vld [vmem:[%s23782_s0 + $0x30a] sm:$0xff] }
 0x195   :  { %13242 = vmatprep.mubr.f32.mxu0 %v17940_v14  ;;  %24123 = vst [vmem:[#allocation64_spill] sm:$0xff] %v17959_v19  ;;  %v17964_v14 = vld [vmem:[%s23782_s0 + $0x31a] sm:$0xff] }
 0x196   :  { %24124 = vst [vmem:[#allocation65_spill] sm:$0xff] %v17964_v14 }
 0x198   :  { %13243 = vmatmul.mubr.f32.gmra.mrb[58].mxu0 %v17947_v22  ;;  %v17971_v22 = vld [vmem:[%s23782_s0 + $0x322] sm:$0xff] }
 0x199   :  { %13245 = vmatprep.mubr.f32.mxu0 %v17952_v24  ;;  %v10959_v24 = vld [vmem:[%s23781_s1 + $0x210] sm:$0xff] }
 0x19c   :  { %13246 = vmatmul.mubr.f32.gmra.mrb[60].mxu0 %v17959_v19  ;;  %v15303_v19 = vpack.c.bf16 %v10960_v44, %v10959_v24  ;;  %v10964_v44 = vld [vmem:[%s23781_s1 + $0x238] sm:$0xff]  ;;  %v11038_v24 = vld [vmem:[%s23781_s1 + $0x288] sm:$0xff] }
 0x19d   :  { %13248 = vmatprep.mubr.f32.mxu0 %v17964_v14  ;;  %v10961_v14 = vld [vmem:[%s23781_s1 + $0x220] sm:$0xff] }
 0x19e   :  { %v15307_v43 = vpack.c.bf16 %v10962_v18, %v10961_v14  ;;  %v10966_v18 = vld [vmem:[%s23781_s1 + $0x248] sm:$0xff]  ;;  %v10972_v14 = vld [vmem:[%s23781_s1 + $0x278] sm:$0xff] }
 0x1a0   :  { %13249 = vmatmul.mubr.f32.gmra.mrb[62].mxu0 %v17971_v22 }
 0x1a1   :  { %13283 = vmatprep.mubr.f32.mxu0 %v17141_v55  ;;  %v10963_v55 = vld [vmem:[%s23781_s1 + $0x230] sm:$0xff] }
 0x1a4   :  { %13284 = vmatmul.mubr.f32.vlgmr.msra.gmra.mrb[0].mxu0 %v17154_v59  ;;  %v15311_v59 = vpack.c.bf16 %v10964_v44, %v10963_v55  ;;  %v18228_v55 = vld [vmem:[%s23782_s0 + $0xb1] sm:$0xff]  ;;  %v18233_v44 = vld [vmem:[%s23782_s0 + $0xc1] sm:$0xff] }
 0x1a5   :  { %15302 = vmatpush3.bf16.msra.mxu0 %v17693_v23  ;;  %13286 = vmatprep.mubr.f32.mxu0 %v17159_v60  ;;  %v10965_v60 = vld [vmem:[%s23781_s1 + $0x240] sm:$0xff]  ;;  %v10968_v23 = vld [vmem:[%s23781_s1 + $0x258] sm:$0xff] }
 0x1a6   :  { %15304 = vmatprep.subr.bf16.mxu0 %v15303_v19 }
 0x1a8   :  { %13287 = vmatmul.mubr.f32.gmra.mrb[2].mxu0 %v17172_v0  ;;  %v15315_v0 = vpack.c.bf16 %v10966_v18, %v10965_v60  ;;  %v11117_v60 = vld [vmem:[%s23781_s1 + $0x300] sm:$0xff]  ;;  %v11118_v18 = vld [vmem:[%s23781_s1 + $0x308] sm:$0xff] }
 0x1a9   :  { %13289 = vmatprep.mubr.f32.mxu0 %v17177_v1  ;;  %15306 = vmatpush3.bf16.msra.mxu0 %v15303_v19  ;;  %v10967_v1 = vld [vmem:[%s23781_s1 + $0x250] sm:$0xff]  ;;  %v11052_v19 = vld [vmem:[%s23781_s1 + $0x2f8] sm:$0xff] }
 0x1aa   :  { %15308 = vmatprep.subr.bf16.mxu0 %v15307_v43 }
 0x1ac   :  { %13290 = vmatmul.mubr.f32.gmra.mrb[4].mxu0 %v17190_v5  ;;  %v15319_v5 = vpack.c.bf16 %v10968_v23, %v10967_v1  ;;  %v18251_v1 = vld [vmem:[%s23782_s0 + $0xd9] sm:$0xff]  ;;  %v18253_v23 = vpack.c.bf16 %v11118_v18, %v11117_v60  ;;  %v18488_v60 = vld [vmem:[%s23782_s0 + $0x2e9] sm:$0xff]  ;;  %v18495_v18 = vld [vmem:[%s23782_s0 + $0x2f1] sm:$0xff] }
 0x1ad   :  { %13292 = vmatprep.mubr.f32.mxu0 %v17195_v6  ;;  %15310 = vmatpush3.bf16.msra.mxu0 %v15307_v43  ;;  %v10969_v6 = vld [vmem:[%s23781_s1 + $0x260] sm:$0xff]  ;;  %v10970_v43 = vld [vmem:[%s23781_s1 + $0x268] sm:$0xff]  ;;  %24137 = vst [vmem:[#allocation66_spill] sm:$0xff] %v18488_v60  ;;  %24138 = vst [vmem:[#allocation67_spill] sm:$0xff] %v18495_v18 }
 0x1ae   :  { %15312 = vmatprep.subr.bf16.mxu0 %v15311_v59 }
 0x1b0   :  { %13293 = vmatmul.mubr.f32.gmra.mrb[6].mxu0 %v17208_v10  ;;  %v15323_v10 = vpack.c.bf16 %v10970_v43, %v10969_v6  ;;  %v18265_v6 = vld [vmem:[%s23782_s0 + $0xf1] sm:$0xff]  ;;  %v18273_v43 = vld [vmem:[%s23782_s0 + $0xf9] sm:$0xff] }
 0x1b1   :  { %13295 = vmatprep.mubr.f32.mxu0 %v17213_v11  ;;  %15314 = vmatpush3.bf16.msra.mxu0 %v15311_v59  ;;  %v10971_v11 = vld [vmem:[%s23781_s1 + $0x270] sm:$0xff] }
 0x1b2   :  { %15316 = vmatprep.subr.bf16.mxu0 %v15315_v0 }
 0x1b4   :  { %13296 = vmatmul.mubr.f32.gmra.mrb[8].mxu0 %v17226_v15  ;;  %v15327_v15 = vpack.c.bf16 %v10972_v14, %v10971_v11  ;;  %v18285_v11 = vld [vmem:[%s23782_s0 + $0x111] sm:$0xff]  ;;  %v18290_v14 = vld [vmem:[%s23782_s0 + $0x121] sm:$0xff] }
 0x1b5   :  { %13298 = vmatprep.mubr.f32.mxu0 %v17231_v16  ;;  %15318 = vmatpush3.bf16.msra.mxu0 %v15315_v0  ;;  %v11037_v16 = vld [vmem:[%s23781_s1 + $0x280] sm:$0xff]  ;;  %v18246_v0 = vld [vmem:[%s23782_s0 + $0xc9] sm:$0xff] }
 0x1b6   :  { %15320 = vmatprep.subr.bf16.mxu0 %v15319_v5 }
 0x1b8   :  { %13299 = vmatmul.mubr.f32.gmra.mrb[10].mxu0 %v17244_v20  ;;  %v18038_v20 = vpack.c.bf16 %v11038_v24, %v11037_v16  ;;  %v18302_v16 = vld [vmem:[%s23782_s0 + $0x139] sm:$0xff]  ;;  %v18309_v24 = vld [vmem:[%s23782_s0 + $0x141] sm:$0xff] }
 0x1b9   :  { %13301 = vmatprep.mubr.f32.mxu0 %v17249_v21  ;;  %15322 = vmatpush3.bf16.msra.mxu0 %v15319_v5  ;;  %v18058_v21 = vld [vmem:[%s23782_s0 + $0x180] sm:$0xff] }
 0x1ba   :  { %15324 = vmatprep.subr.bf16.mxu0 %v15323_v10  ;;  %v18260_v5 = vld [vmem:[%s23782_s0 + $0xe1] sm:$0xff] }
 0x1bc   :  { %13302 = vmatmul.mubr.f32.gmra.mrb[12].mxu0 %v17262_v25  ;;  %v18065_v25 = vld [vmem:[%s23782_s0 + $0x188] sm:$0xff] }
 0x1bd   :  { %13304 = vmatprep.mubr.f32.mxu0 %v17267_v26  ;;  %15326 = vmatpush3.bf16.msra.mxu0 %v15323_v10  ;;  %v24125_v26 = vld [vmem:[#allocation3_spill] sm:$0xff]  ;;  %v18278_v10 = vld [vmem:[%s23782_s0 + $0x109] sm:$0xff] }
 0x1be   :  { %15328 = vmatprep.subr.bf16.mxu0 %v15327_v15 }
 0x1c0   :  { %13305 = vmatmul.mubr.f32.gmra.mrb[14].mxu0 %v17276_v28  ;;  %v24126_v28 = vld [vmem:[#allocation4_spill] sm:$0xff] }
 0x1c1   :  { %13307 = vmatprep.mubr.f32.mxu0 %v17281_v29  ;;  %15330 = vmatpush3.bf16.msra.mxu0 %v15327_v15  ;;  %v24127_v29 = vld [vmem:[#allocation5_spill] sm:$0xff] }
 0x1c2   :  { %15332 = vmatprep.subr.bf16.mxu0 %v18038_v20  ;;  %v18297_v15 = vld [vmem:[%s23782_s0 + $0x129] sm:$0xff] }
 0x1c4   :  { %13308 = vmatmul.mubr.f32.gmra.mrb[16].mxu0 %v17289_v30  ;;  %v24128_v30 = vld [vmem:[#allocation6_spill] sm:$0xff] }
 0x1c5   :  { %13310 = vmatprep.mubr.f32.mxu0 %v17294_v31  ;;  %v24129_v31 = vld [vmem:[#allocation7_spill] sm:$0xff] }
 0x1c8   :  { %13311 = vmatmul.mubr.f32.gmra.mrb[18].mxu0 %v17301_v32  ;;  %v18100_v32 = vld [vmem:[%s23782_s0 + $0x330] sm:$0xff] }
 0x1c9   :  { %13313 = vmatprep.mubr.f32.mxu0 %v17306_v33  ;;  %v24130_v33 = vld [vmem:[#allocation8_spill] sm:$0xff] }
 0x1cc   :  { %13314 = vmatmul.mubr.f32.gmra.mrb[20].mxu0 %v17313_v34  ;;  %v18107_v34 = vld [vmem:[%s23782_s0 + $0x338] sm:$0xff] }
 0x1cd   :  { %13316 = vmatprep.mubr.f32.mxu0 %v17318_v35  ;;  %v10893_v35 = vld [vmem:[%s23782_s0 + $0x19] sm:$0xff] }
 0x1d0   :  { %13317 = vmatmul.mubr.f32.gmra.mrb[22].mxu0 %v17325_v36  ;;  %v11039_v36 = vld [vmem:[%s23781_s1 + $0x290] sm:$0xff] }
 0x1d1   :  { %13319 = vmatprep.mubr.f32.mxu0 %v17330_v37  ;;  %v11040_v37 = vld [vmem:[%s23781_s1 + $0x298] sm:$0xff] }
 0x1d4   :  { %13320 = vmatmul.mubr.f32.gmra.mrb[24].mxu0 %v17337_v38  ;;  %v10894_v38 = vld [vmem:[%s23782_s0 + $0x21] sm:$0xff] }
 0x1d5   :  { %13322 = vmatprep.mubr.f32.mxu0 %v17342_v39  ;;  %v18125_v39 = vld [vmem:[%s23782_s0 + $0x31] sm:$0xff] }
 0x1d8   :  { %13323 = vmatmul.mubr.f32.gmra.mrb[26].mxu0 %v17349_v40  ;;  %v15335_v40 = vpack.c.bf16 %v11040_v37, %v11039_v36  ;;  %v18357_v36 = vld [vmem:[%s23782_s0 + $0x1e1] sm:$0xff]  ;;  %v18363_v37 = vld [vmem:[%s23782_s0 + $0x1e9] sm:$0xff] }
 0x1d9   :  { %13325 = vmatprep.mubr.f32.mxu0 %v17354_v41  ;;  %v11041_v41 = vld [vmem:[%s23781_s1 + $0x2a0] sm:$0xff] }
 0x1dc   :  { %13326 = vmatmul.mubr.f32.gmra.mrb[28].mxu0 %v17361_v42  ;;  %v11042_v42 = vld [vmem:[%s23781_s1 + $0x2a8] sm:$0xff] }
 0x1dd   :  { %13328 = vmatprep.mubr.f32.mxu0 %v18058_v21 }
 0x1e0   :  { %13329 = vmatmul.mubr.f32.gmra.mrb[30].mxu0 %v18065_v25 }
 0x1e1   :  { %13331 = vmatprep.mubr.f32.mxu0 %v17373_v45  ;;  %v18138_v45 = vld [vmem:[%s23782_s0 + $0x39] sm:$0xff] }
 0x1e4   :  { %13332 = vmatmul.mubr.f32.gmra.mrb[32].mxu0 %v17379_v46  ;;  %v18143_v46 = vld [vmem:[%s23782_s0 + $0x49] sm:$0xff] }
 0x1e5   :  { %13334 = vmatprep.mubr.f32.mxu0 %v17384_v47  ;;  %v15339_v47 = vpack.c.bf16 %v11042_v42, %v11041_v41  ;;  %v18380_v41 = vld [vmem:[%s23782_s0 + $0x211] sm:$0xff]  ;;  %v18387_v42 = vld [vmem:[%s23782_s0 + $0x219] sm:$0xff] }
 0x1e8   :  { %13335 = vmatmul.mubr.f32.gmra.mrb[34].mxu0 %v17391_v48  ;;  %v11043_v48 = vld [vmem:[%s23781_s1 + $0x2b0] sm:$0xff] }
 0x1e9   :  { %13337 = vmatprep.mubr.f32.mxu0 %v17396_v49  ;;  %v11044_v49 = vld [vmem:[%s23781_s1 + $0x2b8] sm:$0xff] }
 0x1ec   :  { %13338 = vmatmul.mubr.f32.gmra.mrb[36].mxu0 %v17403_v50  ;;  %v18156_v50 = vld [vmem:[%s23782_s0 + $0x51] sm:$0xff] }
 0x1ed   :  { %13340 = vmatprep.mubr.f32.mxu0 %v17408_v51  ;;  %v18161_v51 = vld [vmem:[%s23782_s0 + $0x61] sm:$0xff] }
 0x1f0   :  { %13341 = vmatmul.mubr.f32.gmra.mrb[38].mxu0 %v17415_v52  ;;  %v15343_v52 = vpack.c.bf16 %v11044_v49, %v11043_v48  ;;  %v18399_v48 = vld [vmem:[%s23782_s0 + $0x231] sm:$0xff]  ;;  %v18404_v49 = vld [vmem:[%s23782_s0 + $0x241] sm:$0xff] }
 0x1f1   :  { %13343 = vmatprep.mubr.f32.mxu0 %v17420_v53  ;;  %v11045_v53 = vld [vmem:[%s23781_s1 + $0x2c0] sm:$0xff] }
 0x1f4   :  { %13344 = vmatmul.mubr.f32.gmra.mrb[40].mxu0 %v17427_v54  ;;  %v11046_v54 = vld [vmem:[%s23781_s1 + $0x2c8] sm:$0xff] }
 0x1f5   :  { %13346 = vmatprep.mubr.f32.mxu0 %v17432_v56  ;;  %v18174_v56 = vld [vmem:[%s23782_s0 + $0x69] sm:$0xff] }
 0x1f8   :  { %13347 = vmatmul.mubr.f32.gmra.mrb[42].mxu0 %v17439_v57  ;;  %v18179_v57 = vld [vmem:[%s23782_s0 + $0x79] sm:$0xff] }
 0x1f9   :  { %13349 = vmatprep.mubr.f32.mxu0 %v17444_v58  ;;  %v15347_v58 = vpack.c.bf16 %v11046_v54, %v11045_v53  ;;  %v18416_v53 = vld [vmem:[%s23782_s0 + $0x259] sm:$0xff]  ;;  %v18423_v54 = vld [vmem:[%s23782_s0 + $0x261] sm:$0xff] }
 0x1fc   :  { %13350 = vmatmul.mubr.f32.gmra.mrb[44].mxu0 %v17451_v61  ;;  %v11047_v61 = vld [vmem:[%s23781_s1 + $0x2d0] sm:$0xff] }
 0x1fd   :  { %13352 = vmatprep.mubr.f32.mxu0 %v17456_v62  ;;  %v11048_v62 = vld [vmem:[%s23781_s1 + $0x2d8] sm:$0xff] }
 0x200   :  { %13353 = vmatmul.mubr.f32.gmra.mrb[46].mxu0 %v17463_v63  ;;  %v18192_v63 = vld [vmem:[%s23782_s0 + $0x81] sm:$0xff] }
 0x201   :  { %13355 = vmatprep.mubr.f32.mxu0 %v17468_v2  ;;  %v18197_v2 = vld [vmem:[%s23782_s0 + $0x91] sm:$0xff] }
 0x204   :  { %13356 = vmatmul.mubr.f32.gmra.mrb[48].mxu0 %v17475_v3  ;;  %v15351_v3 = vpack.c.bf16 %v11048_v62, %v11047_v61  ;;  %v18435_v61 = vld [vmem:[%s23782_s0 + $0x279] sm:$0xff]  ;;  %v18440_v62 = vld [vmem:[%s23782_s0 + $0x289] sm:$0xff] }
 0x205   :  { %13358 = vmatprep.mubr.f32.mxu0 %v17480_v4  ;;  %v11049_v4 = vld [vmem:[%s23781_s1 + $0x2e0] sm:$0xff] }
 0x208   :  { %13359 = vmatmul.mubr.f32.gmra.mrb[50].mxu0 %v17487_v7  ;;  %v11050_v7 = vld [vmem:[%s23781_s1 + $0x2e8] sm:$0xff] }
 0x209   :  { %13361 = vmatprep.mubr.f32.mxu0 %v17492_v8  ;;  %v18210_v8 = vld [vmem:[%s23782_s0 + $0x99] sm:$0xff] }
 0x20c   :  { %13362 = vmatmul.mubr.f32.gmra.mrb[52].mxu0 %v17499_v9  ;;  %v18215_v9 = vld [vmem:[%s23782_s0 + $0xa9] sm:$0xff] }
 0x20d   :  { %13364 = vmatprep.mubr.f32.mxu0 %v17504_v12  ;;  %v15355_v12 = vpack.c.bf16 %v11050_v7, %v11049_v4  ;;  %v18452_v4 = vld [vmem:[%s23782_s0 + $0x2a1] sm:$0xff]  ;;  %v18459_v7 = vld [vmem:[%s23782_s0 + $0x2a9] sm:$0xff] }
 0x20e   :  { %24131 = vst [vmem:[#allocation3_spill] sm:$0xff] %v18452_v4  ;;  %24132 = vst [vmem:[#allocation4_spill] sm:$0xff] %v18459_v7 }
 0x210   :  { %13365 = vmatmul.mubr.f32.gmra.mrb[54].mxu0 %v17511_v13  ;;  %v11051_v13 = vld [vmem:[%s23781_s1 + $0x2f0] sm:$0xff] }
 0x211   :  { %13367 = vmatprep.mubr.f32.mxu0 %v24125_v26  ;;  %v15359_v59 = vpack.c.bf16 %v11052_v19, %v11051_v13  ;;  %v18321_v26 = vld [vmem:[%s23782_s0 + $0x159] sm:$0xff]  ;;  %v18471_v13 = vld [vmem:[%s23782_s0 + $0x2c1] sm:$0xff]  ;;  %v18476_v19 = vld [vmem:[%s23782_s0 + $0x2d1] sm:$0xff] }
 0x212   :  { %24134 = vst [vmem:[#allocation6_spill] sm:$0xff] %v18471_v13  ;;  %24135 = vst [vmem:[#allocation7_spill] sm:$0xff] %v18476_v19 }
 0x214   :  { %13368 = vmatmul.mubr.f32.gmra.mrb[56].mxu0 %v24126_v28  ;;  %v18326_v28 = vld [vmem:[%s23782_s0 + $0x169] sm:$0xff] }
 0x215   :  { %13370 = vmatprep.mubr.f32.mxu0 %v24127_v29  ;;  %v18333_v29 = vld [vmem:[%s23782_s0 + $0x171] sm:$0xff] }
 0x218   :  { %13371 = vmatmul.mubr.f32.gmra.mrb[58].mxu0 %v24128_v30  ;;  %v18338_v30 = vld [vmem:[%s23782_s0 + $0x181] sm:$0xff] }
 0x219   :  { %13373 = vmatprep.mubr.f32.mxu0 %v24129_v31  ;;  %v18345_v31 = vld [vmem:[%s23782_s0 + $0x189] sm:$0xff] }
 0x21c   :  { %13374 = vmatmul.mubr.f32.gmra.mrb[60].mxu0 %v24130_v33  ;;  %v10925_v33 = vld [vmem:[%s23782_s0 + $0x1c9] sm:$0xff] }
 0x21d   :  { %13376 = vmatprep.mubr.f32.mxu0 %v18100_v32 }
 0x220   :  { %13377 = vmatmul.mubr.f32.gmra.mrb[62].mxu0 %v18107_v34 }
 0x221   :  { %13411 = vmatprep.mubr.f32.mxu0 %v10893_v35  ;;  %v10926_v35 = vld [vmem:[%s23782_s0 + $0x1d1] sm:$0xff] }
 0x224   :  { %13412 = vmatmul.mubr.f32.vlgmr.msra.gmra.mrb[0].mxu0 %v10894_v38  ;;  %v18368_v38 = vld [vmem:[%s23782_s0 + $0x1f9] sm:$0xff] }
 0x225   :  { %15334 = vmatpush3.bf16.msra.mxu0 %v18038_v20  ;;  %13414 = vmatprep.mubr.f32.mxu0 %v18125_v39  ;;  %v18314_v20 = vld [vmem:[%s23782_s0 + $0x151] sm:$0xff] }
 0x226   :  { %15336 = vmatprep.subr.bf16.mxu0 %v15335_v40 }
 0x228   :  { %13415 = vmatmul.mubr.f32.gmra.mrb[2].mxu0 %v18138_v45 }
 0x229   :  { %13417 = vmatprep.mubr.f32.mxu0 %v18143_v46  ;;  %15338 = vmatpush3.bf16.msra.mxu0 %v15335_v40  ;;  %v18375_v40 = vld [vmem:[%s23782_s0 + $0x201] sm:$0xff] }
 0x22a   :  { %15340 = vmatprep.subr.bf16.mxu0 %v15339_v47 }
 0x22c   :  { %13418 = vmatmul.mubr.f32.gmra.mrb[4].mxu0 %v18156_v50 }
 0x22d   :  { %13420 = vmatprep.mubr.f32.mxu0 %v18161_v51  ;;  %15342 = vmatpush3.bf16.msra.mxu0 %v15339_v47  ;;  %v18392_v47 = vld [vmem:[%s23782_s0 + $0x229] sm:$0xff] }
 0x22e   :  { %15344 = vmatprep.subr.bf16.mxu0 %v15343_v52 }
 0x230   :  { %13421 = vmatmul.mubr.f32.gmra.mrb[6].mxu0 %v18174_v56 }
 0x231   :  { %13423 = vmatprep.mubr.f32.mxu0 %v18179_v57  ;;  %15346 = vmatpush3.bf16.msra.mxu0 %v15343_v52  ;;  %v18411_v52 = vld [vmem:[%s23782_s0 + $0x249] sm:$0xff] }
 0x232   :  { %15348 = vmatprep.subr.bf16.mxu0 %v15347_v58 }
 0x234   :  { %13424 = vmatmul.mubr.f32.gmra.mrb[8].mxu0 %v18192_v63 }
 0x235   :  { %13426 = vmatprep.mubr.f32.mxu0 %v18197_v2  ;;  %15350 = vmatpush3.bf16.msra.mxu0 %v15347_v58  ;;  %v18428_v58 = vld [vmem:[%s23782_s0 + $0x271] sm:$0xff] }
 0x236   :  { %15352 = vmatprep.subr.bf16.mxu0 %v15351_v3 }
 0x238   :  { %13427 = vmatmul.mubr.f32.gmra.mrb[10].mxu0 %v18210_v8 }
 0x239   :  { %13429 = vmatprep.mubr.f32.mxu0 %v18215_v9  ;;  %15354 = vmatpush3.bf16.msra.mxu0 %v15351_v3  ;;  %v18447_v3 = vld [vmem:[%s23782_s0 + $0x291] sm:$0xff] }
 0x23a   :  { %15356 = vmatprep.subr.bf16.mxu0 %v15355_v12 }
 0x23c   :  { %13430 = vmatmul.mubr.f32.gmra.mrb[12].mxu0 %v18228_v55 }
 0x23d   :  { %13432 = vmatprep.mubr.f32.mxu0 %v18233_v44  ;;  %15358 = vmatpush3.bf16.msra.mxu0 %v15355_v12  ;;  %v18464_v12 = vld [vmem:[%s23782_s0 + $0x2b9] sm:$0xff] }
 0x23e   :  { %15360 = vmatprep.subr.bf16.mxu0 %v15359_v59  ;;  %24133 = vst [vmem:[#allocation5_spill] sm:$0xff] %v18464_v12 }
 0x240   :  { %13433 = vmatmul.mubr.f32.gmra.mrb[14].mxu0 %v18246_v0 }
 0x241   :  { %13435 = vmatprep.mubr.f32.mxu0 %v18251_v1  ;;  %15362 = vmatpush3.bf16.msra.mxu0 %v15359_v59  ;;  %v18483_v59 = vld [vmem:[%s23782_s0 + $0x2d9] sm:$0xff] }
 0x242   :  { %15364 = vmatprep.subr.bf16.mxu0 %v18253_v23  ;;  %24136 = vst [vmem:[#allocation8_spill] sm:$0xff] %v18483_v59 }
 0x244   :  { %13436 = vmatmul.mubr.f32.gmra.mrb[16].mxu0 %v18260_v5 }
 0x245   :  { %13438 = vmatprep.mubr.f32.mxu0 %v18265_v6 }
 0x248   :  { %13439 = vmatmul.mubr.f32.gmra.mrb[18].mxu0 %v18273_v43 }
 0x249   :  { %13441 = vmatprep.mubr.f32.mxu0 %v18278_v10 }
 0x24c   :  { %13442 = vmatmul.mubr.f32.gmra.mrb[20].mxu0 %v18285_v11 }
 0x24d   :  { %13444 = vmatprep.mubr.f32.mxu0 %v18290_v14 }
 0x250   :  { %13445 = vmatmul.mubr.f32.gmra.mrb[22].mxu0 %v18297_v15 }
 0x251   :  { %13447 = vmatprep.mubr.f32.mxu0 %v18302_v16 }
 0x254   :  { %13448 = vmatmul.mubr.f32.gmra.mrb[24].mxu0 %v18309_v24 }
 0x255   :  { %13450 = vmatprep.mubr.f32.mxu0 %v18314_v20 }
 0x258   :  { %13451 = vmatmul.mubr.f32.gmra.mrb[26].mxu0 %v18321_v26 }
 0x259   :  { %13453 = vmatprep.mubr.f32.mxu0 %v18326_v28 }
 0x25c   :  { %13454 = vmatmul.mubr.f32.gmra.mrb[28].mxu0 %v18333_v29 }
 0x25d   :  { %13456 = vmatprep.mubr.f32.mxu0 %v18338_v30 }
 0x260   :  { %13457 = vmatmul.mubr.f32.gmra.mrb[30].mxu0 %v18345_v31 }
 0x261   :  { %13459 = vmatprep.mubr.f32.mxu0 %v10925_v33  ;;  %v18500_v33 = vld [vmem:[%s23782_s0 + $0x301] sm:$0xff] }
 0x262   :  { %24139 = vst [vmem:[#allocation68_spill] sm:$0xff] %v18500_v33 }
 0x264   :  { %13460 = vmatmul.mubr.f32.gmra.mrb[32].mxu0 %v10926_v35  ;;  %v18507_v35 = vld [vmem:[%s23782_s0 + $0x309] sm:$0xff] }
 0x265   :  { %13462 = vmatprep.mubr.f32.mxu0 %v18357_v36  ;;  %24140 = vst [vmem:[#allocation69_spill] sm:$0xff] %v18507_v35 }
 0x268   :  { %13463 = vmatmul.mubr.f32.gmra.mrb[34].mxu0 %v18363_v37 }
 0x269   :  { %13465 = vmatprep.mubr.f32.mxu0 %v18368_v38 }
 0x26c   :  { %13466 = vmatmul.mubr.f32.gmra.mrb[36].mxu0 %v18375_v40 }
 0x26d   :  { %13468 = vmatprep.mubr.f32.mxu0 %v18380_v41 }
 0x270   :  { %13469 = vmatmul.mubr.f32.gmra.mrb[38].mxu0 %v18387_v42 }
 0x271   :  { %13471 = vmatprep.mubr.f32.mxu0 %v18392_v47 }
 0x274   :  { %13472 = vmatmul.mubr.f32.gmra.mrb[40].mxu0 %v18399_v48 }
 0x275   :  { %13474 = vmatprep.mubr.f32.mxu0 %v18404_v49 }
 0x278   :  { %13475 = vmatmul.mubr.f32.gmra.mrb[42].mxu0 %v18411_v52 }
 0x279   :  { %13477 = vmatprep.mubr.f32.mxu0 %v18416_v53 }
 0x27c   :  { %13478 = vmatmul.mubr.f32.gmra.mrb[44].mxu0 %v18423_v54 }
 0x27d   :  { %13480 = vmatprep.mubr.f32.mxu0 %v18428_v58 }
 0x280   :  { %13481 = vmatmul.mubr.f32.gmra.mrb[46].mxu0 %v18435_v61 }
 0x281   :  { %13483 = vmatprep.mubr.f32.mxu0 %v18440_v62 }
 0x284   :  { %13484 = vmatmul.mubr.f32.gmra.mrb[48].mxu0 %v18447_v3 }
 0x285   :  { %13486 = vmatprep.mubr.f32.mxu0 %v18452_v4 }
 0x288   :  { %13487 = vmatmul.mubr.f32.gmra.mrb[50].mxu0 %v18459_v7  ;;  %v24147_v7 = vld [vmem:[#allocation11_spill] sm:$0xff] }
 0x289   :  { %13489 = vmatprep.mubr.f32.mxu0 %v18464_v12  ;;  %v24146_v12 = vld [vmem:[#allocation10_spill] sm:$0xff] }
 0x28c   :  { %13490 = vmatmul.mubr.f32.gmra.mrb[52].mxu0 %v18471_v13  ;;  %v11122_v13 = vld [vmem:[%s23781_s1 + $0x328] sm:$0xff] }
 0x28d   :  { %13492 = vmatprep.mubr.f32.mxu0 %v18476_v19  ;;  %v24145_v19 = vld [vmem:[#allocation9_spill] sm:$0xff] }
 0x290   :  { %13493 = vmatmul.mubr.f32.gmra.mrb[54].mxu0 %v18483_v59  ;;  %v11120_v59 = vld [vmem:[%s23781_s1 + $0x318] sm:$0xff] }
 0x291   :  { %13495 = vmatprep.mubr.f32.mxu0 %v18488_v60  ;;  %v18512_v60 = vld [vmem:[%s23782_s0 + $0x319] sm:$0xff] }
 0x292   :  { %24141 = vst [vmem:[#allocation70_spill] sm:$0xff] %v18512_v60 }
 0x294   :  { %13496 = vmatmul.mubr.f32.gmra.mrb[56].mxu0 %v18495_v18  ;;  %v18519_v18 = vld [vmem:[%s23782_s0 + $0x321] sm:$0xff] }
 0x295   :  { %13498 = vmatprep.mubr.f32.mxu0 %v18500_v33  ;;  %24142 = vst [vmem:[#allocation71_spill] sm:$0xff] %v18519_v18  ;;  %v18524_v33 = vld [vmem:[%s23782_s0 + $0x331] sm:$0xff] }
 0x296   :  { %24143 = vst [vmem:[#allocation72_spill] sm:$0xff] %v18524_v33 }
 0x298   :  { %13499 = vmatmul.mubr.f32.gmra.mrb[58].mxu0 %v18507_v35  ;;  %v18531_v35 = vld [vmem:[%s23782_s0 + $0x339] sm:$0xff] }
 0x299   :  { %13501 = vmatprep.mubr.f32.mxu0 %v18512_v60  ;;  %24144 = vst [vmem:[#allocation73_spill] sm:$0xff] %v18531_v35  ;;  %v11119_v60 = vld [vmem:[%s23781_s1 + $0x310] sm:$0xff] }
 0x29c   :  { %13502 = vmatmul.mubr.f32.gmra.mrb[60].mxu0 %v18519_v18  ;;  %v15367_v18 = vpack.c.bf16 %v11120_v59, %v11119_v60  ;;  %v11124_v59 = vld [vmem:[%s23781_s1 + $0x338] sm:$0xff]  ;;  %v24148_v60 = vld [vmem:[#allocation12_spill] sm:$0xff] }
 0x29d   :  { %13504 = vmatprep.mubr.f32.mxu0 %v18524_v33  ;;  %v11121_v33 = vld [vmem:[%s23781_s1 + $0x320] sm:$0xff] }
 0x29e   :  { %v15371_v4 = vpack.c.bf16 %v11122_v13, %v11121_v33  ;;  %v24150_v13 = vld [vmem:[#allocation14_spill] sm:$0xff]  ;;  %v24151_v33 = vld [vmem:[#allocation15_spill] sm:$0xff] }
 0x2a0   :  { %13505 = vmatmul.mubr.f32.gmra.mrb[62].mxu0 %v18531_v35  ;;  %v24149_v35 = vld [vmem:[#allocation13_spill] sm:$0xff] }
 0x2a1   :  { %13539 = vmatprep.mubr.f32.mxu0 %v24145_v19  ;;  %v11123_v19 = vld [vmem:[%s23781_s1 + $0x330] sm:$0xff] }
 0x2a4   :  { %13540 = vmatmul.mubr.f32.vlgmr.msra.gmra.mrb[0].mxu0 %v24146_v12  ;;  %v15375_v12 = vpack.c.bf16 %v11124_v59, %v11123_v19  ;;  %v24152_v19 = vld [vmem:[#allocation16_spill] sm:$0xff]  ;;  %v24153_v59 = vld [vmem:[#allocation17_spill] sm:$0xff] }
 0x2a5   :  { %15366 = vmatpush3.bf16.msra.mxu0 %v18253_v23  ;;  %13542 = vmatprep.mubr.f32.mxu0 %v24147_v7  ;;  %v11125_v23 = vld [vmem:[%s23781_s1 + $0x340] sm:$0xff]  ;;  %v11126_v7 = vld [vmem:[%s23781_s1 + $0x348] sm:$0xff] }
 0x2a6   :  { %15368 = vmatprep.subr.bf16.mxu0 %v15367_v18 }
 0x2a8   :  { %13543 = vmatmul.mubr.f32.gmra.mrb[2].mxu0 %v24148_v60  ;;  %v15379_v60 = vpack.c.bf16 %v11126_v7, %v11125_v23  ;;  %v11130_v23 = vld [vmem:[%s23781_s1 + $0x368] sm:$0xff]  ;;  %v24154_v7 = vld [vmem:[#allocation18_spill] sm:$0xff] }
 0x2a9   :  { %13545 = vmatprep.mubr.f32.mxu0 %v24149_v35  ;;  %15370 = vmatpush3.bf16.msra.mxu0 %v15367_v18  ;;  %v11127_v18 = vld [vmem:[%s23781_s1 + $0x350] sm:$0xff]  ;;  %v11128_v35 = vld [vmem:[%s23781_s1 + $0x358] sm:$0xff] }
 0x2aa   :  { %15372 = vmatprep.subr.bf16.mxu0 %v15371_v4 }
 0x2ac   :  { %13546 = vmatmul.mubr.f32.gmra.mrb[4].mxu0 %v24150_v13  ;;  %v15383_v13 = vpack.c.bf16 %v11128_v35, %v11127_v18  ;;  %v11132_v18 = vld [vmem:[%s23781_s1 + $0x378] sm:$0xff]  ;;  %v24155_v35 = vld [vmem:[#allocation19_spill] sm:$0xff] }
 0x2ad   :  { %13548 = vmatprep.mubr.f32.mxu0 %v24151_v33  ;;  %15374 = vmatpush3.bf16.msra.mxu0 %v15371_v4  ;;  %v11129_v4 = vld [vmem:[%s23781_s1 + $0x360] sm:$0xff] }
 0x2ae   :  { %15376 = vmatprep.subr.bf16.mxu0 %v15375_v12  ;;  %v15387_v33 = vpack.c.bf16 %v11130_v23, %v11129_v4  ;;  %v24157_v4 = vld [vmem:[#allocation21_spill] sm:$0xff]  ;;  %v24158_v23 = vld [vmem:[#allocation22_spill] sm:$0xff] }
 0x2b0   :  { %13549 = vmatmul.mubr.f32.gmra.mrb[6].mxu0 %v24152_v19  ;;  %v11198_v19 = vld [vmem:[%s23781_s1 + $0x388] sm:$0xff] }
 0x2b1   :  { %13551 = vmatprep.mubr.f32.mxu0 %v24153_v59  ;;  %15378 = vmatpush3.bf16.msra.mxu0 %v15375_v12  ;;  %v11131_v12 = vld [vmem:[%s23781_s1 + $0x370] sm:$0xff]  ;;  %v24156_v59 = vld [vmem:[#allocation20_spill] sm:$0xff] }
 0x2b2   :  { %15380 = vmatprep.subr.bf16.mxu0 %v15379_v60 }
 0x2b4   :  { %13552 = vmatmul.mubr.f32.gmra.mrb[8].mxu0 %v17650_v17  ;;  %v15391_v17 = vpack.c.bf16 %v11132_v18, %v11131_v12  ;;  %v24161_v12 = vld [vmem:[#allocation25_spill] sm:$0xff]  ;;  %v24162_v18 = vld [vmem:[#allocation26_spill] sm:$0xff] }
 0x2b5   :  { %13554 = vmatprep.mubr.f32.mxu0 %v24154_v7  ;;  %15382 = vmatpush3.bf16.msra.mxu0 %v15379_v60  ;;  %v11197_v60 = vld [vmem:[%s23781_s1 + $0x380] sm:$0xff]  ;;  %v24160_v7 = vld [vmem:[#allocation24_spill] sm:$0xff] }
 0x2b6   :  { %15384 = vmatprep.subr.bf16.mxu0 %v15383_v13 }
 0x2b8   :  { %13555 = vmatmul.mubr.f32.gmra.mrb[10].mxu0 %v17668_v27  ;;  %v18598_v27 = vpack.c.bf16 %v11198_v19, %v11197_v60  ;;  %v24166_v60 = vld [vmem:[#allocation30_spill] sm:$0xff]  ;;  %v24167_v19 = vld [vmem:[#allocation31_spill] sm:$0xff] }
 0x2b9   :  { %13557 = vmatprep.mubr.f32.mxu0 %v24155_v35  ;;  %15386 = vmatpush3.bf16.msra.mxu0 %v15383_v13  ;;  %v24159_v13 = vld [vmem:[#allocation23_spill] sm:$0xff] }
 0x2ba   :  { %15388 = vmatprep.subr.bf16.mxu0 %v15387_v33  ;;  %v24163_v35 = vld [vmem:[#allocation27_spill] sm:$0xff] }
 0x2bc   :  { %13558 = vmatmul.mubr.f32.gmra.mrb[12].mxu0 %v24156_v59  ;;  %v24164_v59 = vld [vmem:[#allocation28_spill] sm:$0xff] }
 0x2bd   :  { %13560 = vmatprep.mubr.f32.mxu0 %v24157_v4  ;;  %15390 = vmatpush3.bf16.msra.mxu0 %v15387_v33  ;;  %v24165_v33 = vld [vmem:[#allocation29_spill] sm:$0xff]  ;;  %v24168_v4 = vld [vmem:[#allocation32_spill] sm:$0xff] }
 0x2be   :  { %15392 = vmatprep.subr.bf16.mxu0 %v15391_v17 }
 0x2c0   :  { %13561 = vmatmul.mubr.f32.gmra.mrb[14].mxu0 %v24158_v23  ;;  %v24170_v23 = vld [vmem:[#allocation34_spill] sm:$0xff] }
 0x2c1   :  { %13563 = vmatprep.mubr.f32.mxu0 %v24159_v13  ;;  %15394 = vmatpush3.bf16.msra.mxu0 %v15391_v17  ;;  %v24169_v17 = vld [vmem:[#allocation33_spill] sm:$0xff]  ;;  %v24171_v13 = vld [vmem:[#allocation35_spill] sm:$0xff] }
 0x2c2   :  { %15396 = vmatprep.subr.bf16.mxu0 %v18598_v27 }
 0x2c4   :  { %13564 = vmatmul.mubr.f32.gmra.mrb[16].mxu0 %v24160_v7  ;;  %v18618_v7 = vld [vmem:[%s23782_s0 + $0x182] sm:$0xff] }
 0x2c5   :  { %13566 = vmatprep.mubr.f32.mxu0 %v24161_v12  ;;  %v24172_v12 = vld [vmem:[#allocation36_spill] sm:$0xff] }
 0x2c8   :  { %13567 = vmatmul.mubr.f32.gmra.mrb[18].mxu0 %v24162_v18  ;;  %v18625_v18 = vld [vmem:[%s23782_s0 + $0x18a] sm:$0xff] }
 0x2c9   :  { %13569 = vmatprep.mubr.f32.mxu0 %v24163_v35  ;;  %24173 = vst [vmem:[#allocation9_spill] sm:$0xff] %v18625_v18  ;;  %v24174_v35 = vld [vmem:[#allocation37_spill] sm:$0xff] }
 0x2cc   :  { %13570 = vmatmul.mubr.f32.gmra.mrb[20].mxu0 %v24164_v59  ;;  %v24175_v59 = vld [vmem:[#allocation38_spill] sm:$0xff] }
 0x2cd   :  { %13572 = vmatprep.mubr.f32.mxu0 %v24165_v33  ;;  %v24176_v33 = vld [vmem:[#allocation39_spill] sm:$0xff] }
 0x2d0   :  { %13573 = vmatmul.mubr.f32.gmra.mrb[22].mxu0 %v24166_v60  ;;  %v24177_v60 = vld [vmem:[#allocation40_spill] sm:$0xff] }
 0x2d1   :  { %13575 = vmatprep.mubr.f32.mxu0 %v24167_v19  ;;  %v24178_v19 = vld [vmem:[#allocation41_spill] sm:$0xff] }
 0x2d4   :  { %13576 = vmatmul.mubr.f32.gmra.mrb[24].mxu0 %v24168_v4  ;;  %v24179_v4 = vld [vmem:[#allocation42_spill] sm:$0xff] }
 0x2d5   :  { %13578 = vmatprep.mubr.f32.mxu0 %v24169_v17  ;;  %v24180_v17 = vld [vmem:[#allocation43_spill] sm:$0xff] }
 0x2d8   :  { %13579 = vmatmul.mubr.f32.gmra.mrb[26].mxu0 %v24170_v23  ;;  %v24181_v23 = vld [vmem:[#allocation44_spill] sm:$0xff] }
 0x2d9   :  { %13581 = vmatprep.mubr.f32.mxu0 %v24171_v13  ;;  %v24182_v13 = vld [vmem:[#allocation45_spill] sm:$0xff] }
 0x2dc   :  { %13582 = vmatmul.mubr.f32.gmra.mrb[28].mxu0 %v24172_v12  ;;  %v24183_v12 = vld [vmem:[#allocation46_spill] sm:$0xff] }
 0x2dd   :  { %13584 = vmatprep.mubr.f32.mxu0 %v18618_v7 }
 0x2e0   :  { %13585 = vmatmul.mubr.f32.gmra.mrb[30].mxu0 %v18625_v18  ;;  %v24184_v18 = vld [vmem:[#allocation47_spill] sm:$0xff] }
 0x2e1   :  { %13587 = vmatprep.mubr.f32.mxu0 %v24174_v35  ;;  %v24185_v35 = vld [vmem:[#allocation48_spill] sm:$0xff] }
 0x2e4   :  { %13588 = vmatmul.mubr.f32.gmra.mrb[32].mxu0 %v24175_v59  ;;  %v24186_v59 = vld [vmem:[#allocation49_spill] sm:$0xff] }
 0x2e5   :  { %13590 = vmatprep.mubr.f32.mxu0 %v24176_v33  ;;  %v24187_v33 = vld [vmem:[#allocation50_spill] sm:$0xff] }
 0x2e8   :  { %13591 = vmatmul.mubr.f32.gmra.mrb[34].mxu0 %v24177_v60  ;;  %v24188_v60 = vld [vmem:[#allocation51_spill] sm:$0xff] }
 0x2e9   :  { %13593 = vmatprep.mubr.f32.mxu0 %v24178_v19  ;;  %v24189_v19 = vld [vmem:[#allocation52_spill] sm:$0xff] }
 0x2ec   :  { %13594 = vmatmul.mubr.f32.gmra.mrb[36].mxu0 %v24179_v4  ;;  %v24190_v4 = vld [vmem:[#allocation53_spill] sm:$0xff] }
 0x2ed   :  { %13596 = vmatprep.mubr.f32.mxu0 %v24180_v17  ;;  %v24191_v17 = vld [vmem:[#allocation54_spill] sm:$0xff] }
 0x2f0   :  { %13597 = vmatmul.mubr.f32.gmra.mrb[38].mxu0 %v24181_v23  ;;  %v24192_v23 = vld [vmem:[#allocation55_spill] sm:$0xff] }
 0x2f1   :  { %13599 = vmatprep.mubr.f32.mxu0 %v24182_v13  ;;  %v24193_v13 = vld [vmem:[#allocation56_spill] sm:$0xff] }
 0x2f4   :  { %13600 = vmatmul.mubr.f32.gmra.mrb[40].mxu0 %v24183_v12  ;;  %v24194_v12 = vld [vmem:[#allocation57_spill] sm:$0xff] }
 0x2f5   :  { %13602 = vmatprep.mubr.f32.mxu0 %v24184_v18  ;;  %v24195_v18 = vld [vmem:[#allocation58_spill] sm:$0xff] }
 0x2f8   :  { %13603 = vmatmul.mubr.f32.gmra.mrb[42].mxu0 %v24185_v35  ;;  %v24196_v35 = vld [vmem:[#allocation59_spill] sm:$0xff] }
 0x2f9   :  { %13605 = vmatprep.mubr.f32.mxu0 %v24186_v59  ;;  %v24197_v59 = vld [vmem:[#allocation60_spill] sm:$0xff] }
 0x2fc   :  { %13606 = vmatmul.mubr.f32.gmra.mrb[44].mxu0 %v24187_v33  ;;  %v24198_v33 = vld [vmem:[#allocation61_spill] sm:$0xff] }
 0x2fd   :  { %13608 = vmatprep.mubr.f32.mxu0 %v24188_v60  ;;  %v24199_v60 = vld [vmem:[#allocation62_spill] sm:$0xff] }
 0x300   :  { %13609 = vmatmul.mubr.f32.gmra.mrb[46].mxu0 %v24189_v19  ;;  %v24200_v19 = vld [vmem:[#allocation63_spill] sm:$0xff] }
 0x301   :  { %13611 = vmatprep.mubr.f32.mxu0 %v24190_v4  ;;  %v24201_v4 = vld [vmem:[#allocation64_spill] sm:$0xff] }
 0x304   :  { %13612 = vmatmul.mubr.f32.gmra.mrb[48].mxu0 %v24191_v17  ;;  %v24202_v17 = vld [vmem:[#allocation65_spill] sm:$0xff] }
 0x305   :  { %13614 = vmatprep.mubr.f32.mxu0 %v24192_v23  ;;  %v18660_v23 = vld [vmem:[%s23782_s0 + $0x332] sm:$0xff] }
 0x308   :  { %13615 = vmatmul.mubr.f32.gmra.mrb[50].mxu0 %v24193_v13  ;;  %v18667_v13 = vld [vmem:[%s23782_s0 + $0x33a] sm:$0xff] }
 0x309   :  { %13617 = vmatprep.mubr.f32.mxu0 %v24194_v12  ;;  %v11053_v12 = vld [vmem:[%s23782_s0 + $0x30] sm:$0xff] }
 0x30c   :  { %13618 = vmatmul.mubr.f32.gmra.mrb[52].mxu0 %v24195_v18  ;;  %v11199_v18 = vld [vmem:[%s23781_s1 + $0x390] sm:$0xff] }
 0x30d   :  { %13620 = vmatprep.mubr.f32.mxu0 %v24196_v35  ;;  %v11200_v35 = vld [vmem:[%s23781_s1 + $0x398] sm:$0xff] }
 0x310   :  { %13621 = vmatmul.mubr.f32.gmra.mrb[54].mxu0 %v24197_v59  ;;  %v11055_v59 = vld [vmem:[%s23782_s0 + $0x48] sm:$0xff] }
 0x311   :  { %13623 = vmatprep.mubr.f32.mxu0 %v24198_v33  ;;  %v15399_v33 = vpack.c.bf16 %v11200_v35, %v11199_v18  ;;  %v11203_v18 = vld [vmem:[%s23781_s1 + $0x3b0] sm:$0xff]  ;;  %v11204_v35 = vld [vmem:[%s23781_s1 + $0x3b8] sm:$0xff] }
 0x314   :  { %13624 = vmatmul.mubr.f32.gmra.mrb[56].mxu0 %v24199_v60  ;;  %v11201_v60 = vld [vmem:[%s23781_s1 + $0x3a0] sm:$0xff] }
 0x315   :  { %13626 = vmatprep.mubr.f32.mxu0 %v24200_v19  ;;  %v11202_v19 = vld [vmem:[%s23781_s1 + $0x3a8] sm:$0xff] }
 0x318   :  { %13627 = vmatmul.mubr.f32.gmra.mrb[58].mxu0 %v24201_v4  ;;  %v11056_v4 = vld [vmem:[%s23782_s0 + $0x50] sm:$0xff] }
 0x319   :  { %13629 = vmatprep.mubr.f32.mxu0 %v24202_v17  ;;  %v11057_v17 = vld [vmem:[%s23782_s0 + $0x60] sm:$0xff] }
 0x31c   :  { %13630 = vmatmul.mubr.f32.gmra.mrb[60].mxu0 %v17971_v22  ;;  %v11054_v22 = vld [vmem:[%s23782_s0 + $0x38] sm:$0xff] }
 0x31d   :  { %13632 = vmatprep.mubr.f32.mxu0 %v18660_v23 }
 0x320   :  { %13633 = vmatmul.mubr.f32.gmra.mrb[62].mxu0 %v18667_v13 }
 0x321   :  { %13667 = vmatprep.mubr.f32.mxu0 %v11053_v12  ;;  %v15403_v12 = vpack.c.bf16 %v11202_v19, %v11201_v60  ;;  %v11205_v60 = vld [vmem:[%s23781_s1 + $0x3c0] sm:$0xff]  ;;  %v11206_v19 = vld [vmem:[%s23781_s1 + $0x3c8] sm:$0xff] }
 0x324   :  { %13668 = vmatmul.mubr.f32.vlgmr.msra.gmra.mrb[0].mxu0 %v11054_v22  ;;  %v11059_v22 = vld [vmem:[%s23782_s0 + $0x78] sm:$0xff] }
 0x325   :  { %15398 = vmatpush3.bf16.msra.mxu0 %v18598_v27  ;;  %13670 = vmatprep.mubr.f32.mxu0 %v11055_v59  ;;  %v11058_v27 = vld [vmem:[%s23782_s0 + $0x68] sm:$0xff]  ;;  %v15407_v59 = vpack.c.bf16 %v11204_v35, %v11203_v18  ;;  %v11207_v18 = vld [vmem:[%s23781_s1 + $0x3d0] sm:$0xff]  ;;  %v11208_v35 = vld [vmem:[%s23781_s1 + $0x3d8] sm:$0xff] }
 0x326   :  { %15400 = vmatprep.subr.bf16.mxu0 %v15399_v33 }
 0x328   :  { %13671 = vmatmul.mubr.f32.gmra.mrb[2].mxu0 %v11056_v4  ;;  %v11061_v4 = vld [vmem:[%s23782_s0 + $0x90] sm:$0xff] }
 0x329   :  { %13673 = vmatprep.mubr.f32.mxu0 %v11057_v17  ;;  %15402 = vmatpush3.bf16.msra.mxu0 %v15399_v33  ;;  %v11060_v33 = vld [vmem:[%s23782_s0 + $0x80] sm:$0xff]  ;;  %v15411_v17 = vpack.c.bf16 %v11206_v19, %v11205_v60  ;;  %v11210_v19 = vld [vmem:[%s23781_s1 + $0x3e8] sm:$0xff] }
 0x32a   :  { %15404 = vmatprep.subr.bf16.mxu0 %v15403_v12  ;;  %v11209_v60 = vld [vmem:[%s23781_s1 + $0x3e0] sm:$0xff] }
 0x32c   :  { %13674 = vmatmul.mubr.f32.gmra.mrb[4].mxu0 %v11058_v27  ;;  %v11063_v27 = vld [vmem:[%s23782_s0 + $0xa8] sm:$0xff] }
 0x32d   :  { %13676 = vmatprep.mubr.f32.mxu0 %v11059_v22  ;;  %15406 = vmatpush3.bf16.msra.mxu0 %v15403_v12  ;;  %v11062_v12 = vld [vmem:[%s23782_s0 + $0x98] sm:$0xff]  ;;  %v15415_v22 = vpack.c.bf16 %v11208_v35, %v11207_v18  ;;  %v11211_v18 = vld [vmem:[%s23781_s1 + $0x3f0] sm:$0xff] }
 0x32e   :  { %15408 = vmatprep.subr.bf16.mxu0 %v15407_v59  ;;  %v11212_v35 = vld [vmem:[%s23781_s1 + $0x3f8] sm:$0xff] }
 0x330   :  { %13677 = vmatmul.mubr.f32.gmra.mrb[6].mxu0 %v11060_v33  ;;  %v11065_v33 = vld [vmem:[%s23782_s0 + $0xc0] sm:$0xff] }
 0x331   :  { %13679 = vmatprep.mubr.f32.mxu0 %v11061_v4  ;;  %15410 = vmatpush3.bf16.msra.mxu0 %v15407_v59  ;;  %v11064_v59 = vld [vmem:[%s23782_s0 + $0xb0] sm:$0xff]  ;;  %v15419_v4 = vpack.c.bf16 %v11210_v19, %v11209_v60  ;;  %v11277_v60 = vld [vmem:[%s23781_s1 + $0x400] sm:$0xff]  ;;  %v11278_v19 = vld [vmem:[%s23781_s1 + $0x408] sm:$0xff] }
 0x332   :  { %15412 = vmatprep.subr.bf16.mxu0 %v15411_v17 }
 0x334   :  { %13680 = vmatmul.mubr.f32.gmra.mrb[8].mxu0 %v11062_v12  ;;  %v11067_v12 = vld [vmem:[%s23782_s0 + $0xd8] sm:$0xff] }
 0x335   :  { %13682 = vmatprep.mubr.f32.mxu0 %v11063_v27  ;;  %15414 = vmatpush3.bf16.msra.mxu0 %v15411_v17  ;;  %v11066_v17 = vld [vmem:[%s23782_s0 + $0xc8] sm:$0xff]  ;;  %v15423_v27 = vpack.c.bf16 %v11212_v35, %v11211_v18  ;;  %v11070_v18 = vld [vmem:[%s23782_s0 + $0xf8] sm:$0xff] }
 0x336   :  { %15416 = vmatprep.subr.bf16.mxu0 %v15415_v22  ;;  %v11071_v35 = vld [vmem:[%s23782_s0 + $0x108] sm:$0xff] }
 0x338   :  { %13683 = vmatmul.mubr.f32.gmra.mrb[10].mxu0 %v11064_v59  ;;  %v11069_v59 = vld [vmem:[%s23782_s0 + $0xf0] sm:$0xff] }
 0x339   :  { %13685 = vmatprep.mubr.f32.mxu0 %v11065_v33  ;;  %15418 = vmatpush3.bf16.msra.mxu0 %v15415_v22  ;;  %v11068_v22 = vld [vmem:[%s23782_s0 + $0xe0] sm:$0xff]  ;;  %v18770_v33 = vpack.c.bf16 %v11278_v19, %v11277_v60  ;;  %v11077_v19 = vld [vmem:[%s23782_s0 + $0x150] sm:$0xff] }
 0x33a   :  { %15420 = vmatprep.subr.bf16.mxu0 %v15419_v4  ;;  %v11076_v60 = vld [vmem:[%s23782_s0 + $0x140] sm:$0xff] }
 0x33c   :  { %13686 = vmatmul.mubr.f32.gmra.mrb[12].mxu0 %v11066_v17  ;;  %v11073_v17 = vld [vmem:[%s23782_s0 + $0x120] sm:$0xff] }
 0x33d   :  { %13688 = vmatprep.mubr.f32.mxu0 %v11067_v12  ;;  %15422 = vmatpush3.bf16.msra.mxu0 %v15419_v4  ;;  %v11072_v4 = vld [vmem:[%s23782_s0 + $0x110] sm:$0xff]  ;;  %v11074_v12 = vld [vmem:[%s23782_s0 + $0x128] sm:$0xff] }
 0x33e   :  { %15424 = vmatprep.subr.bf16.mxu0 %v15423_v27 }
 0x340   :  { %13689 = vmatmul.mubr.f32.gmra.mrb[14].mxu0 %v11068_v22  ;;  %v11078_v22 = vld [vmem:[%s23782_s0 + $0x158] sm:$0xff] }
 0x341   :  { %13691 = vmatprep.mubr.f32.mxu0 %v11069_v59  ;;  %15426 = vmatpush3.bf16.msra.mxu0 %v15423_v27  ;;  %v11075_v27 = vld [vmem:[%s23782_s0 + $0x138] sm:$0xff]  ;;  %v11079_v59 = vld [vmem:[%s23782_s0 + $0x168] sm:$0xff] }
 0x342   :  { %15428 = vmatprep.subr.bf16.mxu0 %v18770_v33 }
 0x344   :  { %13692 = vmatmul.mubr.f32.gmra.mrb[16].mxu0 %v11070_v18  ;;  %v11080_v18 = vld [vmem:[%s23782_s0 + $0x170] sm:$0xff] }
 0x345   :  { %13694 = vmatprep.mubr.f32.mxu0 %v11071_v35  ;;  %v11083_v35 = vld [vmem:[%s23782_s0 + $0x198] sm:$0xff] }
 0x348   :  { %13695 = vmatmul.mubr.f32.gmra.mrb[18].mxu0 %v11072_v4  ;;  %v11084_v4 = vld [vmem:[%s23782_s0 + $0x1a0] sm:$0xff] }
 0x349   :  { %13697 = vmatprep.mubr.f32.mxu0 %v11073_v17  ;;  %v11085_v17 = vld [vmem:[%s23782_s0 + $0x1e0] sm:$0xff] }
 0x34c   :  { %13698 = vmatmul.mubr.f32.gmra.mrb[20].mxu0 %v11074_v12  ;;  %v11087_v12 = vld [vmem:[%s23782_s0 + $0x1f8] sm:$0xff] }
 0x34d   :  { %13700 = vmatprep.mubr.f32.mxu0 %v11075_v27  ;;  %v11089_v27 = vld [vmem:[%s23782_s0 + $0x210] sm:$0xff] }
 0x350   :  { %13701 = vmatmul.mubr.f32.gmra.mrb[22].mxu0 %v11076_v60  ;;  %v11090_v60 = vld [vmem:[%s23782_s0 + $0x218] sm:$0xff] }
 0x351   :  { %13703 = vmatprep.mubr.f32.mxu0 %v11077_v19  ;;  %v11091_v19 = vld [vmem:[%s23782_s0 + $0x228] sm:$0xff] }
 0x354   :  { %13704 = vmatmul.mubr.f32.gmra.mrb[24].mxu0 %v11078_v22  ;;  %v11092_v22 = vld [vmem:[%s23782_s0 + $0x230] sm:$0xff] }
 0x355   :  { %13706 = vmatprep.mubr.f32.mxu0 %v11079_v59  ;;  %v11093_v59 = vld [vmem:[%s23782_s0 + $0x240] sm:$0xff] }
 0x358   :  { %13707 = vmatmul.mubr.f32.gmra.mrb[26].mxu0 %v11080_v18  ;;  %v11094_v18 = vld [vmem:[%s23782_s0 + $0x248] sm:$0xff] }
 0x359   :  { %13709 = vmatprep.mubr.f32.mxu0 %v18058_v21  ;;  %v11086_v21 = vld [vmem:[%s23782_s0 + $0x1e8] sm:$0xff] }
 0x35c   :  { %13710 = vmatmul.mubr.f32.gmra.mrb[28].mxu0 %v18065_v25  ;;  %v11088_v25 = vld [vmem:[%s23782_s0 + $0x200] sm:$0xff] }
 0x35d   :  { %13712 = vmatprep.mubr.f32.mxu0 %v11083_v35  ;;  %v11095_v35 = vld [vmem:[%s23782_s0 + $0x258] sm:$0xff] }
 0x360   :  { %13713 = vmatmul.mubr.f32.gmra.mrb[30].mxu0 %v11084_v4  ;;  %v11096_v4 = vld [vmem:[%s23782_s0 + $0x260] sm:$0xff] }
 0x361   :  { %13715 = vmatprep.mubr.f32.mxu0 %v11085_v17  ;;  %v11097_v17 = vld [vmem:[%s23782_s0 + $0x270] sm:$0xff] }
 0x364   :  { %13716 = vmatmul.mubr.f32.gmra.mrb[32].mxu0 %v11086_v21  ;;  %v11098_v21 = vld [vmem:[%s23782_s0 + $0x278] sm:$0xff] }
 0x365   :  { %13718 = vmatprep.mubr.f32.mxu0 %v11087_v12  ;;  %v11099_v12 = vld [vmem:[%s23782_s0 + $0x288] sm:$0xff] }
 0x368   :  { %13719 = vmatmul.mubr.f32.gmra.mrb[34].mxu0 %v11088_v25  ;;  %v11100_v25 = vld [vmem:[%s23782_s0 + $0x290] sm:$0xff] }
 0x369   :  { %13721 = vmatprep.mubr.f32.mxu0 %v11089_v27  ;;  %v11101_v27 = vld [vmem:[%s23782_s0 + $0x2a0] sm:$0xff] }
 0x36c   :  { %13722 = vmatmul.mubr.f32.gmra.mrb[36].mxu0 %v11090_v60  ;;  %v11102_v60 = vld [vmem:[%s23782_s0 + $0x2a8] sm:$0xff] }
 0x36d   :  { %13724 = vmatprep.mubr.f32.mxu0 %v11091_v19  ;;  %v11103_v19 = vld [vmem:[%s23782_s0 + $0x2b8] sm:$0xff] }
 0x370   :  { %13725 = vmatmul.mubr.f32.gmra.mrb[38].mxu0 %v11092_v22  ;;  %v11104_v22 = vld [vmem:[%s23782_s0 + $0x2c0] sm:$0xff] }
 0x371   :  { %13727 = vmatprep.mubr.f32.mxu0 %v11093_v59  ;;  %v11105_v59 = vld [vmem:[%s23782_s0 + $0x2d0] sm:$0xff] }
 0x374   :  { %13728 = vmatmul.mubr.f32.gmra.mrb[40].mxu0 %v11094_v18  ;;  %v11106_v18 = vld [vmem:[%s23782_s0 + $0x2d8] sm:$0xff] }
 0x375   :  { %13730 = vmatprep.mubr.f32.mxu0 %v11095_v35  ;;  %v11107_v35 = vld [vmem:[%s23782_s0 + $0x2e8] sm:$0xff] }
 0x378   :  { %13731 = vmatmul.mubr.f32.gmra.mrb[42].mxu0 %v11096_v4  ;;  %v11108_v4 = vld [vmem:[%s23782_s0 + $0x2f0] sm:$0xff] }
 0x379   :  { %13733 = vmatprep.mubr.f32.mxu0 %v11097_v17  ;;  %v11109_v17 = vld [vmem:[%s23782_s0 + $0x300] sm:$0xff] }
 0x37c   :  { %13734 = vmatmul.mubr.f32.gmra.mrb[44].mxu0 %v11098_v21  ;;  %v11110_v21 = vld [vmem:[%s23782_s0 + $0x308] sm:$0xff] }
 0x37d   :  { %13736 = vmatprep.mubr.f32.mxu0 %v11099_v12  ;;  %v11111_v12 = vld [vmem:[%s23782_s0 + $0x318] sm:$0xff] }
 0x380   :  { %13737 = vmatmul.mubr.f32.gmra.mrb[46].mxu0 %v11100_v25  ;;  %v11112_v25 = vld [vmem:[%s23782_s0 + $0x320] sm:$0xff] }
 0x381   :  { %13739 = vmatprep.mubr.f32.mxu0 %v11101_v27  ;;  %v11115_v27 = vld [vmem:[%s23782_s0 + $0x348] sm:$0xff] }
 0x384   :  { %13740 = vmatmul.mubr.f32.gmra.mrb[48].mxu0 %v11102_v60  ;;  %v11116_v60 = vld [vmem:[%s23782_s0 + $0x350] sm:$0xff] }
 0x385   :  { %13742 = vmatprep.mubr.f32.mxu0 %v11103_v19  ;;  %v11279_v19 = vld [vmem:[%s23781_s1 + $0x410] sm:$0xff] }
 0x388   :  { %13743 = vmatmul.mubr.f32.gmra.mrb[50].mxu0 %v11104_v22  ;;  %v11280_v22 = vld [vmem:[%s23781_s1 + $0x418] sm:$0xff] }
 0x389   :  { %13745 = vmatprep.mubr.f32.mxu0 %v11105_v59  ;;  %v11282_v59 = vld [vmem:[%s23781_s1 + $0x428] sm:$0xff] }
 0x38c   :  { %13746 = vmatmul.mubr.f32.gmra.mrb[52].mxu0 %v11106_v18 }
 0x38d   :  { %13748 = vmatprep.mubr.f32.mxu0 %v11107_v35  ;;  %v11284_v35 = vld [vmem:[%s23781_s1 + $0x438] sm:$0xff] }
 0x390   :  { %13749 = vmatmul.mubr.f32.gmra.mrb[54].mxu0 %v11108_v4  ;;  %v11288_v4 = vld [vmem:[%s23781_s1 + $0x458] sm:$0xff] }
 0x391   :  { %13751 = vmatprep.mubr.f32.mxu0 %v11109_v17  ;;  %v11290_v17 = vld [vmem:[%s23781_s1 + $0x468] sm:$0xff] }
 0x394   :  { %13752 = vmatmul.mubr.f32.gmra.mrb[56].mxu0 %v11110_v21  ;;  %v11292_v21 = vld [vmem:[%s23781_s1 + $0x478] sm:$0xff] }
 0x395   :  { %13754 = vmatprep.mubr.f32.mxu0 %v11111_v12  ;;  %v11231_v12 = vld [vmem:[%s23782_s0 + $0x10a] sm:$0xff] }
 0x398   :  { %13755 = vmatmul.mubr.f32.gmra.mrb[58].mxu0 %v11112_v25  ;;  %v11232_v25 = vld [vmem:[%s23782_s0 + $0x112] sm:$0xff] }
 0x399   :  { %13757 = vmatprep.mubr.f32.mxu0 %v18100_v32  ;;  %v15431_v32 = vpack.c.bf16 %v11280_v22, %v11279_v19  ;;  %v11235_v19 = vld [vmem:[%s23782_s0 + $0x13a] sm:$0xff]  ;;  %v11236_v22 = vld [vmem:[%s23782_s0 + $0x142] sm:$0xff] }
 0x39c   :  { %13758 = vmatmul.mubr.f32.gmra.mrb[60].mxu0 %v18107_v34  ;;  %v11281_v34 = vld [vmem:[%s23781_s1 + $0x420] sm:$0xff] }
 0x39d   :  { %13760 = vmatprep.mubr.f32.mxu0 %v11115_v27  ;;  %v15435_v18 = vpack.c.bf16 %v11282_v59, %v11281_v34  ;;  %v11233_v27 = vld [vmem:[%s23782_s0 + $0x122] sm:$0xff]  ;;  %v11238_v34 = vld [vmem:[%s23782_s0 + $0x15a] sm:$0xff]  ;;  %v11239_v59 = vld [vmem:[%s23782_s0 + $0x16a] sm:$0xff] }
 0x3a0   :  { %13761 = vmatmul.mubr.f32.gmra.mrb[62].mxu0 %v11116_v60  ;;  %v11234_v60 = vld [vmem:[%s23782_s0 + $0x12a] sm:$0xff] }
 0x3a1   :  { %13795 = vmatprep.mubr.f32.mxu0 %v18125_v39  ;;  %v11283_v39 = vld [vmem:[%s23781_s1 + $0x430] sm:$0xff] }
 0x3a4   :  { %13796 = vmatmul.mubr.f32.vlgmr.msra.gmra.mrb[0].mxu0 %v18138_v45  ;;  %v15439_v45 = vpack.c.bf16 %v11284_v35, %v11283_v39  ;;  %v11243_v39 = vld [vmem:[%s23782_s0 + $0x19a] sm:$0xff]  ;;  %v24217_v35 = vld [vmem:[#allocation9_spill] sm:$0xff] }
 0x3a5   :  { %15430 = vmatpush3.bf16.msra.mxu0 %v18770_v33  ;;  %13798 = vmatprep.mubr.f32.mxu0 %v18143_v46  ;;  %v11285_v46 = vld [vmem:[%s23781_s1 + $0x440] sm:$0xff]  ;;  %v11286_v33 = vld [vmem:[%s23781_s1 + $0x448] sm:$0xff] }
 0x3a6   :  { %15432 = vmatprep.subr.bf16.mxu0 %v15431_v32 }
 0x3a8   :  { %13799 = vmatmul.mubr.f32.gmra.mrb[2].mxu0 %v18156_v50  ;;  %v15443_v50 = vpack.c.bf16 %v11286_v33, %v11285_v46  ;;  %v11245_v46 = vld [vmem:[%s23782_s0 + $0x1e2] sm:$0xff]  ;;  %v11247_v33 = vld [vmem:[%s23782_s0 + $0x1fa] sm:$0xff] }
 0x3a9   :  { %13801 = vmatprep.mubr.f32.mxu0 %v18161_v51  ;;  %15434 = vmatpush3.bf16.msra.mxu0 %v15431_v32  ;;  %v11287_v51 = vld [vmem:[%s23781_s1 + $0x450] sm:$0xff] }
 0x3aa   :  { %15436 = vmatprep.subr.bf16.mxu0 %v15435_v18  ;;  %v11237_v32 = vld [vmem:[%s23782_s0 + $0x152] sm:$0xff] }
 0x3ac   :  { %13802 = vmatmul.mubr.f32.gmra.mrb[4].mxu0 %v18174_v56  ;;  %v15447_v56 = vpack.c.bf16 %v11288_v4, %v11287_v51  ;;  %v11249_v51 = vld [vmem:[%s23782_s0 + $0x212] sm:$0xff]  ;;  %v11250_v4 = vld [vmem:[%s23782_s0 + $0x21a] sm:$0xff] }
 0x3ad   :  { %13804 = vmatprep.mubr.f32.mxu0 %v18179_v57  ;;  %15438 = vmatpush3.bf16.msra.mxu0 %v15435_v18  ;;  %v11289_v57 = vld [vmem:[%s23781_s1 + $0x460] sm:$0xff]  ;;  %v11240_v18 = vld [vmem:[%s23782_s0 + $0x172] sm:$0xff] }
 0x3ae   :  { %15440 = vmatprep.subr.bf16.mxu0 %v15439_v45 }
 0x3b0   :  { %13805 = vmatmul.mubr.f32.gmra.mrb[6].mxu0 %v18192_v63  ;;  %v15451_v63 = vpack.c.bf16 %v11290_v17, %v11289_v57  ;;  %v11252_v57 = vld [vmem:[%s23782_s0 + $0x232] sm:$0xff]  ;;  %v11253_v17 = vld [vmem:[%s23782_s0 + $0x242] sm:$0xff] }
 0x3b1   :  { %13807 = vmatprep.mubr.f32.mxu0 %v18197_v2  ;;  %15442 = vmatpush3.bf16.msra.mxu0 %v15439_v45  ;;  %v11291_v2 = vld [vmem:[%s23781_s1 + $0x470] sm:$0xff]  ;;  %v11244_v45 = vld [vmem:[%s23782_s0 + $0x1a2] sm:$0xff] }
 0x3b2   :  { %15444 = vmatprep.subr.bf16.mxu0 %v15443_v50 }
 0x3b4   :  { %13808 = vmatmul.mubr.f32.gmra.mrb[8].mxu0 %v18210_v8  ;;  %v15455_v8 = vpack.c.bf16 %v11292_v21, %v11291_v2  ;;  %v11255_v2 = vld [vmem:[%s23782_s0 + $0x25a] sm:$0xff]  ;;  %v11256_v21 = vld [vmem:[%s23782_s0 + $0x262] sm:$0xff] }
 0x3b5   :  { %13810 = vmatprep.mubr.f32.mxu0 %v18215_v9  ;;  %15446 = vmatpush3.bf16.msra.mxu0 %v15443_v50  ;;  %v11163_v9 = vld [vmem:[%s23782_s0 + $0x199] sm:$0xff]  ;;  %v11248_v50 = vld [vmem:[%s23782_s0 + $0x202] sm:$0xff] }
 0x3b6   :  { %15448 = vmatprep.subr.bf16.mxu0 %v15447_v56 }
 0x3b8   :  { %13811 = vmatmul.mubr.f32.gmra.mrb[10].mxu0 %v18228_v55  ;;  %v11164_v55 = vld [vmem:[%s23782_s0 + $0x1a1] sm:$0xff] }
 0x3b9   :  { %13813 = vmatprep.mubr.f32.mxu0 %v18233_v44  ;;  %15450 = vmatpush3.bf16.msra.mxu0 %v15447_v56  ;;  %v24203_v44 = vld [vmem:[#allocation3_spill] sm:$0xff]  ;;  %v11251_v56 = vld [vmem:[%s23782_s0 + $0x22a] sm:$0xff] }
 0x3ba   :  { %15452 = vmatprep.subr.bf16.mxu0 %v15451_v63 }
 0x3bc   :  { %13814 = vmatmul.mubr.f32.gmra.mrb[12].mxu0 %v18246_v0  ;;  %v24204_v0 = vld [vmem:[#allocation4_spill] sm:$0xff] }
 0x3bd   :  { %13816 = vmatprep.mubr.f32.mxu0 %v18251_v1  ;;  %15454 = vmatpush3.bf16.msra.mxu0 %v15451_v63  ;;  %v24205_v1 = vld [vmem:[#allocation5_spill] sm:$0xff] }
 0x3be   :  { %15456 = vmatprep.subr.bf16.mxu0 %v15455_v8  ;;  %v11254_v63 = vld [vmem:[%s23782_s0 + $0x24a] sm:$0xff] }
 0x3c0   :  { %13817 = vmatmul.mubr.f32.gmra.mrb[14].mxu0 %v18260_v5  ;;  %v24206_v5 = vld [vmem:[#allocation6_spill] sm:$0xff] }
 0x3c1   :  { %13819 = vmatprep.mubr.f32.mxu0 %v18265_v6  ;;  %15458 = vmatpush3.bf16.msra.mxu0 %v15455_v8  ;;  %v24207_v6 = vld [vmem:[#allocation7_spill] sm:$0xff]  ;;  %v11257_v8 = vld [vmem:[%s23782_s0 + $0x272] sm:$0xff] }
 0x3c4   :  { %13820 = vmatmul.mubr.f32.gmra.mrb[16].mxu0 %v18273_v43  ;;  %v24208_v43 = vld [vmem:[#allocation8_spill] sm:$0xff] }
 0x3c5   :  { %13822 = vmatprep.mubr.f32.mxu0 %v18278_v10  ;;  %v24209_v10 = vld [vmem:[#allocation66_spill] sm:$0xff] }
 0x3c8   :  { %13823 = vmatmul.mubr.f32.gmra.mrb[18].mxu0 %v18285_v11  ;;  %v24210_v11 = vld [vmem:[#allocation67_spill] sm:$0xff] }
 0x3c9   :  { %13825 = vmatprep.mubr.f32.mxu0 %v18290_v14  ;;  %v24211_v14 = vld [vmem:[#allocation68_spill] sm:$0xff] }
 0x3cc   :  { %13826 = vmatmul.mubr.f32.gmra.mrb[20].mxu0 %v18297_v15  ;;  %v24212_v15 = vld [vmem:[#allocation69_spill] sm:$0xff] }
 0x3cd   :  { %13828 = vmatprep.mubr.f32.mxu0 %v18302_v16  ;;  %v24213_v16 = vld [vmem:[#allocation70_spill] sm:$0xff] }
 0x3d0   :  { %13829 = vmatmul.mubr.f32.gmra.mrb[22].mxu0 %v18309_v24  ;;  %v24214_v24 = vld [vmem:[#allocation71_spill] sm:$0xff] }
 0x3d1   :  { %13831 = vmatprep.mubr.f32.mxu0 %v18314_v20  ;;  %v24215_v20 = vld [vmem:[#allocation72_spill] sm:$0xff] }
 0x3d4   :  { %13832 = vmatmul.mubr.f32.gmra.mrb[24].mxu0 %v18321_v26  ;;  %v11195_v26 = vld [vmem:[%s23782_s0 + $0x349] sm:$0xff] }
 0x3d5   :  { %13834 = vmatprep.mubr.f32.mxu0 %v18326_v28  ;;  %v24216_v28 = vld [vmem:[#allocation73_spill] sm:$0xff] }
 0x3d8   :  { %13835 = vmatmul.mubr.f32.gmra.mrb[26].mxu0 %v18333_v29  ;;  %v11196_v29 = vld [vmem:[%s23782_s0 + $0x351] sm:$0xff] }
 0x3d9   :  { %13837 = vmatprep.mubr.f32.mxu0 %v18338_v30  ;;  %v11213_v30 = vld [vmem:[%s23782_s0 + $0x32] sm:$0xff] }
 0x3dc   :  { %13838 = vmatmul.mubr.f32.gmra.mrb[28].mxu0 %v18345_v31  ;;  %v11214_v31 = vld [vmem:[%s23782_s0 + $0x3a] sm:$0xff] }
 0x3dd   :  { %13840 = vmatprep.mubr.f32.mxu0 %v11163_v9  ;;  %v19155_v9 = vld [vmem:[%s23782_s0 + $0x27a] sm:$0xff] }
 0x3e0   :  { %13841 = vmatmul.mubr.f32.gmra.mrb[30].mxu0 %v11164_v55  ;;  %v16778_v55 = vmov 0.0  }
 0x3e1   :  { %13843 = vmatprep.mubr.f32.mxu0 %v18357_v36  ;;  %v11215_v36 = vld [vmem:[%s23782_s0 + $0x4a] sm:$0xff]  ;;  %5291 = vst [vmem:[#allocation2 + $0x20] sm:$0xff] %v16778_v55  ;;  %5292 = vst [vmem:[#allocation2 + $0x28] sm:$0x3] %v16778_v55 }
 0x3e2   :  { %5287 = vst [vmem:[#allocation2] sm:$0xff] %v16778_v55  ;;  %5288 = vst [vmem:[#allocation2 + $0x8] sm:$0xff] %v16778_v55 }
 0x3e3   :  { %5289 = vst [vmem:[#allocation2 + $0x10] sm:$0x3] %v16778_v55  ;;  %5290 = vst [vmem:[#allocation2 + $0x18] sm:$0xff] %v16778_v55 }
 0x3e4   :  { %13844 = vmatmul.mubr.f32.gmra.mrb[32].mxu0 %v18363_v37  ;;  %v11216_v37 = vld [vmem:[%s23782_s0 + $0x52] sm:$0xff]  ;;  %5293 = vst [vmem:[#allocation2 + $0x30] sm:$0xff] %v16778_v55  ;;  %5294 = vst [vmem:[#allocation2 + $0x38] sm:$0xff] %v16778_v55 }
 0x3e5   :  { %13846 = vmatprep.mubr.f32.mxu0 %v18368_v38  ;;  %v11217_v38 = vld [vmem:[%s23782_s0 + $0x62] sm:$0xff]  ;;  %5295 = vst [vmem:[#allocation2 + $0x40] sm:$0x3] %v16778_v55  ;;  %5296 = vst [vmem:[#allocation2 + $0x48] sm:$0xff] %v16778_v55 }
 0x3e6   :  { %5297 = vst [vmem:[#allocation2 + $0x50] sm:$0xff] %v16778_v55  ;;  %5298 = vst [vmem:[#allocation2 + $0x58] sm:$0x3] %v16778_v55 }
 0x3e7   :  { %5299 = vst [vmem:[#allocation2 + $0x60] sm:$0xff] %v16778_v55  ;;  %5300 = vst [vmem:[#allocation2 + $0x68] sm:$0xff] %v16778_v55 }
 0x3e8   :  { %13847 = vmatmul.mubr.f32.gmra.mrb[34].mxu0 %v18375_v40  ;;  %v11218_v40 = vld [vmem:[%s23782_s0 + $0x6a] sm:$0xff]  ;;  %5301 = vst [vmem:[#allocation2 + $0x70] sm:$0x3] %v16778_v55  ;;  %5302 = vst [vmem:[#allocation2 + $0x78] sm:$0xff] %v16778_v55 }
 0x3e9   :  { %13849 = vmatprep.mubr.f32.mxu0 %v18380_v41  ;;  %v11219_v41 = vld [vmem:[%s23782_s0 + $0x7a] sm:$0xff]  ;;  %5303 = vst [vmem:[#allocation2 + $0x80] sm:$0xff] %v16778_v55  ;;  %5304 = vst [vmem:[#allocation2 + $0x88] sm:$0x3] %v16778_v55 }
 0x3ea   :  { %5305 = vst [vmem:[#allocation2 + $0x90] sm:$0xff] %v16778_v55  ;;  %5306 = vst [vmem:[#allocation2 + $0x98] sm:$0xff] %v16778_v55 }
 0x3eb   :  { %5307 = vst [vmem:[#allocation2 + $0xa0] sm:$0x3] %v16778_v55  ;;  %5308 = vst [vmem:[#allocation2 + $0xa8] sm:$0xff] %v16778_v55 }
 0x3ec   :  { %13850 = vmatmul.mubr.f32.gmra.mrb[36].mxu0 %v18387_v42  ;;  %v11220_v42 = vld [vmem:[%s23782_s0 + $0x82] sm:$0xff]  ;;  %5309 = vst [vmem:[#allocation2 + $0xb0] sm:$0xff] %v16778_v55  ;;  %5310 = vst [vmem:[#allocation2 + $0xb8] sm:$0x3] %v16778_v55 }
 0x3ed   :  { %13852 = vmatprep.mubr.f32.mxu0 %v18392_v47  ;;  %v11221_v47 = vld [vmem:[%s23782_s0 + $0x92] sm:$0xff]  ;;  %5311 = vst [vmem:[#allocation2 + $0xc0] sm:$0xff] %v16778_v55  ;;  %5312 = vst [vmem:[#allocation2 + $0xc8] sm:$0xff] %v16778_v55 }
 0x3ee   :  { %5313 = vst [vmem:[#allocation2 + $0xd0] sm:$0x3] %v16778_v55  ;;  %5314 = vst [vmem:[#allocation2 + $0xd8] sm:$0xff] %v16778_v55 }
 0x3ef   :  { %5315 = vst [vmem:[#allocation2 + $0xe0] sm:$0xff] %v16778_v55  ;;  %5316 = vst [vmem:[#allocation2 + $0xe8] sm:$0x3] %v16778_v55 }
 0x3f0   :  { %13853 = vmatmul.mubr.f32.gmra.mrb[38].mxu0 %v18399_v48  ;;  %v11222_v48 = vld [vmem:[%s23782_s0 + $0x9a] sm:$0xff]  ;;  %5317 = vst [vmem:[#allocation2 + $0xf0] sm:$0xff] %v16778_v55  ;;  %5318 = vst [vmem:[#allocation2 + $0xf8] sm:$0xff] %v16778_v55 }
 0x3f1   :  { %13855 = vmatprep.mubr.f32.mxu0 %v18404_v49  ;;  %v11223_v49 = vld [vmem:[%s23782_s0 + $0xaa] sm:$0xff]  ;;  %5319 = vst [vmem:[#allocation2 + $0x100] sm:$0x3] %v16778_v55  ;;  %5320 = vst [vmem:[#allocation2 + $0x108] sm:$0xff] %v16778_v55 }
 0x3f2   :  { %5321 = vst [vmem:[#allocation2 + $0x110] sm:$0xff] %v16778_v55  ;;  %5322 = vst [vmem:[#allocation2 + $0x118] sm:$0x3] %v16778_v55 }
 0x3f3   :  { %5323 = vst [vmem:[#allocation2 + $0x120] sm:$0xff] %v16778_v55  ;;  %5324 = vst [vmem:[#allocation2 + $0x128] sm:$0xff] %v16778_v55 }
 0x3f4   :  { %13856 = vmatmul.mubr.f32.gmra.mrb[40].mxu0 %v18411_v52  ;;  %v11224_v52 = vld [vmem:[%s23782_s0 + $0xb2] sm:$0xff]  ;;  %5325 = vst [vmem:[#allocation2 + $0x130] sm:$0x3] %v16778_v55  ;;  %5326 = vst [vmem:[#allocation2 + $0x138] sm:$0xff] %v16778_v55 }
 0x3f5   :  { %13858 = vmatprep.mubr.f32.mxu0 %v18416_v53  ;;  %v11225_v53 = vld [vmem:[%s23782_s0 + $0xc2] sm:$0xff]  ;;  %5327 = vst [vmem:[#allocation2 + $0x140] sm:$0xff] %v16778_v55  ;;  %5328 = vst [vmem:[#allocation2 + $0x148] sm:$0x3] %v16778_v55 }
 0x3f6   :  { %5329 = vst [vmem:[#allocation2 + $0x150] sm:$0xff] %v16778_v55  ;;  %5330 = vst [vmem:[#allocation2 + $0x158] sm:$0xff] %v16778_v55 }
 0x3f7   :  { %5331 = vst [vmem:[#allocation2 + $0x160] sm:$0x3] %v16778_v55  ;;  %5332 = vst [vmem:[#allocation2 + $0x168] sm:$0xff] %v16778_v55 }
 0x3f8   :  { %13859 = vmatmul.mubr.f32.gmra.mrb[42].mxu0 %v18423_v54  ;;  %v11226_v54 = vld [vmem:[%s23782_s0 + $0xca] sm:$0xff]  ;;  %5333 = vst [vmem:[#allocation2 + $0x170] sm:$0xff] %v16778_v55  ;;  %5334 = vst [vmem:[#allocation2 + $0x178] sm:$0x3] %v16778_v55 }
 0x3f9   :  { %13861 = vmatprep.mubr.f32.mxu0 %v18428_v58  ;;  %v11227_v58 = vld [vmem:[%s23782_s0 + $0xda] sm:$0xff]  ;;  %5335 = vst [vmem:[#allocation2 + $0x180] sm:$0xff] %v16778_v55  ;;  %5336 = vst [vmem:[#allocation2 + $0x188] sm:$0xff] %v16778_v55 }
 0x3fa   :  { %5337 = vst [vmem:[#allocation2 + $0x190] sm:$0x3] %v16778_v55  ;;  %5338 = vst [vmem:[#allocation2 + $0x198] sm:$0xff] %v16778_v55 }
 0x3fb   :  { %5339 = vst [vmem:[#allocation2 + $0x1a0] sm:$0xff] %v16778_v55  ;;  %5340 = vst [vmem:[#allocation2 + $0x1a8] sm:$0x3] %v16778_v55 }
 0x3fc   :  { %13862 = vmatmul.mubr.f32.gmra.mrb[44].mxu0 %v18435_v61  ;;  %v11228_v61 = vld [vmem:[%s23782_s0 + $0xe2] sm:$0xff]  ;;  %5341 = vst [vmem:[#allocation2 + $0x1b0] sm:$0xff] %v16778_v55  ;;  %5342 = vst [vmem:[#allocation2 + $0x1b8] sm:$0xff] %v16778_v55 }
 0x3fd   :  { %13864 = vmatprep.mubr.f32.mxu0 %v18440_v62  ;;  %v11229_v62 = vld [vmem:[%s23782_s0 + $0xf2] sm:$0xff]  ;;  %5343 = vst [vmem:[#allocation2 + $0x1c0] sm:$0x3] %v16778_v55  ;;  %5344 = vst [vmem:[#allocation2 + $0x1c8] sm:$0xff] %v16778_v55 }
 0x3fe   :  { %5345 = vst [vmem:[#allocation2 + $0x1d0] sm:$0xff] %v16778_v55  ;;  %5346 = vst [vmem:[#allocation2 + $0x1d8] sm:$0x3] %v16778_v55 }
 0x3ff   :  { %5347 = vst [vmem:[#allocation2 + $0x1e0] sm:$0xff] %v16778_v55  ;;  %5348 = vst [vmem:[#allocation2 + $0x1e8] sm:$0xff] %v16778_v55 }
 0x400   :  { %13865 = vmatmul.mubr.f32.gmra.mrb[46].mxu0 %v18447_v3  ;;  %v11230_v3 = vld [vmem:[%s23782_s0 + $0xfa] sm:$0xff]  ;;  %5349 = vst [vmem:[#allocation2 + $0x1f0] sm:$0x3] %v16778_v55  ;;  %5350 = vst [vmem:[#allocation2 + $0x1f8] sm:$0xff] %v16778_v55 }
 0x401   :  { %13867 = vmatprep.mubr.f32.mxu0 %v24203_v44  ;;  %5351 = vst [vmem:[#allocation2 + $0x200] sm:$0xff] %v16778_v55  ;;  %5352 = vst [vmem:[#allocation2 + $0x208] sm:$0x3] %v16778_v55  ;;  %v11259_v44 = vld [vmem:[%s23782_s0 + $0x28a] sm:$0xff] }
 0x402   :  { %5353 = vst [vmem:[#allocation2 + $0x210] sm:$0xff] %v16778_v55  ;;  %5354 = vst [vmem:[#allocation2 + $0x218] sm:$0xff] %v16778_v55 }
 0x403   :  { %5355 = vst [vmem:[#allocation2 + $0x220] sm:$0x3] %v16778_v55  ;;  %5356 = vst [vmem:[#allocation2 + $0x228] sm:$0xff] %v16778_v55 }
 0x404   :  { %13868 = vmatmul.mubr.f32.gmra.mrb[48].mxu0 %v24204_v0  ;;  %5357 = vst [vmem:[#allocation2 + $0x230] sm:$0xff] %v16778_v55  ;;  %5358 = vst [vmem:[#allocation2 + $0x238] sm:$0x3] %v16778_v55  ;;  %v11260_v0 = vld [vmem:[%s23782_s0 + $0x292] sm:$0xff] }
 0x405   :  { %13870 = vmatprep.mubr.f32.mxu0 %v24205_v1  ;;  %5359 = vst [vmem:[#allocation2 + $0x240] sm:$0xff] %v16778_v55  ;;  %5360 = vst [vmem:[#allocation2 + $0x248] sm:$0xff] %v16778_v55  ;;  %v11261_v1 = vld [vmem:[%s23782_s0 + $0x2a2] sm:$0xff] }
 0x406   :  { %5361 = vst [vmem:[#allocation2 + $0x250] sm:$0x3] %v16778_v55  ;;  %5362 = vst [vmem:[#allocation2 + $0x258] sm:$0xff] %v16778_v55 }
 0x407   :  { %5363 = vst [vmem:[#allocation2 + $0x260] sm:$0xff] %v16778_v55  ;;  %5364 = vst [vmem:[#allocation2 + $0x268] sm:$0x3] %v16778_v55 }
 0x408   :  { %13871 = vmatmul.mubr.f32.gmra.mrb[50].mxu0 %v24206_v5  ;;  %5365 = vst [vmem:[#allocation2 + $0x270] sm:$0xff] %v16778_v55  ;;  %5366 = vst [vmem:[#allocation2 + $0x278] sm:$0xff] %v16778_v55  ;;  %v11262_v5 = vld [vmem:[%s23782_s0 + $0x2aa] sm:$0xff] }
 0x409   :  { %13873 = vmatprep.mubr.f32.mxu0 %v24207_v6  ;;  %5367 = vst [vmem:[#allocation2 + $0x280] sm:$0x3] %v16778_v55  ;;  %5368 = vst [vmem:[#allocation2 + $0x288] sm:$0xff] %v16778_v55  ;;  %v11263_v6 = vld [vmem:[%s23782_s0 + $0x2ba] sm:$0xff] }
 0x40a   :  { %5369 = vst [vmem:[#allocation2 + $0x290] sm:$0xff] %v16778_v55  ;;  %5370 = vst [vmem:[#allocation2 + $0x298] sm:$0x3] %v16778_v55 }
 0x40b   :  { %5371 = vst [vmem:[#allocation2 + $0x2a0] sm:$0xff] %v16778_v55  ;;  %5372 = vst [vmem:[#allocation2 + $0x2a8] sm:$0xff] %v16778_v55 }
 0x40c   :  { %13874 = vmatmul.mubr.f32.gmra.mrb[52].mxu0 %v24208_v43  ;;  %5373 = vst [vmem:[#allocation2 + $0x2b0] sm:$0x3] %v16778_v55  ;;  %5374 = vst [vmem:[#allocation2 + $0x2b8] sm:$0xff] %v16778_v55  ;;  %v11264_v43 = vld [vmem:[%s23782_s0 + $0x2c2] sm:$0xff] }
 0x40d   :  { %13876 = vmatprep.mubr.f32.mxu0 %v24209_v10  ;;  %5375 = vst [vmem:[#allocation2 + $0x2c0] sm:$0xff] %v16778_v55  ;;  %5376 = vst [vmem:[#allocation2 + $0x2c8] sm:$0x3] %v16778_v55  ;;  %v11265_v10 = vld [vmem:[%s23782_s0 + $0x2d2] sm:$0xff] }
 0x40e   :  { %5377 = vst [vmem:[#allocation2 + $0x2d0] sm:$0xff] %v16778_v55  ;;  %5378 = vst [vmem:[#allocation2 + $0x2d8] sm:$0xff] %v16778_v55 }
 0x40f   :  { %5379 = vst [vmem:[#allocation2 + $0x2e0] sm:$0x3] %v16778_v55  ;;  %5380 = vst [vmem:[#allocation2 + $0x2e8] sm:$0xff] %v16778_v55 }
 0x410   :  { %13877 = vmatmul.mubr.f32.gmra.mrb[54].mxu0 %v24210_v11  ;;  %5381 = vst [vmem:[#allocation2 + $0x2f0] sm:$0xff] %v16778_v55  ;;  %5382 = vst [vmem:[#allocation2 + $0x2f8] sm:$0x3] %v16778_v55  ;;  %v11266_v11 = vld [vmem:[%s23782_s0 + $0x2da] sm:$0xff] }
 0x411   :  { %13879 = vmatprep.mubr.f32.mxu0 %v24211_v14  ;;  %5383 = vst [vmem:[#allocation2 + $0x300] sm:$0xff] %v16778_v55  ;;  %5384 = vst [vmem:[#allocation2 + $0x308] sm:$0xff] %v16778_v55  ;;  %v11267_v14 = vld [vmem:[%s23782_s0 + $0x2ea] sm:$0xff] }
 0x412   :  { %5385 = vst [vmem:[#allocation2 + $0x310] sm:$0x3] %v16778_v55  ;;  %5386 = vst [vmem:[#allocation2 + $0x318] sm:$0xff] %v16778_v55 }
 0x413   :  { %5387 = vst [vmem:[#allocation2 + $0x320] sm:$0xff] %v16778_v55  ;;  %5388 = vst [vmem:[#allocation2 + $0x328] sm:$0x3] %v16778_v55 }
 0x414   :  { %13880 = vmatmul.mubr.f32.gmra.mrb[56].mxu0 %v24212_v15  ;;  %5389 = vst [vmem:[#allocation2 + $0x330] sm:$0xff] %v16778_v55  ;;  %5390 = vst [vmem:[#allocation2 + $0x338] sm:$0xff] %v16778_v55  ;;  %v11268_v15 = vld [vmem:[%s23782_s0 + $0x2f2] sm:$0xff] }
 0x415   :  { %13882 = vmatprep.mubr.f32.mxu0 %v24213_v16  ;;  %5391 = vst [vmem:[#allocation2 + $0x340] sm:$0x3] %v16778_v55  ;;  %5392 = vst [vmem:[#allocation2 + $0x348] sm:$0xff] %v16778_v55  ;;  %v11269_v16 = vld [vmem:[%s23782_s0 + $0x302] sm:$0xff] }
 0x416   :  { %5393 = vst [vmem:[#allocation2 + $0x350] sm:$0xff] %v16778_v55  ;;  %5394 = vst [vmem:[#allocation2 + $0x358] sm:$0x3] %v16778_v55 }
 0x418   :  { %13883 = vmatmul.mubr.f32.gmra.mrb[58].mxu0 %v24214_v24  ;;  %v11270_v24 = vld [vmem:[%s23782_s0 + $0x30a] sm:$0xff] }
 0x419   :  { %13885 = vmatprep.mubr.f32.mxu0 %v24215_v20  ;;  %v11271_v20 = vld [vmem:[%s23782_s0 + $0x31a] sm:$0xff] }
 0x41c   :  { %13886 = vmatmul.mubr.f32.gmra.mrb[60].mxu0 %v24216_v28  ;;  %v11275_v28 = vld [vmem:[%s23782_s0 + $0x34a] sm:$0xff] }
 0x41d   :  { %13888 = vmatprep.mubr.f32.mxu0 %v11195_v26  ;;  %v11272_v26 = vld [vmem:[%s23782_s0 + $0x322] sm:$0xff] }
 0x420   :  { %13889 = vmatmul.mubr.f32.gmra.mrb[62].mxu0 %v11196_v29  ;;  %v11276_v29 = vld [vmem:[%s23782_s0 + $0x352] sm:$0xff] }
 0x421   :  { %13923 = vmatprep.mubr.f32.mxu0 %v11213_v30  ;;  %v19319_v30 = vld [vmem:[%s23783_s2] ss:$0 sm:$0xff] }
 0x424   :  { %13924 = vmatmul.mubr.f32.vlgmr.msra.gmra.mrb[0].mxu0 %v11214_v31 }
 0x425   :  { %13926 = vmatprep.mubr.f32.mxu0 %v11215_v36 }
 0x428   :  { %13927 = vmatmul.mubr.f32.gmra.mrb[2].mxu0 %v11216_v37 }
 0x429   :  { %13929 = vmatprep.mubr.f32.mxu0 %v11217_v38 }
 0x42c   :  { %13930 = vmatmul.mubr.f32.gmra.mrb[4].mxu0 %v11218_v40 }
 0x42d   :  { %13932 = vmatprep.mubr.f32.mxu0 %v11219_v41 }
 0x430   :  { %13933 = vmatmul.mubr.f32.gmra.mrb[6].mxu0 %v11220_v42 }
 0x431   :  { %13935 = vmatprep.mubr.f32.mxu0 %v11221_v47 }
 0x434   :  { %13936 = vmatmul.mubr.f32.gmra.mrb[8].mxu0 %v11222_v48 }
 0x435   :  { %13938 = vmatprep.mubr.f32.mxu0 %v11223_v49 }
 0x438   :  { %13939 = vmatmul.mubr.f32.gmra.mrb[10].mxu0 %v11224_v52 }
 0x439   :  { %13941 = vmatprep.mubr.f32.mxu0 %v11225_v53 }
 0x43c   :  { %13942 = vmatmul.mubr.f32.gmra.mrb[12].mxu0 %v11226_v54 }
 0x43d   :  { %13944 = vmatprep.mubr.f32.mxu0 %v11227_v58 }
 0x440   :  { %13945 = vmatmul.mubr.f32.gmra.mrb[14].mxu0 %v11228_v61 }
 0x441   :  { %13947 = vmatprep.mubr.f32.mxu0 %v11229_v62 }
 0x444   :  { %13948 = vmatmul.mubr.f32.gmra.mrb[16].mxu0 %v11230_v3 }
 0x445   :  { %13950 = vmatprep.mubr.f32.mxu0 %v11231_v12 }
 0x448   :  { %13951 = vmatmul.mubr.f32.gmra.mrb[18].mxu0 %v11232_v25 }
 0x449   :  { %13953 = vmatprep.mubr.f32.mxu0 %v11233_v27 }
 0x44c   :  { %13954 = vmatmul.mubr.f32.gmra.mrb[20].mxu0 %v11234_v60 }
 0x44d   :  { %13956 = vmatprep.mubr.f32.mxu0 %v11235_v19 }
 0x450   :  { %13957 = vmatmul.mubr.f32.gmra.mrb[22].mxu0 %v11236_v22 }
 0x451   :  { %13959 = vmatprep.mubr.f32.mxu0 %v11237_v32 }
 0x454   :  { %13960 = vmatmul.mubr.f32.gmra.mrb[24].mxu0 %v11238_v34 }
 0x455   :  { %13962 = vmatprep.mubr.f32.mxu0 %v11239_v59 }
 0x458   :  { %13963 = vmatmul.mubr.f32.gmra.mrb[26].mxu0 %v11240_v18 }
 0x459   :  { %13965 = vmatprep.mubr.f32.mxu0 %v18618_v7  ;;  %v11246_v7 = vld [vmem:[%s23782_s0 + $0x1ea] sm:$0xff] }
 0x45c   :  { %13966 = vmatmul.mubr.f32.gmra.mrb[28].mxu0 %v24217_v35 }
 0x45d   :  { %13968 = vmatprep.mubr.f32.mxu0 %v11243_v39 }
 0x460   :  { %13969 = vmatmul.mubr.f32.gmra.mrb[30].mxu0 %v11244_v45 }
 0x461   :  { %13971 = vmatprep.mubr.f32.mxu0 %v11245_v46 }
 0x464   :  { %13972 = vmatmul.mubr.f32.gmra.mrb[32].mxu0 %v11246_v7 }
 0x465   :  { %13974 = vmatprep.mubr.f32.mxu0 %v11247_v33 }
 0x468   :  { %13975 = vmatmul.mubr.f32.gmra.mrb[34].mxu0 %v11248_v50 }
 0x469   :  { %13977 = vmatprep.mubr.f32.mxu0 %v11249_v51 }
 0x46c   :  { %13978 = vmatmul.mubr.f32.gmra.mrb[36].mxu0 %v11250_v4 }
 0x46d   :  { %13980 = vmatprep.mubr.f32.mxu0 %v11251_v56 }
 0x470   :  { %13981 = vmatmul.mubr.f32.gmra.mrb[38].mxu0 %v11252_v57 }
 0x471   :  { %13983 = vmatprep.mubr.f32.mxu0 %v11253_v17 }
 0x474   :  { %13984 = vmatmul.mubr.f32.gmra.mrb[40].mxu0 %v11254_v63 }
 0x475   :  { %13986 = vmatprep.mubr.f32.mxu0 %v11255_v2 }
 0x478   :  { %13987 = vmatmul.mubr.f32.gmra.mrb[42].mxu0 %v11256_v21 }
 0x479   :  { %13989 = vmatprep.mubr.f32.mxu0 %v11257_v8 }
 0x47c   :  { %13990 = vmatmul.mubr.f32.gmra.mrb[44].mxu0 %v19155_v9 }
 0x47d   :  { %13992 = vmatprep.mubr.f32.mxu0 %v11259_v44 }
 0x480   :  { %13993 = vmatmul.mubr.f32.gmra.mrb[46].mxu0 %v11260_v0 }
 0x481   :  { %13995 = vmatprep.mubr.f32.mxu0 %v11261_v1 }
 0x484   :  { %13996 = vmatmul.mubr.f32.gmra.mrb[48].mxu0 %v11262_v5 }
 0x485   :  { %13998 = vmatprep.mubr.f32.mxu0 %v11263_v6 }
 0x488   :  { %13999 = vmatmul.mubr.f32.gmra.mrb[50].mxu0 %v11264_v43 }
 0x489   :  { %14001 = vmatprep.mubr.f32.mxu0 %v11265_v10 }
 0x48c   :  { %14002 = vmatmul.mubr.f32.gmra.mrb[52].mxu0 %v11266_v11 }
 0x48d   :  { %14004 = vmatprep.mubr.f32.mxu0 %v11267_v14 }
 0x490   :  { %14005 = vmatmul.mubr.f32.gmra.mrb[54].mxu0 %v11268_v15 }
 0x491   :  { %14007 = vmatprep.mubr.f32.mxu0 %v11269_v16 }
 0x494   :  { %14008 = vmatmul.mubr.f32.gmra.mrb[56].mxu0 %v11270_v24 }
 0x495   :  { %14010 = vmatprep.mubr.f32.mxu0 %v11271_v20 }
 0x498   :  { %14011 = vmatmul.mubr.f32.gmra.mrb[58].mxu0 %v11272_v26 }
 0x499   :  { %14013 = vmatprep.mubr.f32.mxu0 %v18660_v23 }
 0x49c   :  { %14014 = vmatmul.mubr.f32.gmra.mrb[60].mxu0 %v18667_v13 }
 0x49d   :  { %14016 = vmatprep.mubr.f32.mxu0 %v11275_v28 }
 0x4a0   :  { %14017 = vmatmul.mubr.f32.gmra.mrb[62].mxu0 %v11276_v29 }
 0x4f7   :  { %v13925_v31 = vpop.f32.mrb[0].mxu0 }
 0x4f8   :  { %v4293_v36 = vpop.f32.mrb[1].mxu0  ;;  %v19322_v23 = vadd.f32 %v13925_v31, %v19319_v30 }
 0x4f9   :  { %v19325_v37 = vadd.f32 %v19319_v30, %v4293_v36 }
 0x4fb   :  { %v13928_v13 = vpop.f32.mrb[2].mxu0  ;;  %v4748_v40 = vadd.f32 %v19322_v23, %v19325_v37 }
 0x4fc   :  { %v4303_v38 = vpop.f32.mrb[3].mxu0  ;;  %v19333_v42 = vadd.f32 %v13928_v13, %v19319_v30 }
 0x4fd   :  { %v19330_v41 = vadd.f32 %v19319_v30, %v4303_v38 }
 0x4ff   :  { %v4749_v47 = vadd.f32 %v4748_v40, %v19330_v41  ;;  %v13931_v48 = vpop.f32.mrb[4].mxu0 }
 0x500   :  { %v4313_v49 = vpop.f32.mrb[5].mxu0  ;;  %v19341_v54 = vadd.f32 %v13931_v48, %v19319_v30 }
 0x501   :  { %v4750_v52 = vadd.f32 %v4749_v47, %v19333_v42  ;;  %v19338_v53 = vadd.f32 %v19319_v30, %v4313_v49 }
 0x503   :  { %v4751_v58 = vadd.f32 %v4750_v52, %v19338_v53  ;;  %v13934_v61 = vpop.f32.mrb[6].mxu0 }
 0x504   :  { %v4323_v62 = vpop.f32.mrb[7].mxu0  ;;  %v19349_v25 = vadd.f32 %v13934_v61, %v19319_v30 }
 0x505   :  { %v19345_v3 = vadd.f32 %v19319_v30, %v4323_v62  ;;  %v4752_v12 = vadd.f32 %v4751_v58, %v19341_v54 }
 0x507   :  { %v4753_v27 = vadd.f32 %v4752_v12, %v19345_v3  ;;  %v13937_v60 = vpop.f32.mrb[8].mxu0 }
 0x508   :  { %v4333_v19 = vpop.f32.mrb[9].mxu0  ;;  %v19357_v34 = vadd.f32 %v13937_v60, %v19319_v30 }
 0x509   :  { %v19353_v22 = vadd.f32 %v19319_v30, %v4333_v19  ;;  %v4754_v32 = vadd.f32 %v4753_v27, %v19349_v25 }
 0x50b   :  { %v4755_v59 = vadd.f32 %v4754_v32, %v19353_v22  ;;  %v13940_v18 = vpop.f32.mrb[10].mxu0 }
 0x50c   :  { %v4343_v39 = vpop.f32.mrb[11].mxu0  ;;  %v19365_v46 = vadd.f32 %v13940_v18, %v19319_v30 }
 0x50d   :  { %v19361_v35 = vadd.f32 %v19319_v30, %v4343_v39  ;;  %v4756_v45 = vadd.f32 %v4755_v59, %v19357_v34 }
 0x50f   :  { %v4757_v7 = vadd.f32 %v4756_v45, %v19361_v35  ;;  %v13943_v33 = vpop.f32.mrb[12].mxu0 }
 0x510   :  { %v4353_v50 = vpop.f32.mrb[13].mxu0  ;;  %v19373_v56 = vadd.f32 %v13943_v33, %v19319_v30 }
 0x511   :  { %v19369_v51 = vadd.f32 %v19319_v30, %v4353_v50  ;;  %v4758_v4 = vadd.f32 %v4757_v7, %v19365_v46 }
 0x513   :  { %v4759_v57 = vadd.f32 %v4758_v4, %v19369_v51  ;;  %v13946_v17 = vpop.f32.mrb[14].mxu0 }
 0x514   :  { %v4363_v63 = vpop.f32.mrb[15].mxu0  ;;  %v19381_v8 = vadd.f32 %v13946_v17, %v19319_v30 }
 0x515   :  { %v19377_v2 = vadd.f32 %v19319_v30, %v4363_v63  ;;  %v4760_v21 = vadd.f32 %v4759_v57, %v19373_v56 }
 0x517   :  { %v4761_v9 = vadd.f32 %v4760_v21, %v19377_v2  ;;  %v13949_v55 = vpop.f32.mrb[16].mxu0 }
 0x518   :  { %v4373_v44 = vpop.f32.mrb[17].mxu0  ;;  %v19389_v5 = vadd.f32 %v13949_v55, %v19319_v30 }
 0x519   :  { %v19385_v0 = vadd.f32 %v19319_v30, %v4373_v44  ;;  %v4762_v1 = vadd.f32 %v4761_v9, %v19381_v8 }
 0x51b   :  { %v4763_v6 = vadd.f32 %v4762_v1, %v19385_v0  ;;  %v13952_v43 = vpop.f32.mrb[18].mxu0 }
 0x51c   :  { %v4383_v10 = vpop.f32.mrb[19].mxu0  ;;  %v19397_v15 = vadd.f32 %v13952_v43, %v19319_v30 }
 0x51d   :  { %v19393_v11 = vadd.f32 %v19319_v30, %v4383_v10  ;;  %v4764_v14 = vadd.f32 %v4763_v6, %v19389_v5 }
 0x51f   :  { %v4765_v16 = vadd.f32 %v4764_v14, %v19393_v11  ;;  %v13955_v24 = vpop.f32.mrb[20].mxu0 }
 0x520   :  { %v4393_v20 = vpop.f32.mrb[21].mxu0  ;;  %v19405_v29 = vadd.f32 %v13955_v24, %v19319_v30 }
 0x521   :  { %v19401_v26 = vadd.f32 %v19319_v30, %v4393_v20  ;;  %v4766_v28 = vadd.f32 %v4765_v16, %v19397_v15 }
 0x523   :  { %v4767_v31 = vadd.f32 %v4766_v28, %v19401_v26  ;;  %v13958_v36 = vpop.f32.mrb[22].mxu0 }
 0x524   :  { %v4403_v13 = vpop.f32.mrb[23].mxu0  ;;  %v19413_v47 = vadd.f32 %v13958_v36, %v19319_v30 }
 0x525   :  { %v19409_v38 = vadd.f32 %v19319_v30, %v4403_v13  ;;  %v4768_v40 = vadd.f32 %v4767_v31, %v19405_v29 }
 0x527   :  { %v4769_v48 = vadd.f32 %v4768_v40, %v19409_v38  ;;  %v13961_v49 = vpop.f32.mrb[24].mxu0 }
 0x528   :  { %v4413_v52 = vpop.f32.mrb[25].mxu0  ;;  %v19421_v62 = vadd.f32 %v13961_v49, %v19319_v30 }
 0x529   :  { %v19417_v58 = vadd.f32 %v19319_v30, %v4413_v52  ;;  %v4770_v61 = vadd.f32 %v4769_v48, %v19413_v47 }
 0x52b   :  { %v4771_v12 = vadd.f32 %v4770_v61, %v19417_v58  ;;  %v13964_v27 = vpop.f32.mrb[26].mxu0 }
 0x52c   :  { %v4423_v60 = vpop.f32.mrb[27].mxu0  ;;  %v19429_v59 = vadd.f32 %v13964_v27, %v19319_v30 }
 0x52d   :  { %v19425_v19 = vadd.f32 %v19319_v30, %v4423_v60  ;;  %v4772_v32 = vadd.f32 %v4771_v12, %v19421_v62 }
 0x52f   :  { %v4773_v18 = vadd.f32 %v4772_v32, %v19425_v19  ;;  %v13967_v39 = vpop.f32.mrb[28].mxu0 }
 0x530   :  { %v4433_v45 = vpop.f32.mrb[29].mxu0  ;;  %v19437_v50 = vadd.f32 %v13967_v39, %v19319_v30 }
 0x531   :  { %v19433_v7 = vadd.f32 %v19319_v30, %v4433_v45  ;;  %v4774_v33 = vadd.f32 %v4773_v18, %v19429_v59 }
 0x532   :  { %24219 = vst [vmem:[#allocation11_spill] sm:$0xff] %v19437_v50 }
 0x533   :  { %24218 = vst [vmem:[#allocation10_spill] sm:$0xff] %v19433_v7  ;;  %v4775_v4 = vadd.f32 %v4774_v33, %v19433_v7  ;;  %v13970_v57 = vpop.f32.mrb[30].mxu0 }
 0x534   :  { %v4443_v17 = vpop.f32.mrb[31].mxu0  ;;  %v19445_v9 = vadd.f32 %v13970_v57, %v19319_v30 }
 0x535   :  { %v19441_v63 = vadd.f32 %v19319_v30, %v4443_v17  ;;  %v4776_v21 = vadd.f32 %v4775_v4, %v19437_v50 }
 0x536   :  { %24221 = vst [vmem:[#allocation13_spill] sm:$0xff] %v19445_v9 }
 0x537   :  { %24220 = vst [vmem:[#allocation12_spill] sm:$0xff] %v19441_v63  ;;  %v4777_v55 = vadd.f32 %v4776_v21, %v19441_v63  ;;  %v13973_v44 = vpop.f32.mrb[32].mxu0 }
 0x538   :  { %v4453_v1 = vpop.f32.mrb[33].mxu0  ;;  %v19453_v10 = vadd.f32 %v13973_v44, %v19319_v30 }
 0x539   :  { %v19449_v6 = vadd.f32 %v19319_v30, %v4453_v1  ;;  %v4778_v43 = vadd.f32 %v4777_v55, %v19445_v9 }
 0x53a   :  { %24223 = vst [vmem:[#allocation15_spill] sm:$0xff] %v19453_v10 }
 0x53b   :  { %24222 = vst [vmem:[#allocation14_spill] sm:$0xff] %v19449_v6  ;;  %v4779_v14 = vadd.f32 %v4778_v43, %v19449_v6  ;;  %v13976_v16 = vpop.f32.mrb[34].mxu0 }
 0x53c   :  { %v4463_v24 = vpop.f32.mrb[35].mxu0  ;;  %v19461_v31 = vadd.f32 %v13976_v16, %v19319_v30 }
 0x53d   :  { %v19457_v20 = vadd.f32 %v19319_v30, %v4463_v24  ;;  %v4780_v28 = vadd.f32 %v4779_v14, %v19453_v10 }
 0x53e   :  { %24225 = vst [vmem:[#allocation17_spill] sm:$0xff] %v19461_v31 }
 0x53f   :  { %24224 = vst [vmem:[#allocation16_spill] sm:$0xff] %v19457_v20  ;;  %v4781_v36 = vadd.f32 %v4780_v28, %v19457_v20  ;;  %v13979_v13 = vpop.f32.mrb[36].mxu0 }
 0x540   :  { %v4473_v40 = vpop.f32.mrb[37].mxu0  ;;  %v19469_v52 = vadd.f32 %v13979_v13, %v19319_v30 }
 0x541   :  { %v19465_v48 = vadd.f32 %v19319_v30, %v4473_v40  ;;  %v4782_v49 = vadd.f32 %v4781_v36, %v19461_v31 }
 0x542   :  { %24227 = vst [vmem:[#allocation19_spill] sm:$0xff] %v19469_v52 }
 0x543   :  { %24226 = vst [vmem:[#allocation18_spill] sm:$0xff] %v19465_v48  ;;  %v4783_v61 = vadd.f32 %v4782_v49, %v19465_v48  ;;  %v13982_v12 = vpop.f32.mrb[38].mxu0 }
 0x544   :  { %v4483_v27 = vpop.f32.mrb[39].mxu0  ;;  %v19477_v18 = vadd.f32 %v13982_v12, %v19319_v30 }
 0x545   :  { %v19473_v60 = vadd.f32 %v19319_v30, %v4483_v27  ;;  %v4784_v32 = vadd.f32 %v4783_v61, %v19469_v52 }
 0x546   :  { %24229 = vst [vmem:[#allocation21_spill] sm:$0xff] %v19477_v18 }
 0x547   :  { %24228 = vst [vmem:[#allocation20_spill] sm:$0xff] %v19473_v60  ;;  %v4785_v39 = vadd.f32 %v4784_v32, %v19473_v60  ;;  %v13985_v45 = vpop.f32.mrb[40].mxu0 }
 0x548   :  { %v4493_v33 = vpop.f32.mrb[41].mxu0  ;;  %v19485_v17 = vadd.f32 %v13985_v45, %v19319_v30 }
 0x549   :  { %v19481_v4 = vadd.f32 %v19319_v30, %v4493_v33  ;;  %v4786_v57 = vadd.f32 %v4785_v39, %v19477_v18 }
 0x54a   :  { %24231 = vst [vmem:[#allocation23_spill] sm:$0xff] %v19485_v17 }
 0x54b   :  { %24230 = vst [vmem:[#allocation22_spill] sm:$0xff] %v19481_v4  ;;  %v4787_v21 = vadd.f32 %v4786_v57, %v19481_v4  ;;  %v13988_v55 = vpop.f32.mrb[42].mxu0 }
 0x54c   :  { %v4503_v44 = vpop.f32.mrb[43].mxu0  ;;  %v19493_v14 = vadd.f32 %v13988_v55, %v19319_v30 }
 0x54d   :  { %v19489_v1 = vadd.f32 %v19319_v30, %v4503_v44  ;;  %v4788_v43 = vadd.f32 %v4787_v21, %v19485_v17 }
 0x54e   :  { %24233 = vst [vmem:[#allocation25_spill] sm:$0xff] %v19493_v14 }
 0x54f   :  { %24232 = vst [vmem:[#allocation24_spill] sm:$0xff] %v19489_v1  ;;  %v4789_v16 = vadd.f32 %v4788_v43, %v19489_v1  ;;  %v13991_v24 = vpop.f32.mrb[44].mxu0 }
 0x550   :  { %v4513_v28 = vpop.f32.mrb[45].mxu0  ;;  %v19501_v40 = vadd.f32 %v13991_v24, %v19319_v30 }
 0x551   :  { %v19497_v36 = vadd.f32 %v19319_v30, %v4513_v28  ;;  %v4790_v13 = vadd.f32 %v4789_v16, %v19493_v14 }
 0x553   :  { %24234 = vst [vmem:[#allocation26_spill] sm:$0xff] %v19497_v36  ;;  %v4791_v49 = vadd.f32 %v4790_v13, %v19497_v36  ;;  %v13994_v61 = vpop.f32.mrb[46].mxu0 }
 0x554   :  { %v4523_v12 = vpop.f32.mrb[47].mxu0  ;;  %v4729_v39 = vadd.f32 %v13994_v61, %v19319_v30 }
 0x555   :  { %v4728_v27 = vadd.f32 %v19319_v30, %v4523_v12  ;;  %v4792_v32 = vadd.f32 %v4791_v49, %v19501_v40 }
 0x557   :  { %v4793_v45 = vadd.f32 %v4792_v32, %v4728_v27  ;;  %v13997_v33 = vpop.f32.mrb[48].mxu0 }
 0x558   :  { %v4533_v57 = vpop.f32.mrb[49].mxu0  ;;  %v4731_v44 = vadd.f32 %v13997_v33, %v19319_v30 }
 0x559   :  { %v4730_v21 = vadd.f32 %v19319_v30, %v4533_v57  ;;  %v4794_v55 = vadd.f32 %v4793_v45, %v4729_v39 }
 0x55b   :  { %v4795_v43 = vadd.f32 %v4794_v55, %v4730_v21  ;;  %v14000_v16 = vpop.f32.mrb[50].mxu0 }
 0x55c   :  { %v4543_v24 = vpop.f32.mrb[51].mxu0  ;;  %v4733_v12 = vadd.f32 %v14000_v16, %v19319_v30 }
 0x55d   :  { %v4732_v28 = vadd.f32 %v19319_v30, %v4543_v24  ;;  %v4796_v13 = vadd.f32 %v4795_v43, %v4731_v44 }
 0x55f   :  { %v4797_v36 = vadd.f32 %v4796_v13, %v4732_v28  ;;  %v14003_v49 = vpop.f32.mrb[52].mxu0 }
 0x560   :  { %v4553_v14 = vpop.f32.mrb[53].mxu0  ;;  %v4735_v1 = vadd.f32 %v14003_v49, %v19319_v30 }
 0x561   :  { %v4734_v61 = vadd.f32 %v19319_v30, %v4553_v14  ;;  %v4798_v32 = vadd.f32 %v4797_v36, %v4733_v12 }
 0x563   :  { %v4799_v57 = vadd.f32 %v4798_v32, %v4734_v61  ;;  %v14006_v45 = vpop.f32.mrb[54].mxu0 }
 0x564   :  { %v4563_v17 = vpop.f32.mrb[55].mxu0  ;;  %v4737_v4 = vadd.f32 %v14006_v45, %v19319_v30 }
 0x565   :  { %v4736_v33 = vadd.f32 %v19319_v30, %v4563_v17  ;;  %v4800_v55 = vadd.f32 %v4799_v57, %v4735_v1 }
 0x567   :  { %v4801_v24 = vadd.f32 %v4800_v55, %v4736_v33  ;;  %v14009_v43 = vpop.f32.mrb[56].mxu0 }
 0x568   :  { %v4573_v18 = vpop.f32.mrb[57].mxu0  ;;  %v4739_v60 = vadd.f32 %v14009_v43, %v19319_v30 }
 0x569   :  { %v4738_v16 = vadd.f32 %v19319_v30, %v4573_v18  ;;  %v4802_v13 = vadd.f32 %v4801_v24, %v4737_v4 }
 0x56b   :  { %v4803_v14 = vadd.f32 %v4802_v13, %v4738_v16  ;;  %v14012_v36 = vpop.f32.mrb[58].mxu0 }
 0x56c   :  { %v4583_v52 = vpop.f32.mrb[59].mxu0  ;;  %v4741_v48 = vadd.f32 %v14012_v36, %v19319_v30 }
 0x56d   :  { %v4740_v49 = vadd.f32 %v19319_v30, %v4583_v52  ;;  %v4804_v32 = vadd.f32 %v4803_v14, %v4739_v60 }
 0x56f   :  { %v4805_v17 = vadd.f32 %v4804_v32, %v4740_v49  ;;  %v14015_v57 = vpop.f32.mrb[60].mxu0 }
 0x570   :  { %v4593_v31 = vpop.f32.mrb[61].mxu0  ;;  %v4743_v20 = vadd.f32 %v14015_v57, %v19319_v30 }
 0x571   :  { %v4742_v45 = vadd.f32 %v19319_v30, %v4593_v31  ;;  %v4806_v55 = vadd.f32 %v4805_v17, %v4741_v48 }
 0x573   :  { %v4807_v18 = vadd.f32 %v4806_v55, %v4742_v45  ;;  %v14018_v24 = vpop.f32.mrb[62].mxu0 }
 0x574   :  { %v4603_v10 = vpop.f32.mrb[63].mxu0  ;;  %v4745_v6 = vadd.f32 %v14018_v24, %v19319_v30 }
 0x575   :  { %v4744_v43 = vadd.f32 %v19319_v30, %v4603_v10  ;;  %v4808_v13 = vadd.f32 %v4807_v18, %v4743_v20 }
 0x577   :  { %v4809_v52 = vadd.f32 %v4808_v13, %v4744_v43 }
 0x579   :  { %v4810_v14 = vadd.f32 %v4809_v52, %v4745_v6 }
 0x57b   :  { %v4811_v9 = vrot.slane %v4810_v14, 4 }
 0x57d   :  { %v4812_v36 = vadd.f32 %v4811_v9, %v4810_v14 }
 0x57f   :  { %v4813_v32 = vrot.slane %v4812_v36, 2 }
 0x581   :  { %v4814_v63 = vadd.f32 %v4813_v32, %v4812_v36 }
 0x583   :  { %v4815_v50 = vrot.slane %v4814_v63, 1 }
 0x585   :  { %v4816_v7 = vadd.f32 %v4815_v50, %v4814_v63 }
 0x587   :  { %v19523_v31 = vmul.f32 0.001953125, %v4816_v7 }
 0x589   :  { %v19527_v17 = vsub.f32 %v19501_v40, %v19523_v31  ;;  %v19530_v57 = vsub.f32 %v4728_v27, %v19523_v31  ;;  %v19533_v10 = vsub.f32 %v4729_v39, %v19523_v31  ;;  %v19536_v30 = vsub.f32 %v4730_v21, %v19523_v31 }
 0x58a   :  { %v19539_v9 = vsub.f32 %v4731_v44, %v19523_v31  ;;  %v19542_v50 = vsub.f32 %v4732_v28, %v19523_v31  ;;  %v19545_v7 = vsub.f32 %v4733_v12, %v19523_v31  ;;  %v19548_v63 = vsub.f32 %v4734_v61, %v19523_v31 }
 0x58b   :  { %24235 = vst [vmem:[#allocation27_spill] sm:$0xff] %v19533_v10  ;;  %v19551_v40 = vsub.f32 %v4735_v1, %v19523_v31  ;;  %v19554_v27 = vsub.f32 %v4736_v33, %v19523_v31  ;;  %v19557_v39 = vsub.f32 %v4737_v4, %v19523_v31  ;;  %v19560_v21 = vsub.f32 %v4738_v16, %v19523_v31 }
 0x58c   :  { %v19563_v44 = vsub.f32 %v4739_v60, %v19523_v31  ;;  %v19566_v28 = vsub.f32 %v4740_v49, %v19523_v31  ;;  %v19569_v12 = vsub.f32 %v4741_v48, %v19523_v31  ;;  %v19572_v1 = vsub.f32 %v4742_v45, %v19523_v31 }
 0x58d   :  { %v19575_v61 = vsub.f32 %v4743_v20, %v19523_v31  ;;  %v19578_v4 = vsub.f32 %v4744_v43, %v19523_v31  ;;  %v19581_v33 = vsub.f32 %v4745_v6, %v19523_v31  ;;  %v19585_v60 = vsub.f32 %v19325_v37, %v19523_v31 }
 0x58e   :  { %v19589_v48 = vsub.f32 %v19322_v23, %v19523_v31  ;;  %v19593_v16 = vsub.f32 %v19330_v41, %v19523_v31  ;;  %v19601_v6 = vsub.f32 %v19333_v42, %v19523_v31  ;;  %v19605_v37 = vsub.f32 %v19338_v53, %v19523_v31 }
 0x58f   :  { %24236 = vst [vmem:[#allocation28_spill] sm:$0xff] %v19575_v61  ;;  %24237 = vst [vmem:[#allocation29_spill] sm:$0xff] %v19581_v33  ;;  %v4883_v20 = vmul.f32 %v19585_v60, %v19585_v60  ;;  %v19611_v41 = vsub.f32 %v19341_v54, %v19523_v31  ;;  %v19617_v42 = vsub.f32 %v19345_v3, %v19523_v31 }
 0x590   :  { %v4884_v49 = vmul.f32 %v19589_v48, %v19589_v48  ;;  %v4885_v23 = vmul.f32 %v19593_v16, %v19593_v16  ;;  %v4886_v55 = vmul.f32 %v19601_v6, %v19601_v6  ;;  %v4887_v53 = vmul.f32 %v19605_v37, %v19605_v37 }
 0x591   :  { %v19623_v43 = vsub.f32 %v19349_v25, %v19523_v31  ;;  %v4888_v54 = vmul.f32 %v19611_v41, %v19611_v41  ;;  %v19629_v52 = vsub.f32 %v19353_v22, %v19523_v31  ;;  %v4889_v3 = vmul.f32 %v19617_v42, %v19617_v42 }
 0x592   :  { %v4947_v45 = vadd.f32 %v4884_v49, %v4883_v20  ;;  %v19635_v36 = vsub.f32 %v19357_v34, %v19523_v31  ;;  %v19641_v20 = vsub.f32 %v19361_v35, %v19523_v31 }
 0x593   :  { %v4890_v25 = vmul.f32 %v19623_v43, %v19623_v43  ;;  %v4891_v22 = vmul.f32 %v19629_v52, %v19629_v52 }
 0x594   :  { %v4948_v18 = vadd.f32 %v4947_v45, %v4885_v23  ;;  %v19647_v23 = vsub.f32 %v19365_v46, %v19523_v31  ;;  %v4892_v34 = vmul.f32 %v19635_v36, %v19635_v36  ;;  %v4893_v35 = vmul.f32 %v19641_v20, %v19641_v20 }
 0x596   :  { %v4949_v24 = vadd.f32 %v4948_v18, %v4886_v55  ;;  %v19653_v55 = vsub.f32 %v19369_v51, %v19523_v31  ;;  %v4894_v46 = vmul.f32 %v19647_v23, %v19647_v23 }
 0x598   :  { %v4950_v13 = vadd.f32 %v4949_v24, %v4887_v53  ;;  %v19659_v53 = vsub.f32 %v19373_v56, %v19523_v31  ;;  %v4895_v51 = vmul.f32 %v19653_v55, %v19653_v55 }
 0x59a   :  { %v4951_v14 = vadd.f32 %v4950_v13, %v4888_v54  ;;  %v19665_v54 = vsub.f32 %v19377_v2, %v19523_v31  ;;  %v4896_v56 = vmul.f32 %v19659_v53, %v19659_v53 }
 0x59c   :  { %v4952_v32 = vadd.f32 %v4951_v14, %v4889_v3  ;;  %v19671_v3 = vsub.f32 %v19381_v8, %v19523_v31  ;;  %v4897_v2 = vmul.f32 %v19665_v54, %v19665_v54 }
 0x59e   :  { %v4953_v49 = vadd.f32 %v4952_v32, %v4890_v25  ;;  %v19677_v25 = vsub.f32 %v19385_v0, %v19523_v31  ;;  %v4898_v8 = vmul.f32 %v19671_v3, %v19671_v3 }
 0x5a0   :  { %v4954_v45 = vadd.f32 %v4953_v49, %v4891_v22  ;;  %v19683_v22 = vsub.f32 %v19389_v5, %v19523_v31  ;;  %v4899_v0 = vmul.f32 %v19677_v25, %v19677_v25 }
 0x5a2   :  { %v4955_v18 = vadd.f32 %v4954_v45, %v4892_v34  ;;  %v19689_v34 = vsub.f32 %v19393_v11, %v19523_v31  ;;  %v4900_v5 = vmul.f32 %v19683_v22, %v19683_v22 }
 0x5a4   :  { %v4956_v24 = vadd.f32 %v4955_v18, %v4893_v35  ;;  %v19695_v35 = vsub.f32 %v19397_v15, %v19523_v31  ;;  %v4901_v11 = vmul.f32 %v19689_v34, %v19689_v34 }
 0x5a6   :  { %v4957_v13 = vadd.f32 %v4956_v24, %v4894_v46  ;;  %v19701_v46 = vsub.f32 %v19401_v26, %v19523_v31  ;;  %v4902_v15 = vmul.f32 %v19695_v35, %v19695_v35 }
 0x5a8   :  { %v4958_v14 = vadd.f32 %v4957_v13, %v4895_v51  ;;  %v19707_v51 = vsub.f32 %v19405_v29, %v19523_v31  ;;  %v4903_v26 = vmul.f32 %v19701_v46, %v19701_v46 }
 0x5aa   :  { %v4959_v32 = vadd.f32 %v4958_v14, %v4896_v56  ;;  %v19713_v56 = vsub.f32 %v19409_v38, %v19523_v31  ;;  %v4904_v29 = vmul.f32 %v19707_v51, %v19707_v51 }
 0x5ac   :  { %v4960_v49 = vadd.f32 %v4959_v32, %v4897_v2  ;;  %v19719_v2 = vsub.f32 %v19413_v47, %v19523_v31  ;;  %v4905_v38 = vmul.f32 %v19713_v56, %v19713_v56 }
 0x5ae   :  { %v4961_v45 = vadd.f32 %v4960_v49, %v4898_v8  ;;  %v19725_v8 = vsub.f32 %v19417_v58, %v19523_v31  ;;  %v4906_v47 = vmul.f32 %v19719_v2, %v19719_v2 }
 0x5b0   :  { %v4962_v18 = vadd.f32 %v4961_v45, %v4899_v0  ;;  %v19731_v0 = vsub.f32 %v19421_v62, %v19523_v31  ;;  %v4907_v58 = vmul.f32 %v19725_v8, %v19725_v8 }
 0x5b2   :  { %v4963_v24 = vadd.f32 %v4962_v18, %v4900_v5  ;;  %v19737_v5 = vsub.f32 %v19425_v19, %v19523_v31  ;;  %v4908_v62 = vmul.f32 %v19731_v0, %v19731_v0 }
 0x5b4   :  { %v4964_v13 = vadd.f32 %v4963_v24, %v4901_v11  ;;  %v19743_v11 = vsub.f32 %v19429_v59, %v19523_v31  ;;  %v4909_v19 = vmul.f32 %v19737_v5, %v19737_v5 }
 0x5b6   :  { %v4965_v14 = vadd.f32 %v4964_v13, %v4902_v15  ;;  %v24238_v15 = vld [vmem:[#allocation10_spill] sm:$0xff]  ;;  %v4910_v59 = vmul.f32 %v19743_v11, %v19743_v11 }
 0x5b7   :  { %v19749_v13 = vsub.f32 %v24238_v15, %v19523_v31 }
 0x5b8   :  { %v4966_v32 = vadd.f32 %v4965_v14, %v4903_v26  ;;  %v24239_v14 = vld [vmem:[#allocation11_spill] sm:$0xff] }
 0x5ba   :  { %v4967_v49 = vadd.f32 %v4966_v32, %v4904_v29  ;;  %v19755_v29 = vsub.f32 %v24239_v14, %v19523_v31  ;;  %v24245_v14 = vld [vmem:[#allocation14_spill] sm:$0xff] }
 0x5bc   :  { %v4968_v45 = vadd.f32 %v4967_v49, %v4905_v38  ;;  %24240 = vst [vmem:[#allocation30_spill] sm:$0xff] %v19755_v29  ;;  %v24241_v38 = vld [vmem:[#allocation12_spill] sm:$0xff] }
 0x5bd   :  { %v19761_v49 = vsub.f32 %v24241_v38, %v19523_v31 }
 0x5be   :  { %v4969_v18 = vadd.f32 %v4968_v45, %v4906_v47  ;;  %v4911_v47 = vmul.f32 %v19749_v13, %v19749_v13 }
 0x5bf   :  { %24242 = vst [vmem:[#allocation31_spill] sm:$0xff] %v19761_v49 }
 0x5c0   :  { %v4970_v24 = vadd.f32 %v4969_v18, %v4907_v58  ;;  %v11296_v58 = vld [vmem:[%s23784_s5 + $0x80] sm:$0xff]  ;;  %v11297_v18 = vld [vmem:[%s23784_s5 + $0x88] sm:$0xff] }
 0x5c2   :  { %v4971_v26 = vadd.f32 %v4970_v24, %v4908_v62  ;;  %v15459_v62 = vpack.c.bf16 %v11297_v18, %v11296_v58  ;;  %v24243_v24 = vld [vmem:[#allocation13_spill] sm:$0xff]  ;;  %v11299_v18 = vld [vmem:[%s23784_s5 + $0x98] sm:$0xff] }
 0x5c3   :  { %v19773_v15 = vsub.f32 %v24243_v24, %v19523_v31  ;;  %v11298_v58 = vld [vmem:[%s23784_s5 + $0x90] sm:$0xff] }
 0x5c4   :  { %v4972_v32 = vadd.f32 %v4971_v26, %v4909_v19  ;;  %v4912_v19 = vmul.f32 %v19755_v29, %v19755_v29  ;;  %15460 = vmatprep.subr.bf16.mxu1 %v15459_v62  ;;  %v15463_v24 = vpack.c.bf16 %v11299_v18, %v11298_v58  ;;  %v11300_v58 = vld [vmem:[%s23784_s5 + $0xa0] sm:$0xff]  ;;  %v11301_v18 = vld [vmem:[%s23784_s5 + $0xa8] sm:$0xff] }
 0x5c5   :  { %24244 = vst [vmem:[#allocation32_spill] sm:$0xff] %v19773_v15  ;;  %15462 = vmatpush3.bf16.msra.mxu1 %v15459_v62  ;;  %v24249_v62 = vld [vmem:[#allocation16_spill] sm:$0xff] }
 0x5c6   :  { %v4973_v45 = vadd.f32 %v4972_v32, %v4910_v59  ;;  %v19779_v59 = vsub.f32 %v24245_v14, %v19523_v31  ;;  %v4913_v32 = vmul.f32 %v19761_v49, %v19761_v49  ;;  %v4914_v14 = vmul.f32 %v19773_v15, %v19773_v15  ;;  %15464 = vmatprep.subr.bf16.mxu1 %v15463_v24 }
 0x5c8   :  { %v4974_v26 = vadd.f32 %v4973_v45, %v4911_v47  ;;  %24246 = vst [vmem:[#allocation33_spill] sm:$0xff] %v19779_v59  ;;  %v24247_v47 = vld [vmem:[#allocation15_spill] sm:$0xff] }
 0x5c9   :  { %v19791_v45 = vsub.f32 %v24247_v47, %v19523_v31  ;;  %15466 = vmatpush3.bf16.msra.mxu1 %v15463_v24  ;;  %v15467_v47 = vpack.c.bf16 %v11301_v18, %v11300_v58  ;;  %v11302_v58 = vld [vmem:[%s23784_s5 + $0xb0] sm:$0xff]  ;;  %v11303_v18 = vld [vmem:[%s23784_s5 + $0xb8] sm:$0xff] }
 0x5ca   :  { %v4975_v38 = vadd.f32 %v4974_v26, %v4912_v19  ;;  %v19797_v19 = vsub.f32 %v24249_v62, %v19523_v31  ;;  %v4915_v26 = vmul.f32 %v19779_v59, %v19779_v59 }
 0x5cb   :  { %24248 = vst [vmem:[#allocation34_spill] sm:$0xff] %v19791_v45  ;;  %v4916_v62 = vmul.f32 %v19791_v45, %v19791_v45  ;;  %15468 = vmatprep.subr.bf16.mxu1 %v15467_v47 }
 0x5cc   :  { %v4976_v29 = vadd.f32 %v4975_v38, %v4913_v32  ;;  %24250 = vst [vmem:[#allocation35_spill] sm:$0xff] %v19797_v19  ;;  %v24251_v32 = vld [vmem:[#allocation17_spill] sm:$0xff] }
 0x5cd   :  { %v19809_v38 = vsub.f32 %v24251_v32, %v19523_v31  ;;  %15470 = vmatpush3.bf16.msra.mxu1 %v15467_v47  ;;  %v15471_v32 = vpack.c.bf16 %v11303_v18, %v11302_v58  ;;  %v11304_v58 = vld [vmem:[%s23784_s5 + $0xc0] sm:$0xff]  ;;  %v11305_v18 = vld [vmem:[%s23784_s5 + $0xc8] sm:$0xff] }
 0x5ce   :  { %v4977_v49 = vadd.f32 %v4976_v29, %v4914_v14  ;;  %v24253_v29 = vld [vmem:[#allocation18_spill] sm:$0xff]  ;;  %v4917_v14 = vmul.f32 %v19797_v19, %v19797_v19 }
 0x5cf   :  { %24252 = vst [vmem:[#allocation36_spill] sm:$0xff] %v19809_v38  ;;  %v19815_v24 = vsub.f32 %v24253_v29, %v19523_v31  ;;  %v4918_v29 = vmul.f32 %v19809_v38, %v19809_v38  ;;  %15472 = vmatprep.subr.bf16.mxu1 %v15471_v32 }
 0x5d0   :  { %v4978_v15 = vadd.f32 %v4977_v49, %v4915_v26  ;;  %v24255_v49 = vld [vmem:[#allocation19_spill] sm:$0xff] }
 0x5d1   :  { %24254 = vst [vmem:[#allocation37_spill] sm:$0xff] %v19815_v24  ;;  %v19827_v26 = vsub.f32 %v24255_v49, %v19523_v31  ;;  %15474 = vmatpush3.bf16.msra.mxu1 %v15471_v32  ;;  %v15475_v49 = vpack.c.bf16 %v11305_v18, %v11304_v58  ;;  %v11306_v58 = vld [vmem:[%s23784_s5 + $0xd0] sm:$0xff]  ;;  %v11307_v18 = vld [vmem:[%s23784_s5 + $0xd8] sm:$0xff] }
 0x5d2   :  { %v4979_v59 = vadd.f32 %v4978_v15, %v4916_v62  ;;  %v24257_v15 = vld [vmem:[#allocation20_spill] sm:$0xff]  ;;  %v4919_v62 = vmul.f32 %v19815_v24, %v19815_v24 }
 0x5d3   :  { %24256 = vst [vmem:[#allocation38_spill] sm:$0xff] %v19827_v26  ;;  %v19833_v47 = vsub.f32 %v24257_v15, %v19523_v31  ;;  %v4920_v15 = vmul.f32 %v19827_v26, %v19827_v26  ;;  %15476 = vmatprep.subr.bf16.mxu1 %v15475_v49 }
 0x5d4   :  { %v4980_v45 = vadd.f32 %v4979_v59, %v4917_v14  ;;  %v24259_v59 = vld [vmem:[#allocation21_spill] sm:$0xff] }
 0x5d5   :  { %24258 = vst [vmem:[#allocation39_spill] sm:$0xff] %v19833_v47  ;;  %v19845_v14 = vsub.f32 %v24259_v59, %v19523_v31  ;;  %15478 = vmatpush3.bf16.msra.mxu1 %v15475_v49  ;;  %v15479_v59 = vpack.c.bf16 %v11307_v18, %v11306_v58  ;;  %v11308_v58 = vld [vmem:[%s23784_s5 + $0xe0] sm:$0xff]  ;;  %v11309_v18 = vld [vmem:[%s23784_s5 + $0xe8] sm:$0xff] }
 0x5d6   :  { %v4981_v19 = vadd.f32 %v4980_v45, %v4918_v29  ;;  %v24261_v45 = vld [vmem:[#allocation22_spill] sm:$0xff]  ;;  %v4921_v29 = vmul.f32 %v19833_v47, %v19833_v47 }
 0x5d7   :  { %24260 = vst [vmem:[#allocation40_spill] sm:$0xff] %v19845_v14  ;;  %v19851_v32 = vsub.f32 %v24261_v45, %v19523_v31  ;;  %v4922_v45 = vmul.f32 %v19845_v14, %v19845_v14  ;;  %15480 = vmatprep.subr.bf16.mxu1 %v15479_v59 }
 0x5d8   :  { %v4982_v38 = vadd.f32 %v4981_v19, %v4919_v62  ;;  %v24263_v19 = vld [vmem:[#allocation23_spill] sm:$0xff] }
 0x5d9   :  { %24262 = vst [vmem:[#allocation41_spill] sm:$0xff] %v19851_v32  ;;  %v19863_v62 = vsub.f32 %v24263_v19, %v19523_v31  ;;  %15482 = vmatpush3.bf16.msra.mxu1 %v15479_v59  ;;  %v15483_v19 = vpack.c.bf16 %v11309_v18, %v11308_v58  ;;  %v11310_v58 = vld [vmem:[%s23784_s5 + $0xf0] sm:$0xff]  ;;  %v11311_v18 = vld [vmem:[%s23784_s5 + $0xf8] sm:$0xff] }
 0x5da   :  { %v4983_v24 = vadd.f32 %v4982_v38, %v4920_v15  ;;  %v24264_v38 = vld [vmem:[#allocation24_spill] sm:$0xff]  ;;  %v4923_v15 = vmul.f32 %v19851_v32, %v19851_v32 }
 0x5db   :  { %v19869_v49 = vsub.f32 %v24264_v38, %v19523_v31  ;;  %v4924_v38 = vmul.f32 %v19863_v62, %v19863_v62  ;;  %15484 = vmatprep.subr.bf16.mxu1 %v15483_v19 }
 0x5dc   :  { %v4984_v26 = vadd.f32 %v4983_v24, %v4921_v29  ;;  %v24266_v24 = vld [vmem:[#allocation25_spill] sm:$0xff] }
 0x5dd   :  { %24265 = vst [vmem:[#allocation42_spill] sm:$0xff] %v19869_v49  ;;  %v19881_v29 = vsub.f32 %v24266_v24, %v19523_v31  ;;  %15486 = vmatpush3.bf16.msra.mxu1 %v15483_v19  ;;  %v15487_v24 = vpack.c.bf16 %v11311_v18, %v11310_v58  ;;  %v4928_v19 = vmul.f32 %v19527_v17, %v19527_v17 }
 0x5de   :  { %v4985_v47 = vadd.f32 %v4984_v26, %v4922_v45  ;;  %v24267_v26 = vld [vmem:[#allocation26_spill] sm:$0xff]  ;;  %v4925_v45 = vmul.f32 %v19869_v49, %v19869_v49  ;;  %v5542_v49 = vld [vmem:[#allocation2 + $0x9] sm:$0xff]  ;;  %v4929_v58 = vmul.f32 %v19530_v57, %v19530_v57 }
 0x5df   :  { %v19887_v59 = vsub.f32 %v24267_v26, %v19523_v31  ;;  %15488 = vmatprep.subr.bf16.mxu1 %v15487_v24 }
 0x5e0   :  { %v4986_v14 = vadd.f32 %v4985_v47, %v4923_v15  ;;  %v4926_v47 = vmul.f32 %v19881_v29, %v19881_v29 }
 0x5e1   :  { %v4927_v31 = vmul.f32 %v19887_v59, %v19887_v59  ;;  %15490 = vmatpush3.bf16.msra.mxu1 %v15487_v24  ;;  %v5525_v24 = vld [vmem:[%s23784_s5] sm:$0xff] }
 0x5e2   :  { %v4987_v32 = vadd.f32 %v4986_v14, %v4924_v38  ;;  %v5541_v14 = vld [vmem:[#allocation2 + $0x1] sm:$0xff] }
 0x5e3   :  { %14051 = vmatprep.mubr.f32.mxu1 %v5541_v14 }
 0x5e4   :  { %v4988_v15 = vadd.f32 %v4987_v32, %v4925_v45  ;;  %14052 = vmatmul.mubr.f32.vlgmr.msra.gmra.mrb[0].mxu1 %v5542_v49  ;;  %v4930_v32 = vmul.f32 %v19533_v10, %v19533_v10  ;;  %v5527_v49 = vld [vmem:[%s23784_s5 + $0x10] sm:$0xff] }
 0x5e6   :  { %v4989_v26 = vadd.f32 %v4988_v15, %v4926_v47  ;;  %v5526_v47 = vld [vmem:[%s23784_s5 + $0x8] sm:$0xff] }
 0x5e7   :  { %v15491_v15 = vpack.c.bf16 %v5526_v47, %v5525_v24  ;;  %v4934_v47 = vmul.f32 %v19545_v7, %v19545_v7 }
 0x5e8   :  { %v4990_v38 = vadd.f32 %v4989_v26, %v4927_v31  ;;  %v5528_v31 = vld [vmem:[%s23784_s5 + $0x18] sm:$0xff]  ;;  %v4931_v26 = vmul.f32 %v19536_v30, %v19536_v30 }
 0x5e9   :  { %15492 = vmatprep.subr.bf16.mxu1 %v15491_v15 }
 0x5ea   :  { %v4991_v18 = vadd.f32 %v4990_v38, %v4928_v19  ;;  %v15495_v19 = vpack.c.bf16 %v5528_v31, %v5527_v49  ;;  %v4932_v38 = vmul.f32 %v19539_v9, %v19539_v9  ;;  %15494 = vmatpush3.bf16.msra.mxu1 %v15491_v15  ;;  %v4936_v49 = vmul.f32 %v19551_v40, %v19551_v40 }
 0x5eb   :  { %v4937_v15 = vmul.f32 %v19554_v27, %v19554_v27 }
 0x5ec   :  { %v4992_v45 = vadd.f32 %v4991_v18, %v4929_v58  ;;  %15496 = vmatprep.subr.bf16.mxu1 %v15495_v19  ;;  %v4933_v18 = vmul.f32 %v19542_v50, %v19542_v50 }
 0x5ee   :  { %v4993_v14 = vadd.f32 %v4992_v45, %v4930_v32  ;;  %15498 = vmatpush3.bf16.msra.mxu1 %v15495_v19  ;;  %v4935_v32 = vmul.f32 %v19548_v63, %v19548_v63  ;;  %v5530_v19 = vld [vmem:[%s23784_s5 + $0x28] sm:$0xff] }
 0x5f0   :  { %v4994_v58 = vadd.f32 %v4993_v14, %v4931_v26  ;;  %v5529_v14 = vld [vmem:[%s23784_s5 + $0x20] sm:$0xff] }
 0x5f2   :  { %v4995_v24 = vadd.f32 %v4994_v58, %v4932_v38  ;;  %v15499_v38 = vpack.c.bf16 %v5530_v19, %v5529_v14  ;;  %v4944_v19 = vmul.f32 %v19575_v61, %v19575_v61  ;;  %v5533_v61 = vld [vmem:[%s23784_s5 + $0x40] sm:$0xff] }
 0x5f4   :  { %v4996_v10 = vadd.f32 %v4995_v24, %v4933_v18  ;;  %15500 = vmatprep.subr.bf16.mxu1 %v15499_v38  ;;  %v4939_v18 = vmul.f32 %v19560_v21, %v19560_v21 }
 0x5f5   :  { %15502 = vmatpush3.bf16.msra.mxu1 %v15499_v38 }
 0x5f6   :  { %v4997_v45 = vadd.f32 %v4996_v10, %v4934_v47  ;;  %v4938_v10 = vmul.f32 %v19557_v39, %v19557_v39  ;;  %v4940_v47 = vmul.f32 %v19563_v44, %v19563_v44 }
 0x5f8   :  { %v4998_v31 = vadd.f32 %v4997_v45, %v4935_v32  ;;  %v4941_v45 = vmul.f32 %v19566_v28, %v19566_v28 }
 0x5fa   :  { %v4999_v26 = vadd.f32 %v4998_v31, %v4936_v49  ;;  %v4942_v31 = vmul.f32 %v19569_v12, %v19569_v12 }
 0x5fc   :  { %v5000_v58 = vadd.f32 %v4999_v26, %v4937_v15  ;;  %v4943_v15 = vmul.f32 %v19572_v1, %v19572_v1 }
 0x5fe   :  { %v5001_v24 = vadd.f32 %v5000_v58, %v4938_v10  ;;  %v4945_v10 = vmul.f32 %v19578_v4, %v19578_v4 }
 0x600   :  { %v5002_v32 = vadd.f32 %v5001_v24, %v4939_v18  ;;  %v5531_v18 = vld [vmem:[%s23784_s5 + $0x30] sm:$0xff]  ;;  %v5532_v24 = vld [vmem:[%s23784_s5 + $0x38] sm:$0xff] }
 0x602   :  { %v5003_v49 = vadd.f32 %v5002_v32, %v4940_v47  ;;  %v15503_v47 = vpack.c.bf16 %v5532_v24, %v5531_v18  ;;  %v4946_v32 = vmul.f32 %v19581_v33, %v19581_v33  ;;  %v5534_v18 = vld [vmem:[%s23784_s5 + $0x48] sm:$0xff] }
 0x603   :  { %v15507_v24 = vpack.c.bf16 %v5534_v18, %v5533_v61  ;;  %v24271_v18 = vld [vmem:[#allocation32_spill] sm:$0xff] }
 0x604   :  { %v5004_v14 = vadd.f32 %v5003_v49, %v4941_v45  ;;  %15504 = vmatprep.subr.bf16.mxu1 %v15503_v47 }
 0x605   :  { %15506 = vmatpush3.bf16.msra.mxu1 %v15503_v47  ;;  %v19974_v47 = vld [vmem:[%s23785_s3] ss:$0 sm:$0xff] }
 0x606   :  { %v5005_v26 = vadd.f32 %v5004_v14, %v4942_v31  ;;  %15508 = vmatprep.subr.bf16.mxu1 %v15507_v24 }
 0x608   :  { %v5006_v38 = vadd.f32 %v5005_v26, %v4943_v15 }
 0x609   :  { %15510 = vmatpush3.bf16.msra.mxu1 %v15507_v24  ;;  %v24272_v24 = vld [vmem:[#allocation33_spill] sm:$0xff] }
 0x60a   :  { %v5007_v58 = vadd.f32 %v5006_v38, %v4944_v19 }
 0x60c   :  { %v5008_v45 = vadd.f32 %v5007_v58, %v4945_v10 }
 0x60e   :  { %v5009_v49 = vadd.f32 %v5008_v45, %v4946_v32 }
 0x610   :  { %v5010_v31 = vrot.slane %v5009_v49, 4 }
 0x612   :  { %v5011_v14 = vadd.f32 %v5010_v31, %v5009_v49  ;;  %v19993_v49 = vld [vmem:[%s23786_s4] ss:$0 sm:$0xff] }
 0x613   :  { %24268 = vst [vmem:[#allocation43_spill] sm:$0xff] %v19993_v49 }
 0x614   :  { %v5012_v15 = vrot.slane %v5011_v14, 2 }
 0x616   :  { %v5013_v26 = vadd.f32 %v5012_v15, %v5011_v14 }
 0x618   :  { %v5014_v19 = vrot.slane %v5013_v26, 1 }
 0x61a   :  { %v5015_v38 = vadd.f32 %v5014_v19, %v5013_v26  ;;  %v24269_v19 = vld [vmem:[#allocation30_spill] sm:$0xff] }
 0x61c   :  { %v5016_v33 = vmul.f32 0.001953125, %v5015_v38  ;;  %v24270_v38 = vld [vmem:[#allocation31_spill] sm:$0xff] }
 0x61e   :  { %v5017_v10 = vadd.f32 1e-05, %v5016_v33 }
 0x620   :  { %16772 = vrsqrt.f32 %v5017_v10  ;;  %v24273_v10 = vld [vmem:[#allocation34_spill] sm:$0xff] }
 0x62a   :  { %v19969_v58 = vpop.eup %16772 }
 0x62b   :  { %v5081_v32 = vmul.f32 %v19969_v58, %v19578_v4  ;;  %v19980_v45 = vmul.f32 %v19969_v58, %v19585_v60  ;;  %v19984_v61 = vmul.f32 %v19969_v58, %v19589_v48  ;;  %v19988_v33 = vmul.f32 %v19969_v58, %v19593_v16 }
 0x62c   :  { %v19997_v4 = vmul.f32 %v19969_v58, %v19601_v6  ;;  %v20001_v60 = vmul.f32 %v19969_v58, %v19605_v37  ;;  %v20005_v48 = vmul.f32 %v19969_v58, %v19611_v41  ;;  %v20009_v16 = vmul.f32 %v19969_v58, %v19617_v42 }
 0x62d   :  { %v5151_v31 = vmul.f32 %v19974_v47, %v5081_v32  ;;  %v20014_v14 = vmul.f32 %v19969_v58, %v19623_v43  ;;  %v20018_v6 = vmul.f32 %v19969_v58, %v19629_v52  ;;  %v20022_v37 = vmul.f32 %v19969_v58, %v19635_v36  ;;  %v24275_v32 = vld [vmem:[#allocation35_spill] sm:$0xff] }
 0x62e   :  { %v20026_v41 = vmul.f32 %v19969_v58, %v19641_v20  ;;  %v20030_v42 = vmul.f32 %v19969_v58, %v19647_v23  ;;  %v20034_v43 = vmul.f32 %v19969_v58, %v19653_v55  ;;  %v20038_v52 = vmul.f32 %v19969_v58, %v19659_v53 }
 0x62f   :  { %v5221_v15 = vadd.f32 %v19993_v49, %v5151_v31  ;;  %v20043_v36 = vmul.f32 %v19969_v58, %v19665_v54  ;;  %v20047_v20 = vmul.f32 %v19969_v58, %v19671_v3  ;;  %v20051_v23 = vmul.f32 %v19969_v58, %v19677_v25  ;;  %v24281_v49 = vld [vmem:[#allocation39_spill] sm:$0xff] }
 0x630   :  { %v20055_v55 = vmul.f32 %v19969_v58, %v19683_v22  ;;  %v20059_v53 = vmul.f32 %v19969_v58, %v19689_v34  ;;  %v20063_v54 = vmul.f32 %v19969_v58, %v19695_v35  ;;  %v20067_v3 = vmul.f32 %v19969_v58, %v19701_v46 }
 0x631   :  { %v5285_v26 = vmax.f32 %v5221_v15, 0.0  ;;  %v20071_v25 = vmul.f32 %v19969_v58, %v19707_v51  ;;  %v20075_v22 = vmul.f32 %v19969_v58, %v19713_v56  ;;  %v20079_v34 = vmul.f32 %v19969_v58, %v19719_v2  ;;  %v24277_v15 = vld [vmem:[#allocation36_spill] sm:$0xff] }
 0x632   :  { %v20083_v35 = vmul.f32 %v19969_v58, %v19725_v8  ;;  %v20087_v46 = vmul.f32 %v19969_v58, %v19731_v0  ;;  %v20091_v51 = vmul.f32 %v19969_v58, %v19737_v5  ;;  %v20095_v56 = vmul.f32 %v19969_v58, %v19743_v11 }
 0x633   :  { %5458 = vst [vmem:[#allocation2 + $0x331] sm:$0xff] %v5285_v26  ;;  %v20099_v2 = vmul.f32 %v19969_v58, %v19749_v13  ;;  %v20103_v8 = vmul.f32 %v19969_v58, %v24269_v19  ;;  %v20107_v0 = vmul.f32 %v19969_v58, %v24270_v38  ;;  %v20111_v5 = vmul.f32 %v19969_v58, %v24271_v18  ;;  %v24278_v19 = vld [vmem:[#allocation37_spill] sm:$0xff]  ;;  %v24280_v18 = vld [vmem:[#allocation38_spill] sm:$0xff] }
 0x634   :  { %v20115_v11 = vmul.f32 %v19969_v58, %v24272_v24  ;;  %v20119_v13 = vmul.f32 %v19969_v58, %v24273_v10  ;;  %v20123_v31 = vmul.f32 %v19969_v58, %v24275_v32  ;;  %v20127_v26 = vmul.f32 %v19969_v58, %v24277_v15 }
 0x635   :  { %v20131_v38 = vmul.f32 %v19969_v58, %v24278_v19  ;;  %v20135_v24 = vmul.f32 %v19969_v58, %v24280_v18  ;;  %v20139_v10 = vmul.f32 %v19969_v58, %v24281_v49  ;;  %v20151_v19 = vmul.f32 %v19969_v58, %v19863_v62 }
 0x636   :  { %24274 = vst [vmem:[#allocation44_spill] sm:$0xff] %v20119_v13  ;;  %24276 = vst [vmem:[#allocation45_spill] sm:$0xff] %v20123_v31  ;;  %v24282_v13 = vld [vmem:[#allocation40_spill] sm:$0xff]  ;;  %v24283_v31 = vld [vmem:[#allocation41_spill] sm:$0xff]  ;;  %v20159_v49 = vmul.f32 %v19969_v58, %v19881_v29  ;;  %v20171_v62 = vmul.f32 %v19969_v58, %v19530_v57  ;;  %v20179_v29 = vmul.f32 %v19969_v58, %v19536_v30 }
 0x637   :  { %24279 = vst [vmem:[#allocation46_spill] sm:$0xff] %v20131_v38  ;;  %v20143_v32 = vmul.f32 %v19969_v58, %v24282_v13  ;;  %v20147_v15 = vmul.f32 %v19969_v58, %v24283_v31  ;;  %24284 = vst [vmem:[#allocation47_spill] sm:$0xff] %v20151_v19  ;;  %v24285_v38 = vld [vmem:[#allocation42_spill] sm:$0xff]  ;;  %v20163_v13 = vmul.f32 %v19969_v58, %v19887_v59  ;;  %v24286_v19 = vld [vmem:[#allocation27_spill] sm:$0xff] }
 0x638   :  { %v20155_v18 = vmul.f32 %v19969_v58, %v24285_v38  ;;  %v20167_v31 = vmul.f32 %v19969_v58, %v19527_v17  ;;  %v20175_v38 = vmul.f32 %v19969_v58, %v24286_v19  ;;  %v20183_v59 = vmul.f32 %v19969_v58, %v19539_v9 }
 0x639   :  { %v20187_v17 = vmul.f32 %v19969_v58, %v19542_v50  ;;  %v20191_v57 = vmul.f32 %v19969_v58, %v19545_v7  ;;  %v20195_v19 = vmul.f32 %v19969_v58, %v19548_v63  ;;  %v20199_v30 = vmul.f32 %v19969_v58, %v19551_v40 }
 0x63a   :  { %v20203_v9 = vmul.f32 %v19969_v58, %v19554_v27  ;;  %v20207_v50 = vmul.f32 %v19969_v58, %v19557_v39  ;;  %v20211_v7 = vmul.f32 %v19969_v58, %v19560_v21  ;;  %v20215_v63 = vmul.f32 %v19969_v58, %v19563_v44 }
 0x63b   :  { %v20219_v40 = vmul.f32 %v19969_v58, %v19566_v28  ;;  %v20223_v27 = vmul.f32 %v19969_v58, %v19569_v12  ;;  %v20227_v39 = vmul.f32 %v19969_v58, %v19572_v1  ;;  %v20239_v28 = vmul.f32 %v19974_v47, %v19980_v45 }
 0x63c   :  { %24287 = vst [vmem:[#allocation48_spill] sm:$0xff] %v20207_v50  ;;  %24288 = vst [vmem:[#allocation49_spill] sm:$0xff] %v20211_v7  ;;  %v24289_v50 = vld [vmem:[#allocation28_spill] sm:$0xff]  ;;  %v24290_v7 = vld [vmem:[#allocation29_spill] sm:$0xff]  ;;  %v20243_v12 = vmul.f32 %v19974_v47, %v19984_v61  ;;  %v20247_v1 = vmul.f32 %v19974_v47, %v19988_v33  ;;  %v20259_v45 = vmul.f32 %v19974_v47, %v20005_v48 }
 0x63d   :  { %v20231_v21 = vmul.f32 %v19969_v58, %v24289_v50  ;;  %v20235_v44 = vmul.f32 %v19969_v58, %v24290_v7  ;;  %v20251_v50 = vmul.f32 %v19974_v47, %v19997_v4  ;;  %v20255_v58 = vmul.f32 %v19974_v47, %v20001_v60  ;;  %v24293_v7 = vld [vmem:[#allocation44_spill] sm:$0xff] }
 0x63e   :  { %v20263_v61 = vmul.f32 %v19974_v47, %v20009_v16  ;;  %v20267_v33 = vmul.f32 %v19974_v47, %v20014_v14  ;;  %v20271_v4 = vmul.f32 %v19974_v47, %v20018_v6  ;;  %v20275_v60 = vmul.f32 %v19974_v47, %v20022_v37 }
 0x63f   :  { %v20279_v48 = vmul.f32 %v19974_v47, %v20026_v41  ;;  %v20283_v16 = vmul.f32 %v19974_v47, %v20030_v42  ;;  %v20287_v14 = vmul.f32 %v19974_v47, %v20034_v43  ;;  %v20291_v6 = vmul.f32 %v19974_v47, %v20038_v52 }
 0x640   :  { %v20295_v37 = vmul.f32 %v19974_v47, %v20043_v36  ;;  %v20299_v41 = vmul.f32 %v19974_v47, %v20047_v20  ;;  %v20303_v42 = vmul.f32 %v19974_v47, %v20051_v23  ;;  %v20307_v43 = vmul.f32 %v19974_v47, %v20055_v55 }
 0x641   :  { %v20311_v52 = vmul.f32 %v19974_v47, %v20059_v53  ;;  %v20315_v36 = vmul.f32 %v19974_v47, %v20063_v54  ;;  %v20319_v20 = vmul.f32 %v19974_v47, %v20067_v3  ;;  %v20323_v23 = vmul.f32 %v19974_v47, %v20071_v25 }
 0x642   :  { %v20327_v55 = vmul.f32 %v19974_v47, %v20075_v22  ;;  %v20331_v53 = vmul.f32 %v19974_v47, %v20079_v34  ;;  %v20335_v54 = vmul.f32 %v19974_v47, %v20083_v35  ;;  %v20339_v3 = vmul.f32 %v19974_v47, %v20087_v46 }
 0x643   :  { %v20343_v25 = vmul.f32 %v19974_v47, %v20091_v51  ;;  %v20347_v22 = vmul.f32 %v19974_v47, %v20095_v56  ;;  %v20351_v34 = vmul.f32 %v19974_v47, %v20099_v2  ;;  %v20355_v35 = vmul.f32 %v19974_v47, %v20103_v8 }
 0x644   :  { %v20359_v46 = vmul.f32 %v19974_v47, %v20107_v0  ;;  %v20363_v51 = vmul.f32 %v19974_v47, %v20111_v5  ;;  %v20367_v56 = vmul.f32 %v19974_v47, %v20115_v11  ;;  %v20371_v2 = vmul.f32 %v19974_v47, %v24293_v7 }
 0x645   :  { %24291 = vst [vmem:[#allocation50_spill] sm:$0xff] %v20351_v34  ;;  %v24294_v34 = vld [vmem:[#allocation45_spill] sm:$0xff]  ;;  %v20379_v0 = vmul.f32 %v19974_v47, %v20127_v26  ;;  %v20387_v11 = vmul.f32 %v19974_v47, %v20135_v24  ;;  %v20391_v7 = vmul.f32 %v19974_v47, %v20139_v10  ;;  %v20399_v26 = vmul.f32 %v19974_v47, %v20147_v15 }
 0x646   :  { %24292 = vst [vmem:[#allocation51_spill] sm:$0xff] %v20359_v46  ;;  %v20375_v8 = vmul.f32 %v19974_v47, %v24294_v34  ;;  %v24296_v46 = vld [vmem:[#allocation46_spill] sm:$0xff]  ;;  %v20395_v34 = vmul.f32 %v19974_v47, %v20143_v32  ;;  %v20407_v24 = vmul.f32 %v19974_v47, %v20155_v18  ;;  %v20411_v10 = vmul.f32 %v19974_v47, %v20159_v49 }
 0x647   :  { %24295 = vst [vmem:[#allocation52_spill] sm:$0xff] %v20379_v0  ;;  %v20383_v5 = vmul.f32 %v19974_v47, %v24296_v46  ;;  %v24297_v0 = vld [vmem:[#allocation47_spill] sm:$0xff]  ;;  %v20415_v32 = vmul.f32 %v19974_v47, %v20163_v13  ;;  %v20419_v15 = vmul.f32 %v19974_v47, %v20167_v31  ;;  %v20427_v18 = vmul.f32 %v19974_v47, %v20175_v38 }
 0x648   :  { %v20403_v46 = vmul.f32 %v19974_v47, %v24297_v0  ;;  %v20423_v0 = vmul.f32 %v19974_v47, %v20171_v62  ;;  %v20431_v49 = vmul.f32 %v19974_v47, %v20179_v29  ;;  %v20435_v13 = vmul.f32 %v19974_v47, %v20183_v59 }
 0x649   :  { %v20439_v31 = vmul.f32 %v19974_v47, %v20187_v17  ;;  %v20443_v62 = vmul.f32 %v19974_v47, %v20191_v57  ;;  %v20447_v38 = vmul.f32 %v19974_v47, %v20195_v19  ;;  %v20451_v29 = vmul.f32 %v19974_v47, %v20199_v30 }
 0x64a   :  { %24298 = vst [vmem:[#allocation53_spill] sm:$0xff] %v20435_v13  ;;  %v20455_v59 = vmul.f32 %v19974_v47, %v20203_v9  ;;  %v24300_v13 = vld [vmem:[#allocation48_spill] sm:$0xff]  ;;  %v20467_v19 = vmul.f32 %v19974_v47, %v20215_v63  ;;  %v20471_v30 = vmul.f32 %v19974_v47, %v20219_v40  ;;  %v20475_v9 = vmul.f32 %v19974_v47, %v20223_v27 }
 0x64b   :  { %24299 = vst [vmem:[#allocation54_spill] sm:$0xff] %v20439_v31  ;;  %v20459_v17 = vmul.f32 %v19974_v47, %v24300_v13  ;;  %v24301_v31 = vld [vmem:[#allocation49_spill] sm:$0xff]  ;;  %v20479_v13 = vmul.f32 %v19974_v47, %v20227_v39  ;;  %v20487_v63 = vmul.f32 %v19974_v47, %v20235_v44 }
 0x64c   :  { %v20463_v57 = vmul.f32 %v19974_v47, %v24301_v31  ;;  %24302 = vst [vmem:[#allocation55_spill] sm:$0xff] %v20467_v19  ;;  %v20483_v31 = vmul.f32 %v19974_v47, %v20231_v21  ;;  %v24303_v19 = vld [vmem:[#allocation43_spill] sm:$0xff] }
 0x64d   :  { %v20491_v40 = vadd.f32 %v24303_v19, %v20239_v28  ;;  %v20495_v27 = vadd.f32 %v24303_v19, %v20243_v12  ;;  %v20499_v39 = vadd.f32 %v24303_v19, %v20247_v1  ;;  %v20503_v21 = vadd.f32 %v24303_v19, %v20251_v50 }
 0x64e   :  { %v20507_v47 = vadd.f32 %v24303_v19, %v20255_v58  ;;  %v20511_v44 = vadd.f32 %v24303_v19, %v20259_v45  ;;  %v20515_v28 = vadd.f32 %v24303_v19, %v20263_v61  ;;  %v20519_v12 = vadd.f32 %v24303_v19, %v20267_v33 }
 0x64f   :  { %v20523_v1 = vadd.f32 %v24303_v19, %v20271_v4  ;;  %v20527_v50 = vadd.f32 %v24303_v19, %v20275_v60  ;;  %v20531_v58 = vadd.f32 %v24303_v19, %v20279_v48  ;;  %v20535_v45 = vadd.f32 %v24303_v19, %v20283_v16 }
 0x650   :  { %v20539_v61 = vadd.f32 %v24303_v19, %v20287_v14  ;;  %v20543_v33 = vadd.f32 %v24303_v19, %v20291_v6  ;;  %v20547_v4 = vadd.f32 %v24303_v19, %v20295_v37  ;;  %v20551_v60 = vadd.f32 %v24303_v19, %v20299_v41 }
 0x651   :  { %v20555_v48 = vadd.f32 %v24303_v19, %v20303_v42  ;;  %v20559_v16 = vadd.f32 %v24303_v19, %v20307_v43  ;;  %v20563_v14 = vadd.f32 %v24303_v19, %v20311_v52  ;;  %v20567_v6 = vadd.f32 %v24303_v19, %v20315_v36 }
 0x652   :  { %v20571_v37 = vadd.f32 %v24303_v19, %v20319_v20  ;;  %v20575_v41 = vadd.f32 %v24303_v19, %v20323_v23  ;;  %v20579_v42 = vadd.f32 %v24303_v19, %v20327_v55  ;;  %v20583_v43 = vadd.f32 %v24303_v19, %v20331_v53  ;;  %v24305_v55 = vld [vmem:[#allocation50_spill] sm:$0xff] }
 0x653   :  { %v20587_v52 = vadd.f32 %v24303_v19, %v20335_v54  ;;  %v20591_v36 = vadd.f32 %v24303_v19, %v20339_v3  ;;  %v20595_v20 = vadd.f32 %v24303_v19, %v20343_v25  ;;  %v20599_v23 = vadd.f32 %v24303_v19, %v20347_v22 }
 0x654   :  { %v20603_v53 = vadd.f32 %v24303_v19, %v24305_v55  ;;  %v20607_v54 = vadd.f32 %v24303_v19, %v20355_v35  ;;  %v20615_v25 = vadd.f32 %v24303_v19, %v20363_v51  ;;  %v20619_v22 = vadd.f32 %v24303_v19, %v20367_v56 }
 0x655   :  { %24304 = vst [vmem:[#allocation56_spill] sm:$0xff] %v20587_v52  ;;  %v24307_v52 = vld [vmem:[#allocation51_spill] sm:$0xff]  ;;  %v20623_v55 = vadd.f32 %v24303_v19, %v20371_v2  ;;  %v20627_v35 = vadd.f32 %v24303_v19, %v20375_v8  ;;  %v20635_v51 = vadd.f32 %v24303_v19, %v20383_v5  ;;  %v20639_v56 = vadd.f32 %v24303_v19, %v20387_v11 }
 0x656   :  { %24306 = vst [vmem:[#allocation57_spill] sm:$0xff] %v20607_v54  ;;  %v20611_v3 = vadd.f32 %v24303_v19, %v24307_v52  ;;  %v24308_v54 = vld [vmem:[#allocation52_spill] sm:$0xff]  ;;  %v20643_v2 = vadd.f32 %v24303_v19, %v20391_v7  ;;  %v20647_v8 = vadd.f32 %v24303_v19, %v20395_v34  ;;  %v20655_v5 = vadd.f32 %v24303_v19, %v20403_v46 }
 0x657   :  { %v20631_v52 = vadd.f32 %v24303_v19, %v24308_v54  ;;  %v20651_v54 = vadd.f32 %v24303_v19, %v20399_v26  ;;  %v20659_v11 = vadd.f32 %v24303_v19, %v20407_v24  ;;  %v20663_v7 = vadd.f32 %v24303_v19, %v20411_v10 }
 0x658   :  { %v20667_v34 = vadd.f32 %v24303_v19, %v20415_v32  ;;  %v20671_v26 = vadd.f32 %v24303_v19, %v20419_v15  ;;  %v20675_v46 = vadd.f32 %v24303_v19, %v20423_v0  ;;  %v20679_v24 = vadd.f32 %v24303_v19, %v20427_v18 }
 0x659   :  { %24309 = vst [vmem:[#allocation58_spill] sm:$0xff] %v20663_v7  ;;  %v20683_v10 = vadd.f32 %v24303_v19, %v20431_v49  ;;  %v24311_v7 = vld [vmem:[#allocation53_spill] sm:$0xff]  ;;  %v20695_v0 = vadd.f32 %v24303_v19, %v20443_v62  ;;  %v20699_v18 = vadd.f32 %v24303_v19, %v20447_v38  ;;  %v20703_v49 = vadd.f32 %v24303_v19, %v20451_v29 }
 0x65a   :  { %24310 = vst [vmem:[#allocation59_spill] sm:$0xff] %v20667_v34  ;;  %v20687_v32 = vadd.f32 %v24303_v19, %v24311_v7  ;;  %v24313_v34 = vld [vmem:[#allocation54_spill] sm:$0xff]  ;;  %v20707_v7 = vadd.f32 %v24303_v19, %v20455_v59  ;;  %v20715_v62 = vadd.f32 %v24303_v19, %v20463_v57  ;;  %v20723_v29 = vadd.f32 %v24303_v19, %v20471_v30 }
 0x65b   :  { %v20691_v15 = vadd.f32 %v24303_v19, %v24313_v34  ;;  %24315 = vst [vmem:[#allocation62_spill] sm:$0xff] %v20695_v0  ;;  %v20711_v34 = vadd.f32 %v24303_v19, %v20459_v17  ;;  %v24316_v0 = vld [vmem:[#allocation55_spill] sm:$0xff]  ;;  %v20727_v59 = vadd.f32 %v24303_v19, %v20475_v9  ;;  %v20731_v17 = vadd.f32 %v24303_v19, %v20479_v13 }
 0x65c   :  { %24312 = vst [vmem:[#allocation60_spill] sm:$0xff] %v20687_v32  ;;  %v20719_v38 = vadd.f32 %v24303_v19, %v24316_v0  ;;  %24318 = vst [vmem:[#allocation64_spill] sm:$0xff] %v20723_v29  ;;  %v20735_v57 = vadd.f32 %v24303_v19, %v20483_v31  ;;  %v20739_v0 = vadd.f32 %v24303_v19, %v20487_v63  ;;  %v5224_v30 = vmax.f32 %v20495_v27, 0.0 }
 0x65d   :  { %24314 = vst [vmem:[#allocation61_spill] sm:$0xff] %v20691_v15  ;;  %24319 = vst [vmem:[#allocation65_spill] sm:$0xff] %v20727_v59  ;;  %v5225_v29 = vmax.f32 %v20499_v39, 0.0  ;;  %v5226_v9 = vmax.f32 %v20503_v21, 0.0  ;;  %v5227_v59 = vmax.f32 %v20507_v47, 0.0  ;;  %v23915_v13 = vmax.f32 %v20511_v44, 0.0 }
 0x65e   :  { %24317 = vst [vmem:[#allocation63_spill] sm:$0xff] %v20719_v38  ;;  %24320 = vst [vmem:[#allocation3_spill] sm:$0xff] %v20731_v17  ;;  %v5223_v38 = vmax.f32 %v20491_v40, 0.0  ;;  %v23914_v17 = vmax.f32 %v20515_v28, 0.0  ;;  %v23916_v31 = vmax.f32 %v20519_v12, 0.0  ;;  %v23919_v19 = vmax.f32 %v20527_v50, 0.0 }
 0x65f   :  { %24321 = vst [vmem:[#allocation4_spill] sm:$0xff] %v20735_v57  ;;  %v23917_v57 = vmax.f32 %v20523_v1, 0.0  ;;  %v23918_v63 = vmax.f32 %v20531_v58, 0.0  ;;  %5397 = vst [vmem:[#allocation2 + $0x21] sm:$0xff] %v5224_v30  ;;  %v23921_v39 = vmax.f32 %v20543_v33, 0.0  ;;  %v23920_v21 = vmax.f32 %v20547_v4, 0.0 }
 0x660   :  { %5396 = vst [vmem:[#allocation2 + $0x19] sm:$0xff] %v5223_v38  ;;  %5398 = vst [vmem:[#allocation2 + $0x31] sm:$0xff] %v5225_v29  ;;  %14054 = vmatprep.mubr.f32.mxu1 %v5223_v38  ;;  %v23924_v47 = vmax.f32 %v20551_v60, 0.0  ;;  %v23922_v38 = vmax.f32 %v20555_v48, 0.0  ;;  %v23923_v40 = vmax.f32 %v20559_v16, 0.0  ;;  %v5253_v27 = vmax.f32 %v20611_v3, 0.0 }
 0x661   :  { %5399 = vst [vmem:[#allocation2 + $0x39] sm:$0xff] %v5226_v9  ;;  %5400 = vst [vmem:[#allocation2 + $0x49] sm:$0xff] %v5227_v59  ;;  %14055 = vmatmul.mubr.f32.gmra.mrb[2].mxu1 %v5224_v30  ;;  %v23926_v30 = vmax.f32 %v20567_v6, 0.0  ;;  %v23931_v3 = vmax.f32 %v20627_v35, 0.0 }
 0x662   :  { %5401 = vst [vmem:[#allocation2 + $0x51] sm:$0xff] %v23915_v13  ;;  %5402 = vst [vmem:[#allocation2 + $0x61] sm:$0xff] %v23914_v17  ;;  %14057 = vmatprep.mubr.f32.mxu1 %v5225_v29  ;;  %v23925_v17 = vmax.f32 %v20571_v37, 0.0  ;;  %v23928_v29 = vmax.f32 %v20583_v43, 0.0  ;;  %v23932_v13 = vmax.f32 %v20623_v55, 0.0 }
 0x663   :  { %5403 = vst [vmem:[#allocation2 + $0x69] sm:$0xff] %v23916_v31  ;;  %5404 = vst [vmem:[#allocation2 + $0x79] sm:$0xff] %v23917_v57  ;;  %v24322_v31 = vmax.f32 %v20535_v45, 0.0  ;;  %v24323_v57 = vmax.f32 %v20539_v61, 0.0 }
 0x664   :  { %5405 = vst [vmem:[#allocation2 + $0x81] sm:$0xff] %v23919_v19  ;;  %5406 = vst [vmem:[#allocation2 + $0x91] sm:$0xff] %v23918_v63  ;;  %v24324_v63 = vld [vmem:[#allocation56_spill] sm:$0xff] }
 0x665   :  { %5407 = vst [vmem:[#allocation2 + $0x99] sm:$0xff] %v24322_v31  ;;  %5408 = vst [vmem:[#allocation2 + $0xa9] sm:$0xff] %v24323_v57  ;;  %v23927_v19 = vmax.f32 %v24324_v63, 0.0  ;;  %v24325_v57 = vmax.f32 %v20563_v14, 0.0  ;;  %v23930_v31 = vmax.f32 %v20599_v23, 0.0  ;;  %14058 = vmatmul.mubr.f32.gmra.mrb[4].mxu1 %v5226_v9  ;;  %v23935_v9 = vmax.f32 %v20635_v51, 0.0 }
 0x666   :  { %5409 = vst [vmem:[#allocation2 + $0xb1] sm:$0xff] %v23921_v39  ;;  %5410 = vst [vmem:[#allocation2 + $0xc1] sm:$0xff] %v23920_v21  ;;  %v23929_v21 = vmax.f32 %v20603_v53, 0.0  ;;  %v24326_v39 = vld [vmem:[#allocation57_spill] sm:$0xff]  ;;  %14060 = vmatprep.mubr.f32.mxu1 %v5227_v59  ;;  %v23938_v59 = vmax.f32 %v20647_v8, 0.0 }
 0x667   :  { %5411 = vst [vmem:[#allocation2 + $0xc9] sm:$0xff] %v23924_v47  ;;  %5412 = vst [vmem:[#allocation2 + $0xd9] sm:$0xff] %v23922_v38  ;;  %v24327_v38 = vmax.f32 %v20575_v41, 0.0  ;;  %v23933_v47 = vmax.f32 %v20619_v22, 0.0 }
 0x668   :  { %5413 = vst [vmem:[#allocation2 + $0xe1] sm:$0xff] %v23923_v40  ;;  %5414 = vst [vmem:[#allocation2 + $0xf1] sm:$0xff] %v24325_v57  ;;  %v24328_v40 = vmax.f32 %v20579_v42, 0.0  ;;  %v5254_v57 = vmax.f32 %v20615_v25, 0.0  ;;  %v23934_v25 = vmax.f32 %v20631_v52, 0.0 }
 0x669   :  { %5415 = vst [vmem:[#allocation2 + $0xf9] sm:$0xff] %v23926_v30  ;;  %5416 = vst [vmem:[#allocation2 + $0x109] sm:$0xff] %v23925_v17  ;;  %v23936_v17 = vmax.f32 %v20639_v56, 0.0  ;;  %v23937_v30 = vmax.f32 %v20643_v2, 0.0 }
 0x66a   :  { %5417 = vst [vmem:[#allocation2 + $0x111] sm:$0xff] %v24327_v38  ;;  %5418 = vst [vmem:[#allocation2 + $0x121] sm:$0xff] %v24328_v40  ;;  %v24329_v38 = vmax.f32 %v20591_v36, 0.0  ;;  %v24330_v40 = vmax.f32 %v20595_v20, 0.0 }
 0x66b   :  { %5419 = vst [vmem:[#allocation2 + $0x129] sm:$0xff] %v23928_v29  ;;  %5420 = vst [vmem:[#allocation2 + $0x139] sm:$0xff] %v23927_v19  ;;  %v23941_v29 = vmax.f32 %v20659_v11, 0.0  ;;  %v23942_v19 = vmax.f32 %v20675_v46, 0.0 }
 0x66c   :  { %5421 = vst [vmem:[#allocation2 + $0x141] sm:$0xff] %v24329_v38  ;;  %5422 = vst [vmem:[#allocation2 + $0x151] sm:$0xff] %v24330_v40  ;;  %v24331_v38 = vmax.f32 %v24326_v39, 0.0  ;;  %v23943_v40 = vmax.f32 %v20671_v26, 0.0 }
 0x66d   :  { %5423 = vst [vmem:[#allocation2 + $0x159] sm:$0xff] %v23930_v31  ;;  %5424 = vst [vmem:[#allocation2 + $0x169] sm:$0xff] %v23929_v21  ;;  %v24333_v21 = vld [vmem:[#allocation59_spill] sm:$0xff] }
 0x66e   :  { %5425 = vst [vmem:[#allocation2 + $0x171] sm:$0xff] %v24331_v38  ;;  %5426 = vst [vmem:[#allocation2 + $0x181] sm:$0xff] %v5253_v27  ;;  %v24332_v38 = vld [vmem:[#allocation58_spill] sm:$0xff]  ;;  %v23940_v31 = vmax.f32 %v24333_v21, 0.0 }
 0x66f   :  { %5427 = vst [vmem:[#allocation2 + $0x189] sm:$0xff] %v5254_v57  ;;  %5428 = vst [vmem:[#allocation2 + $0x1c9] sm:$0xff] %v23933_v47  ;;  %v23939_v27 = vmax.f32 %v24332_v38, 0.0  ;;  %v24334_v57 = vmax.f32 %v20511_v44, 0.0  ;;  %v24337_v44 = vmax.f32 %v20515_v28, 0.0  ;;  %v5535_v28 = vld [vmem:[%s23784_s5 + $0x50] sm:$0xff] }
 0x670   :  { %5429 = vst [vmem:[#allocation2 + $0x1d1] sm:$0xff] %v23932_v13  ;;  %5430 = vst [vmem:[#allocation2 + $0x1e1] sm:$0xff] %v23931_v3  ;;  %v23944_v3 = vmax.f32 %v20679_v24, 0.0  ;;  %v23945_v13 = vmax.f32 %v20683_v10, 0.0  ;;  %v24345_v47 = vld [vmem:[#allocation4_spill] sm:$0xff] }
 0x671   :  { %5431 = vst [vmem:[#allocation2 + $0x1e9] sm:$0xff] %v23934_v25  ;;  %5432 = vst [vmem:[#allocation2 + $0x1f9] sm:$0xff] %v23935_v9  ;;  %14061 = vmatmul.mubr.f32.gmra.mrb[6].mxu1 %v24334_v57  ;;  %v24335_v9 = vmax.f32 %v20651_v54, 0.0  ;;  %v24338_v57 = vld [vmem:[#allocation62_spill] sm:$0xff]  ;;  %v24351_v25 = vmax.f32 %v20711_v34, 0.0 }
 0x672   :  { %5433 = vst [vmem:[#allocation2 + $0x201] sm:$0xff] %v23936_v17  ;;  %5434 = vst [vmem:[#allocation2 + $0x211] sm:$0xff] %v23937_v30  ;;  %v24336_v17 = vmax.f32 %v20655_v5, 0.0  ;;  %14063 = vmatprep.mubr.f32.mxu1 %v24337_v44  ;;  %v5537_v44 = vld [vmem:[%s23784_s5 + $0x60] sm:$0xff]  ;;  %v5286_v30 = vmax.f32 %v20739_v0, 0.0  ;;  %v24352_v0 = vmax.f32 %v20715_v62, 0.0 }
 0x673   :  { %5435 = vst [vmem:[#allocation2 + $0x219] sm:$0xff] %v23938_v59  ;;  %5436 = vst [vmem:[#allocation2 + $0x229] sm:$0xff] %v24335_v9  ;;  %v5538_v59 = vld [vmem:[%s23784_s5 + $0x68] sm:$0xff]  ;;  %v24350_v9 = vmax.f32 %v20519_v12, 0.0 }
 0x674   :  { %5437 = vst [vmem:[#allocation2 + $0x231] sm:$0xff] %v24336_v17  ;;  %5438 = vst [vmem:[#allocation2 + $0x241] sm:$0xff] %v23941_v29  ;;  %v5536_v17 = vld [vmem:[%s23784_s5 + $0x58] sm:$0xff]  ;;  %v24340_v29 = vld [vmem:[#allocation64_spill] sm:$0xff] }
 0x675   :  { %5439 = vst [vmem:[#allocation2 + $0x249] sm:$0xff] %v23939_v27  ;;  %5440 = vst [vmem:[#allocation2 + $0x259] sm:$0xff] %v23940_v31  ;;  %v24339_v27 = vld [vmem:[#allocation63_spill] sm:$0xff]  ;;  %v24343_v31 = vld [vmem:[#allocation65_spill] sm:$0xff]  ;;  %14064 = vmatmul.mubr.f32.gmra.mrb[8].mxu1 %v24350_v9  ;;  %v15515_v9 = vpack.c.bf16 %v5538_v59, %v5537_v44  ;;  %v24361_v44 = vmax.f32 %v20535_v45, 0.0  ;;  %v24366_v45 = vmax.f32 %v20555_v48, 0.0 }
 0x676   :  { %5441 = vst [vmem:[#allocation2 + $0x261] sm:$0xff] %v23943_v40  ;;  %5442 = vst [vmem:[#allocation2 + $0x271] sm:$0xff] %v23942_v19  ;;  %v24341_v19 = vmax.f32 %v20687_v32, 0.0  ;;  %v24342_v40 = vmax.f32 %v20691_v15, 0.0  ;;  %v24348_v15 = vmax.f32 %v20703_v49, 0.0  ;;  %v24349_v32 = vmax.f32 %v20707_v7, 0.0 }
 0x677   :  { %5443 = vst [vmem:[#allocation2 + $0x279] sm:$0xff] %v23944_v3  ;;  %5444 = vst [vmem:[#allocation2 + $0x289] sm:$0xff] %v23945_v13  ;;  %v24344_v3 = vld [vmem:[#allocation3_spill] sm:$0xff]  ;;  %v15511_v13 = vpack.c.bf16 %v5536_v17, %v5535_v28  ;;  %v24359_v28 = vmax.f32 %v20527_v50, 0.0  ;;  %v24360_v17 = vmax.f32 %v20531_v58, 0.0  ;;  %v11313_v59 = vld [vmem:[%s23784_s5 + $0x108] sm:$0xff] }
 0x678   :  { %5445 = vst [vmem:[#allocation2 + $0x291] sm:$0xff] %v24341_v19  ;;  %5446 = vst [vmem:[#allocation2 + $0x2a1] sm:$0xff] %v24342_v40  ;;  %v24346_v19 = vmax.f32 %v24338_v57, 0.0  ;;  %v24347_v40 = vmax.f32 %v20699_v18, 0.0  ;;  %v24357_v12 = vmax.f32 %v24344_v3, 0.0  ;;  %v24362_v50 = vmax.f32 %v20539_v61, 0.0 }
 0x679   :  { %5449 = vst [vmem:[#allocation2 + $0x2c1] sm:$0xff] %v24348_v15  ;;  %5450 = vst [vmem:[#allocation2 + $0x2d1] sm:$0xff] %v24349_v32  ;;  %v24355_v15 = vmax.f32 %v20523_v1, 0.0  ;;  %v24356_v32 = vmax.f32 %v24343_v31, 0.0  ;;  %15512 = vmatprep.subr.bf16.mxu1 %v15511_v13  ;;  %v5540_v1 = vld [vmem:[%s23784_s5 + $0x78] sm:$0xff]  ;;  %v24367_v61 = vmax.f32 %v20559_v16, 0.0 }
 0x67a   :  { %5447 = vst [vmem:[#allocation2 + $0x2a9] sm:$0xff] %v24346_v19  ;;  %5448 = vst [vmem:[#allocation2 + $0x2b9] sm:$0xff] %v24347_v40  ;;  %v24353_v19 = vmax.f32 %v24339_v27, 0.0  ;;  %v24354_v40 = vmax.f32 %v24340_v29, 0.0  ;;  %15514 = vmatpush3.bf16.msra.mxu1 %v15511_v13  ;;  %v24363_v13 = vmax.f32 %v20543_v33, 0.0  ;;  %v24369_v33 = vmax.f32 %v20567_v6, 0.0 }
 0x67b   :  { %5451 = vst [vmem:[#allocation2 + $0x2d9] sm:$0xff] %v24351_v25  ;;  %5452 = vst [vmem:[#allocation2 + $0x2e9] sm:$0xff] %v24352_v0  ;;  %14066 = vmatprep.mubr.f32.mxu1 %v24355_v15  ;;  %v24358_v25 = vmax.f32 %v24345_v47, 0.0  ;;  %v5539_v0 = vld [vmem:[%s23784_s5 + $0x70] sm:$0xff]  ;;  %15516 = vmatprep.subr.bf16.mxu1 %v15515_v9  ;;  %v24365_v15 = vmax.f32 %v20551_v60, 0.0  ;;  %v24372_v60 = vmax.f32 %v20579_v42, 0.0 }
 0x67c   :  { %5453 = vst [vmem:[#allocation2 + $0x2f1] sm:$0xff] %v24353_v19  ;;  %5454 = vst [vmem:[#allocation2 + $0x301] sm:$0xff] %v24354_v40  ;;  %14067 = vmatmul.mubr.f32.gmra.mrb[10].mxu1 %v24359_v28  ;;  %v15519_v19 = vpack.c.bf16 %v5540_v1, %v5539_v0  ;;  %v24364_v40 = vmax.f32 %v20547_v4, 0.0  ;;  %v24370_v4 = vmax.f32 %v20571_v37, 0.0  ;;  %v24373_v48 = vmax.f32 %v20583_v43, 0.0  ;;  %v5573_v42 = vld [vmem:[#allocation2 + $0x1b1] sm:$0xff] }
 0x67d   :  { %5455 = vst [vmem:[#allocation2 + $0x309] sm:$0xff] %v24356_v32  ;;  %5456 = vst [vmem:[#allocation2 + $0x319] sm:$0xff] %v24357_v12  ;;  %14069 = vmatprep.mubr.f32.mxu1 %v24360_v17  ;;  %v24368_v32 = vmax.f32 %v20563_v14, 0.0  ;;  %v24371_v12 = vmax.f32 %v20575_v41, 0.0  ;;  %v24374_v16 = vmax.f32 %v24324_v63, 0.0  ;;  %v24375_v14 = vmax.f32 %v20591_v36, 0.0 }
 0x67e   :  { %5457 = vst [vmem:[#allocation2 + $0x321] sm:$0xff] %v24358_v25  ;;  %5459 = vst [vmem:[#allocation2 + $0x339] sm:$0xff] %v5286_v30  ;;  %v11312_v30 = vld [vmem:[%s23784_s5 + $0x100] sm:$0xff]  ;;  %15518 = vmatpush3.bf16.msra.mxu1 %v15515_v9  ;;  %v24376_v6 = vmax.f32 %v20595_v20, 0.0  ;;  %v24377_v37 = vmax.f32 %v20599_v23, 0.0  ;;  %v24378_v41 = vmax.f32 %v20603_v53, 0.0 }
 0x67f   :  { %15520 = vmatprep.subr.bf16.mxu1 %v15519_v19  ;;  %v20954_v58 = vpack.c.bf16 %v11313_v59, %v11312_v30  ;;  %v24379_v25 = vmax.f32 %v24326_v39, 0.0  ;;  %v5574_v43 = vld [vmem:[#allocation2 + $0x1b9] sm:$0xff]  ;;  %v24380_v63 = vmax.f32 %v20619_v22, 0.0  ;;  %v24381_v36 = vmax.f32 %v20623_v55, 0.0  ;;  %v11318_v59 = vld [vmem:[%s23784_s5 + $0x130] sm:$0xff] }
 0x680   :  { %14070 = vmatmul.mubr.f32.gmra.mrb[12].mxu1 %v24361_v44  ;;  %v24382_v20 = vmax.f32 %v20627_v35, 0.0  ;;  %v24383_v23 = vmax.f32 %v20631_v52, 0.0  ;;  %v24384_v53 = vmax.f32 %v20635_v51, 0.0  ;;  %v24385_v39 = vmax.f32 %v20639_v56, 0.0  ;;  %v21071_v30 = vld [vmem:[#allocation2 + $0x20] sm:$0xff]  ;;  %v11319_v44 = vld [vmem:[%s23784_s5 + $0x138] sm:$0xff] }
 0x681   :  { %14072 = vmatprep.mubr.f32.mxu1 %v24362_v50  ;;  %v24386_v9 = vmax.f32 %v20643_v2, 0.0  ;;  %v24387_v22 = vmax.f32 %v20647_v8, 0.0  ;;  %v24388_v55 = vmax.f32 %v20651_v54, 0.0  ;;  %v24389_v35 = vmax.f32 %v20655_v5, 0.0  ;;  %v21080_v50 = vld [vmem:[#allocation2 + $0x30] sm:$0xff] }
 0x682   :  { %15522 = vmatpush3.bf16.msra.mxu1 %v15519_v19  ;;  %v24390_v52 = vmax.f32 %v20659_v11, 0.0  ;;  %v24391_v51 = vmax.f32 %v24332_v38, 0.0  ;;  %v24392_v56 = vmax.f32 %v24333_v21, 0.0  ;;  %v24393_v2 = vmax.f32 %v20671_v26, 0.0  ;;  %v24397_v11 = vld [vmem:[#allocation60_spill] sm:$0xff]  ;;  %v24399_v38 = vld [vmem:[#allocation61_spill] sm:$0xff] }
 0x683   :  { %15524 = vmatprep.subr.bf16.mxu1 %v20954_v58  ;;  %v24394_v8 = vmax.f32 %v20675_v46, 0.0  ;;  %v24395_v54 = vmax.f32 %v20679_v24, 0.0  ;;  %v24396_v5 = vmax.f32 %v20683_v10, 0.0  ;;  %v24398_v0 = vmax.f32 %v24397_v11, 0.0  ;;  %v21067_v19 = vld [vmem:[#allocation2 + $0x18] sm:$0xff] }
 0x684   :  { %14073 = vmatmul.mubr.f32.gmra.mrb[14].mxu1 %v24363_v13  ;;  %v24400_v1 = vmax.f32 %v24399_v38, 0.0  ;;  %v24401_v21 = vmax.f32 %v24338_v57, 0.0  ;;  %v24402_v26 = vmax.f32 %v20699_v18, 0.0  ;;  %v24403_v46 = vmax.f32 %v20703_v49, 0.0  ;;  %v21083_v13 = vld [vmem:[#allocation2 + $0x38] sm:$0xff]  ;;  %v21185_v38 = vld [vmem:[#allocation2 + $0x150] sm:$0xff] }
 0x685   :  { %14075 = vmatprep.mubr.f32.mxu1 %v24364_v40  ;;  %v24404_v24 = vmax.f32 %v20707_v7, 0.0  ;;  %v24405_v10 = vmax.f32 %v20711_v34, 0.0  ;;  %v24406_v28 = vmax.f32 %v20715_v62, 0.0  ;;  %v24407_v17 = vmax.f32 %v24339_v27, 0.0  ;;  %v11314_v7 = vld [vmem:[%s23784_s5 + $0x110] sm:$0xff]  ;;  %v11315_v34 = vld [vmem:[%s23784_s5 + $0x118] sm:$0xff] }
 0x686   :  { %v24408_v57 = vmax.f32 %v24340_v29, 0.0  ;;  %v24409_v18 = vmax.f32 %v24343_v31, 0.0  ;;  %v24410_v49 = vmax.f32 %v24344_v3, 0.0  ;;  %v24411_v62 = vmax.f32 %v24345_v47, 0.0  ;;  %v21057_v27 = vld [vmem:[#allocation2] sm:$0xff]  ;;  %v11317_v3 = vld [vmem:[%s23784_s5 + $0x128] sm:$0xff] }
 0x687   :  { %v15527_v29 = vpack.c.bf16 %v11315_v34, %v11314_v7  ;;  %v11316_v31 = vld [vmem:[%s23784_s5 + $0x120] sm:$0xff]  ;;  %v21179_v11 = vld [vmem:[#allocation2 + $0x138] sm:$0xff]  ;;  %v21223_v7 = vld [vmem:[#allocation2 + $0x228] sm:$0xff] }
 0x688   :  { %14076 = vmatmul.mubr.f32.gmra.mrb[16].mxu1 %v24365_v15  ;;  %v15531_v47 = vpack.c.bf16 %v11317_v3, %v11316_v31  ;;  %v11320_v40 = vld [vmem:[%s23784_s5 + $0x140] sm:$0xff]  ;;  %v11321_v15 = vld [vmem:[%s23784_s5 + $0x148] sm:$0xff]  ;;  %v21226_v34 = vld [vmem:[#allocation2 + $0x230] sm:$0xff] }
 0x689   :  { %14078 = vmatprep.mubr.f32.mxu1 %v24366_v45  ;;  %v21092_v45 = vld [vmem:[#allocation2 + $0x48] sm:$0xff]  ;;  %v21238_v31 = vld [vmem:[#allocation2 + $0x260] sm:$0xff]  ;;  %v21241_v3 = vld [vmem:[#allocation2 + $0x270] sm:$0xff] }
 0x68c   :  { %14079 = vmatmul.mubr.f32.gmra.mrb[18].mxu1 %v24367_v61  ;;  %v15539_v61 = vpack.c.bf16 %v11321_v15, %v11320_v40  ;;  %v21256_v40 = vld [vmem:[#allocation2 + $0x2a8] sm:$0xff]  ;;  %v21259_v15 = vld [vmem:[#allocation2 + $0x2b8] sm:$0xff] }
 0x68d   :  { %14081 = vmatprep.mubr.f32.mxu1 %v24368_v32  ;;  %v21095_v32 = vld [vmem:[#allocation2 + $0x50] sm:$0xff] }
 0x690   :  { %14082 = vmatmul.mubr.f32.gmra.mrb[20].mxu1 %v24369_v33  ;;  %v11322_v33 = vld [vmem:[%s23784_s5 + $0x150] sm:$0xff] }
 0x691   :  { %14084 = vmatprep.mubr.f32.mxu1 %v24370_v4  ;;  %v11323_v4 = vld [vmem:[%s23784_s5 + $0x158] sm:$0xff] }
 0x694   :  { %14085 = vmatmul.mubr.f32.gmra.mrb[22].mxu1 %v24371_v12  ;;  %v21104_v12 = vld [vmem:[#allocation2 + $0x60] sm:$0xff] }
 0x695   :  { %14087 = vmatprep.mubr.f32.mxu1 %v24372_v60  ;;  %v15543_v60 = vpack.c.bf16 %v11323_v4, %v11322_v33  ;;  %v21265_v33 = vld [vmem:[#allocation2 + $0x2d0] sm:$0xff]  ;;  %v21268_v4 = vld [vmem:[#allocation2 + $0x2d8] sm:$0xff] }
 0x698   :  { %14088 = vmatmul.mubr.f32.gmra.mrb[24].mxu1 %v24373_v48  ;;  %v21107_v48 = vld [vmem:[#allocation2 + $0x68] sm:$0xff] }
 0x699   :  { %14090 = vmatprep.mubr.f32.mxu1 %v24374_v16  ;;  %v11324_v16 = vld [vmem:[%s23784_s5 + $0x160] sm:$0xff] }
 0x69c   :  { %14091 = vmatmul.mubr.f32.gmra.mrb[26].mxu1 %v24375_v14  ;;  %v11325_v14 = vld [vmem:[%s23784_s5 + $0x168] sm:$0xff] }
 0x69d   :  { %14093 = vmatprep.mubr.f32.mxu1 %v24376_v6  ;;  %v21116_v6 = vld [vmem:[#allocation2 + $0x78] sm:$0xff] }
 0x6a0   :  { %14094 = vmatmul.mubr.f32.gmra.mrb[28].mxu1 %v24377_v37  ;;  %v15547_v37 = vpack.c.bf16 %v11325_v14, %v11324_v16  ;;  %v21274_v16 = vld [vmem:[#allocation2 + $0x2f0] sm:$0xff]  ;;  %v21277_v14 = vld [vmem:[#allocation2 + $0x300] sm:$0xff] }
 0x6a1   :  { %14096 = vmatprep.mubr.f32.mxu1 %v24378_v41  ;;  %v21119_v41 = vld [vmem:[#allocation2 + $0x80] sm:$0xff]  ;;  %24413 = vst [vmem:[#allocation6_spill] sm:$0xff] %v21274_v16  ;;  %24414 = vst [vmem:[#allocation7_spill] sm:$0xff] %v21277_v14 }
 0x6a4   :  { %14097 = vmatmul.mubr.f32.gmra.mrb[30].mxu1 %v24379_v25  ;;  %v11327_v25 = vld [vmem:[%s23784_s5 + $0x178] sm:$0xff] }
 0x6a5   :  { %14099 = vmatprep.mubr.f32.mxu1 %v5573_v42  ;;  %v11326_v42 = vld [vmem:[%s23784_s5 + $0x170] sm:$0xff] }
 0x6a8   :  { %14100 = vmatmul.mubr.f32.gmra.mrb[32].mxu1 %v5574_v43  ;;  %v21128_v43 = vld [vmem:[#allocation2 + $0x90] sm:$0xff] }
 0x6a9   :  { %14102 = vmatprep.mubr.f32.mxu1 %v24380_v63  ;;  %v15551_v63 = vpack.c.bf16 %v11327_v25, %v11326_v42  ;;  %v21283_v42 = vld [vmem:[#allocation2 + $0x318] sm:$0xff]  ;;  %v6392_v25 = vld [vmem:[#allocation2 + $0x2] sm:$0xff] }
 0x6aa   :  { %24416 = vst [vmem:[#allocation66_spill] sm:$0xff] %v21283_v42 }
 0x6ac   :  { %14103 = vmatmul.mubr.f32.gmra.mrb[34].mxu1 %v24381_v36  ;;  %v21131_v36 = vld [vmem:[#allocation2 + $0x98] sm:$0xff] }
 0x6ad   :  { %14105 = vmatprep.mubr.f32.mxu1 %v24382_v20  ;;  %v11328_v20 = vld [vmem:[%s23784_s5 + $0x180] sm:$0xff] }
 0x6b0   :  { %14106 = vmatmul.mubr.f32.gmra.mrb[36].mxu1 %v24383_v23  ;;  %v11329_v23 = vld [vmem:[%s23784_s5 + $0x188] sm:$0xff] }
 0x6b1   :  { %14108 = vmatprep.mubr.f32.mxu1 %v24384_v53  ;;  %v21140_v53 = vld [vmem:[#allocation2 + $0xa8] sm:$0xff] }
 0x6b4   :  { %14109 = vmatmul.mubr.f32.gmra.mrb[38].mxu1 %v24385_v39  ;;  %v21143_v39 = vpack.c.bf16 %v11329_v23, %v11328_v20  ;;  %v11330_v20 = vld [vmem:[%s23784_s5 + $0x190] sm:$0xff]  ;;  %v11331_v23 = vld [vmem:[%s23784_s5 + $0x198] sm:$0xff] }
 0x6b5   :  { %14111 = vmatprep.mubr.f32.mxu1 %v24386_v9  ;;  %v21145_v9 = vld [vmem:[#allocation2 + $0xb0] sm:$0xff] }
 0x6b8   :  { %14112 = vmatmul.mubr.f32.gmra.mrb[40].mxu1 %v24387_v22  ;;  %v21148_v22 = vld [vmem:[#allocation2 + $0xc0] sm:$0xff] }
 0x6b9   :  { %14114 = vmatprep.mubr.f32.mxu1 %v24388_v55  ;;  %v21152_v55 = vld [vmem:[#allocation2 + $0xc8] sm:$0xff] }
 0x6bc   :  { %14115 = vmatmul.mubr.f32.gmra.mrb[42].mxu1 %v24389_v35  ;;  %v21155_v35 = vld [vmem:[#allocation2 + $0xd8] sm:$0xff] }
 0x6bd   :  { %14117 = vmatprep.mubr.f32.mxu1 %v24390_v52  ;;  %v21158_v52 = vld [vmem:[#allocation2 + $0xe0] sm:$0xff] }
 0x6c0   :  { %14118 = vmatmul.mubr.f32.gmra.mrb[44].mxu1 %v24391_v51  ;;  %v21161_v51 = vld [vmem:[#allocation2 + $0xf0] sm:$0xff] }
 0x6c1   :  { %14120 = vmatprep.mubr.f32.mxu1 %v24392_v56  ;;  %v21164_v56 = vld [vmem:[#allocation2 + $0xf8] sm:$0xff] }
 0x6c4   :  { %14121 = vmatmul.mubr.f32.gmra.mrb[46].mxu1 %v24393_v2  ;;  %v21167_v2 = vld [vmem:[#allocation2 + $0x108] sm:$0xff] }
 0x6c5   :  { %14123 = vmatprep.mubr.f32.mxu1 %v24394_v8  ;;  %v21170_v8 = vld [vmem:[#allocation2 + $0x110] sm:$0xff] }
 0x6c8   :  { %14124 = vmatmul.mubr.f32.gmra.mrb[48].mxu1 %v24395_v54  ;;  %v21173_v54 = vld [vmem:[#allocation2 + $0x120] sm:$0xff] }
 0x6c9   :  { %14126 = vmatprep.mubr.f32.mxu1 %v24396_v5  ;;  %v21176_v5 = vld [vmem:[#allocation2 + $0x128] sm:$0xff] }
 0x6cc   :  { %14127 = vmatmul.mubr.f32.gmra.mrb[50].mxu1 %v24398_v0  ;;  %v21182_v0 = vld [vmem:[#allocation2 + $0x140] sm:$0xff] }
 0x6cd   :  { %14129 = vmatprep.mubr.f32.mxu1 %v24400_v1  ;;  %v21188_v1 = vld [vmem:[#allocation2 + $0x158] sm:$0xff] }
 0x6d0   :  { %14130 = vmatmul.mubr.f32.gmra.mrb[52].mxu1 %v24401_v21  ;;  %v21191_v21 = vld [vmem:[#allocation2 + $0x168] sm:$0xff] }
 0x6d1   :  { %14132 = vmatprep.mubr.f32.mxu1 %v24402_v26  ;;  %v21194_v26 = vld [vmem:[#allocation2 + $0x170] sm:$0xff] }
 0x6d4   :  { %14133 = vmatmul.mubr.f32.gmra.mrb[54].mxu1 %v24403_v46  ;;  %v21199_v46 = vld [vmem:[#allocation2 + $0x1c8] sm:$0xff] }
 0x6d5   :  { %14135 = vmatprep.mubr.f32.mxu1 %v24404_v24  ;;  %v21202_v24 = vld [vmem:[#allocation2 + $0x1d0] sm:$0xff] }
 0x6d8   :  { %14136 = vmatmul.mubr.f32.gmra.mrb[56].mxu1 %v24405_v10  ;;  %v21205_v10 = vld [vmem:[#allocation2 + $0x1e0] sm:$0xff] }
 0x6d9   :  { %14138 = vmatprep.mubr.f32.mxu1 %v24406_v28  ;;  %v21208_v28 = vld [vmem:[#allocation2 + $0x1e8] sm:$0xff] }
 0x6dc   :  { %14139 = vmatmul.mubr.f32.gmra.mrb[58].mxu1 %v24407_v17  ;;  %v21211_v17 = vld [vmem:[#allocation2 + $0x1f8] sm:$0xff] }
 0x6dd   :  { %14141 = vmatprep.mubr.f32.mxu1 %v24408_v57  ;;  %v21214_v57 = vld [vmem:[#allocation2 + $0x200] sm:$0xff] }
 0x6e0   :  { %14142 = vmatmul.mubr.f32.gmra.mrb[60].mxu1 %v24409_v18  ;;  %v21217_v18 = vld [vmem:[#allocation2 + $0x210] sm:$0xff] }
 0x6e1   :  { %14144 = vmatprep.mubr.f32.mxu1 %v24410_v49  ;;  %v21220_v49 = vld [vmem:[#allocation2 + $0x218] sm:$0xff] }
 0x6e4   :  { %14145 = vmatmul.mubr.f32.gmra.mrb[62].mxu1 %v24411_v62  ;;  %v21229_v62 = vld [vmem:[#allocation2 + $0x240] sm:$0xff] }
 0x6e5   :  { %14179 = vmatprep.mubr.f32.mxu1 %v21057_v27 }
 0x6e8   :  { %14180 = vmatmul.mubr.f32.vlgmr.msra.gmra.mrb[0].mxu1 %v21057_v27 }
 0x6e9   :  { %14182 = vmatprep.mubr.f32.mxu1 %v21067_v19  ;;  %15526 = vmatpush3.bf16.msra.mxu1 %v20954_v58  ;;  %v15535_v58 = vpack.c.bf16 %v11319_v44, %v11318_v59  ;;  %v21247_v59 = vld [vmem:[#allocation2 + $0x288] sm:$0xff]  ;;  %v21250_v44 = vld [vmem:[#allocation2 + $0x290] sm:$0xff] }
 0x6ea   :  { %15528 = vmatprep.subr.bf16.mxu1 %v15527_v29 }
 0x6ec   :  { %14183 = vmatmul.mubr.f32.gmra.mrb[2].mxu1 %v21071_v30 }
 0x6ed   :  { %14185 = vmatprep.mubr.f32.mxu1 %v21080_v50  ;;  %15530 = vmatpush3.bf16.msra.mxu1 %v15527_v29  ;;  %v21235_v29 = vld [vmem:[#allocation2 + $0x258] sm:$0xff] }
 0x6ee   :  { %15532 = vmatprep.subr.bf16.mxu1 %v15531_v47 }
 0x6f0   :  { %14186 = vmatmul.mubr.f32.gmra.mrb[4].mxu1 %v21083_v13 }
 0x6f1   :  { %14188 = vmatprep.mubr.f32.mxu1 %v21092_v45  ;;  %15534 = vmatpush3.bf16.msra.mxu1 %v15531_v47  ;;  %v21244_v47 = vld [vmem:[#allocation2 + $0x278] sm:$0xff] }
 0x6f2   :  { %15536 = vmatprep.subr.bf16.mxu1 %v15535_v58 }
 0x6f4   :  { %14189 = vmatmul.mubr.f32.gmra.mrb[6].mxu1 %v21095_v32 }
 0x6f5   :  { %14191 = vmatprep.mubr.f32.mxu1 %v21104_v12  ;;  %15538 = vmatpush3.bf16.msra.mxu1 %v15535_v58  ;;  %v21253_v58 = vld [vmem:[#allocation2 + $0x2a0] sm:$0xff] }
 0x6f6   :  { %15540 = vmatprep.subr.bf16.mxu1 %v15539_v61 }
 0x6f8   :  { %14192 = vmatmul.mubr.f32.gmra.mrb[8].mxu1 %v21107_v48 }
 0x6f9   :  { %14194 = vmatprep.mubr.f32.mxu1 %v21116_v6  ;;  %15542 = vmatpush3.bf16.msra.mxu1 %v15539_v61  ;;  %v21262_v61 = vld [vmem:[#allocation2 + $0x2c0] sm:$0xff] }
 0x6fa   :  { %15544 = vmatprep.subr.bf16.mxu1 %v15543_v60 }
 0x6fc   :  { %14195 = vmatmul.mubr.f32.gmra.mrb[10].mxu1 %v21119_v41 }
 0x6fd   :  { %14197 = vmatprep.mubr.f32.mxu1 %v21128_v43  ;;  %15546 = vmatpush3.bf16.msra.mxu1 %v15543_v60  ;;  %v21271_v60 = vld [vmem:[#allocation2 + $0x2e8] sm:$0xff] }
 0x6fe   :  { %15548 = vmatprep.subr.bf16.mxu1 %v15547_v37  ;;  %24412 = vst [vmem:[#allocation5_spill] sm:$0xff] %v21271_v60 }
 0x700   :  { %14198 = vmatmul.mubr.f32.gmra.mrb[12].mxu1 %v21131_v36 }
 0x701   :  { %14200 = vmatprep.mubr.f32.mxu1 %v21140_v53  ;;  %15550 = vmatpush3.bf16.msra.mxu1 %v15547_v37  ;;  %v21280_v37 = vld [vmem:[#allocation2 + $0x308] sm:$0xff] }
 0x702   :  { %15552 = vmatprep.subr.bf16.mxu1 %v15551_v63  ;;  %24415 = vst [vmem:[#allocation8_spill] sm:$0xff] %v21280_v37 }
 0x704   :  { %14201 = vmatmul.mubr.f32.gmra.mrb[14].mxu1 %v21145_v9 }
 0x705   :  { %14203 = vmatprep.mubr.f32.mxu1 %v21148_v22  ;;  %15554 = vmatpush3.bf16.msra.mxu1 %v15551_v63  ;;  %v21286_v63 = vld [vmem:[#allocation2 + $0x320] sm:$0xff] }
 0x706   :  { %15556 = vmatprep.subr.bf16.mxu1 %v21143_v39  ;;  %24417 = vst [vmem:[#allocation67_spill] sm:$0xff] %v21286_v63 }
 0x708   :  { %14204 = vmatmul.mubr.f32.gmra.mrb[16].mxu1 %v21152_v55 }
 0x709   :  { %14206 = vmatprep.mubr.f32.mxu1 %v21155_v35 }
 0x70c   :  { %14207 = vmatmul.mubr.f32.gmra.mrb[18].mxu1 %v21158_v52 }
 0x70d   :  { %14209 = vmatprep.mubr.f32.mxu1 %v21161_v51 }
 0x710   :  { %14210 = vmatmul.mubr.f32.gmra.mrb[20].mxu1 %v21164_v56 }
 0x711   :  { %14212 = vmatprep.mubr.f32.mxu1 %v21167_v2 }
 0x714   :  { %14213 = vmatmul.mubr.f32.gmra.mrb[22].mxu1 %v21170_v8 }
 0x715   :  { %14215 = vmatprep.mubr.f32.mxu1 %v21173_v54 }
 0x718   :  { %14216 = vmatmul.mubr.f32.gmra.mrb[24].mxu1 %v21176_v5 }
 0x719   :  { %14218 = vmatprep.mubr.f32.mxu1 %v21179_v11 }
 0x71c   :  { %14219 = vmatmul.mubr.f32.gmra.mrb[26].mxu1 %v21182_v0 }
 0x71d   :  { %14221 = vmatprep.mubr.f32.mxu1 %v21185_v38 }
 0x720   :  { %14222 = vmatmul.mubr.f32.gmra.mrb[28].mxu1 %v21188_v1 }
 0x721   :  { %14224 = vmatprep.mubr.f32.mxu1 %v21191_v21 }
 0x724   :  { %14225 = vmatmul.mubr.f32.gmra.mrb[30].mxu1 %v21194_v26 }
 0x725   :  { %14227 = vmatprep.mubr.f32.mxu1 %v21057_v27 }
 0x728   :  { %14228 = vmatmul.mubr.f32.gmra.mrb[32].mxu1 %v21057_v27  ;;  %v21232_v27 = vld [vmem:[#allocation2 + $0x248] sm:$0xff] }
 0x729   :  { %14230 = vmatprep.mubr.f32.mxu1 %v21199_v46 }
 0x72c   :  { %14231 = vmatmul.mubr.f32.gmra.mrb[34].mxu1 %v21202_v24 }
 0x72d   :  { %14233 = vmatprep.mubr.f32.mxu1 %v21205_v10 }
 0x730   :  { %14234 = vmatmul.mubr.f32.gmra.mrb[36].mxu1 %v21208_v28 }
 0x731   :  { %14236 = vmatprep.mubr.f32.mxu1 %v21211_v17 }
 0x734   :  { %14237 = vmatmul.mubr.f32.gmra.mrb[38].mxu1 %v21214_v57 }
 0x735   :  { %14239 = vmatprep.mubr.f32.mxu1 %v21217_v18 }
 0x738   :  { %14240 = vmatmul.mubr.f32.gmra.mrb[40].mxu1 %v21220_v49 }
 0x739   :  { %14242 = vmatprep.mubr.f32.mxu1 %v21223_v7 }
 0x73c   :  { %14243 = vmatmul.mubr.f32.gmra.mrb[42].mxu1 %v21226_v34 }
 0x73d   :  { %14245 = vmatprep.mubr.f32.mxu1 %v21229_v62 }
 0x740   :  { %14246 = vmatmul.mubr.f32.gmra.mrb[44].mxu1 %v21232_v27 }
 0x741   :  { %14248 = vmatprep.mubr.f32.mxu1 %v21235_v29 }
 0x744   :  { %14249 = vmatmul.mubr.f32.gmra.mrb[46].mxu1 %v21238_v31 }
 0x745   :  { %14251 = vmatprep.mubr.f32.mxu1 %v21241_v3 }
 0x748   :  { %14252 = vmatmul.mubr.f32.gmra.mrb[48].mxu1 %v21244_v47 }
 0x749   :  { %14254 = vmatprep.mubr.f32.mxu1 %v21247_v59 }
 0x74c   :  { %14255 = vmatmul.mubr.f32.gmra.mrb[50].mxu1 %v21250_v44 }
 0x74d   :  { %14257 = vmatprep.mubr.f32.mxu1 %v21253_v58 }
 0x750   :  { %14258 = vmatmul.mubr.f32.gmra.mrb[52].mxu1 %v21256_v40 }
 0x751   :  { %14260 = vmatprep.mubr.f32.mxu1 %v21259_v15 }
 0x754   :  { %14261 = vmatmul.mubr.f32.gmra.mrb[54].mxu1 %v21262_v61 }
 0x755   :  { %14263 = vmatprep.mubr.f32.mxu1 %v21265_v33 }
 0x758   :  { %14264 = vmatmul.mubr.f32.gmra.mrb[56].mxu1 %v21268_v4 }
 0x759   :  { %14266 = vmatprep.mubr.f32.mxu1 %v21271_v60  ;;  %v21301_v60 = vld [vmem:[#allocation2 + $0x1a] sm:$0xff] }
 0x75a   :  { %24418 = vst [vmem:[#allocation68_spill] sm:$0xff] %v21301_v60 }
 0x75c   :  { %14267 = vmatmul.mubr.f32.gmra.mrb[58].mxu1 %v21274_v16  ;;  %v11333_v16 = vld [vmem:[%s23784_s5 + $0x1a8] sm:$0xff] }
 0x75d   :  { %14269 = vmatprep.mubr.f32.mxu1 %v21277_v14  ;;  %v6393_v14 = vld [vmem:[#allocation2 + $0xa] sm:$0xff] }
 0x760   :  { %14270 = vmatmul.mubr.f32.gmra.mrb[60].mxu1 %v21280_v37  ;;  %v15559_v37 = vpack.c.bf16 %v11331_v23, %v11330_v20  ;;  %v11334_v20 = vld [vmem:[%s23784_s5 + $0x1b0] sm:$0xff]  ;;  %v11335_v23 = vld [vmem:[%s23784_s5 + $0x1b8] sm:$0xff] }
 0x761   :  { %14272 = vmatprep.mubr.f32.mxu1 %v21283_v42  ;;  %v11332_v42 = vld [vmem:[%s23784_s5 + $0x1a0] sm:$0xff] }
 0x764   :  { %14273 = vmatmul.mubr.f32.gmra.mrb[62].mxu1 %v21286_v63  ;;  %v15563_v63 = vpack.c.bf16 %v11333_v16, %v11332_v42  ;;  %v21317_v16 = vld [vmem:[#allocation2 + $0x3a] sm:$0xff] }
 0x765   :  { %14307 = vmatprep.mubr.f32.mxu1 %v6392_v25  ;;  %v21305_v25 = vld [vmem:[#allocation2 + $0x22] sm:$0xff]  ;;  %24421 = vst [vmem:[#allocation71_spill] sm:$0xff] %v21317_v16 }
 0x766   :  { %24419 = vst [vmem:[#allocation69_spill] sm:$0xff] %v21305_v25  ;;  %v11336_v42 = vld [vmem:[%s23784_s5 + $0x1c0] sm:$0xff] }
 0x768   :  { %14308 = vmatmul.mubr.f32.vlgmr.msra.gmra.mrb[0].mxu1 %v6393_v14  ;;  %v21314_v14 = vld [vmem:[#allocation2 + $0x32] sm:$0xff] }
 0x769   :  { %14310 = vmatprep.mubr.f32.mxu1 %v21301_v60  ;;  %15558 = vmatpush3.bf16.msra.mxu1 %v21143_v39  ;;  %24420 = vst [vmem:[#allocation70_spill] sm:$0xff] %v21314_v14  ;;  %v15567_v39 = vpack.c.bf16 %v11335_v23, %v11334_v20  ;;  %v11337_v60 = vld [vmem:[%s23784_s5 + $0x1c8] sm:$0xff]  ;;  %v21329_v20 = vld [vmem:[#allocation2 + $0x52] sm:$0xff] }
 0x76a   :  { %15560 = vmatprep.subr.bf16.mxu1 %v15559_v37  ;;  %24423 = vst [vmem:[#allocation73_spill] sm:$0xff] %v21329_v20  ;;  %v11338_v23 = vld [vmem:[%s23784_s5 + $0x1d0] sm:$0xff] }
 0x76c   :  { %14311 = vmatmul.mubr.f32.gmra.mrb[2].mxu1 %v21305_v25  ;;  %v21326_v25 = vld [vmem:[#allocation2 + $0x4a] sm:$0xff] }
 0x76d   :  { %14313 = vmatprep.mubr.f32.mxu1 %v21314_v14  ;;  %15562 = vmatpush3.bf16.msra.mxu1 %v15559_v37  ;;  %24422 = vst [vmem:[#allocation72_spill] sm:$0xff] %v21326_v25  ;;  %v15571_v37 = vpack.c.bf16 %v11337_v60, %v11336_v42  ;;  %v11339_v14 = vld [vmem:[%s23784_s5 + $0x1d8] sm:$0xff]  ;;  %v21341_v60 = vld [vmem:[#allocation2 + $0x6a] sm:$0xff]  ;;  %v11340_v42 = vld [vmem:[%s23784_s5 + $0x1e0] sm:$0xff] }
 0x76e   :  { %15564 = vmatprep.subr.bf16.mxu1 %v15563_v63  ;;  %24425 = vst [vmem:[#allocation10_spill] sm:$0xff] %v21341_v60 }
 0x770   :  { %14314 = vmatmul.mubr.f32.gmra.mrb[4].mxu1 %v21317_v16  ;;  %v21338_v16 = vld [vmem:[#allocation2 + $0x62] sm:$0xff] }
 0x771   :  { %14316 = vmatprep.mubr.f32.mxu1 %v21326_v25  ;;  %15566 = vmatpush3.bf16.msra.mxu1 %v15563_v63  ;;  %24424 = vst [vmem:[#allocation9_spill] sm:$0xff] %v21338_v16  ;;  %v15575_v63 = vpack.c.bf16 %v11339_v14, %v11338_v23  ;;  %v11341_v25 = vld [vmem:[%s23784_s5 + $0x1e8] sm:$0xff]  ;;  %v11342_v23 = vld [vmem:[%s23784_s5 + $0x1f0] sm:$0xff] }
 0x772   :  { %15568 = vmatprep.subr.bf16.mxu1 %v15567_v39  ;;  %v21353_v14 = vld [vmem:[#allocation2 + $0x82] sm:$0xff] }
 0x773   :  { %24427 = vst [vmem:[#allocation12_spill] sm:$0xff] %v21353_v14 }
 0x774   :  { %14317 = vmatmul.mubr.f32.gmra.mrb[6].mxu1 %v21329_v20  ;;  %v21350_v20 = vld [vmem:[#allocation2 + $0x7a] sm:$0xff] }
 0x775   :  { %14319 = vmatprep.mubr.f32.mxu1 %v21338_v16  ;;  %15570 = vmatpush3.bf16.msra.mxu1 %v15567_v39  ;;  %24426 = vst [vmem:[#allocation11_spill] sm:$0xff] %v21350_v20  ;;  %v15579_v39 = vpack.c.bf16 %v11341_v25, %v11340_v42  ;;  %v11343_v16 = vld [vmem:[%s23784_s5 + $0x1f8] sm:$0xff]  ;;  %v11344_v42 = vld [vmem:[%s23784_s5 + $0x200] sm:$0xff] }
 0x776   :  { %15572 = vmatprep.subr.bf16.mxu1 %v15571_v37  ;;  %v21365_v25 = vld [vmem:[#allocation2 + $0x9a] sm:$0xff] }
 0x777   :  { %24428 = vst [vmem:[#allocation13_spill] sm:$0xff] %v21365_v25 }
 0x778   :  { %14320 = vmatmul.mubr.f32.gmra.mrb[8].mxu1 %v21341_v60  ;;  %v21362_v60 = vld [vmem:[#allocation2 + $0x92] sm:$0xff] }
 0x779   :  { %14322 = vmatprep.mubr.f32.mxu1 %v21350_v20  ;;  %15574 = vmatpush3.bf16.msra.mxu1 %v15571_v37  ;;  %v15583_v37 = vpack.c.bf16 %v11343_v16, %v11342_v23  ;;  %v11345_v20 = vld [vmem:[%s23784_s5 + $0x208] sm:$0xff]  ;;  %v21379_v16 = vld [vmem:[#allocation2 + $0xb2] sm:$0xff] }
 0x77a   :  { %15576 = vmatprep.subr.bf16.mxu1 %v15575_v63  ;;  %v21382_v23 = vld [vmem:[#allocation2 + $0xc2] sm:$0xff] }
 0x77b   :  { %24430 = vst [vmem:[#allocation15_spill] sm:$0xff] %v21382_v23 }
 0x77c   :  { %14323 = vmatmul.mubr.f32.gmra.mrb[10].mxu1 %v21353_v14  ;;  %v21374_v14 = vld [vmem:[#allocation2 + $0xaa] sm:$0xff] }
 0x77d   :  { %14325 = vmatprep.mubr.f32.mxu1 %v21362_v60  ;;  %15578 = vmatpush3.bf16.msra.mxu1 %v15575_v63  ;;  %24429 = vst [vmem:[#allocation14_spill] sm:$0xff] %v21374_v14  ;;  %v21377_v63 = vpack.c.bf16 %v11345_v20, %v11344_v42  ;;  %v21392_v20 = vld [vmem:[#allocation2 + $0xe2] sm:$0xff]  ;;  %v21398_v42 = vld [vmem:[#allocation2 + $0xfa] sm:$0xff] }
 0x77e   :  { %15580 = vmatprep.subr.bf16.mxu1 %v15579_v39  ;;  %24433 = vst [vmem:[#allocation18_spill] sm:$0xff] %v21392_v20  ;;  %24435 = vst [vmem:[#allocation20_spill] sm:$0xff] %v21398_v42 }
 0x780   :  { %14326 = vmatmul.mubr.f32.gmra.mrb[12].mxu1 %v21365_v25  ;;  %v21386_v25 = vld [vmem:[#allocation2 + $0xca] sm:$0xff] }
 0x781   :  { %14328 = vmatprep.mubr.f32.mxu1 %v21374_v14  ;;  %15582 = vmatpush3.bf16.msra.mxu1 %v15579_v39  ;;  %24431 = vst [vmem:[#allocation16_spill] sm:$0xff] %v21386_v25  ;;  %v21389_v14 = vld [vmem:[#allocation2 + $0xda] sm:$0xff]  ;;  %v21395_v39 = vld [vmem:[#allocation2 + $0xf2] sm:$0xff] }
 0x782   :  { %15584 = vmatprep.subr.bf16.mxu1 %v15583_v37  ;;  %24432 = vst [vmem:[#allocation17_spill] sm:$0xff] %v21389_v14  ;;  %24434 = vst [vmem:[#allocation19_spill] sm:$0xff] %v21395_v39 }
 0x784   :  { %14329 = vmatmul.mubr.f32.gmra.mrb[14].mxu1 %v21379_v16 }
 0x785   :  { %14331 = vmatprep.mubr.f32.mxu1 %v21382_v23  ;;  %15586 = vmatpush3.bf16.msra.mxu1 %v15583_v37  ;;  %v21401_v37 = vld [vmem:[#allocation2 + $0x10a] sm:$0xff]  ;;  %v21428_v23 = vld [vmem:[#allocation2 + $0x172] sm:$0xff] }
 0x786   :  { %15588 = vmatprep.subr.bf16.mxu1 %v21377_v63  ;;  %24436 = vst [vmem:[#allocation21_spill] sm:$0xff] %v21401_v37  ;;  %24445 = vst [vmem:[#allocation33_spill] sm:$0xff] %v21428_v23 }
 0x788   :  { %14332 = vmatmul.mubr.f32.gmra.mrb[16].mxu1 %v21386_v25  ;;  %v21404_v25 = vld [vmem:[#allocation2 + $0x112] sm:$0xff] }
 0x789   :  { %14334 = vmatprep.mubr.f32.mxu1 %v21389_v14  ;;  %24437 = vst [vmem:[#allocation22_spill] sm:$0xff] %v21404_v25  ;;  %v21407_v14 = vld [vmem:[#allocation2 + $0x122] sm:$0xff] }
 0x78a   :  { %24438 = vst [vmem:[#allocation23_spill] sm:$0xff] %v21407_v14 }
 0x78c   :  { %14335 = vmatmul.mubr.f32.gmra.mrb[18].mxu1 %v21392_v20  ;;  %v21410_v20 = vld [vmem:[#allocation2 + $0x12a] sm:$0xff] }
 0x78d   :  { %14337 = vmatprep.mubr.f32.mxu1 %v21395_v39  ;;  %24439 = vst [vmem:[#allocation24_spill] sm:$0xff] %v21410_v20  ;;  %v21413_v39 = vld [vmem:[#allocation2 + $0x13a] sm:$0xff] }
 0x78e   :  { %24440 = vst [vmem:[#allocation25_spill] sm:$0xff] %v21413_v39 }
 0x790   :  { %14338 = vmatmul.mubr.f32.gmra.mrb[20].mxu1 %v21398_v42  ;;  %v21416_v42 = vld [vmem:[#allocation2 + $0x142] sm:$0xff] }
 0x791   :  { %14340 = vmatprep.mubr.f32.mxu1 %v21401_v37  ;;  %24441 = vst [vmem:[#allocation26_spill] sm:$0xff] %v21416_v42  ;;  %v21419_v37 = vld [vmem:[#allocation2 + $0x152] sm:$0xff] }
 0x792   :  { %24442 = vst [vmem:[#allocation30_spill] sm:$0xff] %v21419_v37 }
 0x794   :  { %14341 = vmatmul.mubr.f32.gmra.mrb[22].mxu1 %v21404_v25  ;;  %v21422_v25 = vld [vmem:[#allocation2 + $0x15a] sm:$0xff] }
 0x795   :  { %14343 = vmatprep.mubr.f32.mxu1 %v21407_v14  ;;  %24443 = vst [vmem:[#allocation31_spill] sm:$0xff] %v21422_v25  ;;  %v21425_v14 = vld [vmem:[#allocation2 + $0x16a] sm:$0xff] }
 0x796   :  { %24444 = vst [vmem:[#allocation32_spill] sm:$0xff] %v21425_v14 }
 0x798   :  { %14344 = vmatmul.mubr.f32.gmra.mrb[24].mxu1 %v21410_v20  ;;  %v6424_v20 = vld [vmem:[#allocation2 + $0x1b2] sm:$0xff] }
 0x799   :  { %14346 = vmatprep.mubr.f32.mxu1 %v21413_v39  ;;  %v6425_v39 = vld [vmem:[#allocation2 + $0x1ba] sm:$0xff] }
 0x79c   :  { %14347 = vmatmul.mubr.f32.gmra.mrb[26].mxu1 %v21416_v42  ;;  %v21431_v42 = vld [vmem:[#allocation2 + $0x1ca] sm:$0xff] }
 0x79d   :  { %14349 = vmatprep.mubr.f32.mxu1 %v21419_v37  ;;  %24446 = vst [vmem:[#allocation34_spill] sm:$0xff] %v21431_v42  ;;  %v21434_v37 = vld [vmem:[#allocation2 + $0x1d2] sm:$0xff] }
 0x79e   :  { %24447 = vst [vmem:[#allocation35_spill] sm:$0xff] %v21434_v37 }
 0x7a0   :  { %14350 = vmatmul.mubr.f32.gmra.mrb[28].mxu1 %v21422_v25  ;;  %v21437_v25 = vld [vmem:[#allocation2 + $0x1e2] sm:$0xff] }
 0x7a1   :  { %14352 = vmatprep.mubr.f32.mxu1 %v21425_v14  ;;  %24448 = vst [vmem:[#allocation36_spill] sm:$0xff] %v21437_v25  ;;  %v21440_v14 = vld [vmem:[#allocation2 + $0x1ea] sm:$0xff] }
 0x7a2   :  { %24449 = vst [vmem:[#allocation37_spill] sm:$0xff] %v21440_v14 }
 0x7a4   :  { %14353 = vmatmul.mubr.f32.gmra.mrb[30].mxu1 %v21428_v23  ;;  %v21443_v23 = vld [vmem:[#allocation2 + $0x1fa] sm:$0xff] }
 0x7a5   :  { %14355 = vmatprep.mubr.f32.mxu1 %v6424_v20  ;;  %24450 = vst [vmem:[#allocation38_spill] sm:$0xff] %v21443_v23  ;;  %v21446_v20 = vld [vmem:[#allocation2 + $0x202] sm:$0xff] }
 0x7a6   :  { %24451 = vst [vmem:[#allocation39_spill] sm:$0xff] %v21446_v20 }
 0x7a8   :  { %14356 = vmatmul.mubr.f32.gmra.mrb[32].mxu1 %v6425_v39  ;;  %v21449_v39 = vld [vmem:[#allocation2 + $0x212] sm:$0xff] }
 0x7a9   :  { %14358 = vmatprep.mubr.f32.mxu1 %v21431_v42  ;;  %24452 = vst [vmem:[#allocation40_spill] sm:$0xff] %v21449_v39 }
 0x7ac   :  { %14359 = vmatmul.mubr.f32.gmra.mrb[34].mxu1 %v21434_v37  ;;  %v21452_v37 = vld [vmem:[#allocation2 + $0x21a] sm:$0xff] }
 0x7ad   :  { %14361 = vmatprep.mubr.f32.mxu1 %v21437_v25  ;;  %24453 = vst [vmem:[#allocation41_spill] sm:$0xff] %v21452_v37  ;;  %v21455_v25 = vld [vmem:[#allocation2 + $0x22a] sm:$0xff] }
 0x7ae   :  { %24454 = vst [vmem:[#allocation42_spill] sm:$0xff] %v21455_v25 }
 0x7b0   :  { %14362 = vmatmul.mubr.f32.gmra.mrb[36].mxu1 %v21440_v14  ;;  %v21458_v14 = vld [vmem:[#allocation2 + $0x232] sm:$0xff] }
 0x7b1   :  { %14364 = vmatprep.mubr.f32.mxu1 %v21443_v23  ;;  %24455 = vst [vmem:[#allocation27_spill] sm:$0xff] %v21458_v14  ;;  %v21461_v23 = vld [vmem:[#allocation2 + $0x242] sm:$0xff] }
 0x7b2   :  { %24456 = vst [vmem:[#allocation28_spill] sm:$0xff] %v21461_v23 }
 0x7b4   :  { %14365 = vmatmul.mubr.f32.gmra.mrb[38].mxu1 %v21446_v20  ;;  %v21464_v20 = vld [vmem:[#allocation2 + $0x24a] sm:$0xff] }
 0x7b5   :  { %14367 = vmatprep.mubr.f32.mxu1 %v21449_v39  ;;  %24457 = vst [vmem:[#allocation29_spill] sm:$0xff] %v21464_v20  ;;  %v21467_v39 = vld [vmem:[#allocation2 + $0x25a] sm:$0xff] }
 0x7b6   :  { %24458 = vst [vmem:[#allocation44_spill] sm:$0xff] %v21467_v39 }
 0x7b8   :  { %14368 = vmatmul.mubr.f32.gmra.mrb[40].mxu1 %v21452_v37  ;;  %v21470_v37 = vld [vmem:[#allocation2 + $0x262] sm:$0xff] }
 0x7b9   :  { %14370 = vmatprep.mubr.f32.mxu1 %v21455_v25  ;;  %24459 = vst [vmem:[#allocation45_spill] sm:$0xff] %v21470_v37  ;;  %v21473_v25 = vld [vmem:[#allocation2 + $0x272] sm:$0xff] }
 0x7ba   :  { %24460 = vst [vmem:[#allocation46_spill] sm:$0xff] %v21473_v25 }
 0x7bc   :  { %14371 = vmatmul.mubr.f32.gmra.mrb[42].mxu1 %v21458_v14  ;;  %v21476_v14 = vld [vmem:[#allocation2 + $0x27a] sm:$0xff] }
 0x7bd   :  { %14373 = vmatprep.mubr.f32.mxu1 %v21461_v23  ;;  %24461 = vst [vmem:[#allocation47_spill] sm:$0xff] %v21476_v14  ;;  %v21479_v23 = vld [vmem:[#allocation2 + $0x28a] sm:$0xff] }
 0x7be   :  { %24462 = vst [vmem:[#allocation48_spill] sm:$0xff] %v21479_v23 }
 0x7c0   :  { %14374 = vmatmul.mubr.f32.gmra.mrb[44].mxu1 %v21464_v20  ;;  %v21482_v20 = vld [vmem:[#allocation2 + $0x292] sm:$0xff] }
 0x7c1   :  { %14376 = vmatprep.mubr.f32.mxu1 %v21467_v39  ;;  %24463 = vst [vmem:[#allocation49_spill] sm:$0xff] %v21482_v20  ;;  %v21485_v39 = vld [vmem:[#allocation2 + $0x2a2] sm:$0xff] }
 0x7c2   :  { %24464 = vst [vmem:[#allocation43_spill] sm:$0xff] %v21485_v39 }
 0x7c4   :  { %14377 = vmatmul.mubr.f32.gmra.mrb[46].mxu1 %v21470_v37  ;;  %v21488_v37 = vld [vmem:[#allocation2 + $0x2aa] sm:$0xff] }
 0x7c5   :  { %14379 = vmatprep.mubr.f32.mxu1 %v21473_v25  ;;  %24465 = vst [vmem:[#allocation50_spill] sm:$0xff] %v21488_v37  ;;  %v21491_v25 = vld [vmem:[#allocation2 + $0x2ba] sm:$0xff] }
 0x7c6   :  { %24466 = vst [vmem:[#allocation51_spill] sm:$0xff] %v21491_v25 }
 0x7c8   :  { %14380 = vmatmul.mubr.f32.gmra.mrb[48].mxu1 %v21476_v14  ;;  %v21494_v14 = vld [vmem:[#allocation2 + $0x2c2] sm:$0xff] }
 0x7c9   :  { %14382 = vmatprep.mubr.f32.mxu1 %v21479_v23  ;;  %24467 = vst [vmem:[#allocation52_spill] sm:$0xff] %v21494_v14  ;;  %v21497_v23 = vld [vmem:[#allocation2 + $0x2d2] sm:$0xff] }
 0x7ca   :  { %24468 = vst [vmem:[#allocation53_spill] sm:$0xff] %v21497_v23 }
 0x7cc   :  { %14383 = vmatmul.mubr.f32.gmra.mrb[50].mxu1 %v21482_v20  ;;  %v21500_v20 = vld [vmem:[#allocation2 + $0x2da] sm:$0xff] }
 0x7cd   :  { %14385 = vmatprep.mubr.f32.mxu1 %v21485_v39  ;;  %24469 = vst [vmem:[#allocation54_spill] sm:$0xff] %v21500_v20  ;;  %v21503_v39 = vld [vmem:[#allocation2 + $0x2ea] sm:$0xff] }
 0x7ce   :  { %24470 = vst [vmem:[#allocation55_spill] sm:$0xff] %v21503_v39 }
 0x7d0   :  { %14386 = vmatmul.mubr.f32.gmra.mrb[52].mxu1 %v21488_v37  ;;  %v21506_v37 = vld [vmem:[#allocation2 + $0x2f2] sm:$0xff] }
 0x7d1   :  { %14388 = vmatprep.mubr.f32.mxu1 %v21491_v25  ;;  %24471 = vst [vmem:[#allocation56_spill] sm:$0xff] %v21506_v37  ;;  %v21509_v25 = vld [vmem:[#allocation2 + $0x302] sm:$0xff] }
 0x7d2   :  { %24472 = vst [vmem:[#allocation57_spill] sm:$0xff] %v21509_v25 }
 0x7d4   :  { %14389 = vmatmul.mubr.f32.gmra.mrb[54].mxu1 %v21494_v14  ;;  %v21512_v14 = vld [vmem:[#allocation2 + $0x30a] sm:$0xff] }
 0x7d5   :  { %14391 = vmatprep.mubr.f32.mxu1 %v21497_v23  ;;  %24473 = vst [vmem:[#allocation58_spill] sm:$0xff] %v21512_v14  ;;  %v21515_v23 = vld [vmem:[#allocation2 + $0x31a] sm:$0xff] }
 0x7d6   :  { %24474 = vst [vmem:[#allocation59_spill] sm:$0xff] %v21515_v23 }
 0x7d8   :  { %14392 = vmatmul.mubr.f32.gmra.mrb[56].mxu1 %v21500_v20  ;;  %v21518_v20 = vld [vmem:[#allocation2 + $0x322] sm:$0xff] }
 0x7d9   :  { %14394 = vmatprep.mubr.f32.mxu1 %v21503_v39  ;;  %v11346_v39 = vld [vmem:[%s23784_s5 + $0x210] sm:$0xff] }
 0x7dc   :  { %14395 = vmatmul.mubr.f32.gmra.mrb[58].mxu1 %v21506_v37  ;;  %v11347_v37 = vld [vmem:[%s23784_s5 + $0x218] sm:$0xff] }
 0x7dd   :  { %14397 = vmatprep.mubr.f32.mxu1 %v21509_v25  ;;  %v15591_v25 = vpack.c.bf16 %v11347_v37, %v11346_v39  ;;  %v11351_v37 = vld [vmem:[%s23784_s5 + $0x238] sm:$0xff]  ;;  %v21718_v39 = vld [vmem:[#allocation2 + $0xa9] sm:$0xff] }
 0x7e0   :  { %14398 = vmatmul.mubr.f32.gmra.mrb[60].mxu1 %v21512_v14  ;;  %v11348_v14 = vld [vmem:[%s23784_s5 + $0x220] sm:$0xff] }
 0x7e1   :  { %14400 = vmatprep.mubr.f32.mxu1 %v21515_v23  ;;  %v11349_v23 = vld [vmem:[%s23784_s5 + $0x228] sm:$0xff] }
 0x7e2   :  { %v15595_v42 = vpack.c.bf16 %v11349_v23, %v11348_v14  ;;  %v11353_v14 = vld [vmem:[%s23784_s5 + $0x248] sm:$0xff]  ;;  %v11359_v23 = vld [vmem:[%s23784_s5 + $0x278] sm:$0xff] }
 0x7e4   :  { %14401 = vmatmul.mubr.f32.gmra.mrb[62].mxu1 %v21518_v20 }
 0x7e5   :  { %14435 = vmatprep.mubr.f32.mxu1 %v21067_v19  ;;  %v11350_v19 = vld [vmem:[%s23784_s5 + $0x230] sm:$0xff] }
 0x7e8   :  { %14436 = vmatmul.mubr.f32.vlgmr.msra.gmra.mrb[0].mxu1 %v21071_v30  ;;  %v15599_v30 = vpack.c.bf16 %v11351_v37, %v11350_v19  ;;  %v21721_v37 = vld [vmem:[#allocation2 + $0xb1] sm:$0xff] }
 0x7e9   :  { %14438 = vmatprep.mubr.f32.mxu1 %v21080_v50  ;;  %15590 = vmatpush3.bf16.msra.mxu1 %v21377_v63  ;;  %v11352_v50 = vld [vmem:[%s23784_s5 + $0x240] sm:$0xff]  ;;  %v11357_v63 = vld [vmem:[%s23784_s5 + $0x268] sm:$0xff] }
 0x7ea   :  { %15592 = vmatprep.subr.bf16.mxu1 %v15591_v25 }
 0x7ec   :  { %14439 = vmatmul.mubr.f32.gmra.mrb[2].mxu1 %v21083_v13  ;;  %v15603_v13 = vpack.c.bf16 %v11353_v14, %v11352_v50  ;;  %v11377_v50 = vld [vmem:[%s23784_s5 + $0x308] sm:$0xff] }
 0x7ed   :  { %14441 = vmatprep.mubr.f32.mxu1 %v21092_v45  ;;  %15594 = vmatpush3.bf16.msra.mxu1 %v15591_v25  ;;  %v11354_v45 = vld [vmem:[%s23784_s5 + $0x250] sm:$0xff]  ;;  %v11355_v25 = vld [vmem:[%s23784_s5 + $0x258] sm:$0xff]  ;;  %v21730_v14 = vld [vmem:[#allocation2 + $0xc1] sm:$0xff] }
 0x7ee   :  { %15596 = vmatprep.subr.bf16.mxu1 %v15595_v42 }
 0x7f0   :  { %14442 = vmatmul.mubr.f32.gmra.mrb[4].mxu1 %v21095_v32  ;;  %v15607_v32 = vpack.c.bf16 %v11355_v25, %v11354_v45  ;;  %v21735_v45 = vld [vmem:[#allocation2 + $0xc9] sm:$0xff]  ;;  %v21738_v25 = vld [vmem:[#allocation2 + $0xd9] sm:$0xff] }
 0x7f1   :  { %14444 = vmatprep.mubr.f32.mxu1 %v21104_v12  ;;  %15598 = vmatpush3.bf16.msra.mxu1 %v15595_v42  ;;  %v11356_v12 = vld [vmem:[%s23784_s5 + $0x260] sm:$0xff]  ;;  %v11361_v42 = vld [vmem:[%s23784_s5 + $0x288] sm:$0xff] }
 0x7f2   :  { %15600 = vmatprep.subr.bf16.mxu1 %v15599_v30 }
 0x7f4   :  { %14445 = vmatmul.mubr.f32.gmra.mrb[6].mxu1 %v21107_v48  ;;  %v15611_v48 = vpack.c.bf16 %v11357_v63, %v11356_v12  ;;  %v21745_v12 = vld [vmem:[#allocation2 + $0xf1] sm:$0xff]  ;;  %v21748_v63 = vld [vmem:[#allocation2 + $0xf9] sm:$0xff] }
 0x7f5   :  { %14447 = vmatprep.mubr.f32.mxu1 %v21116_v6  ;;  %15602 = vmatpush3.bf16.msra.mxu1 %v15599_v30  ;;  %v11358_v6 = vld [vmem:[%s23784_s5 + $0x270] sm:$0xff]  ;;  %v11376_v30 = vld [vmem:[%s23784_s5 + $0x300] sm:$0xff] }
 0x7f6   :  { %15604 = vmatprep.subr.bf16.mxu1 %v15603_v13 }
 0x7f8   :  { %14448 = vmatmul.mubr.f32.gmra.mrb[8].mxu1 %v21119_v41  ;;  %v15615_v41 = vpack.c.bf16 %v11359_v23, %v11358_v6  ;;  %v21754_v6 = vld [vmem:[#allocation2 + $0x111] sm:$0xff]  ;;  %v21757_v23 = vld [vmem:[#allocation2 + $0x121] sm:$0xff] }
 0x7f9   :  { %14450 = vmatprep.mubr.f32.mxu1 %v21128_v43  ;;  %15606 = vmatpush3.bf16.msra.mxu1 %v15603_v13  ;;  %v11360_v43 = vld [vmem:[%s23784_s5 + $0x280] sm:$0xff]  ;;  %v21733_v13 = vpack.c.bf16 %v11377_v50, %v11376_v30  ;;  %v21853_v30 = vld [vmem:[#allocation2 + $0x2e9] sm:$0xff]  ;;  %v21856_v50 = vld [vmem:[#allocation2 + $0x2f1] sm:$0xff] }
 0x7fa   :  { %15608 = vmatprep.subr.bf16.mxu1 %v15607_v32  ;;  %24487 = vst [vmem:[#allocation60_spill] sm:$0xff] %v21853_v30  ;;  %24488 = vst [vmem:[#allocation61_spill] sm:$0xff] %v21856_v50 }
 0x7fc   :  { %14451 = vmatmul.mubr.f32.gmra.mrb[10].mxu1 %v21131_v36  ;;  %v21585_v36 = vpack.c.bf16 %v11361_v42, %v11360_v43  ;;  %v21763_v43 = vld [vmem:[#allocation2 + $0x139] sm:$0xff]  ;;  %v21766_v42 = vld [vmem:[#allocation2 + $0x141] sm:$0xff] }
 0x7fd   :  { %14453 = vmatprep.mubr.f32.mxu1 %v21140_v53  ;;  %15610 = vmatpush3.bf16.msra.mxu1 %v15607_v32  ;;  %v21603_v53 = vld [vmem:[#allocation2 + $0x180] sm:$0xff] }
 0x7fe   :  { %15612 = vmatprep.subr.bf16.mxu1 %v15611_v48  ;;  %v21742_v32 = vld [vmem:[#allocation2 + $0xe1] sm:$0xff] }
 0x800   :  { %14454 = vmatmul.mubr.f32.gmra.mrb[12].mxu1 %v21145_v9  ;;  %v21606_v9 = vld [vmem:[#allocation2 + $0x188] sm:$0xff] }
 0x801   :  { %14456 = vmatprep.mubr.f32.mxu1 %v21148_v22  ;;  %15614 = vmatpush3.bf16.msra.mxu1 %v15611_v48  ;;  %v24475_v22 = vld [vmem:[#allocation5_spill] sm:$0xff] }
 0x802   :  { %15616 = vmatprep.subr.bf16.mxu1 %v15615_v41  ;;  %v21751_v48 = vld [vmem:[#allocation2 + $0x109] sm:$0xff] }
 0x804   :  { %14457 = vmatmul.mubr.f32.gmra.mrb[14].mxu1 %v21152_v55  ;;  %v24476_v55 = vld [vmem:[#allocation6_spill] sm:$0xff] }
 0x805   :  { %14459 = vmatprep.mubr.f32.mxu1 %v21155_v35  ;;  %15618 = vmatpush3.bf16.msra.mxu1 %v15615_v41  ;;  %v24477_v35 = vld [vmem:[#allocation7_spill] sm:$0xff]  ;;  %v21760_v41 = vld [vmem:[#allocation2 + $0x129] sm:$0xff] }
 0x806   :  { %15620 = vmatprep.subr.bf16.mxu1 %v21585_v36 }
 0x808   :  { %14460 = vmatmul.mubr.f32.gmra.mrb[16].mxu1 %v21158_v52  ;;  %v24478_v52 = vld [vmem:[#allocation8_spill] sm:$0xff] }
 0x809   :  { %14462 = vmatprep.mubr.f32.mxu1 %v21161_v51  ;;  %v24479_v51 = vld [vmem:[#allocation66_spill] sm:$0xff] }
 0x80c   :  { %14463 = vmatmul.mubr.f32.gmra.mrb[18].mxu1 %v21164_v56  ;;  %v24480_v56 = vld [vmem:[#allocation67_spill] sm:$0xff] }
 0x80d   :  { %14465 = vmatprep.mubr.f32.mxu1 %v21167_v2  ;;  %v21639_v2 = vld [vmem:[#allocation2 + $0x330] sm:$0xff] }
 0x810   :  { %14466 = vmatmul.mubr.f32.gmra.mrb[20].mxu1 %v21170_v8  ;;  %v21642_v8 = vld [vmem:[#allocation2 + $0x338] sm:$0xff] }
 0x811   :  { %14468 = vmatprep.mubr.f32.mxu1 %v21173_v54  ;;  %v11362_v54 = vld [vmem:[%s23784_s5 + $0x290] sm:$0xff] }
 0x814   :  { %14469 = vmatmul.mubr.f32.gmra.mrb[22].mxu1 %v21176_v5  ;;  %v11363_v5 = vld [vmem:[%s23784_s5 + $0x298] sm:$0xff] }
 0x815   :  { %14471 = vmatprep.mubr.f32.mxu1 %v21179_v11  ;;  %v7452_v11 = vld [vmem:[#allocation2 + $0x19] sm:$0xff] }
 0x818   :  { %14472 = vmatmul.mubr.f32.gmra.mrb[24].mxu1 %v21182_v0  ;;  %v15623_v0 = vpack.c.bf16 %v11363_v5, %v11362_v54  ;;  %v7485_v54 = vld [vmem:[#allocation2 + $0x1d1] sm:$0xff]  ;;  %v21787_v5 = vld [vmem:[#allocation2 + $0x1e1] sm:$0xff] }
 0x819   :  { %14474 = vmatprep.mubr.f32.mxu1 %v21185_v38  ;;  %v7453_v38 = vld [vmem:[#allocation2 + $0x21] sm:$0xff] }
 0x81c   :  { %14475 = vmatmul.mubr.f32.gmra.mrb[26].mxu1 %v21188_v1  ;;  %v11364_v1 = vld [vmem:[%s23784_s5 + $0x2a0] sm:$0xff] }
 0x81d   :  { %14477 = vmatprep.mubr.f32.mxu1 %v21191_v21  ;;  %v11365_v21 = vld [vmem:[%s23784_s5 + $0x2a8] sm:$0xff] }
 0x820   :  { %14478 = vmatmul.mubr.f32.gmra.mrb[28].mxu1 %v21194_v26  ;;  %v21657_v26 = vld [vmem:[#allocation2 + $0x31] sm:$0xff] }
 0x821   :  { %14480 = vmatprep.mubr.f32.mxu1 %v21603_v53 }
 0x824   :  { %14481 = vmatmul.mubr.f32.gmra.mrb[30].mxu1 %v21606_v9 }
 0x825   :  { %14483 = vmatprep.mubr.f32.mxu1 %v21199_v46  ;;  %v15627_v46 = vpack.c.bf16 %v11365_v21, %v11364_v1  ;;  %v21799_v1 = vld [vmem:[#allocation2 + $0x211] sm:$0xff]  ;;  %v21802_v21 = vld [vmem:[#allocation2 + $0x219] sm:$0xff] }
 0x828   :  { %14484 = vmatmul.mubr.f32.gmra.mrb[32].mxu1 %v21202_v24  ;;  %v21661_v24 = vld [vmem:[#allocation2 + $0x39] sm:$0xff] }
 0x829   :  { %14486 = vmatprep.mubr.f32.mxu1 %v21205_v10  ;;  %v11366_v10 = vld [vmem:[%s23784_s5 + $0x2b0] sm:$0xff] }
 0x82c   :  { %14487 = vmatmul.mubr.f32.gmra.mrb[34].mxu1 %v21208_v28  ;;  %v11367_v28 = vld [vmem:[%s23784_s5 + $0x2b8] sm:$0xff] }
 0x82d   :  { %14489 = vmatprep.mubr.f32.mxu1 %v21211_v17  ;;  %v21670_v17 = vld [vmem:[#allocation2 + $0x49] sm:$0xff] }
 0x830   :  { %14490 = vmatmul.mubr.f32.gmra.mrb[36].mxu1 %v21214_v57  ;;  %v15631_v57 = vpack.c.bf16 %v11367_v28, %v11366_v10  ;;  %v21808_v10 = vld [vmem:[#allocation2 + $0x231] sm:$0xff]  ;;  %v21811_v28 = vld [vmem:[#allocation2 + $0x241] sm:$0xff] }
 0x831   :  { %14492 = vmatprep.mubr.f32.mxu1 %v21217_v18  ;;  %v21673_v18 = vld [vmem:[#allocation2 + $0x51] sm:$0xff] }
 0x834   :  { %14493 = vmatmul.mubr.f32.gmra.mrb[38].mxu1 %v21220_v49  ;;  %v11368_v49 = vld [vmem:[%s23784_s5 + $0x2c0] sm:$0xff] }
 0x835   :  { %14495 = vmatprep.mubr.f32.mxu1 %v21223_v7  ;;  %v11369_v7 = vld [vmem:[%s23784_s5 + $0x2c8] sm:$0xff] }
 0x838   :  { %14496 = vmatmul.mubr.f32.gmra.mrb[40].mxu1 %v21226_v34  ;;  %v21682_v34 = vld [vmem:[#allocation2 + $0x61] sm:$0xff] }
 0x839   :  { %14498 = vmatprep.mubr.f32.mxu1 %v21229_v62  ;;  %v15635_v62 = vpack.c.bf16 %v11369_v7, %v11368_v49  ;;  %v21817_v49 = vld [vmem:[#allocation2 + $0x259] sm:$0xff]  ;;  %v21820_v7 = vld [vmem:[#allocation2 + $0x261] sm:$0xff] }
 0x83c   :  { %14499 = vmatmul.mubr.f32.gmra.mrb[42].mxu1 %v21232_v27  ;;  %v21685_v27 = vld [vmem:[#allocation2 + $0x69] sm:$0xff] }
 0x83d   :  { %14501 = vmatprep.mubr.f32.mxu1 %v21235_v29  ;;  %v11370_v29 = vld [vmem:[%s23784_s5 + $0x2d0] sm:$0xff] }
 0x840   :  { %14502 = vmatmul.mubr.f32.gmra.mrb[44].mxu1 %v21238_v31  ;;  %v11371_v31 = vld [vmem:[%s23784_s5 + $0x2d8] sm:$0xff] }
 0x841   :  { %14504 = vmatprep.mubr.f32.mxu1 %v21241_v3  ;;  %v21694_v3 = vld [vmem:[#allocation2 + $0x79] sm:$0xff] }
 0x844   :  { %14505 = vmatmul.mubr.f32.gmra.mrb[46].mxu1 %v21244_v47  ;;  %v15639_v47 = vpack.c.bf16 %v11371_v31, %v11370_v29  ;;  %v21826_v29 = vld [vmem:[#allocation2 + $0x279] sm:$0xff]  ;;  %v21829_v31 = vld [vmem:[#allocation2 + $0x289] sm:$0xff] }
 0x845   :  { %14507 = vmatprep.mubr.f32.mxu1 %v21247_v59  ;;  %v21697_v59 = vld [vmem:[#allocation2 + $0x81] sm:$0xff] }
 0x848   :  { %14508 = vmatmul.mubr.f32.gmra.mrb[48].mxu1 %v21250_v44  ;;  %v11372_v44 = vld [vmem:[%s23784_s5 + $0x2e0] sm:$0xff] }
 0x849   :  { %14510 = vmatprep.mubr.f32.mxu1 %v21253_v58  ;;  %v11373_v58 = vld [vmem:[%s23784_s5 + $0x2e8] sm:$0xff] }
 0x84c   :  { %14511 = vmatmul.mubr.f32.gmra.mrb[50].mxu1 %v21256_v40  ;;  %v21706_v40 = vld [vmem:[#allocation2 + $0x91] sm:$0xff] }
 0x84d   :  { %14513 = vmatprep.mubr.f32.mxu1 %v21259_v15  ;;  %v15643_v15 = vpack.c.bf16 %v11373_v58, %v11372_v44  ;;  %v21835_v44 = vld [vmem:[#allocation2 + $0x2a1] sm:$0xff]  ;;  %v21838_v58 = vld [vmem:[#allocation2 + $0x2a9] sm:$0xff] }
 0x84e   :  { %24481 = vst [vmem:[#allocation62_spill] sm:$0xff] %v21835_v44  ;;  %24482 = vst [vmem:[#allocation63_spill] sm:$0xff] %v21838_v58 }
 0x850   :  { %14514 = vmatmul.mubr.f32.gmra.mrb[52].mxu1 %v21262_v61  ;;  %v21709_v61 = vld [vmem:[#allocation2 + $0x99] sm:$0xff] }
 0x851   :  { %14516 = vmatprep.mubr.f32.mxu1 %v21265_v33  ;;  %v11374_v33 = vld [vmem:[%s23784_s5 + $0x2f0] sm:$0xff] }
 0x854   :  { %14517 = vmatmul.mubr.f32.gmra.mrb[54].mxu1 %v21268_v4  ;;  %v11375_v4 = vld [vmem:[%s23784_s5 + $0x2f8] sm:$0xff] }
 0x855   :  { %14519 = vmatprep.mubr.f32.mxu1 %v24475_v22  ;;  %v15647_v19 = vpack.c.bf16 %v11375_v4, %v11374_v33  ;;  %v21772_v22 = vld [vmem:[#allocation2 + $0x159] sm:$0xff]  ;;  %v21844_v33 = vld [vmem:[#allocation2 + $0x2c1] sm:$0xff]  ;;  %v21847_v4 = vld [vmem:[#allocation2 + $0x2d1] sm:$0xff] }
 0x856   :  { %24484 = vst [vmem:[#allocation65_spill] sm:$0xff] %v21844_v33  ;;  %24485 = vst [vmem:[#allocation3_spill] sm:$0xff] %v21847_v4 }
 0x858   :  { %14520 = vmatmul.mubr.f32.gmra.mrb[56].mxu1 %v24476_v55  ;;  %v21775_v55 = vld [vmem:[#allocation2 + $0x169] sm:$0xff] }
 0x859   :  { %14522 = vmatprep.mubr.f32.mxu1 %v24477_v35  ;;  %v21778_v35 = vld [vmem:[#allocation2 + $0x171] sm:$0xff] }
 0x85c   :  { %14523 = vmatmul.mubr.f32.gmra.mrb[58].mxu1 %v24478_v52  ;;  %v21781_v52 = vld [vmem:[#allocation2 + $0x181] sm:$0xff] }
 0x85d   :  { %14525 = vmatprep.mubr.f32.mxu1 %v24479_v51  ;;  %v21784_v51 = vld [vmem:[#allocation2 + $0x189] sm:$0xff] }
 0x860   :  { %14526 = vmatmul.mubr.f32.gmra.mrb[60].mxu1 %v24480_v56  ;;  %v7484_v56 = vld [vmem:[#allocation2 + $0x1c9] sm:$0xff] }
 0x861   :  { %14528 = vmatprep.mubr.f32.mxu1 %v21639_v2 }
 0x864   :  { %14529 = vmatmul.mubr.f32.gmra.mrb[62].mxu1 %v21642_v8 }
 0x865   :  { %14563 = vmatprep.mubr.f32.mxu1 %v7452_v11  ;;  %v21790_v11 = vld [vmem:[#allocation2 + $0x1e9] sm:$0xff] }
 0x868   :  { %14564 = vmatmul.mubr.f32.vlgmr.msra.gmra.mrb[0].mxu1 %v7453_v38  ;;  %v21796_v38 = vld [vmem:[#allocation2 + $0x201] sm:$0xff] }
 0x869   :  { %14566 = vmatprep.mubr.f32.mxu1 %v21657_v26  ;;  %15622 = vmatpush3.bf16.msra.mxu1 %v21585_v36  ;;  %v21769_v36 = vld [vmem:[#allocation2 + $0x151] sm:$0xff] }
 0x86a   :  { %15624 = vmatprep.subr.bf16.mxu1 %v15623_v0 }
 0x86c   :  { %14567 = vmatmul.mubr.f32.gmra.mrb[2].mxu1 %v21661_v24 }
 0x86d   :  { %14569 = vmatprep.mubr.f32.mxu1 %v21670_v17  ;;  %15626 = vmatpush3.bf16.msra.mxu1 %v15623_v0  ;;  %v21793_v0 = vld [vmem:[#allocation2 + $0x1f9] sm:$0xff] }
 0x86e   :  { %15628 = vmatprep.subr.bf16.mxu1 %v15627_v46 }
 0x870   :  { %14570 = vmatmul.mubr.f32.gmra.mrb[4].mxu1 %v21673_v18 }
 0x871   :  { %14572 = vmatprep.mubr.f32.mxu1 %v21682_v34  ;;  %15630 = vmatpush3.bf16.msra.mxu1 %v15627_v46  ;;  %v21805_v46 = vld [vmem:[#allocation2 + $0x229] sm:$0xff] }
 0x872   :  { %15632 = vmatprep.subr.bf16.mxu1 %v15631_v57 }
 0x874   :  { %14573 = vmatmul.mubr.f32.gmra.mrb[6].mxu1 %v21685_v27 }
 0x875   :  { %14575 = vmatprep.mubr.f32.mxu1 %v21694_v3  ;;  %15634 = vmatpush3.bf16.msra.mxu1 %v15631_v57  ;;  %v21814_v57 = vld [vmem:[#allocation2 + $0x249] sm:$0xff] }
 0x876   :  { %15636 = vmatprep.subr.bf16.mxu1 %v15635_v62 }
 0x878   :  { %14576 = vmatmul.mubr.f32.gmra.mrb[8].mxu1 %v21697_v59 }
 0x879   :  { %14578 = vmatprep.mubr.f32.mxu1 %v21706_v40  ;;  %15638 = vmatpush3.bf16.msra.mxu1 %v15635_v62  ;;  %v21823_v62 = vld [vmem:[#allocation2 + $0x271] sm:$0xff] }
 0x87a   :  { %15640 = vmatprep.subr.bf16.mxu1 %v15639_v47 }
 0x87c   :  { %14579 = vmatmul.mubr.f32.gmra.mrb[10].mxu1 %v21709_v61 }
 0x87d   :  { %14581 = vmatprep.mubr.f32.mxu1 %v21718_v39  ;;  %15642 = vmatpush3.bf16.msra.mxu1 %v15639_v47  ;;  %v21832_v47 = vld [vmem:[#allocation2 + $0x291] sm:$0xff] }
 0x87e   :  { %15644 = vmatprep.subr.bf16.mxu1 %v15643_v15 }
 0x880   :  { %14582 = vmatmul.mubr.f32.gmra.mrb[12].mxu1 %v21721_v37 }
 0x881   :  { %14584 = vmatprep.mubr.f32.mxu1 %v21730_v14  ;;  %15646 = vmatpush3.bf16.msra.mxu1 %v15643_v15  ;;  %v21841_v15 = vld [vmem:[#allocation2 + $0x2b9] sm:$0xff] }
 0x882   :  { %15648 = vmatprep.subr.bf16.mxu1 %v15647_v19  ;;  %24483 = vst [vmem:[#allocation64_spill] sm:$0xff] %v21841_v15 }
 0x884   :  { %14585 = vmatmul.mubr.f32.gmra.mrb[14].mxu1 %v21735_v45 }
 0x885   :  { %14587 = vmatprep.mubr.f32.mxu1 %v21738_v25  ;;  %15650 = vmatpush3.bf16.msra.mxu1 %v15647_v19  ;;  %v21850_v19 = vld [vmem:[#allocation2 + $0x2d9] sm:$0xff] }
 0x886   :  { %15652 = vmatprep.subr.bf16.mxu1 %v21733_v13  ;;  %24486 = vst [vmem:[#allocation4_spill] sm:$0xff] %v21850_v19 }
 0x888   :  { %14588 = vmatmul.mubr.f32.gmra.mrb[16].mxu1 %v21742_v32 }
 0x889   :  { %14590 = vmatprep.mubr.f32.mxu1 %v21745_v12 }
 0x88c   :  { %14591 = vmatmul.mubr.f32.gmra.mrb[18].mxu1 %v21748_v63 }
 0x88d   :  { %14593 = vmatprep.mubr.f32.mxu1 %v21751_v48 }
 0x890   :  { %14594 = vmatmul.mubr.f32.gmra.mrb[20].mxu1 %v21754_v6 }
 0x891   :  { %14596 = vmatprep.mubr.f32.mxu1 %v21757_v23 }
 0x894   :  { %14597 = vmatmul.mubr.f32.gmra.mrb[22].mxu1 %v21760_v41 }
 0x895   :  { %14599 = vmatprep.mubr.f32.mxu1 %v21763_v43 }
 0x898   :  { %14600 = vmatmul.mubr.f32.gmra.mrb[24].mxu1 %v21766_v42 }
 0x899   :  { %14602 = vmatprep.mubr.f32.mxu1 %v21769_v36 }
 0x89c   :  { %14603 = vmatmul.mubr.f32.gmra.mrb[26].mxu1 %v21772_v22 }
 0x89d   :  { %14605 = vmatprep.mubr.f32.mxu1 %v21775_v55 }
 0x8a0   :  { %14606 = vmatmul.mubr.f32.gmra.mrb[28].mxu1 %v21778_v35 }
 0x8a1   :  { %14608 = vmatprep.mubr.f32.mxu1 %v21781_v52 }
 0x8a4   :  { %14609 = vmatmul.mubr.f32.gmra.mrb[30].mxu1 %v21784_v51 }
 0x8a5   :  { %14611 = vmatprep.mubr.f32.mxu1 %v7484_v56  ;;  %v21859_v56 = vld [vmem:[#allocation2 + $0x301] sm:$0xff] }
 0x8a6   :  { %24489 = vst [vmem:[#allocation5_spill] sm:$0xff] %v21859_v56 }
 0x8a8   :  { %14612 = vmatmul.mubr.f32.gmra.mrb[32].mxu1 %v7485_v54  ;;  %v21862_v54 = vld [vmem:[#allocation2 + $0x309] sm:$0xff] }
 0x8a9   :  { %14614 = vmatprep.mubr.f32.mxu1 %v21787_v5  ;;  %24490 = vst [vmem:[#allocation6_spill] sm:$0xff] %v21862_v54 }
 0x8ac   :  { %14615 = vmatmul.mubr.f32.gmra.mrb[34].mxu1 %v21790_v11 }
 0x8ad   :  { %14617 = vmatprep.mubr.f32.mxu1 %v21793_v0 }
 0x8b0   :  { %14618 = vmatmul.mubr.f32.gmra.mrb[36].mxu1 %v21796_v38 }
 0x8b1   :  { %14620 = vmatprep.mubr.f32.mxu1 %v21799_v1 }
 0x8b4   :  { %14621 = vmatmul.mubr.f32.gmra.mrb[38].mxu1 %v21802_v21 }
 0x8b5   :  { %14623 = vmatprep.mubr.f32.mxu1 %v21805_v46 }
 0x8b8   :  { %14624 = vmatmul.mubr.f32.gmra.mrb[40].mxu1 %v21808_v10 }
 0x8b9   :  { %14626 = vmatprep.mubr.f32.mxu1 %v21811_v28 }
 0x8bc   :  { %14627 = vmatmul.mubr.f32.gmra.mrb[42].mxu1 %v21814_v57 }
 0x8bd   :  { %14629 = vmatprep.mubr.f32.mxu1 %v21817_v49 }
 0x8c0   :  { %14630 = vmatmul.mubr.f32.gmra.mrb[44].mxu1 %v21820_v7 }
 0x8c1   :  { %14632 = vmatprep.mubr.f32.mxu1 %v21823_v62 }
 0x8c4   :  { %14633 = vmatmul.mubr.f32.gmra.mrb[46].mxu1 %v21826_v29 }
 0x8c5   :  { %14635 = vmatprep.mubr.f32.mxu1 %v21829_v31 }
 0x8c8   :  { %14636 = vmatmul.mubr.f32.gmra.mrb[48].mxu1 %v21832_v47 }
 0x8c9   :  { %14638 = vmatprep.mubr.f32.mxu1 %v21835_v44 }
 0x8cc   :  { %14639 = vmatmul.mubr.f32.gmra.mrb[50].mxu1 %v21838_v58  ;;  %v24497_v58 = vld [vmem:[#allocation70_spill] sm:$0xff] }
 0x8cd   :  { %14641 = vmatprep.mubr.f32.mxu1 %v21841_v15  ;;  %v24496_v15 = vld [vmem:[#allocation69_spill] sm:$0xff] }
 0x8d0   :  { %14642 = vmatmul.mubr.f32.gmra.mrb[52].mxu1 %v21844_v33 }
 0x8d1   :  { %14644 = vmatprep.mubr.f32.mxu1 %v21847_v4  ;;  %v21865_v4 = vld [vmem:[#allocation2 + $0x319] sm:$0xff] }
 0x8d2   :  { %24491 = vst [vmem:[#allocation7_spill] sm:$0xff] %v21865_v4 }
 0x8d4   :  { %14645 = vmatmul.mubr.f32.gmra.mrb[54].mxu1 %v21850_v19  ;;  %v21868_v19 = vld [vmem:[#allocation2 + $0x321] sm:$0xff] }
 0x8d5   :  { %14647 = vmatprep.mubr.f32.mxu1 %v21853_v30  ;;  %24492 = vst [vmem:[#allocation8_spill] sm:$0xff] %v21868_v19  ;;  %v21871_v30 = vld [vmem:[#allocation2 + $0x331] sm:$0xff] }
 0x8d6   :  { %24493 = vst [vmem:[#allocation66_spill] sm:$0xff] %v21871_v30 }
 0x8d8   :  { %14648 = vmatmul.mubr.f32.gmra.mrb[56].mxu1 %v21856_v50  ;;  %v21874_v50 = vld [vmem:[#allocation2 + $0x339] sm:$0xff] }
 0x8d9   :  { %14650 = vmatprep.mubr.f32.mxu1 %v21859_v56  ;;  %24494 = vst [vmem:[#allocation67_spill] sm:$0xff] %v21874_v50  ;;  %v11378_v56 = vld [vmem:[%s23784_s5 + $0x310] sm:$0xff] }
 0x8dc   :  { %14651 = vmatmul.mubr.f32.gmra.mrb[58].mxu1 %v21862_v54  ;;  %v11379_v54 = vld [vmem:[%s23784_s5 + $0x318] sm:$0xff] }
 0x8dd   :  { %14653 = vmatprep.mubr.f32.mxu1 %v21865_v4  ;;  %v24495_v4 = vld [vmem:[#allocation68_spill] sm:$0xff]  ;;  %v15655_v33 = vpack.c.bf16 %v11379_v54, %v11378_v56  ;;  %v11383_v56 = vld [vmem:[%s23784_s5 + $0x338] sm:$0xff]  ;;  %v24498_v54 = vld [vmem:[#allocation71_spill] sm:$0xff] }
 0x8e0   :  { %14654 = vmatmul.mubr.f32.gmra.mrb[60].mxu1 %v21868_v19  ;;  %v11380_v19 = vld [vmem:[%s23784_s5 + $0x320] sm:$0xff] }
 0x8e1   :  { %14656 = vmatprep.mubr.f32.mxu1 %v21871_v30  ;;  %v11381_v30 = vld [vmem:[%s23784_s5 + $0x328] sm:$0xff] }
 0x8e2   :  { %v15659_v44 = vpack.c.bf16 %v11381_v30, %v11380_v19  ;;  %v24500_v19 = vld [vmem:[#allocation73_spill] sm:$0xff] }
 0x8e3   :  { %v24501_v30 = vld [vmem:[#allocation9_spill] sm:$0xff] }
 0x8e4   :  { %14657 = vmatmul.mubr.f32.gmra.mrb[62].mxu1 %v21874_v50  ;;  %v24499_v50 = vld [vmem:[#allocation72_spill] sm:$0xff] }
 0x8e5   :  { %14691 = vmatprep.mubr.f32.mxu1 %v24495_v4  ;;  %v11382_v4 = vld [vmem:[%s23784_s5 + $0x330] sm:$0xff] }
 0x8e8   :  { %14692 = vmatmul.mubr.f32.vlgmr.msra.gmra.mrb[0].mxu1 %v24496_v15  ;;  %v15663_v15 = vpack.c.bf16 %v11383_v56, %v11382_v4  ;;  %v24502_v4 = vld [vmem:[#allocation10_spill] sm:$0xff]  ;;  %v24503_v56 = vld [vmem:[#allocation11_spill] sm:$0xff] }
 0x8e9   :  { %14694 = vmatprep.mubr.f32.mxu1 %v24497_v58  ;;  %15654 = vmatpush3.bf16.msra.mxu1 %v21733_v13  ;;  %v11384_v13 = vld [vmem:[%s23784_s5 + $0x340] sm:$0xff]  ;;  %v11385_v58 = vld [vmem:[%s23784_s5 + $0x348] sm:$0xff] }
 0x8ea   :  { %15656 = vmatprep.subr.bf16.mxu1 %v15655_v33 }
 0x8ec   :  { %14695 = vmatmul.mubr.f32.gmra.mrb[2].mxu1 %v24498_v54  ;;  %v15667_v54 = vpack.c.bf16 %v11385_v58, %v11384_v13  ;;  %v11389_v13 = vld [vmem:[%s23784_s5 + $0x368] sm:$0xff] }
 0x8ed   :  { %14697 = vmatprep.mubr.f32.mxu1 %v24499_v50  ;;  %15658 = vmatpush3.bf16.msra.mxu1 %v15655_v33  ;;  %v11386_v33 = vld [vmem:[%s23784_s5 + $0x350] sm:$0xff]  ;;  %v11387_v50 = vld [vmem:[%s23784_s5 + $0x358] sm:$0xff]  ;;  %v24504_v58 = vld [vmem:[#allocation12_spill] sm:$0xff] }
 0x8ee   :  { %15660 = vmatprep.subr.bf16.mxu1 %v15659_v44 }
 0x8f0   :  { %14698 = vmatmul.mubr.f32.gmra.mrb[4].mxu1 %v24500_v19  ;;  %v15671_v19 = vpack.c.bf16 %v11387_v50, %v11386_v33  ;;  %v11391_v33 = vld [vmem:[%s23784_s5 + $0x378] sm:$0xff]  ;;  %v24505_v50 = vld [vmem:[#allocation13_spill] sm:$0xff] }
 0x8f1   :  { %14700 = vmatprep.mubr.f32.mxu1 %v24501_v30  ;;  %15662 = vmatpush3.bf16.msra.mxu1 %v15659_v44  ;;  %v11388_v44 = vld [vmem:[%s23784_s5 + $0x360] sm:$0xff] }
 0x8f2   :  { %15664 = vmatprep.subr.bf16.mxu1 %v15663_v15  ;;  %v15675_v30 = vpack.c.bf16 %v11389_v13, %v11388_v44  ;;  %v24507_v44 = vld [vmem:[#allocation15_spill] sm:$0xff] }
 0x8f4   :  { %14701 = vmatmul.mubr.f32.gmra.mrb[6].mxu1 %v24502_v4  ;;  %v24506_v4 = vld [vmem:[#allocation14_spill] sm:$0xff] }
 0x8f5   :  { %14703 = vmatprep.mubr.f32.mxu1 %v24503_v56  ;;  %15666 = vmatpush3.bf16.msra.mxu1 %v15663_v15  ;;  %v11390_v15 = vld [vmem:[%s23784_s5 + $0x370] sm:$0xff] }
 0x8f6   :  { %15668 = vmatprep.subr.bf16.mxu1 %v15667_v54  ;;  %v15679_v56 = vpack.c.bf16 %v11391_v33, %v11390_v15  ;;  %v24510_v15 = vld [vmem:[#allocation18_spill] sm:$0xff]  ;;  %v24511_v33 = vld [vmem:[#allocation19_spill] sm:$0xff] }
 0x8f8   :  { %14704 = vmatmul.mubr.f32.gmra.mrb[8].mxu1 %v24504_v58  ;;  %v24508_v58 = vld [vmem:[#allocation16_spill] sm:$0xff] }
 0x8f9   :  { %14706 = vmatprep.mubr.f32.mxu1 %v21362_v60  ;;  %15670 = vmatpush3.bf16.msra.mxu1 %v15667_v54  ;;  %v11392_v60 = vld [vmem:[%s23784_s5 + $0x380] sm:$0xff]  ;;  %v11393_v54 = vld [vmem:[%s23784_s5 + $0x388] sm:$0xff] }
 0x8fa   :  { %15672 = vmatprep.subr.bf16.mxu1 %v15671_v19  ;;  %v21941_v13 = vpack.c.bf16 %v11393_v54, %v11392_v60  ;;  %v24516_v60 = vld [vmem:[#allocation24_spill] sm:$0xff]  ;;  %v24517_v54 = vld [vmem:[#allocation25_spill] sm:$0xff] }
 0x8fc   :  { %14707 = vmatmul.mubr.f32.gmra.mrb[10].mxu1 %v24505_v50  ;;  %v24512_v50 = vld [vmem:[#allocation20_spill] sm:$0xff] }
 0x8fd   :  { %14709 = vmatprep.mubr.f32.mxu1 %v24506_v4  ;;  %15674 = vmatpush3.bf16.msra.mxu1 %v15671_v19  ;;  %v24509_v19 = vld [vmem:[#allocation17_spill] sm:$0xff]  ;;  %v24514_v4 = vld [vmem:[#allocation22_spill] sm:$0xff] }
 0x8fe   :  { %15676 = vmatprep.subr.bf16.mxu1 %v15675_v30 }
 0x900   :  { %14710 = vmatmul.mubr.f32.gmra.mrb[12].mxu1 %v21379_v16  ;;  %v24513_v16 = vld [vmem:[#allocation21_spill] sm:$0xff] }
 0x901   :  { %14712 = vmatprep.mubr.f32.mxu1 %v24507_v44  ;;  %15678 = vmatpush3.bf16.msra.mxu1 %v15675_v30  ;;  %v24515_v30 = vld [vmem:[#allocation23_spill] sm:$0xff]  ;;  %v24518_v44 = vld [vmem:[#allocation26_spill] sm:$0xff] }
 0x902   :  { %15680 = vmatprep.subr.bf16.mxu1 %v15679_v56 }
 0x904   :  { %14713 = vmatmul.mubr.f32.gmra.mrb[14].mxu1 %v24508_v58  ;;  %v24520_v58 = vld [vmem:[#allocation31_spill] sm:$0xff] }
 0x905   :  { %14715 = vmatprep.mubr.f32.mxu1 %v24509_v19  ;;  %15682 = vmatpush3.bf16.msra.mxu1 %v15679_v56  ;;  %v24519_v56 = vld [vmem:[#allocation30_spill] sm:$0xff]  ;;  %v24521_v19 = vld [vmem:[#allocation32_spill] sm:$0xff] }
 0x906   :  { %15684 = vmatprep.subr.bf16.mxu1 %v21941_v13 }
 0x908   :  { %14716 = vmatmul.mubr.f32.gmra.mrb[16].mxu1 %v24510_v15  ;;  %v24522_v15 = vld [vmem:[#allocation33_spill] sm:$0xff] }
 0x909   :  { %14718 = vmatprep.mubr.f32.mxu1 %v24511_v33  ;;  %v21959_v33 = vld [vmem:[#allocation2 + $0x182] sm:$0xff] }
 0x90c   :  { %14719 = vmatmul.mubr.f32.gmra.mrb[18].mxu1 %v24512_v50  ;;  %v21962_v50 = vld [vmem:[#allocation2 + $0x18a] sm:$0xff] }
 0x90d   :  { %14721 = vmatprep.mubr.f32.mxu1 %v24513_v16  ;;  %24523 = vst [vmem:[#allocation68_spill] sm:$0xff] %v21962_v50  ;;  %v24524_v16 = vld [vmem:[#allocation34_spill] sm:$0xff] }
 0x910   :  { %14722 = vmatmul.mubr.f32.gmra.mrb[20].mxu1 %v24514_v4  ;;  %v24525_v4 = vld [vmem:[#allocation35_spill] sm:$0xff] }
 0x911   :  { %14724 = vmatprep.mubr.f32.mxu1 %v24515_v30  ;;  %v24526_v30 = vld [vmem:[#allocation36_spill] sm:$0xff] }
 0x914   :  { %14725 = vmatmul.mubr.f32.gmra.mrb[22].mxu1 %v24516_v60  ;;  %v24527_v60 = vld [vmem:[#allocation37_spill] sm:$0xff] }
 0x915   :  { %14727 = vmatprep.mubr.f32.mxu1 %v24517_v54  ;;  %v24528_v54 = vld [vmem:[#allocation38_spill] sm:$0xff] }
 0x918   :  { %14728 = vmatmul.mubr.f32.gmra.mrb[24].mxu1 %v24518_v44  ;;  %v24529_v44 = vld [vmem:[#allocation39_spill] sm:$0xff] }
 0x919   :  { %14730 = vmatprep.mubr.f32.mxu1 %v24519_v56  ;;  %v24530_v56 = vld [vmem:[#allocation40_spill] sm:$0xff] }
 0x91c   :  { %14731 = vmatmul.mubr.f32.gmra.mrb[26].mxu1 %v24520_v58  ;;  %v24531_v58 = vld [vmem:[#allocation41_spill] sm:$0xff] }
 0x91d   :  { %14733 = vmatprep.mubr.f32.mxu1 %v24521_v19  ;;  %v24532_v19 = vld [vmem:[#allocation42_spill] sm:$0xff] }
 0x920   :  { %14734 = vmatmul.mubr.f32.gmra.mrb[28].mxu1 %v24522_v15  ;;  %v24533_v15 = vld [vmem:[#allocation27_spill] sm:$0xff] }
 0x921   :  { %14736 = vmatprep.mubr.f32.mxu1 %v21959_v33 }
 0x924   :  { %14737 = vmatmul.mubr.f32.gmra.mrb[30].mxu1 %v21962_v50  ;;  %v24534_v50 = vld [vmem:[#allocation28_spill] sm:$0xff] }
 0x925   :  { %14739 = vmatprep.mubr.f32.mxu1 %v24524_v16  ;;  %v24535_v16 = vld [vmem:[#allocation29_spill] sm:$0xff] }
 0x928   :  { %14740 = vmatmul.mubr.f32.gmra.mrb[32].mxu1 %v24525_v4  ;;  %v24536_v4 = vld [vmem:[#allocation44_spill] sm:$0xff] }
 0x929   :  { %14742 = vmatprep.mubr.f32.mxu1 %v24526_v30  ;;  %v24537_v30 = vld [vmem:[#allocation45_spill] sm:$0xff] }
 0x92c   :  { %14743 = vmatmul.mubr.f32.gmra.mrb[34].mxu1 %v24527_v60  ;;  %v24538_v60 = vld [vmem:[#allocation46_spill] sm:$0xff] }
 0x92d   :  { %14745 = vmatprep.mubr.f32.mxu1 %v24528_v54  ;;  %v24539_v54 = vld [vmem:[#allocation47_spill] sm:$0xff] }
 0x930   :  { %14746 = vmatmul.mubr.f32.gmra.mrb[36].mxu1 %v24529_v44  ;;  %v24540_v44 = vld [vmem:[#allocation48_spill] sm:$0xff] }
 0x931   :  { %14748 = vmatprep.mubr.f32.mxu1 %v24530_v56  ;;  %v24541_v56 = vld [vmem:[#allocation49_spill] sm:$0xff] }
 0x934   :  { %14749 = vmatmul.mubr.f32.gmra.mrb[38].mxu1 %v24531_v58  ;;  %v24542_v58 = vld [vmem:[#allocation43_spill] sm:$0xff] }
 0x935   :  { %14751 = vmatprep.mubr.f32.mxu1 %v24532_v19  ;;  %v24543_v19 = vld [vmem:[#allocation50_spill] sm:$0xff] }
 0x938   :  { %14752 = vmatmul.mubr.f32.gmra.mrb[40].mxu1 %v24533_v15  ;;  %v24544_v15 = vld [vmem:[#allocation51_spill] sm:$0xff] }
 0x939   :  { %14754 = vmatprep.mubr.f32.mxu1 %v24534_v50  ;;  %v24545_v50 = vld [vmem:[#allocation52_spill] sm:$0xff] }
 0x93c   :  { %14755 = vmatmul.mubr.f32.gmra.mrb[42].mxu1 %v24535_v16  ;;  %v24546_v16 = vld [vmem:[#allocation53_spill] sm:$0xff] }
 0x93d   :  { %14757 = vmatprep.mubr.f32.mxu1 %v24536_v4  ;;  %v24547_v4 = vld [vmem:[#allocation54_spill] sm:$0xff] }
 0x940   :  { %14758 = vmatmul.mubr.f32.gmra.mrb[44].mxu1 %v24537_v30  ;;  %v24548_v30 = vld [vmem:[#allocation55_spill] sm:$0xff] }
 0x941   :  { %14760 = vmatprep.mubr.f32.mxu1 %v24538_v60  ;;  %v24549_v60 = vld [vmem:[#allocation56_spill] sm:$0xff] }
 0x944   :  { %14761 = vmatmul.mubr.f32.gmra.mrb[46].mxu1 %v24539_v54  ;;  %v24550_v54 = vld [vmem:[#allocation57_spill] sm:$0xff] }
 0x945   :  { %14763 = vmatprep.mubr.f32.mxu1 %v24540_v44  ;;  %v24551_v44 = vld [vmem:[#allocation58_spill] sm:$0xff] }
 0x948   :  { %14764 = vmatmul.mubr.f32.gmra.mrb[48].mxu1 %v24541_v56  ;;  %v24552_v56 = vld [vmem:[#allocation59_spill] sm:$0xff] }
 0x949   :  { %14766 = vmatprep.mubr.f32.mxu1 %v24542_v58  ;;  %v21995_v58 = vld [vmem:[#allocation2 + $0x332] sm:$0xff] }
 0x94c   :  { %14767 = vmatmul.mubr.f32.gmra.mrb[50].mxu1 %v24543_v19  ;;  %v21998_v19 = vld [vmem:[#allocation2 + $0x33a] sm:$0xff] }
 0x94d   :  { %14769 = vmatprep.mubr.f32.mxu1 %v24544_v15  ;;  %24553 = vst [vmem:[#allocation69_spill] sm:$0xff] %v21998_v19  ;;  %v11394_v15 = vld [vmem:[%s23784_s5 + $0x390] sm:$0xff] }
 0x950   :  { %14770 = vmatmul.mubr.f32.gmra.mrb[52].mxu1 %v24545_v50  ;;  %v11395_v50 = vld [vmem:[%s23784_s5 + $0x398] sm:$0xff] }
 0x951   :  { %14772 = vmatprep.mubr.f32.mxu1 %v24546_v16  ;;  %v8513_v16 = vld [vmem:[#allocation2 + $0x30] sm:$0xff] }
 0x954   :  { %14773 = vmatmul.mubr.f32.gmra.mrb[54].mxu1 %v24547_v4  ;;  %v15687_v4 = vpack.c.bf16 %v11395_v50, %v11394_v15  ;;  %v11398_v15 = vld [vmem:[%s23784_s5 + $0x3b0] sm:$0xff]  ;;  %v11399_v50 = vld [vmem:[%s23784_s5 + $0x3b8] sm:$0xff] }
 0x955   :  { %14775 = vmatprep.mubr.f32.mxu1 %v24548_v30  ;;  %v11396_v30 = vld [vmem:[%s23784_s5 + $0x3a0] sm:$0xff] }
 0x958   :  { %14776 = vmatmul.mubr.f32.gmra.mrb[56].mxu1 %v24549_v60  ;;  %v11397_v60 = vld [vmem:[%s23784_s5 + $0x3a8] sm:$0xff] }
 0x959   :  { %14778 = vmatprep.mubr.f32.mxu1 %v24550_v54  ;;  %v8515_v54 = vld [vmem:[#allocation2 + $0x48] sm:$0xff] }
 0x95c   :  { %14779 = vmatmul.mubr.f32.gmra.mrb[58].mxu1 %v24551_v44  ;;  %v15691_v44 = vpack.c.bf16 %v11397_v60, %v11396_v30  ;;  %v11401_v30 = vld [vmem:[%s23784_s5 + $0x3c8] sm:$0xff]  ;;  %v8519_v60 = vld [vmem:[#allocation2 + $0x78] sm:$0xff] }
 0x95d   :  { %14781 = vmatprep.mubr.f32.mxu1 %v24552_v56  ;;  %v8516_v56 = vld [vmem:[#allocation2 + $0x50] sm:$0xff] }
 0x960   :  { %14782 = vmatmul.mubr.f32.gmra.mrb[60].mxu1 %v21518_v20  ;;  %v8514_v20 = vld [vmem:[#allocation2 + $0x38] sm:$0xff] }
 0x961   :  { %14784 = vmatprep.mubr.f32.mxu1 %v21995_v58 }
 0x964   :  { %14785 = vmatmul.mubr.f32.gmra.mrb[62].mxu1 %v21998_v19  ;;  %v8520_v19 = vld [vmem:[#allocation2 + $0x80] sm:$0xff] }
 0x965   :  { %14819 = vmatprep.mubr.f32.mxu1 %v8513_v16  ;;  %v8517_v16 = vld [vmem:[#allocation2 + $0x60] sm:$0xff] }
 0x968   :  { %14820 = vmatmul.mubr.f32.vlgmr.msra.gmra.mrb[0].mxu1 %v8514_v20  ;;  %v15695_v20 = vpack.c.bf16 %v11399_v50, %v11398_v15  ;;  %v11403_v15 = vld [vmem:[%s23784_s5 + $0x3d8] sm:$0xff]  ;;  %v8521_v50 = vld [vmem:[#allocation2 + $0x90] sm:$0xff] }
 0x969   :  { %14822 = vmatprep.mubr.f32.mxu1 %v8515_v54  ;;  %15686 = vmatpush3.bf16.msra.mxu1 %v21941_v13  ;;  %v8518_v54 = vld [vmem:[#allocation2 + $0x68] sm:$0xff]  ;;  %v11400_v13 = vld [vmem:[%s23784_s5 + $0x3c0] sm:$0xff] }
 0x96a   :  { %15688 = vmatprep.subr.bf16.mxu1 %v15687_v4 }
 0x96c   :  { %14823 = vmatmul.mubr.f32.gmra.mrb[2].mxu1 %v8516_v56  ;;  %v15699_v56 = vpack.c.bf16 %v11401_v30, %v11400_v13  ;;  %v11405_v13 = vld [vmem:[%s23784_s5 + $0x3e8] sm:$0xff] }
 0x96d   :  { %14825 = vmatprep.mubr.f32.mxu1 %v8517_v16  ;;  %15690 = vmatpush3.bf16.msra.mxu1 %v15687_v4  ;;  %v11402_v4 = vld [vmem:[%s23784_s5 + $0x3d0] sm:$0xff]  ;;  %v8523_v30 = vld [vmem:[#allocation2 + $0xa8] sm:$0xff] }
 0x96e   :  { %15692 = vmatprep.subr.bf16.mxu1 %v15691_v44  ;;  %v15703_v16 = vpack.c.bf16 %v11403_v15, %v11402_v4  ;;  %v11407_v4 = vld [vmem:[%s23784_s5 + $0x3f8] sm:$0xff]  ;;  %v8525_v15 = vld [vmem:[#allocation2 + $0xc0] sm:$0xff] }
 0x970   :  { %14826 = vmatmul.mubr.f32.gmra.mrb[4].mxu1 %v8518_v54  ;;  %v8522_v54 = vld [vmem:[#allocation2 + $0x98] sm:$0xff] }
 0x971   :  { %14828 = vmatprep.mubr.f32.mxu1 %v8519_v60  ;;  %15694 = vmatpush3.bf16.msra.mxu1 %v15691_v44  ;;  %v11404_v44 = vld [vmem:[%s23784_s5 + $0x3e0] sm:$0xff]  ;;  %v8524_v60 = vld [vmem:[#allocation2 + $0xb0] sm:$0xff] }
 0x972   :  { %15696 = vmatprep.subr.bf16.mxu1 %v15695_v20 }
 0x974   :  { %14829 = vmatmul.mubr.f32.gmra.mrb[6].mxu1 %v8520_v19  ;;  %v15707_v19 = vpack.c.bf16 %v11405_v13, %v11404_v44  ;;  %v11409_v44 = vld [vmem:[%s23784_s5 + $0x408] sm:$0xff]  ;;  %v8527_v13 = vld [vmem:[#allocation2 + $0xd8] sm:$0xff] }
 0x975   :  { %14831 = vmatprep.mubr.f32.mxu1 %v8521_v50  ;;  %15698 = vmatpush3.bf16.msra.mxu1 %v15695_v20  ;;  %v11406_v20 = vld [vmem:[%s23784_s5 + $0x3f0] sm:$0xff] }
 0x976   :  { %15700 = vmatprep.subr.bf16.mxu1 %v15699_v56  ;;  %v15711_v50 = vpack.c.bf16 %v11407_v4, %v11406_v20  ;;  %v8530_v20 = vld [vmem:[#allocation2 + $0xf8] sm:$0xff]  ;;  %v8531_v4 = vld [vmem:[#allocation2 + $0x108] sm:$0xff] }
 0x978   :  { %14832 = vmatmul.mubr.f32.gmra.mrb[8].mxu1 %v8522_v54  ;;  %v8526_v54 = vld [vmem:[#allocation2 + $0xc8] sm:$0xff] }
 0x979   :  { %14834 = vmatprep.mubr.f32.mxu1 %v8523_v30  ;;  %15702 = vmatpush3.bf16.msra.mxu1 %v15699_v56  ;;  %v11408_v56 = vld [vmem:[%s23784_s5 + $0x400] sm:$0xff] }
 0x97a   :  { %15704 = vmatprep.subr.bf16.mxu1 %v15703_v16  ;;  %v22050_v30 = vpack.c.bf16 %v11409_v44, %v11408_v56  ;;  %v8536_v56 = vld [vmem:[#allocation2 + $0x140] sm:$0xff]  ;;  %v8537_v44 = vld [vmem:[#allocation2 + $0x150] sm:$0xff] }
 0x97c   :  { %14835 = vmatmul.mubr.f32.gmra.mrb[10].mxu1 %v8524_v60  ;;  %v8528_v60 = vld [vmem:[#allocation2 + $0xe0] sm:$0xff] }
 0x97d   :  { %14837 = vmatprep.mubr.f32.mxu1 %v8525_v15  ;;  %15706 = vmatpush3.bf16.msra.mxu1 %v15703_v16  ;;  %v8529_v16 = vld [vmem:[#allocation2 + $0xf0] sm:$0xff] }
 0x97e   :  { %15708 = vmatprep.subr.bf16.mxu1 %v15707_v19  ;;  %v8532_v15 = vld [vmem:[#allocation2 + $0x110] sm:$0xff] }
 0x980   :  { %14838 = vmatmul.mubr.f32.gmra.mrb[12].mxu1 %v8526_v54  ;;  %v8533_v54 = vld [vmem:[#allocation2 + $0x120] sm:$0xff] }
 0x981   :  { %14840 = vmatprep.mubr.f32.mxu1 %v8527_v13  ;;  %15710 = vmatpush3.bf16.msra.mxu1 %v15707_v19  ;;  %v8534_v13 = vld [vmem:[#allocation2 + $0x128] sm:$0xff]  ;;  %v8535_v19 = vld [vmem:[#allocation2 + $0x138] sm:$0xff] }
 0x982   :  { %15712 = vmatprep.subr.bf16.mxu1 %v15711_v50 }
 0x984   :  { %14841 = vmatmul.mubr.f32.gmra.mrb[14].mxu1 %v8528_v60  ;;  %v8538_v60 = vld [vmem:[#allocation2 + $0x158] sm:$0xff] }
 0x985   :  { %14843 = vmatprep.mubr.f32.mxu1 %v8529_v16  ;;  %15714 = vmatpush3.bf16.msra.mxu1 %v15711_v50  ;;  %v8539_v50 = vld [vmem:[#allocation2 + $0x168] sm:$0xff]  ;;  %v8540_v16 = vld [vmem:[#allocation2 + $0x170] sm:$0xff] }
 0x986   :  { %15716 = vmatprep.subr.bf16.mxu1 %v22050_v30 }
 0x988   :  { %14844 = vmatmul.mubr.f32.gmra.mrb[16].mxu1 %v8530_v20  ;;  %v22055_v20 = vld [vmem:[#allocation2] sm:$0xff] }
 0x989   :  { %14846 = vmatprep.mubr.f32.mxu1 %v8531_v4  ;;  %v8545_v4 = vld [vmem:[#allocation2 + $0x1e0] sm:$0xff] }
 0x98c   :  { %14847 = vmatmul.mubr.f32.gmra.mrb[18].mxu1 %v8532_v15  ;;  %v8546_v15 = vld [vmem:[#allocation2 + $0x1e8] sm:$0xff] }
 0x98d   :  { %14849 = vmatprep.mubr.f32.mxu1 %v8533_v54  ;;  %v8547_v54 = vld [vmem:[#allocation2 + $0x1f8] sm:$0xff] }
 0x990   :  { %14850 = vmatmul.mubr.f32.gmra.mrb[20].mxu1 %v8534_v13  ;;  %v8548_v13 = vld [vmem:[#allocation2 + $0x200] sm:$0xff] }
 0x991   :  { %14852 = vmatprep.mubr.f32.mxu1 %v8535_v19  ;;  %v8549_v19 = vld [vmem:[#allocation2 + $0x210] sm:$0xff] }
 0x994   :  { %14853 = vmatmul.mubr.f32.gmra.mrb[22].mxu1 %v8536_v56  ;;  %v8550_v56 = vld [vmem:[#allocation2 + $0x218] sm:$0xff] }
 0x995   :  { %14855 = vmatprep.mubr.f32.mxu1 %v8537_v44  ;;  %v8553_v44 = vld [vmem:[#allocation2 + $0x240] sm:$0xff] }
 0x998   :  { %14856 = vmatmul.mubr.f32.gmra.mrb[24].mxu1 %v8538_v60  ;;  %v8554_v60 = vld [vmem:[#allocation2 + $0x248] sm:$0xff] }
 0x999   :  { %14858 = vmatprep.mubr.f32.mxu1 %v8539_v50  ;;  %v8555_v50 = vld [vmem:[#allocation2 + $0x258] sm:$0xff] }
 0x99c   :  { %14859 = vmatmul.mubr.f32.gmra.mrb[26].mxu1 %v8540_v16  ;;  %v8556_v16 = vld [vmem:[#allocation2 + $0x260] sm:$0xff] }
 0x99d   :  { %14861 = vmatprep.mubr.f32.mxu1 %v21603_v53  ;;  %v8551_v53 = vld [vmem:[#allocation2 + $0x228] sm:$0xff] }
 0x9a0   :  { %14862 = vmatmul.mubr.f32.gmra.mrb[28].mxu1 %v21606_v9  ;;  %v8552_v9 = vld [vmem:[#allocation2 + $0x230] sm:$0xff] }
 0x9a1   :  { %14864 = vmatprep.mubr.f32.mxu1 %v22055_v20 }
 0x9a4   :  { %14865 = vmatmul.mubr.f32.gmra.mrb[30].mxu1 %v22055_v20 }
 0x9a5   :  { %14867 = vmatprep.mubr.f32.mxu1 %v8545_v4  ;;  %v8557_v4 = vld [vmem:[#allocation2 + $0x270] sm:$0xff] }
 0x9a8   :  { %14868 = vmatmul.mubr.f32.gmra.mrb[32].mxu1 %v8546_v15  ;;  %v8558_v15 = vld [vmem:[#allocation2 + $0x278] sm:$0xff] }
 0x9a9   :  { %14870 = vmatprep.mubr.f32.mxu1 %v8547_v54  ;;  %v8559_v54 = vld [vmem:[#allocation2 + $0x288] sm:$0xff] }
 0x9ac   :  { %14871 = vmatmul.mubr.f32.gmra.mrb[34].mxu1 %v8548_v13  ;;  %v8560_v13 = vld [vmem:[#allocation2 + $0x290] sm:$0xff] }
 0x9ad   :  { %14873 = vmatprep.mubr.f32.mxu1 %v8549_v19  ;;  %v8561_v19 = vld [vmem:[#allocation2 + $0x2a0] sm:$0xff] }
 0x9b0   :  { %14874 = vmatmul.mubr.f32.gmra.mrb[36].mxu1 %v8550_v56  ;;  %v8562_v56 = vld [vmem:[#allocation2 + $0x2a8] sm:$0xff] }
 0x9b1   :  { %14876 = vmatprep.mubr.f32.mxu1 %v8551_v53  ;;  %v8563_v53 = vld [vmem:[#allocation2 + $0x2b8] sm:$0xff] }
 0x9b4   :  { %14877 = vmatmul.mubr.f32.gmra.mrb[38].mxu1 %v8552_v9  ;;  %v8564_v9 = vld [vmem:[#allocation2 + $0x2c0] sm:$0xff] }
 0x9b5   :  { %14879 = vmatprep.mubr.f32.mxu1 %v8553_v44  ;;  %v8565_v44 = vld [vmem:[#allocation2 + $0x2d0] sm:$0xff] }
 0x9b8   :  { %14880 = vmatmul.mubr.f32.gmra.mrb[40].mxu1 %v8554_v60  ;;  %v8566_v60 = vld [vmem:[#allocation2 + $0x2d8] sm:$0xff] }
 0x9b9   :  { %14882 = vmatprep.mubr.f32.mxu1 %v8555_v50  ;;  %v8567_v50 = vld [vmem:[#allocation2 + $0x2e8] sm:$0xff] }
 0x9bc   :  { %14883 = vmatmul.mubr.f32.gmra.mrb[42].mxu1 %v8556_v16  ;;  %v8568_v16 = vld [vmem:[#allocation2 + $0x2f0] sm:$0xff] }
 0x9bd   :  { %14885 = vmatprep.mubr.f32.mxu1 %v8557_v4  ;;  %v8569_v4 = vld [vmem:[#allocation2 + $0x300] sm:$0xff] }
 0x9c0   :  { %14886 = vmatmul.mubr.f32.gmra.mrb[44].mxu1 %v8558_v15  ;;  %v8570_v15 = vld [vmem:[#allocation2 + $0x308] sm:$0xff] }
 0x9c1   :  { %14888 = vmatprep.mubr.f32.mxu1 %v8559_v54  ;;  %v8571_v54 = vld [vmem:[#allocation2 + $0x318] sm:$0xff] }
 0x9c4   :  { %14889 = vmatmul.mubr.f32.gmra.mrb[46].mxu1 %v8560_v13  ;;  %v8572_v13 = vld [vmem:[#allocation2 + $0x320] sm:$0xff] }
 0x9c5   :  { %14891 = vmatprep.mubr.f32.mxu1 %v8561_v19  ;;  %v11410_v19 = vld [vmem:[%s23784_s5 + $0x410] sm:$0xff] }
 0x9c8   :  { %14892 = vmatmul.mubr.f32.gmra.mrb[48].mxu1 %v8562_v56  ;;  %v11411_v56 = vld [vmem:[%s23784_s5 + $0x418] sm:$0xff] }
 0x9c9   :  { %14894 = vmatprep.mubr.f32.mxu1 %v8563_v53  ;;  %v15719_v53 = vpack.c.bf16 %v11411_v56, %v11410_v19  ;;  %v9596_v19 = vld [vmem:[#allocation2 + $0x142] sm:$0xff]  ;;  %v9597_v56 = vld [vmem:[#allocation2 + $0x152] sm:$0xff] }
 0x9cc   :  { %14895 = vmatmul.mubr.f32.gmra.mrb[50].mxu1 %v8564_v9 }
 0x9cd   :  { %14897 = vmatprep.mubr.f32.mxu1 %v8565_v44  ;;  %v11419_v44 = vld [vmem:[%s23784_s5 + $0x458] sm:$0xff] }
 0x9d0   :  { %14898 = vmatmul.mubr.f32.gmra.mrb[52].mxu1 %v8566_v60  ;;  %v11421_v60 = vld [vmem:[%s23784_s5 + $0x468] sm:$0xff] }
 0x9d1   :  { %14900 = vmatprep.mubr.f32.mxu1 %v8567_v50  ;;  %v11423_v50 = vld [vmem:[%s23784_s5 + $0x478] sm:$0xff] }
 0x9d4   :  { %14901 = vmatmul.mubr.f32.gmra.mrb[54].mxu1 %v8568_v16  ;;  %v9591_v16 = vld [vmem:[#allocation2 + $0x10a] sm:$0xff] }
 0x9d5   :  { %14903 = vmatprep.mubr.f32.mxu1 %v8569_v4  ;;  %v9592_v4 = vld [vmem:[#allocation2 + $0x112] sm:$0xff] }
 0x9d8   :  { %14904 = vmatmul.mubr.f32.gmra.mrb[56].mxu1 %v8570_v15  ;;  %v9593_v15 = vld [vmem:[#allocation2 + $0x122] sm:$0xff] }
 0x9d9   :  { %14906 = vmatprep.mubr.f32.mxu1 %v8571_v54  ;;  %v9594_v54 = vld [vmem:[#allocation2 + $0x12a] sm:$0xff] }
 0x9dc   :  { %14907 = vmatmul.mubr.f32.gmra.mrb[58].mxu1 %v8572_v13  ;;  %v9595_v13 = vld [vmem:[#allocation2 + $0x13a] sm:$0xff] }
 0x9dd   :  { %14909 = vmatprep.mubr.f32.mxu1 %v21639_v2  ;;  %v11412_v2 = vld [vmem:[%s23784_s5 + $0x420] sm:$0xff] }
 0x9e0   :  { %14910 = vmatmul.mubr.f32.gmra.mrb[60].mxu1 %v21642_v8  ;;  %v11413_v8 = vld [vmem:[%s23784_s5 + $0x428] sm:$0xff] }
 0x9e1   :  { %14912 = vmatprep.mubr.f32.mxu1 %v22055_v20  ;;  %v15723_v9 = vpack.c.bf16 %v11413_v8, %v11412_v2  ;;  %v9599_v2 = vld [vmem:[#allocation2 + $0x16a] sm:$0xff]  ;;  %v9600_v8 = vld [vmem:[#allocation2 + $0x172] sm:$0xff] }
 0x9e4   :  { %14913 = vmatmul.mubr.f32.gmra.mrb[62].mxu1 %v22055_v20  ;;  %v11415_v20 = vld [vmem:[%s23784_s5 + $0x438] sm:$0xff] }
 0x9e5   :  { %14947 = vmatprep.mubr.f32.mxu1 %v21657_v26  ;;  %v11414_v26 = vld [vmem:[%s23784_s5 + $0x430] sm:$0xff] }
 0x9e8   :  { %14948 = vmatmul.mubr.f32.vlgmr.msra.gmra.mrb[0].mxu1 %v21661_v24  ;;  %v15727_v24 = vpack.c.bf16 %v11415_v20, %v11414_v26  ;;  %v24568_v26 = vld [vmem:[#allocation68_spill] sm:$0xff] }
 0x9e9   :  { %14950 = vmatprep.mubr.f32.mxu1 %v21670_v17  ;;  %15718 = vmatpush3.bf16.msra.mxu1 %v22050_v30  ;;  %v11416_v17 = vld [vmem:[%s23784_s5 + $0x440] sm:$0xff]  ;;  %v11417_v30 = vld [vmem:[%s23784_s5 + $0x448] sm:$0xff] }
 0x9ea   :  { %15720 = vmatprep.subr.bf16.mxu1 %v15719_v53  ;;  %v9604_v20 = vld [vmem:[#allocation2 + $0x1a2] sm:$0xff] }
 0x9ec   :  { %14951 = vmatmul.mubr.f32.gmra.mrb[2].mxu1 %v21673_v18  ;;  %v15731_v18 = vpack.c.bf16 %v11417_v30, %v11416_v17  ;;  %v9606_v17 = vld [vmem:[#allocation2 + $0x1ea] sm:$0xff]  ;;  %v9607_v30 = vld [vmem:[#allocation2 + $0x1fa] sm:$0xff] }
 0x9ed   :  { %14953 = vmatprep.mubr.f32.mxu1 %v21682_v34  ;;  %15722 = vmatpush3.bf16.msra.mxu1 %v15719_v53  ;;  %v11418_v34 = vld [vmem:[%s23784_s5 + $0x450] sm:$0xff]  ;;  %v9598_v53 = vld [vmem:[#allocation2 + $0x15a] sm:$0xff] }
 0x9ee   :  { %15724 = vmatprep.subr.bf16.mxu1 %v15723_v9 }
 0x9f0   :  { %14954 = vmatmul.mubr.f32.gmra.mrb[4].mxu1 %v21685_v27  ;;  %v15735_v27 = vpack.c.bf16 %v11419_v44, %v11418_v34  ;;  %v9609_v34 = vld [vmem:[#allocation2 + $0x212] sm:$0xff]  ;;  %v9610_v44 = vld [vmem:[#allocation2 + $0x21a] sm:$0xff] }
 0x9f1   :  { %14956 = vmatprep.mubr.f32.mxu1 %v21694_v3  ;;  %15726 = vmatpush3.bf16.msra.mxu1 %v15723_v9  ;;  %v11420_v3 = vld [vmem:[%s23784_s5 + $0x460] sm:$0xff] }
 0x9f2   :  { %15728 = vmatprep.subr.bf16.mxu1 %v15727_v24  ;;  %v9603_v9 = vld [vmem:[#allocation2 + $0x19a] sm:$0xff] }
 0x9f4   :  { %14957 = vmatmul.mubr.f32.gmra.mrb[6].mxu1 %v21697_v59  ;;  %v15739_v59 = vpack.c.bf16 %v11421_v60, %v11420_v3  ;;  %v9613_v3 = vld [vmem:[#allocation2 + $0x242] sm:$0xff]  ;;  %v9614_v60 = vld [vmem:[#allocation2 + $0x24a] sm:$0xff] }
 0x9f5   :  { %14959 = vmatprep.mubr.f32.mxu1 %v21706_v40  ;;  %15730 = vmatpush3.bf16.msra.mxu1 %v15727_v24  ;;  %v11422_v40 = vld [vmem:[%s23784_s5 + $0x470] sm:$0xff]  ;;  %v9605_v24 = vld [vmem:[#allocation2 + $0x1e2] sm:$0xff] }
 0x9f6   :  { %15732 = vmatprep.subr.bf16.mxu1 %v15731_v18 }
 0x9f8   :  { %14960 = vmatmul.mubr.f32.gmra.mrb[8].mxu1 %v21709_v61  ;;  %v15743_v61 = vpack.c.bf16 %v11423_v50, %v11422_v40  ;;  %v9616_v40 = vld [vmem:[#allocation2 + $0x262] sm:$0xff]  ;;  %v9617_v50 = vld [vmem:[#allocation2 + $0x272] sm:$0xff] }
 0x9f9   :  { %14962 = vmatprep.mubr.f32.mxu1 %v21718_v39  ;;  %15734 = vmatpush3.bf16.msra.mxu1 %v15731_v18  ;;  %v9073_v39 = vld [vmem:[#allocation2 + $0x199] sm:$0xff]  ;;  %v9608_v18 = vld [vmem:[#allocation2 + $0x202] sm:$0xff] }
 0x9fa   :  { %15736 = vmatprep.subr.bf16.mxu1 %v15735_v27 }
 0x9fc   :  { %14963 = vmatmul.mubr.f32.gmra.mrb[10].mxu1 %v21721_v37  ;;  %v9074_v37 = vld [vmem:[#allocation2 + $0x1a1] sm:$0xff] }
 0x9fd   :  { %14965 = vmatprep.mubr.f32.mxu1 %v21730_v14  ;;  %15738 = vmatpush3.bf16.msra.mxu1 %v15735_v27  ;;  %v24554_v14 = vld [vmem:[#allocation62_spill] sm:$0xff]  ;;  %v9611_v27 = vld [vmem:[#allocation2 + $0x22a] sm:$0xff] }
 0x9fe   :  { %15740 = vmatprep.subr.bf16.mxu1 %v15739_v59 }
 0xa00   :  { %14966 = vmatmul.mubr.f32.gmra.mrb[12].mxu1 %v21735_v45  ;;  %v24555_v45 = vld [vmem:[#allocation63_spill] sm:$0xff] }
 0xa01   :  { %14968 = vmatprep.mubr.f32.mxu1 %v21738_v25  ;;  %15742 = vmatpush3.bf16.msra.mxu1 %v15739_v59  ;;  %v24556_v25 = vld [vmem:[#allocation64_spill] sm:$0xff]  ;;  %v9615_v59 = vld [vmem:[#allocation2 + $0x25a] sm:$0xff] }
 0xa02   :  { %15744 = vmatprep.subr.bf16.mxu1 %v15743_v61 }
 0xa04   :  { %14969 = vmatmul.mubr.f32.gmra.mrb[14].mxu1 %v21742_v32  ;;  %v24557_v32 = vld [vmem:[#allocation65_spill] sm:$0xff] }
 0xa05   :  { %14971 = vmatprep.mubr.f32.mxu1 %v21745_v12  ;;  %15746 = vmatpush3.bf16.msra.mxu1 %v15743_v61  ;;  %v24558_v12 = vld [vmem:[#allocation3_spill] sm:$0xff] }
 0xa06   :  { %v9618_v61 = vld [vmem:[#allocation2 + $0x27a] sm:$0xff] }
 0xa08   :  { %14972 = vmatmul.mubr.f32.gmra.mrb[16].mxu1 %v21748_v63  ;;  %v24559_v63 = vld [vmem:[#allocation4_spill] sm:$0xff] }
 0xa09   :  { %14974 = vmatprep.mubr.f32.mxu1 %v21751_v48  ;;  %v24560_v48 = vld [vmem:[#allocation60_spill] sm:$0xff] }
 0xa0c   :  { %14975 = vmatmul.mubr.f32.gmra.mrb[18].mxu1 %v21754_v6  ;;  %v24561_v6 = vld [vmem:[#allocation61_spill] sm:$0xff] }
 0xa0d   :  { %14977 = vmatprep.mubr.f32.mxu1 %v21757_v23  ;;  %v24562_v23 = vld [vmem:[#allocation5_spill] sm:$0xff] }
 0xa10   :  { %14978 = vmatmul.mubr.f32.gmra.mrb[20].mxu1 %v21760_v41  ;;  %v24563_v41 = vld [vmem:[#allocation6_spill] sm:$0xff] }
 0xa11   :  { %14980 = vmatprep.mubr.f32.mxu1 %v21763_v43  ;;  %v24564_v43 = vld [vmem:[#allocation7_spill] sm:$0xff] }
 0xa14   :  { %14981 = vmatmul.mubr.f32.gmra.mrb[22].mxu1 %v21766_v42  ;;  %v24565_v42 = vld [vmem:[#allocation8_spill] sm:$0xff] }
 0xa15   :  { %14983 = vmatprep.mubr.f32.mxu1 %v21769_v36  ;;  %v24566_v36 = vld [vmem:[#allocation66_spill] sm:$0xff] }
 0xa18   :  { %14984 = vmatmul.mubr.f32.gmra.mrb[24].mxu1 %v21772_v22  ;;  %v9105_v22 = vld [vmem:[#allocation2 + $0x349] sm:$0xff] }
 0xa19   :  { %14986 = vmatprep.mubr.f32.mxu1 %v21775_v55  ;;  %v24567_v55 = vld [vmem:[#allocation67_spill] sm:$0xff] }
 0xa1c   :  { %14987 = vmatmul.mubr.f32.gmra.mrb[26].mxu1 %v21778_v35  ;;  %v9106_v35 = vld [vmem:[#allocation2 + $0x351] sm:$0xff] }
 0xa1d   :  { %14989 = vmatprep.mubr.f32.mxu1 %v21781_v52  ;;  %v9573_v52 = vld [vmem:[#allocation2 + $0x32] sm:$0xff] }
 0xa20   :  { %14990 = vmatmul.mubr.f32.gmra.mrb[28].mxu1 %v21784_v51  ;;  %v9574_v51 = vld [vmem:[#allocation2 + $0x3a] sm:$0xff] }
 0xa21   :  { %14992 = vmatprep.mubr.f32.mxu1 %v9073_v39  ;;  %v9619_v39 = vld [vmem:[#allocation2 + $0x28a] sm:$0xff] }
 0xa24   :  { %14993 = vmatmul.mubr.f32.gmra.mrb[30].mxu1 %v9074_v37  ;;  %v9620_v37 = vld [vmem:[#allocation2 + $0x292] sm:$0xff] }
 0xa25   :  { %14995 = vmatprep.mubr.f32.mxu1 %v21787_v5  ;;  %v9575_v5 = vld [vmem:[#allocation2 + $0x4a] sm:$0xff] }
 0xa28   :  { %14996 = vmatmul.mubr.f32.gmra.mrb[32].mxu1 %v21790_v11  ;;  %v9576_v11 = vld [vmem:[#allocation2 + $0x52] sm:$0xff] }
 0xa29   :  { %14998 = vmatprep.mubr.f32.mxu1 %v21793_v0  ;;  %v9577_v0 = vld [vmem:[#allocation2 + $0x62] sm:$0xff] }
 0xa2c   :  { %14999 = vmatmul.mubr.f32.gmra.mrb[34].mxu1 %v21796_v38  ;;  %v9578_v38 = vld [vmem:[#allocation2 + $0x6a] sm:$0xff] }
 0xa2d   :  { %15001 = vmatprep.mubr.f32.mxu1 %v21799_v1  ;;  %v9579_v1 = vld [vmem:[#allocation2 + $0x7a] sm:$0xff] }
 0xa30   :  { %15002 = vmatmul.mubr.f32.gmra.mrb[36].mxu1 %v21802_v21  ;;  %v9580_v21 = vld [vmem:[#allocation2 + $0x82] sm:$0xff] }
 0xa31   :  { %15004 = vmatprep.mubr.f32.mxu1 %v21805_v46  ;;  %v9581_v46 = vld [vmem:[#allocation2 + $0x92] sm:$0xff] }
 0xa34   :  { %15005 = vmatmul.mubr.f32.gmra.mrb[38].mxu1 %v21808_v10  ;;  %v9582_v10 = vld [vmem:[#allocation2 + $0x9a] sm:$0xff] }
 0xa35   :  { %15007 = vmatprep.mubr.f32.mxu1 %v21811_v28  ;;  %v9583_v28 = vld [vmem:[#allocation2 + $0xaa] sm:$0xff] }
 0xa38   :  { %15008 = vmatmul.mubr.f32.gmra.mrb[40].mxu1 %v21814_v57  ;;  %v9584_v57 = vld [vmem:[#allocation2 + $0xb2] sm:$0xff] }
 0xa39   :  { %15010 = vmatprep.mubr.f32.mxu1 %v21817_v49  ;;  %v9585_v49 = vld [vmem:[#allocation2 + $0xc2] sm:$0xff] }
 0xa3c   :  { %15011 = vmatmul.mubr.f32.gmra.mrb[42].mxu1 %v21820_v7  ;;  %v9586_v7 = vld [vmem:[#allocation2 + $0xca] sm:$0xff] }
 0xa3d   :  { %15013 = vmatprep.mubr.f32.mxu1 %v21823_v62  ;;  %v9587_v62 = vld [vmem:[#allocation2 + $0xda] sm:$0xff] }
 0xa40   :  { %15014 = vmatmul.mubr.f32.gmra.mrb[44].mxu1 %v21826_v29  ;;  %v9588_v29 = vld [vmem:[#allocation2 + $0xe2] sm:$0xff] }
 0xa41   :  { %15016 = vmatprep.mubr.f32.mxu1 %v21829_v31  ;;  %v9589_v31 = vld [vmem:[#allocation2 + $0xf2] sm:$0xff] }
 0xa44   :  { %15017 = vmatmul.mubr.f32.gmra.mrb[46].mxu1 %v21832_v47  ;;  %v9590_v47 = vld [vmem:[#allocation2 + $0xfa] sm:$0xff] }
 0xa45   :  { %15019 = vmatprep.mubr.f32.mxu1 %v24554_v14  ;;  %v9621_v14 = vld [vmem:[#allocation2 + $0x2a2] sm:$0xff] }
 0xa48   :  { %15020 = vmatmul.mubr.f32.gmra.mrb[48].mxu1 %v24555_v45  ;;  %v9622_v45 = vld [vmem:[#allocation2 + $0x2aa] sm:$0xff] }
 0xa49   :  { %15022 = vmatprep.mubr.f32.mxu1 %v24556_v25  ;;  %v9623_v25 = vld [vmem:[#allocation2 + $0x2ba] sm:$0xff] }
 0xa4c   :  { %15023 = vmatmul.mubr.f32.gmra.mrb[50].mxu1 %v24557_v32  ;;  %v9624_v32 = vld [vmem:[#allocation2 + $0x2c2] sm:$0xff] }
 0xa4d   :  { %15025 = vmatprep.mubr.f32.mxu1 %v24558_v12  ;;  %v9625_v12 = vld [vmem:[#allocation2 + $0x2d2] sm:$0xff] }
 0xa50   :  { %15026 = vmatmul.mubr.f32.gmra.mrb[52].mxu1 %v24559_v63  ;;  %v9626_v63 = vld [vmem:[#allocation2 + $0x2da] sm:$0xff] }
 0xa51   :  { %15028 = vmatprep.mubr.f32.mxu1 %v24560_v48  ;;  %v9627_v48 = vld [vmem:[#allocation2 + $0x2ea] sm:$0xff] }
 0xa54   :  { %15029 = vmatmul.mubr.f32.gmra.mrb[54].mxu1 %v24561_v6  ;;  %v9628_v6 = vld [vmem:[#allocation2 + $0x2f2] sm:$0xff] }
 0xa55   :  { %15031 = vmatprep.mubr.f32.mxu1 %v24562_v23  ;;  %v9629_v23 = vld [vmem:[#allocation2 + $0x302] sm:$0xff] }
 0xa58   :  { %15032 = vmatmul.mubr.f32.gmra.mrb[56].mxu1 %v24563_v41  ;;  %v9630_v41 = vld [vmem:[#allocation2 + $0x30a] sm:$0xff] }
 0xa59   :  { %15034 = vmatprep.mubr.f32.mxu1 %v24564_v43  ;;  %v9631_v43 = vld [vmem:[#allocation2 + $0x31a] sm:$0xff] }
 0xa5c   :  { %15035 = vmatmul.mubr.f32.gmra.mrb[58].mxu1 %v24565_v42  ;;  %v9632_v42 = vld [vmem:[#allocation2 + $0x322] sm:$0xff] }
 0xa5d   :  { %15037 = vmatprep.mubr.f32.mxu1 %v24566_v36  ;;  %v9635_v36 = vld [vmem:[#allocation2 + $0x34a] sm:$0xff] }
 0xa60   :  { %15038 = vmatmul.mubr.f32.gmra.mrb[60].mxu1 %v24567_v55  ;;  %v9636_v55 = vld [vmem:[#allocation2 + $0x352] sm:$0xff] }
 0xa61   :  { %15040 = vmatprep.mubr.f32.mxu1 %v9105_v22  ;;  %v24569_v22 = vld [vmem:[#allocation69_spill] sm:$0xff] }
 0xa64   :  { %15041 = vmatmul.mubr.f32.gmra.mrb[62].mxu1 %v9106_v35  ;;  %v22173_v35 = vld [vmem:[%s23787_s6] ss:$0 sm:$0xff] }
 0xa65   :  { %15075 = vmatprep.mubr.f32.mxu1 %v9573_v52 }
 0xa68   :  { %15076 = vmatmul.mubr.f32.vlgmr.msra.gmra.mrb[0].mxu1 %v9574_v51 }
 0xa69   :  { %15078 = vmatprep.mubr.f32.mxu1 %v9575_v5 }
 0xa6c   :  { %15079 = vmatmul.mubr.f32.gmra.mrb[2].mxu1 %v9576_v11 }
 0xa6d   :  { %15081 = vmatprep.mubr.f32.mxu1 %v9577_v0 }
 0xa70   :  { %15082 = vmatmul.mubr.f32.gmra.mrb[4].mxu1 %v9578_v38 }
 0xa71   :  { %15084 = vmatprep.mubr.f32.mxu1 %v9579_v1 }
 0xa74   :  { %15085 = vmatmul.mubr.f32.gmra.mrb[6].mxu1 %v9580_v21 }
 0xa75   :  { %15087 = vmatprep.mubr.f32.mxu1 %v9581_v46 }
 0xa78   :  { %15088 = vmatmul.mubr.f32.gmra.mrb[8].mxu1 %v9582_v10 }
 0xa79   :  { %15090 = vmatprep.mubr.f32.mxu1 %v9583_v28 }
 0xa7c   :  { %15091 = vmatmul.mubr.f32.gmra.mrb[10].mxu1 %v9584_v57 }
 0xa7d   :  { %15093 = vmatprep.mubr.f32.mxu1 %v9585_v49 }
 0xa80   :  { %15094 = vmatmul.mubr.f32.gmra.mrb[12].mxu1 %v9586_v7 }
 0xa81   :  { %15096 = vmatprep.mubr.f32.mxu1 %v9587_v62 }
 0xa84   :  { %15097 = vmatmul.mubr.f32.gmra.mrb[14].mxu1 %v9588_v29 }
 0xa85   :  { %15099 = vmatprep.mubr.f32.mxu1 %v9589_v31 }
 0xa88   :  { %15100 = vmatmul.mubr.f32.gmra.mrb[16].mxu1 %v9590_v47 }
 0xa89   :  { %15102 = vmatprep.mubr.f32.mxu1 %v9591_v16 }
 0xa8c   :  { %15103 = vmatmul.mubr.f32.gmra.mrb[18].mxu1 %v9592_v4 }
 0xa8d   :  { %15105 = vmatprep.mubr.f32.mxu1 %v9593_v15 }
 0xa90   :  { %15106 = vmatmul.mubr.f32.gmra.mrb[20].mxu1 %v9594_v54 }
 0xa91   :  { %15108 = vmatprep.mubr.f32.mxu1 %v9595_v13 }
 0xa94   :  { %15109 = vmatmul.mubr.f32.gmra.mrb[22].mxu1 %v9596_v19 }
 0xa95   :  { %15111 = vmatprep.mubr.f32.mxu1 %v9597_v56 }
 0xa98   :  { %15112 = vmatmul.mubr.f32.gmra.mrb[24].mxu1 %v9598_v53 }
 0xa99   :  { %15114 = vmatprep.mubr.f32.mxu1 %v9599_v2 }
 0xa9c   :  { %15115 = vmatmul.mubr.f32.gmra.mrb[26].mxu1 %v9600_v8 }
 0xa9d   :  { %15117 = vmatprep.mubr.f32.mxu1 %v21959_v33  ;;  %v9612_v33 = vld [vmem:[#allocation2 + $0x232] sm:$0xff] }
 0xaa0   :  { %15118 = vmatmul.mubr.f32.gmra.mrb[28].mxu1 %v24568_v26 }
 0xaa1   :  { %15120 = vmatprep.mubr.f32.mxu1 %v9603_v9 }
 0xaa4   :  { %15121 = vmatmul.mubr.f32.gmra.mrb[30].mxu1 %v9604_v20 }
 0xaa5   :  { %15123 = vmatprep.mubr.f32.mxu1 %v9605_v24 }
 0xaa8   :  { %15124 = vmatmul.mubr.f32.gmra.mrb[32].mxu1 %v9606_v17 }
 0xaa9   :  { %15126 = vmatprep.mubr.f32.mxu1 %v9607_v30 }
 0xaac   :  { %15127 = vmatmul.mubr.f32.gmra.mrb[34].mxu1 %v9608_v18 }
 0xaad   :  { %15129 = vmatprep.mubr.f32.mxu1 %v9609_v34 }
 0xab0   :  { %15130 = vmatmul.mubr.f32.gmra.mrb[36].mxu1 %v9610_v44 }
 0xab1   :  { %15132 = vmatprep.mubr.f32.mxu1 %v9611_v27 }
 0xab4   :  { %15133 = vmatmul.mubr.f32.gmra.mrb[38].mxu1 %v9612_v33 }
 0xab5   :  { %15135 = vmatprep.mubr.f32.mxu1 %v9613_v3 }
 0xab8   :  { %15136 = vmatmul.mubr.f32.gmra.mrb[40].mxu1 %v9614_v60 }
 0xab9   :  { %15138 = vmatprep.mubr.f32.mxu1 %v9615_v59 }
 0xabc   :  { %15139 = vmatmul.mubr.f32.gmra.mrb[42].mxu1 %v9616_v40 }
 0xabd   :  { %15141 = vmatprep.mubr.f32.mxu1 %v9617_v50 }
 0xac0   :  { %15142 = vmatmul.mubr.f32.gmra.mrb[44].mxu1 %v9618_v61 }
 0xac1   :  { %15144 = vmatprep.mubr.f32.mxu1 %v9619_v39 }
 0xac4   :  { %15145 = vmatmul.mubr.f32.gmra.mrb[46].mxu1 %v9620_v37 }
 0xac5   :  { %15147 = vmatprep.mubr.f32.mxu1 %v9621_v14 }
 0xac8   :  { %15148 = vmatmul.mubr.f32.gmra.mrb[48].mxu1 %v9622_v45 }
 0xac9   :  { %15150 = vmatprep.mubr.f32.mxu1 %v9623_v25 }
 0xacc   :  { %15151 = vmatmul.mubr.f32.gmra.mrb[50].mxu1 %v9624_v32 }
 0xacd   :  { %15153 = vmatprep.mubr.f32.mxu1 %v9625_v12 }
 0xad0   :  { %15154 = vmatmul.mubr.f32.gmra.mrb[52].mxu1 %v9626_v63 }
 0xad1   :  { %15156 = vmatprep.mubr.f32.mxu1 %v9627_v48 }
 0xad4   :  { %15157 = vmatmul.mubr.f32.gmra.mrb[54].mxu1 %v9628_v6 }
 0xad5   :  { %15159 = vmatprep.mubr.f32.mxu1 %v9629_v23 }
 0xad8   :  { %15160 = vmatmul.mubr.f32.gmra.mrb[56].mxu1 %v9630_v41 }
 0xad9   :  { %15162 = vmatprep.mubr.f32.mxu1 %v9631_v43 }
 0xadc   :  { %15163 = vmatmul.mubr.f32.gmra.mrb[58].mxu1 %v9632_v42 }
 0xadd   :  { %15165 = vmatprep.mubr.f32.mxu1 %v21995_v58 }
 0xae0   :  { %15166 = vmatmul.mubr.f32.gmra.mrb[60].mxu1 %v24569_v22 }
 0xae1   :  { %15168 = vmatprep.mubr.f32.mxu1 %v9635_v36 }
 0xae4   :  { %15169 = vmatmul.mubr.f32.gmra.mrb[62].mxu1 %v9636_v55 }
 0xb3b   :  { %v15077_v52 = vpop.f32.mrb[0].mxu1 }
 0xb3c   :  { %v9720_v51 = vpop.f32.mrb[1].mxu1  ;;  %v22176_v5 = vadd.f32 %v15077_v52, %v22173_v35 }
 0xb3d   :  { %v22179_v11 = vadd.f32 %v22173_v35, %v9720_v51 }
 0xb3f   :  { %v15080_v58 = vpop.f32.mrb[2].mxu1  ;;  %v10175_v38 = vadd.f32 %v22176_v5, %v22179_v11 }
 0xb40   :  { %v9730_v0 = vpop.f32.mrb[3].mxu1  ;;  %v22187_v21 = vadd.f32 %v15080_v58, %v22173_v35 }
 0xb41   :  { %v22184_v1 = vadd.f32 %v22173_v35, %v9730_v0 }
 0xb43   :  { %v10176_v46 = vadd.f32 %v10175_v38, %v22184_v1  ;;  %v15083_v10 = vpop.f32.mrb[4].mxu1 }
 0xb44   :  { %v9740_v28 = vpop.f32.mrb[5].mxu1  ;;  %v22195_v7 = vadd.f32 %v15083_v10, %v22173_v35 }
 0xb45   :  { %v10177_v57 = vadd.f32 %v10176_v46, %v22187_v21  ;;  %v22192_v49 = vadd.f32 %v22173_v35, %v9740_v28 }
 0xb47   :  { %v10178_v62 = vadd.f32 %v10177_v57, %v22192_v49  ;;  %v15086_v29 = vpop.f32.mrb[6].mxu1 }
 0xb48   :  { %v9750_v31 = vpop.f32.mrb[7].mxu1  ;;  %v22203_v4 = vadd.f32 %v15086_v29, %v22173_v35 }
 0xb49   :  { %v22199_v47 = vadd.f32 %v22173_v35, %v9750_v31  ;;  %v10179_v16 = vadd.f32 %v10178_v62, %v22195_v7 }
 0xb4b   :  { %v10180_v15 = vadd.f32 %v10179_v16, %v22199_v47  ;;  %v15089_v54 = vpop.f32.mrb[8].mxu1 }
 0xb4c   :  { %v9760_v13 = vpop.f32.mrb[9].mxu1  ;;  %v22211_v53 = vadd.f32 %v15089_v54, %v22173_v35 }
 0xb4d   :  { %v22207_v19 = vadd.f32 %v22173_v35, %v9760_v13  ;;  %v10181_v56 = vadd.f32 %v10180_v15, %v22203_v4 }
 0xb4f   :  { %v10182_v2 = vadd.f32 %v10181_v56, %v22207_v19  ;;  %v15092_v8 = vpop.f32.mrb[10].mxu1 }
 0xb50   :  { %v9770_v9 = vpop.f32.mrb[11].mxu1  ;;  %v22219_v24 = vadd.f32 %v15092_v8, %v22173_v35 }
 0xb51   :  { %v22215_v26 = vadd.f32 %v22173_v35, %v9770_v9  ;;  %v10183_v20 = vadd.f32 %v10182_v2, %v22211_v53 }
 0xb53   :  { %v10184_v17 = vadd.f32 %v10183_v20, %v22215_v26  ;;  %v15095_v30 = vpop.f32.mrb[12].mxu1 }
 0xb54   :  { %v9780_v18 = vpop.f32.mrb[13].mxu1  ;;  %v22227_v27 = vadd.f32 %v15095_v30, %v22173_v35 }
 0xb55   :  { %v22223_v34 = vadd.f32 %v22173_v35, %v9780_v18  ;;  %v10185_v44 = vadd.f32 %v10184_v17, %v22219_v24 }
 0xb57   :  { %v10186_v33 = vadd.f32 %v10185_v44, %v22223_v34  ;;  %v15098_v3 = vpop.f32.mrb[14].mxu1 }
 0xb58   :  { %v9790_v60 = vpop.f32.mrb[15].mxu1  ;;  %v22235_v50 = vadd.f32 %v15098_v3, %v22173_v35 }
 0xb59   :  { %v22231_v59 = vadd.f32 %v22173_v35, %v9790_v60  ;;  %v10187_v40 = vadd.f32 %v10186_v33, %v22227_v27 }
 0xb5b   :  { %v10188_v61 = vadd.f32 %v10187_v40, %v22231_v59  ;;  %v15101_v39 = vpop.f32.mrb[16].mxu1 }
 0xb5c   :  { %v9800_v37 = vpop.f32.mrb[17].mxu1  ;;  %v22243_v25 = vadd.f32 %v15101_v39, %v22173_v35 }
 0xb5d   :  { %v22239_v14 = vadd.f32 %v22173_v35, %v9800_v37  ;;  %v10189_v45 = vadd.f32 %v10188_v61, %v22235_v50 }
 0xb5f   :  { %v10190_v32 = vadd.f32 %v10189_v45, %v22239_v14  ;;  %v15104_v12 = vpop.f32.mrb[18].mxu1 }
 0xb60   :  { %v9810_v63 = vpop.f32.mrb[19].mxu1  ;;  %v22251_v23 = vadd.f32 %v15104_v12, %v22173_v35 }
 0xb61   :  { %v22247_v48 = vadd.f32 %v22173_v35, %v9810_v63  ;;  %v10191_v6 = vadd.f32 %v10190_v32, %v22243_v25 }
 0xb63   :  { %v10192_v41 = vadd.f32 %v10191_v6, %v22247_v48  ;;  %v15107_v43 = vpop.f32.mrb[20].mxu1 }
 0xb64   :  { %v9820_v42 = vpop.f32.mrb[21].mxu1  ;;  %v22259_v55 = vadd.f32 %v15107_v43, %v22173_v35 }
 0xb65   :  { %v22255_v36 = vadd.f32 %v22173_v35, %v9820_v42  ;;  %v10193_v22 = vadd.f32 %v10192_v41, %v22251_v23 }
 0xb67   :  { %v10194_v52 = vadd.f32 %v10193_v22, %v22255_v36  ;;  %v15110_v51 = vpop.f32.mrb[22].mxu1 }
 0xb68   :  { %v9830_v58 = vpop.f32.mrb[23].mxu1  ;;  %v22267_v46 = vadd.f32 %v15110_v51, %v22173_v35 }
 0xb69   :  { %v22263_v0 = vadd.f32 %v22173_v35, %v9830_v58  ;;  %v10195_v38 = vadd.f32 %v10194_v52, %v22259_v55 }
 0xb6b   :  { %v10196_v10 = vadd.f32 %v10195_v38, %v22263_v0  ;;  %v15113_v28 = vpop.f32.mrb[24].mxu1 }
 0xb6c   :  { %v9840_v57 = vpop.f32.mrb[25].mxu1  ;;  %v22275_v31 = vadd.f32 %v15113_v28, %v22173_v35 }
 0xb6d   :  { %v22271_v62 = vadd.f32 %v22173_v35, %v9840_v57  ;;  %v10197_v29 = vadd.f32 %v10196_v10, %v22267_v46 }
 0xb6f   :  { %v10198_v16 = vadd.f32 %v10197_v29, %v22271_v62  ;;  %v15116_v15 = vpop.f32.mrb[26].mxu1 }
 0xb70   :  { %v9850_v54 = vpop.f32.mrb[27].mxu1  ;;  %v22283_v2 = vadd.f32 %v15116_v15, %v22173_v35 }
 0xb71   :  { %v22279_v13 = vadd.f32 %v22173_v35, %v9850_v54  ;;  %v10199_v56 = vadd.f32 %v10198_v16, %v22275_v31 }
 0xb73   :  { %v10200_v8 = vadd.f32 %v10199_v56, %v22279_v13  ;;  %v15119_v9 = vpop.f32.mrb[28].mxu1 }
 0xb74   :  { %v9860_v20 = vpop.f32.mrb[29].mxu1  ;;  %v22291_v18 = vadd.f32 %v15119_v9, %v22173_v35 }
 0xb75   :  { %v22287_v17 = vadd.f32 %v22173_v35, %v9860_v20  ;;  %v10201_v30 = vadd.f32 %v10200_v8, %v22283_v2 }
 0xb76   :  { %24571 = vst [vmem:[#allocation71_spill] sm:$0xff] %v22291_v18 }
 0xb77   :  { %24570 = vst [vmem:[#allocation70_spill] sm:$0xff] %v22287_v17  ;;  %v10202_v44 = vadd.f32 %v10201_v30, %v22287_v17  ;;  %v15122_v33 = vpop.f32.mrb[30].mxu1 }
 0xb78   :  { %v9870_v3 = vpop.f32.mrb[31].mxu1  ;;  %v22299_v61 = vadd.f32 %v15122_v33, %v22173_v35 }
 0xb79   :  { %v22295_v60 = vadd.f32 %v22173_v35, %v9870_v3  ;;  %v10203_v40 = vadd.f32 %v10202_v44, %v22291_v18 }
 0xb7a   :  { %24573 = vst [vmem:[#allocation73_spill] sm:$0xff] %v22299_v61 }
 0xb7b   :  { %24572 = vst [vmem:[#allocation72_spill] sm:$0xff] %v22295_v60  ;;  %v10204_v39 = vadd.f32 %v10203_v40, %v22295_v60  ;;  %v15125_v37 = vpop.f32.mrb[32].mxu1 }
 0xb7c   :  { %v9880_v45 = vpop.f32.mrb[33].mxu1  ;;  %v22307_v63 = vadd.f32 %v15125_v37, %v22173_v35 }
 0xb7d   :  { %v22303_v32 = vadd.f32 %v22173_v35, %v9880_v45  ;;  %v10205_v12 = vadd.f32 %v10204_v39, %v22299_v61 }
 0xb7e   :  { %24575 = vst [vmem:[#allocation10_spill] sm:$0xff] %v22307_v63 }
 0xb7f   :  { %24574 = vst [vmem:[#allocation9_spill] sm:$0xff] %v22303_v32  ;;  %v10206_v6 = vadd.f32 %v10205_v12, %v22303_v32  ;;  %v15128_v41 = vpop.f32.mrb[34].mxu1 }
 0xb80   :  { %v9890_v43 = vpop.f32.mrb[35].mxu1  ;;  %v22315_v52 = vadd.f32 %v15128_v41, %v22173_v35 }
 0xb81   :  { %v22311_v42 = vadd.f32 %v22173_v35, %v9890_v43  ;;  %v10207_v22 = vadd.f32 %v10206_v6, %v22307_v63 }
 0xb82   :  { %24577 = vst [vmem:[#allocation12_spill] sm:$0xff] %v22315_v52 }
 0xb83   :  { %24576 = vst [vmem:[#allocation11_spill] sm:$0xff] %v22311_v42  ;;  %v10208_v51 = vadd.f32 %v10207_v22, %v22311_v42  ;;  %v15131_v58 = vpop.f32.mrb[36].mxu1 }
 0xb84   :  { %v9900_v38 = vpop.f32.mrb[37].mxu1  ;;  %v22323_v57 = vadd.f32 %v15131_v58, %v22173_v35 }
 0xb85   :  { %v22319_v10 = vadd.f32 %v22173_v35, %v9900_v38  ;;  %v10209_v28 = vadd.f32 %v10208_v51, %v22315_v52 }
 0xb86   :  { %24579 = vst [vmem:[#allocation14_spill] sm:$0xff] %v22323_v57 }
 0xb87   :  { %24578 = vst [vmem:[#allocation13_spill] sm:$0xff] %v22319_v10  ;;  %v10210_v29 = vadd.f32 %v10209_v28, %v22319_v10  ;;  %v15134_v16 = vpop.f32.mrb[38].mxu1 }
 0xb88   :  { %v9910_v15 = vpop.f32.mrb[39].mxu1  ;;  %v22331_v8 = vadd.f32 %v15134_v16, %v22173_v35 }
 0xb89   :  { %v22327_v54 = vadd.f32 %v22173_v35, %v9910_v15  ;;  %v10211_v56 = vadd.f32 %v10210_v29, %v22323_v57 }
 0xb8a   :  { %24581 = vst [vmem:[#allocation16_spill] sm:$0xff] %v22331_v8 }
 0xb8b   :  { %24580 = vst [vmem:[#allocation15_spill] sm:$0xff] %v22327_v54  ;;  %v10212_v9 = vadd.f32 %v10211_v56, %v22327_v54  ;;  %v15137_v20 = vpop.f32.mrb[40].mxu1 }
 0xb8c   :  { %v9920_v30 = vpop.f32.mrb[41].mxu1  ;;  %v22339_v3 = vadd.f32 %v15137_v20, %v22173_v35 }
 0xb8d   :  { %v22335_v44 = vadd.f32 %v22173_v35, %v9920_v30  ;;  %v10213_v33 = vadd.f32 %v10212_v9, %v22331_v8 }
 0xb8e   :  { %24583 = vst [vmem:[#allocation18_spill] sm:$0xff] %v22339_v3 }
 0xb8f   :  { %24582 = vst [vmem:[#allocation17_spill] sm:$0xff] %v22335_v44  ;;  %v10214_v40 = vadd.f32 %v10213_v33, %v22335_v44  ;;  %v15140_v39 = vpop.f32.mrb[42].mxu1 }
 0xb90   :  { %v9930_v37 = vpop.f32.mrb[43].mxu1  ;;  %v22347_v6 = vadd.f32 %v15140_v39, %v22173_v35 }
 0xb91   :  { %v22343_v45 = vadd.f32 %v22173_v35, %v9930_v37  ;;  %v10215_v12 = vadd.f32 %v10214_v40, %v22339_v3 }
 0xb92   :  { %24585 = vst [vmem:[#allocation20_spill] sm:$0xff] %v22347_v6 }
 0xb93   :  { %24584 = vst [vmem:[#allocation19_spill] sm:$0xff] %v22343_v45  ;;  %v10216_v41 = vadd.f32 %v10215_v12, %v22343_v45  ;;  %v15143_v43 = vpop.f32.mrb[44].mxu1 }
 0xb94   :  { %v9940_v22 = vpop.f32.mrb[45].mxu1  ;;  %v22355_v38 = vadd.f32 %v15143_v43, %v22173_v35 }
 0xb95   :  { %v22351_v51 = vadd.f32 %v22173_v35, %v9940_v22  ;;  %v10217_v58 = vadd.f32 %v10216_v41, %v22347_v6 }
 0xb97   :  { %24586 = vst [vmem:[#allocation21_spill] sm:$0xff] %v22351_v51  ;;  %v10218_v28 = vadd.f32 %v10217_v58, %v22351_v51  ;;  %v15146_v29 = vpop.f32.mrb[46].mxu1 }
 0xb98   :  { %v9950_v16 = vpop.f32.mrb[47].mxu1  ;;  %v10156_v9 = vadd.f32 %v15146_v29, %v22173_v35 }
 0xb99   :  { %v10155_v15 = vadd.f32 %v22173_v35, %v9950_v16  ;;  %v10219_v56 = vadd.f32 %v10218_v28, %v22355_v38 }
 0xb9b   :  { %v10220_v20 = vadd.f32 %v10219_v56, %v10155_v15  ;;  %v15149_v30 = vpop.f32.mrb[48].mxu1 }
 0xb9c   :  { %v9960_v33 = vpop.f32.mrb[49].mxu1  ;;  %v10158_v37 = vadd.f32 %v15149_v30, %v22173_v35 }
 0xb9d   :  { %v10157_v40 = vadd.f32 %v22173_v35, %v9960_v33  ;;  %v10221_v39 = vadd.f32 %v10220_v20, %v10156_v9 }
 0xb9f   :  { %v10222_v12 = vadd.f32 %v10221_v39, %v10157_v40  ;;  %v15152_v41 = vpop.f32.mrb[50].mxu1 }
 0xba0   :  { %v9970_v43 = vpop.f32.mrb[51].mxu1  ;;  %v10160_v16 = vadd.f32 %v15152_v41, %v22173_v35 }
 0xba1   :  { %v10159_v22 = vadd.f32 %v22173_v35, %v9970_v43  ;;  %v10223_v58 = vadd.f32 %v10222_v12, %v10158_v37 }
 0xba3   :  { %v10224_v51 = vadd.f32 %v10223_v58, %v10159_v22  ;;  %v15155_v28 = vpop.f32.mrb[52].mxu1 }
 0xba4   :  { %v9980_v6 = vpop.f32.mrb[53].mxu1  ;;  %v10162_v45 = vadd.f32 %v15155_v28, %v22173_v35 }
 0xba5   :  { %v10161_v29 = vadd.f32 %v22173_v35, %v9980_v6  ;;  %v10225_v56 = vadd.f32 %v10224_v51, %v10160_v16 }
 0xba7   :  { %v10226_v33 = vadd.f32 %v10225_v56, %v10161_v29  ;;  %v15158_v20 = vpop.f32.mrb[54].mxu1 }
 0xba8   :  { %v9990_v3 = vpop.f32.mrb[55].mxu1  ;;  %v10164_v44 = vadd.f32 %v15158_v20, %v22173_v35 }
 0xba9   :  { %v10163_v30 = vadd.f32 %v22173_v35, %v9990_v3  ;;  %v10227_v39 = vadd.f32 %v10226_v33, %v10162_v45 }
 0xbab   :  { %v10228_v43 = vadd.f32 %v10227_v39, %v10163_v30  ;;  %v15161_v12 = vpop.f32.mrb[56].mxu1 }
 0xbac   :  { %v10000_v8 = vpop.f32.mrb[57].mxu1  ;;  %v10166_v54 = vadd.f32 %v15161_v12, %v22173_v35 }
 0xbad   :  { %v10165_v41 = vadd.f32 %v22173_v35, %v10000_v8  ;;  %v10229_v58 = vadd.f32 %v10228_v43, %v10164_v44 }
 0xbaf   :  { %v10230_v6 = vadd.f32 %v10229_v58, %v10165_v41  ;;  %v15164_v51 = vpop.f32.mrb[58].mxu1 }
 0xbb0   :  { %v10010_v57 = vpop.f32.mrb[59].mxu1  ;;  %v10168_v10 = vadd.f32 %v15164_v51, %v22173_v35 }
 0xbb1   :  { %v10167_v28 = vadd.f32 %v22173_v35, %v10010_v57  ;;  %v10231_v56 = vadd.f32 %v10230_v6, %v10166_v54 }
 0xbb3   :  { %v10232_v3 = vadd.f32 %v10231_v56, %v10167_v28  ;;  %v15167_v33 = vpop.f32.mrb[60].mxu1 }
 0xbb4   :  { %v10020_v52 = vpop.f32.mrb[61].mxu1  ;;  %v10170_v42 = vadd.f32 %v15167_v33, %v22173_v35 }
 0xbb5   :  { %v10169_v20 = vadd.f32 %v22173_v35, %v10020_v52  ;;  %v10233_v39 = vadd.f32 %v10232_v3, %v10168_v10 }
 0xbb7   :  { %v10234_v8 = vadd.f32 %v10233_v39, %v10169_v20  ;;  %v15170_v43 = vpop.f32.mrb[62].mxu1 }
 0xbb8   :  { %v10030_v63 = vpop.f32.mrb[63].mxu1  ;;  %v10172_v32 = vadd.f32 %v15170_v43, %v22173_v35 }
 0xbb9   :  { %v10171_v12 = vadd.f32 %v22173_v35, %v10030_v63  ;;  %v10235_v58 = vadd.f32 %v10234_v8, %v10170_v42 }
 0xbbb   :  { %v10236_v57 = vadd.f32 %v10235_v58, %v10171_v12 }
 0xbbd   :  { %v10237_v6 = vadd.f32 %v10236_v57, %v10172_v32 }
 0xbbf   :  { %v10238_v61 = vrot.slane %v10237_v6, 4 }
 0xbc1   :  { %v10239_v51 = vadd.f32 %v10238_v61, %v10237_v6 }
 0xbc3   :  { %v10240_v56 = vrot.slane %v10239_v51, 2 }
 0xbc5   :  { %v10241_v60 = vadd.f32 %v10240_v56, %v10239_v51 }
 0xbc7   :  { %v10242_v18 = vrot.slane %v10241_v60, 1 }
 0xbc9   :  { %v10243_v17 = vadd.f32 %v10242_v18, %v10241_v60 }
 0xbcb   :  { %v22377_v52 = vmul.f32 0.001953125, %v10243_v17 }
 0xbcd   :  { %v22381_v3 = vsub.f32 %v22355_v38, %v22377_v52  ;;  %v22384_v33 = vsub.f32 %v10155_v15, %v22377_v52  ;;  %v22387_v63 = vsub.f32 %v10156_v9, %v22377_v52  ;;  %v22390_v35 = vsub.f32 %v10157_v40, %v22377_v52 }
 0xbce   :  { %v22393_v61 = vsub.f32 %v10158_v37, %v22377_v52  ;;  %v22396_v18 = vsub.f32 %v10159_v22, %v22377_v52  ;;  %v22399_v17 = vsub.f32 %v10160_v16, %v22377_v52  ;;  %v22402_v60 = vsub.f32 %v10161_v29, %v22377_v52 }
 0xbcf   :  { %v22405_v38 = vsub.f32 %v10162_v45, %v22377_v52  ;;  %v22408_v15 = vsub.f32 %v10163_v30, %v22377_v52  ;;  %v22411_v9 = vsub.f32 %v10164_v44, %v22377_v52  ;;  %v22414_v40 = vsub.f32 %v10165_v41, %v22377_v52 }
 0xbd0   :  { %v22417_v37 = vsub.f32 %v10166_v54, %v22377_v52  ;;  %v22420_v22 = vsub.f32 %v10167_v28, %v22377_v52  ;;  %v22423_v16 = vsub.f32 %v10168_v10, %v22377_v52  ;;  %v22426_v45 = vsub.f32 %v10169_v20, %v22377_v52 }
 0xbd1   :  { %v22429_v29 = vsub.f32 %v10170_v42, %v22377_v52  ;;  %v22432_v44 = vsub.f32 %v10171_v12, %v22377_v52  ;;  %v22435_v30 = vsub.f32 %v10172_v32, %v22377_v52  ;;  %v22439_v54 = vsub.f32 %v22179_v11, %v22377_v52 }
 0xbd2   :  { %24587 = vst [vmem:[#allocation22_spill] sm:$0xff] %v22417_v37  ;;  %24588 = vst [vmem:[#allocation23_spill] sm:$0xff] %v22420_v22  ;;  %v22443_v10 = vsub.f32 %v22176_v5, %v22377_v52  ;;  %v22447_v41 = vsub.f32 %v22184_v1, %v22377_v52  ;;  %v22455_v32 = vsub.f32 %v22187_v21, %v22377_v52 }
 0xbd3   :  { %24589 = vst [vmem:[#allocation24_spill] sm:$0xff] %v22423_v16  ;;  %24590 = vst [vmem:[#allocation25_spill] sm:$0xff] %v22426_v45  ;;  %v10309_v42 = vmul.f32 %v22439_v54, %v22439_v54  ;;  %v22459_v11 = vsub.f32 %v22192_v49, %v22377_v52  ;;  %v22465_v1 = vsub.f32 %v22195_v7, %v22377_v52 }
 0xbd4   :  { %24591 = vst [vmem:[#allocation26_spill] sm:$0xff] %v22429_v29  ;;  %v10310_v28 = vmul.f32 %v22443_v10, %v22443_v10  ;;  %v10311_v5 = vmul.f32 %v22447_v41, %v22447_v41  ;;  %v10312_v39 = vmul.f32 %v22455_v32, %v22455_v32  ;;  %v22471_v21 = vsub.f32 %v22199_v47, %v22377_v52 }
 0xbd5   :  { %v10313_v49 = vmul.f32 %v22459_v11, %v22459_v11  ;;  %v22477_v12 = vsub.f32 %v22203_v4, %v22377_v52  ;;  %v10314_v7 = vmul.f32 %v22465_v1, %v22465_v1  ;;  %v22483_v57 = vsub.f32 %v22207_v19, %v22377_v52 }
 0xbd6   :  { %v10373_v20 = vadd.f32 %v10310_v28, %v10309_v42  ;;  %v10315_v47 = vmul.f32 %v22471_v21, %v22471_v21  ;;  %v22489_v51 = vsub.f32 %v22211_v53, %v22377_v52  ;;  %v22495_v42 = vsub.f32 %v22215_v26, %v22377_v52 }
 0xbd7   :  { %v10316_v4 = vmul.f32 %v22477_v12, %v22477_v12  ;;  %v10317_v19 = vmul.f32 %v22483_v57, %v22483_v57 }
 0xbd8   :  { %v10374_v8 = vadd.f32 %v10373_v20, %v10311_v5  ;;  %v22501_v5 = vsub.f32 %v22219_v24, %v22377_v52  ;;  %v10318_v53 = vmul.f32 %v22489_v51, %v22489_v51  ;;  %v10319_v26 = vmul.f32 %v22495_v42, %v22495_v42 }
 0xbda   :  { %v10375_v43 = vadd.f32 %v10374_v8, %v10312_v39  ;;  %v22507_v39 = vsub.f32 %v22223_v34, %v22377_v52  ;;  %v10320_v24 = vmul.f32 %v22501_v5, %v22501_v5 }
 0xbdc   :  { %v10376_v58 = vadd.f32 %v10375_v43, %v10313_v49  ;;  %v22513_v49 = vsub.f32 %v22227_v27, %v22377_v52  ;;  %v10321_v34 = vmul.f32 %v22507_v39, %v22507_v39 }
 0xbde   :  { %v10377_v6 = vadd.f32 %v10376_v58, %v10314_v7  ;;  %v22519_v7 = vsub.f32 %v22231_v59, %v22377_v52  ;;  %v10322_v27 = vmul.f32 %v22513_v49, %v22513_v49 }
 0xbe0   :  { %v10378_v56 = vadd.f32 %v10377_v6, %v10315_v47  ;;  %v22525_v47 = vsub.f32 %v22235_v50, %v22377_v52  ;;  %v10323_v59 = vmul.f32 %v22519_v7, %v22519_v7 }
 0xbe2   :  { %v10379_v28 = vadd.f32 %v10378_v56, %v10316_v4  ;;  %v22531_v4 = vsub.f32 %v22239_v14, %v22377_v52  ;;  %v10324_v50 = vmul.f32 %v22525_v47, %v22525_v47 }
 0xbe4   :  { %v10380_v20 = vadd.f32 %v10379_v28, %v10317_v19  ;;  %v22537_v19 = vsub.f32 %v22243_v25, %v22377_v52  ;;  %v10325_v14 = vmul.f32 %v22531_v4, %v22531_v4 }
 0xbe6   :  { %v10381_v8 = vadd.f32 %v10380_v20, %v10318_v53  ;;  %v22543_v53 = vsub.f32 %v22247_v48, %v22377_v52  ;;  %v10326_v25 = vmul.f32 %v22537_v19, %v22537_v19 }
 0xbe8   :  { %v10382_v43 = vadd.f32 %v10381_v8, %v10319_v26  ;;  %v22549_v26 = vsub.f32 %v22251_v23, %v22377_v52  ;;  %v10327_v48 = vmul.f32 %v22543_v53, %v22543_v53 }
 0xbea   :  { %v10383_v58 = vadd.f32 %v10382_v43, %v10320_v24  ;;  %v22555_v24 = vsub.f32 %v22255_v36, %v22377_v52  ;;  %v10328_v23 = vmul.f32 %v22549_v26, %v22549_v26 }
 0xbec   :  { %v10384_v6 = vadd.f32 %v10383_v58, %v10321_v34  ;;  %v22561_v34 = vsub.f32 %v22259_v55, %v22377_v52  ;;  %v10329_v36 = vmul.f32 %v22555_v24, %v22555_v24 }
 0xbee   :  { %v10385_v56 = vadd.f32 %v10384_v6, %v10322_v27  ;;  %v22567_v27 = vsub.f32 %v22263_v0, %v22377_v52  ;;  %v10330_v55 = vmul.f32 %v22561_v34, %v22561_v34 }
 0xbf0   :  { %v10386_v28 = vadd.f32 %v10385_v56, %v10323_v59  ;;  %v22573_v59 = vsub.f32 %v22267_v46, %v22377_v52  ;;  %v10331_v0 = vmul.f32 %v22567_v27, %v22567_v27 }
 0xbf2   :  { %v10387_v20 = vadd.f32 %v10386_v28, %v10324_v50  ;;  %v22579_v50 = vsub.f32 %v22271_v62, %v22377_v52  ;;  %v10332_v46 = vmul.f32 %v22573_v59, %v22573_v59 }
 0xbf4   :  { %v10388_v8 = vadd.f32 %v10387_v20, %v10325_v14  ;;  %v22585_v14 = vsub.f32 %v22275_v31, %v22377_v52  ;;  %v10333_v62 = vmul.f32 %v22579_v50, %v22579_v50 }
 0xbf6   :  { %v10389_v43 = vadd.f32 %v10388_v8, %v10326_v25  ;;  %v22591_v25 = vsub.f32 %v22279_v13, %v22377_v52  ;;  %v10334_v31 = vmul.f32 %v22585_v14, %v22585_v14 }
 0xbf8   :  { %v10390_v58 = vadd.f32 %v10389_v43, %v10327_v48  ;;  %v22597_v48 = vsub.f32 %v22283_v2, %v22377_v52  ;;  %v10335_v13 = vmul.f32 %v22591_v25, %v22591_v25 }
 0xbfa   :  { %v10391_v6 = vadd.f32 %v10390_v58, %v10328_v23  ;;  %v24592_v23 = vld [vmem:[#allocation70_spill] sm:$0xff]  ;;  %v10336_v2 = vmul.f32 %v22597_v48, %v22597_v48 }
 0xbfb   :  { %v22603_v58 = vsub.f32 %v24592_v23, %v22377_v52  ;;  %v24600_v23 = vld [vmem:[#allocation9_spill] sm:$0xff] }
 0xbfc   :  { %v10392_v56 = vadd.f32 %v10391_v6, %v10329_v36  ;;  %v24594_v6 = vld [vmem:[#allocation71_spill] sm:$0xff] }
 0xbfd   :  { %24593 = vst [vmem:[#allocation30_spill] sm:$0xff] %v22603_v58 }
 0xbfe   :  { %v10393_v28 = vadd.f32 %v10392_v56, %v10330_v55  ;;  %v22609_v55 = vsub.f32 %v24594_v6, %v22377_v52  ;;  %v22627_v6 = vsub.f32 %v24600_v23, %v22377_v52  ;;  %v24606_v23 = vld [vmem:[#allocation12_spill] sm:$0xff] }
 0xc00   :  { %v10394_v20 = vadd.f32 %v10393_v28, %v10331_v0  ;;  %24595 = vst [vmem:[#allocation31_spill] sm:$0xff] %v22609_v55  ;;  %v24596_v0 = vld [vmem:[#allocation72_spill] sm:$0xff]  ;;  %24601 = vst [vmem:[#allocation34_spill] sm:$0xff] %v22627_v6 }
 0xc01   :  { %v22615_v28 = vsub.f32 %v24596_v0, %v22377_v52  ;;  %v24602_v0 = vld [vmem:[#allocation10_spill] sm:$0xff] }
 0xc02   :  { %v10395_v8 = vadd.f32 %v10394_v20, %v10332_v46  ;;  %v10337_v46 = vmul.f32 %v22603_v58, %v22603_v58  ;;  %v22633_v58 = vsub.f32 %v24602_v0, %v22377_v52  ;;  %v24608_v0 = vld [vmem:[#allocation13_spill] sm:$0xff] }
 0xc03   :  { %24597 = vst [vmem:[#allocation32_spill] sm:$0xff] %v22615_v28 }
 0xc04   :  { %v10396_v43 = vadd.f32 %v10395_v8, %v10333_v62  ;;  %v24598_v62 = vld [vmem:[#allocation73_spill] sm:$0xff]  ;;  %24603 = vst [vmem:[#allocation35_spill] sm:$0xff] %v22633_v58 }
 0xc05   :  { %v22621_v8 = vsub.f32 %v24598_v62, %v22377_v52  ;;  %v24604_v62 = vld [vmem:[#allocation11_spill] sm:$0xff] }
 0xc06   :  { %v10397_v36 = vadd.f32 %v10396_v43, %v10334_v31  ;;  %v10338_v31 = vmul.f32 %v22609_v55, %v22609_v55  ;;  %v22639_v55 = vsub.f32 %v24604_v62, %v22377_v52  ;;  %v24610_v62 = vld [vmem:[#allocation14_spill] sm:$0xff] }
 0xc07   :  { %24599 = vst [vmem:[#allocation33_spill] sm:$0xff] %v22621_v8 }
 0xc08   :  { %v10398_v56 = vadd.f32 %v10397_v36, %v10335_v13  ;;  %v10339_v13 = vmul.f32 %v22615_v28, %v22615_v28  ;;  %24605 = vst [vmem:[#allocation36_spill] sm:$0xff] %v22639_v55  ;;  %v22645_v28 = vsub.f32 %v24606_v23, %v22377_v52  ;;  %v24612_v23 = vld [vmem:[#allocation15_spill] sm:$0xff] }
 0xc0a   :  { %v10399_v20 = vadd.f32 %v10398_v56, %v10336_v2  ;;  %v10340_v2 = vmul.f32 %v22621_v8, %v22621_v8  ;;  %24607 = vst [vmem:[#allocation37_spill] sm:$0xff] %v22645_v28  ;;  %v22651_v8 = vsub.f32 %v24608_v0, %v22377_v52  ;;  %v24614_v0 = vld [vmem:[#allocation16_spill] sm:$0xff] }
 0xc0c   :  { %v10400_v43 = vadd.f32 %v10399_v20, %v10337_v46  ;;  %v10341_v46 = vmul.f32 %v22627_v6, %v22627_v6  ;;  %24609 = vst [vmem:[#allocation38_spill] sm:$0xff] %v22651_v8  ;;  %v22657_v6 = vsub.f32 %v24610_v62, %v22377_v52  ;;  %v24616_v62 = vld [vmem:[#allocation17_spill] sm:$0xff] }
 0xc0e   :  { %v10401_v36 = vadd.f32 %v10400_v43, %v10338_v31  ;;  %v10342_v31 = vmul.f32 %v22633_v58, %v22633_v58  ;;  %24611 = vst [vmem:[#allocation39_spill] sm:$0xff] %v22657_v6  ;;  %v22663_v58 = vsub.f32 %v24612_v23, %v22377_v52  ;;  %v24617_v23 = vld [vmem:[#allocation18_spill] sm:$0xff] }
 0xc10   :  { %v10402_v56 = vadd.f32 %v10401_v36, %v10339_v13  ;;  %v10343_v13 = vmul.f32 %v22639_v55, %v22639_v55  ;;  %24613 = vst [vmem:[#allocation40_spill] sm:$0xff] %v22663_v58  ;;  %v22669_v55 = vsub.f32 %v24614_v0, %v22377_v52  ;;  %v24619_v0 = vld [vmem:[#allocation19_spill] sm:$0xff] }
 0xc12   :  { %v10403_v20 = vadd.f32 %v10402_v56, %v10340_v2  ;;  %v10344_v2 = vmul.f32 %v22645_v28, %v22645_v28  ;;  %24615 = vst [vmem:[#allocation41_spill] sm:$0xff] %v22669_v55  ;;  %v22675_v28 = vsub.f32 %v24616_v62, %v22377_v52  ;;  %v24620_v62 = vld [vmem:[#allocation20_spill] sm:$0xff] }
 0xc14   :  { %v10404_v43 = vadd.f32 %v10403_v20, %v10341_v46  ;;  %v10345_v46 = vmul.f32 %v22651_v8, %v22651_v8  ;;  %v22681_v8 = vsub.f32 %v24617_v23, %v22377_v52  ;;  %v24621_v23 = vld [vmem:[#allocation21_spill] sm:$0xff] }
 0xc16   :  { %v10405_v36 = vadd.f32 %v10404_v43, %v10342_v31  ;;  %v10346_v31 = vmul.f32 %v22657_v6, %v22657_v6  ;;  %24618 = vst [vmem:[#allocation42_spill] sm:$0xff] %v22681_v8  ;;  %v22687_v6 = vsub.f32 %v24619_v0, %v22377_v52 }
 0xc18   :  { %v10406_v56 = vadd.f32 %v10405_v36, %v10343_v13  ;;  %v10347_v13 = vmul.f32 %v22663_v58, %v22663_v58  ;;  %v22693_v58 = vsub.f32 %v24620_v62, %v22377_v52 }
 0xc1a   :  { %v10407_v20 = vadd.f32 %v10406_v56, %v10344_v2  ;;  %v10348_v2 = vmul.f32 %v22669_v55, %v22669_v55  ;;  %v22699_v55 = vsub.f32 %v24621_v23, %v22377_v52  ;;  %v10352_v0 = vmul.f32 %v22693_v58, %v22693_v58 }
 0xc1b   :  { %v10355_v52 = vmul.f32 %v22384_v33, %v22384_v33  ;;  %v10356_v23 = vmul.f32 %v22387_v63, %v22387_v63 }
 0xc1c   :  { %v10408_v43 = vadd.f32 %v10407_v20, %v10345_v46  ;;  %v10349_v46 = vmul.f32 %v22675_v28, %v22675_v28 }
 0xc1e   :  { %v10409_v36 = vadd.f32 %v10408_v43, %v10346_v31  ;;  %v10350_v31 = vmul.f32 %v22681_v8, %v22681_v8  ;;  %v10354_v8 = vmul.f32 %v22381_v3, %v22381_v3 }
 0xc20   :  { %v10410_v56 = vadd.f32 %v10409_v36, %v10347_v13  ;;  %v10351_v13 = vmul.f32 %v22687_v6, %v22687_v6 }
 0xc22   :  { %v10411_v20 = vadd.f32 %v10410_v56, %v10348_v2  ;;  %v10353_v56 = vmul.f32 %v22699_v55, %v22699_v55 }
 0xc24   :  { %v10412_v43 = vadd.f32 %v10411_v20, %v10349_v46 }
 0xc26   :  { %v10413_v36 = vadd.f32 %v10412_v43, %v10350_v31  ;;  %v10357_v43 = vmul.f32 %v22390_v35, %v22390_v35 }
 0xc28   :  { %v10414_v2 = vadd.f32 %v10413_v36, %v10351_v13  ;;  %v10358_v36 = vmul.f32 %v22393_v61, %v22393_v61 }
 0xc2a   :  { %v10415_v62 = vadd.f32 %v10414_v2, %v10352_v0  ;;  %v10359_v2 = vmul.f32 %v22396_v18, %v22396_v18 }
 0xc2c   :  { %v10416_v46 = vadd.f32 %v10415_v62, %v10353_v56  ;;  %v10360_v62 = vmul.f32 %v22399_v17, %v22399_v17 }
 0xc2e   :  { %v10417_v20 = vadd.f32 %v10416_v46, %v10354_v8  ;;  %v10361_v46 = vmul.f32 %v22402_v60, %v22402_v60 }
 0xc30   :  { %v10418_v31 = vadd.f32 %v10417_v20, %v10355_v52  ;;  %v10362_v20 = vmul.f32 %v22405_v38, %v22405_v38 }
 0xc32   :  { %v10419_v13 = vadd.f32 %v10418_v31, %v10356_v23  ;;  %v10363_v31 = vmul.f32 %v22408_v15, %v22408_v15 }
 0xc34   :  { %v10420_v0 = vadd.f32 %v10419_v13, %v10357_v43  ;;  %v10364_v13 = vmul.f32 %v22411_v9, %v22411_v9 }
 0xc36   :  { %v10421_v56 = vadd.f32 %v10420_v0, %v10358_v36  ;;  %v10365_v0 = vmul.f32 %v22414_v40, %v22414_v40 }
 0xc38   :  { %v10422_v8 = vadd.f32 %v10421_v56, %v10359_v2  ;;  %v10366_v56 = vmul.f32 %v22417_v37, %v22417_v37 }
 0xc3a   :  { %v10423_v52 = vadd.f32 %v10422_v8, %v10360_v62  ;;  %v10367_v8 = vmul.f32 %v22420_v22, %v22420_v22 }
 0xc3c   :  { %v10424_v23 = vadd.f32 %v10423_v52, %v10361_v46  ;;  %v10368_v52 = vmul.f32 %v22423_v16, %v22423_v16 }
 0xc3e   :  { %v10425_v43 = vadd.f32 %v10424_v23, %v10362_v20  ;;  %v10369_v23 = vmul.f32 %v22426_v45, %v22426_v45 }
 0xc40   :  { %v10426_v36 = vadd.f32 %v10425_v43, %v10363_v31  ;;  %v10370_v43 = vmul.f32 %v22429_v29, %v22429_v29 }
 0xc42   :  { %v10427_v2 = vadd.f32 %v10426_v36, %v10364_v13  ;;  %v10371_v36 = vmul.f32 %v22432_v44, %v22432_v44 }
 0xc44   :  { %v10428_v62 = vadd.f32 %v10427_v2, %v10365_v0  ;;  %v10372_v2 = vmul.f32 %v22435_v30, %v22435_v30 }
 0xc46   :  { %v10429_v46 = vadd.f32 %v10428_v62, %v10366_v56 }
 0xc48   :  { %v10430_v20 = vadd.f32 %v10429_v46, %v10367_v8 }
 0xc4a   :  { %v10431_v31 = vadd.f32 %v10430_v20, %v10368_v52 }
 0xc4c   :  { %v10432_v13 = vadd.f32 %v10431_v31, %v10369_v23 }
 0xc4e   :  { %v10433_v0 = vadd.f32 %v10432_v13, %v10370_v43  ;;  %v24623_v43 = vld [vmem:[#allocation31_spill] sm:$0xff]  ;;  %v24624_v13 = vld [vmem:[#allocation32_spill] sm:$0xff] }
 0xc50   :  { %v10434_v56 = vadd.f32 %v10433_v0, %v10371_v36  ;;  %v24625_v36 = vld [vmem:[#allocation33_spill] sm:$0xff]  ;;  %v24626_v0 = vld [vmem:[#allocation34_spill] sm:$0xff] }
 0xc52   :  { %v10435_v62 = vadd.f32 %v10434_v56, %v10372_v2  ;;  %v24627_v2 = vld [vmem:[#allocation35_spill] sm:$0xff] }
 0xc54   :  { %v10436_v22 = vrot.slane %v10435_v62, 4 }
 0xc56   :  { %v10437_v16 = vadd.f32 %v10436_v22, %v10435_v62  ;;  %v24628_v62 = vld [vmem:[#allocation36_spill] sm:$0xff] }
 0xc58   :  { %v10438_v8 = vrot.slane %v10437_v16, 2 }
 0xc5a   :  { %v10439_v46 = vadd.f32 %v10438_v8, %v10437_v16 }
 0xc5c   :  { %v10440_v37 = vrot.slane %v10439_v46, 1 }
 0xc5e   :  { %v10441_v45 = vadd.f32 %v10440_v37, %v10439_v46  ;;  %v24629_v46 = vld [vmem:[#allocation37_spill] sm:$0xff] }
 0xc60   :  { %v10442_v52 = vmul.f32 0.001953125, %v10441_v45 }
 0xc62   :  { %v10443_v20 = vadd.f32 1e-05, %v10442_v52 }
 0xc64   :  { %16774 = vrsqrt.f32 %v10443_v20  ;;  %v24631_v20 = vld [vmem:[#allocation38_spill] sm:$0xff] }
 0xc6e   :  { %v22745_v29 = vpop.eup %16774 }
 0xc6f   :  { %v22749_v23 = vmul.f32 %v22745_v29, %v22439_v54  ;;  %v22753_v31 = vmul.f32 %v22745_v29, %v22443_v10  ;;  %v22757_v22 = vmul.f32 %v22745_v29, %v22447_v41  ;;  %v22761_v37 = vmul.f32 %v22745_v29, %v22455_v32 }
 0xc70   :  { %v22765_v16 = vmul.f32 %v22745_v29, %v22459_v11  ;;  %v22769_v45 = vmul.f32 %v22745_v29, %v22465_v1  ;;  %v22773_v54 = vmul.f32 %v22745_v29, %v22471_v21  ;;  %v22777_v10 = vmul.f32 %v22745_v29, %v22477_v12 }
 0xc71   :  { %v22781_v41 = vmul.f32 %v22745_v29, %v22483_v57  ;;  %v22785_v32 = vmul.f32 %v22745_v29, %v22489_v51  ;;  %v22789_v11 = vmul.f32 %v22745_v29, %v22495_v42  ;;  %v22793_v1 = vmul.f32 %v22745_v29, %v22501_v5 }
 0xc72   :  { %v22797_v21 = vmul.f32 %v22745_v29, %v22507_v39  ;;  %v22801_v12 = vmul.f32 %v22745_v29, %v22513_v49  ;;  %v22805_v57 = vmul.f32 %v22745_v29, %v22519_v7  ;;  %v22809_v51 = vmul.f32 %v22745_v29, %v22525_v47 }
 0xc73   :  { %v22813_v42 = vmul.f32 %v22745_v29, %v22531_v4  ;;  %v22817_v5 = vmul.f32 %v22745_v29, %v22537_v19  ;;  %v22821_v39 = vmul.f32 %v22745_v29, %v22543_v53  ;;  %v22825_v49 = vmul.f32 %v22745_v29, %v22549_v26 }
 0xc74   :  { %v22829_v7 = vmul.f32 %v22745_v29, %v22555_v24  ;;  %v22833_v47 = vmul.f32 %v22745_v29, %v22561_v34  ;;  %v22837_v4 = vmul.f32 %v22745_v29, %v22567_v27  ;;  %v22841_v19 = vmul.f32 %v22745_v29, %v22573_v59  ;;  %v24622_v27 = vld [vmem:[#allocation30_spill] sm:$0xff] }
 0xc75   :  { %v22845_v53 = vmul.f32 %v22745_v29, %v22579_v50  ;;  %v22849_v26 = vmul.f32 %v22745_v29, %v22585_v14  ;;  %v22853_v24 = vmul.f32 %v22745_v29, %v22591_v25  ;;  %v22857_v34 = vmul.f32 %v22745_v29, %v22597_v48 }
 0xc76   :  { %v22861_v59 = vmul.f32 %v22745_v29, %v24622_v27  ;;  %v22865_v50 = vmul.f32 %v22745_v29, %v24623_v43  ;;  %v22869_v14 = vmul.f32 %v22745_v29, %v24624_v13  ;;  %v22873_v25 = vmul.f32 %v22745_v29, %v24625_v36  ;;  %v24632_v43 = vld [vmem:[#allocation39_spill] sm:$0xff]  ;;  %v24633_v36 = vld [vmem:[#allocation40_spill] sm:$0xff] }
 0xc77   :  { %v22877_v48 = vmul.f32 %v22745_v29, %v24626_v0  ;;  %v22881_v56 = vmul.f32 %v22745_v29, %v24627_v2  ;;  %v22885_v8 = vmul.f32 %v22745_v29, %v24628_v62  ;;  %v22889_v52 = vmul.f32 %v22745_v29, %v24629_v46  ;;  %v24634_v2 = vld [vmem:[#allocation41_spill] sm:$0xff] }
 0xc78   :  { %v22893_v27 = vmul.f32 %v22745_v29, %v24631_v20  ;;  %v22897_v13 = vmul.f32 %v22745_v29, %v24632_v43  ;;  %v22901_v0 = vmul.f32 %v22745_v29, %v24633_v36  ;;  %v22905_v62 = vmul.f32 %v22745_v29, %v24634_v2 }
 0xc79   :  { %24630 = vst [vmem:[#allocation27_spill] sm:$0xff] %v22889_v52  ;;  %v22909_v46 = vmul.f32 %v22745_v29, %v22675_v28  ;;  %v24635_v52 = vld [vmem:[#allocation42_spill] sm:$0xff]  ;;  %v22917_v43 = vmul.f32 %v22745_v29, %v22687_v6  ;;  %v22921_v36 = vmul.f32 %v22745_v29, %v22693_v58  ;;  %v22925_v2 = vmul.f32 %v22745_v29, %v22699_v55 }
 0xc7a   :  { %v22913_v20 = vmul.f32 %v22745_v29, %v24635_v52  ;;  %v22929_v28 = vmul.f32 %v22745_v29, %v22381_v3  ;;  %v22933_v52 = vmul.f32 %v22745_v29, %v22384_v33  ;;  %v22937_v6 = vmul.f32 %v22745_v29, %v22387_v63  ;;  %v22958_v63 = vld [vmem:[%s23788_s7] ss:$0 sm:$0xff] }
 0xc7b   :  { %v22941_v58 = vmul.f32 %v22745_v29, %v22390_v35  ;;  %v22945_v55 = vmul.f32 %v22745_v29, %v22393_v61  ;;  %v22949_v3 = vmul.f32 %v22745_v29, %v22396_v18  ;;  %v22953_v33 = vmul.f32 %v22745_v29, %v22399_v17 }
 0xc7c   :  { %v22962_v35 = vmul.f32 %v22745_v29, %v22402_v60  ;;  %v22966_v61 = vmul.f32 %v22745_v29, %v22405_v38  ;;  %v22970_v18 = vmul.f32 %v22745_v29, %v22408_v15  ;;  %v22974_v17 = vmul.f32 %v22745_v29, %v22411_v9 }
 0xc7d   :  { %24636 = vst [vmem:[#allocation28_spill] sm:$0xff] %v22949_v3  ;;  %24637 = vst [vmem:[#allocation29_spill] sm:$0xff] %v22953_v33  ;;  %v22978_v33 = vmul.f32 %v22745_v29, %v22414_v40  ;;  %v24642_v3 = vld [vmem:[#allocation22_spill] sm:$0xff] }
 0xc7e   :  { %24638 = vst [vmem:[#allocation44_spill] sm:$0xff] %v22962_v35  ;;  %24639 = vst [vmem:[#allocation45_spill] sm:$0xff] %v22966_v61  ;;  %v22982_v60 = vmul.f32 %v22745_v29, %v24642_v3  ;;  %v24643_v35 = vld [vmem:[#allocation23_spill] sm:$0xff]  ;;  %v24644_v61 = vld [vmem:[#allocation24_spill] sm:$0xff]  ;;  %v23002_v3 = vmul.f32 %v22745_v29, %v22432_v44  ;;  %v23022_v44 = vmul.f32 %v22958_v63, %v22761_v37 }
 0xc7f   :  { %24640 = vst [vmem:[#allocation46_spill] sm:$0xff] %v22970_v18  ;;  %24641 = vst [vmem:[#allocation47_spill] sm:$0xff] %v22974_v17  ;;  %v22986_v38 = vmul.f32 %v22745_v29, %v24643_v35  ;;  %v22990_v15 = vmul.f32 %v22745_v29, %v24644_v61  ;;  %v24645_v18 = vld [vmem:[#allocation25_spill] sm:$0xff]  ;;  %v24646_v17 = vld [vmem:[#allocation26_spill] sm:$0xff]  ;;  %v23006_v35 = vmul.f32 %v22745_v29, %v22435_v30 }
 0xc80   :  { %v22994_v9 = vmul.f32 %v22745_v29, %v24645_v18  ;;  %v22998_v40 = vmul.f32 %v22745_v29, %v24646_v17  ;;  %v23010_v61 = vmul.f32 %v22958_v63, %v22749_v23  ;;  %v23014_v18 = vmul.f32 %v22958_v63, %v22753_v31 }
 0xc81   :  { %v23018_v17 = vmul.f32 %v22958_v63, %v22757_v22  ;;  %v23026_v29 = vmul.f32 %v22958_v63, %v22765_v16  ;;  %v23030_v30 = vmul.f32 %v22958_v63, %v22769_v45  ;;  %v23034_v23 = vmul.f32 %v22958_v63, %v22773_v54 }
 0xc82   :  { %v23038_v31 = vmul.f32 %v22958_v63, %v22777_v10  ;;  %v23042_v22 = vmul.f32 %v22958_v63, %v22781_v41  ;;  %v23046_v37 = vmul.f32 %v22958_v63, %v22785_v32  ;;  %v23050_v16 = vmul.f32 %v22958_v63, %v22789_v11 }
 0xc83   :  { %v23054_v45 = vmul.f32 %v22958_v63, %v22793_v1  ;;  %v23058_v54 = vmul.f32 %v22958_v63, %v22797_v21  ;;  %v23062_v10 = vmul.f32 %v22958_v63, %v22801_v12  ;;  %v23066_v41 = vmul.f32 %v22958_v63, %v22805_v57 }
 0xc84   :  { %v23070_v32 = vmul.f32 %v22958_v63, %v22809_v51  ;;  %v23074_v11 = vmul.f32 %v22958_v63, %v22813_v42  ;;  %v23078_v1 = vmul.f32 %v22958_v63, %v22817_v5  ;;  %v23082_v21 = vmul.f32 %v22958_v63, %v22821_v39 }
 0xc85   :  { %v23086_v12 = vmul.f32 %v22958_v63, %v22825_v49  ;;  %v23090_v57 = vmul.f32 %v22958_v63, %v22829_v7  ;;  %v23094_v51 = vmul.f32 %v22958_v63, %v22833_v47  ;;  %v23098_v42 = vmul.f32 %v22958_v63, %v22837_v4 }
 0xc86   :  { %v23102_v5 = vmul.f32 %v22958_v63, %v22841_v19  ;;  %v23106_v39 = vmul.f32 %v22958_v63, %v22845_v53  ;;  %v23110_v49 = vmul.f32 %v22958_v63, %v22849_v26  ;;  %v23114_v7 = vmul.f32 %v22958_v63, %v22853_v24 }
 0xc87   :  { %v23118_v47 = vmul.f32 %v22958_v63, %v22857_v34  ;;  %v23122_v4 = vmul.f32 %v22958_v63, %v22861_v59  ;;  %v23126_v19 = vmul.f32 %v22958_v63, %v22865_v50  ;;  %v23130_v53 = vmul.f32 %v22958_v63, %v22869_v14  ;;  %v24647_v50 = vld [vmem:[#allocation27_spill] sm:$0xff] }
 0xc88   :  { %v23134_v26 = vmul.f32 %v22958_v63, %v22873_v25  ;;  %v23138_v24 = vmul.f32 %v22958_v63, %v22877_v48  ;;  %v23142_v34 = vmul.f32 %v22958_v63, %v22881_v56  ;;  %v23146_v59 = vmul.f32 %v22958_v63, %v22885_v8 }
 0xc89   :  { %v23150_v14 = vmul.f32 %v22958_v63, %v24647_v50  ;;  %v23154_v25 = vmul.f32 %v22958_v63, %v22893_v27  ;;  %v23158_v48 = vmul.f32 %v22958_v63, %v22897_v13  ;;  %v23162_v56 = vmul.f32 %v22958_v63, %v22901_v0 }
 0xc8a   :  { %v23166_v8 = vmul.f32 %v22958_v63, %v22905_v62  ;;  %v23170_v50 = vmul.f32 %v22958_v63, %v22909_v46  ;;  %v23174_v27 = vmul.f32 %v22958_v63, %v22913_v20  ;;  %v23178_v13 = vmul.f32 %v22958_v63, %v22917_v43 }
 0xc8b   :  { %v23182_v0 = vmul.f32 %v22958_v63, %v22921_v36  ;;  %v23186_v62 = vmul.f32 %v22958_v63, %v22925_v2  ;;  %v23190_v46 = vmul.f32 %v22958_v63, %v22929_v28  ;;  %v23194_v20 = vmul.f32 %v22958_v63, %v22933_v52 }
 0xc8c   :  { %v23198_v43 = vmul.f32 %v22958_v63, %v22937_v6  ;;  %v23202_v36 = vmul.f32 %v22958_v63, %v22941_v58  ;;  %v23206_v2 = vmul.f32 %v22958_v63, %v22945_v55  ;;  %v23219_v6 = vld [vmem:[%s23789_s8] ss:$0 sm:$0xff] }
 0xc8d   :  { %24648 = vst [vmem:[#allocation48_spill] sm:$0xff] %v23186_v62  ;;  %24649 = vst [vmem:[#allocation49_spill] sm:$0xff] %v23190_v46  ;;  %v24653_v62 = vld [vmem:[#allocation28_spill] sm:$0xff]  ;;  %v24655_v46 = vld [vmem:[#allocation29_spill] sm:$0xff] }
 0xc8e   :  { %24650 = vst [vmem:[#allocation43_spill] sm:$0xff] %v23198_v43  ;;  %24651 = vst [vmem:[#allocation50_spill] sm:$0xff] %v23202_v36  ;;  %v23210_v28 = vmul.f32 %v22958_v63, %v24653_v62  ;;  %v23214_v52 = vmul.f32 %v22958_v63, %v24655_v46  ;;  %v24657_v43 = vld [vmem:[#allocation44_spill] sm:$0xff]  ;;  %v24658_v36 = vld [vmem:[#allocation45_spill] sm:$0xff] }
 0xc8f   :  { %24652 = vst [vmem:[#allocation51_spill] sm:$0xff] %v23206_v2  ;;  %v23223_v58 = vmul.f32 %v22958_v63, %v24657_v43  ;;  %v23227_v55 = vmul.f32 %v22958_v63, %v24658_v36  ;;  %v24659_v2 = vld [vmem:[#allocation46_spill] sm:$0xff]  ;;  %v23243_v43 = vmul.f32 %v22958_v63, %v22982_v60  ;;  %v23247_v36 = vmul.f32 %v22958_v63, %v22986_v38 }
 0xc90   :  { %24654 = vst [vmem:[#allocation52_spill] sm:$0xff] %v23210_v28  ;;  %24656 = vst [vmem:[#allocation53_spill] sm:$0xff] %v23214_v52  ;;  %v23231_v62 = vmul.f32 %v22958_v63, %v24659_v2  ;;  %v24660_v28 = vld [vmem:[#allocation47_spill] sm:$0xff]  ;;  %v23239_v52 = vmul.f32 %v22958_v63, %v22978_v33  ;;  %v23251_v2 = vmul.f32 %v22958_v63, %v22990_v15 }
 0xc91   :  { %v23235_v46 = vmul.f32 %v22958_v63, %v24660_v28  ;;  %v23255_v28 = vmul.f32 %v22958_v63, %v22994_v9  ;;  %v23259_v33 = vmul.f32 %v22958_v63, %v22998_v40  ;;  %v23263_v60 = vmul.f32 %v22958_v63, %v23002_v3 }
 0xc92   :  { %v23267_v38 = vmul.f32 %v22958_v63, %v23006_v35  ;;  %v23271_v15 = vadd.f32 %v23219_v6, %v23010_v61  ;;  %v23275_v9 = vadd.f32 %v23219_v6, %v23014_v18  ;;  %v23279_v40 = vadd.f32 %v23219_v6, %v23018_v17 }
 0xc93   :  { %v23283_v3 = vadd.f32 %v23219_v6, %v23022_v44  ;;  %v23287_v63 = vadd.f32 %v23219_v6, %v23026_v29  ;;  %v23291_v35 = vadd.f32 %v23219_v6, %v23030_v30  ;;  %v23295_v61 = vadd.f32 %v23219_v6, %v23034_v23 }
 0xc94   :  { %v23299_v18 = vadd.f32 %v23219_v6, %v23038_v31  ;;  %v23303_v17 = vadd.f32 %v23219_v6, %v23042_v22  ;;  %v23307_v44 = vadd.f32 %v23219_v6, %v23046_v37  ;;  %v23311_v29 = vadd.f32 %v23219_v6, %v23050_v16 }
 0xc95   :  { %v23315_v30 = vadd.f32 %v23219_v6, %v23054_v45  ;;  %v23319_v23 = vadd.f32 %v23219_v6, %v23058_v54  ;;  %v23323_v31 = vadd.f32 %v23219_v6, %v23062_v10  ;;  %v23327_v22 = vadd.f32 %v23219_v6, %v23066_v41 }
 0xc96   :  { %v23331_v37 = vadd.f32 %v23219_v6, %v23070_v32  ;;  %v23335_v16 = vadd.f32 %v23219_v6, %v23074_v11  ;;  %v23339_v45 = vadd.f32 %v23219_v6, %v23078_v1  ;;  %v23343_v54 = vadd.f32 %v23219_v6, %v23082_v21 }
 0xc97   :  { %v23347_v10 = vadd.f32 %v23219_v6, %v23086_v12  ;;  %v23351_v41 = vadd.f32 %v23219_v6, %v23090_v57  ;;  %v23355_v32 = vadd.f32 %v23219_v6, %v23094_v51  ;;  %v23359_v11 = vadd.f32 %v23219_v6, %v23098_v42 }
 0xc98   :  { %v23363_v1 = vadd.f32 %v23219_v6, %v23102_v5  ;;  %v23367_v21 = vadd.f32 %v23219_v6, %v23106_v39  ;;  %v23371_v12 = vadd.f32 %v23219_v6, %v23110_v49  ;;  %v23375_v57 = vadd.f32 %v23219_v6, %v23114_v7 }
 0xc99   :  { %v23379_v51 = vadd.f32 %v23219_v6, %v23118_v47  ;;  %v23383_v42 = vadd.f32 %v23219_v6, %v23122_v4  ;;  %v23387_v5 = vadd.f32 %v23219_v6, %v23126_v19  ;;  %v23391_v39 = vadd.f32 %v23219_v6, %v23130_v53 }
 0xc9a   :  { %v23395_v49 = vadd.f32 %v23219_v6, %v23134_v26  ;;  %v23399_v7 = vadd.f32 %v23219_v6, %v23138_v24  ;;  %v23403_v47 = vadd.f32 %v23219_v6, %v23142_v34  ;;  %v23407_v4 = vadd.f32 %v23219_v6, %v23146_v59 }
 0xc9b   :  { %v23411_v19 = vadd.f32 %v23219_v6, %v23150_v14  ;;  %v23415_v53 = vadd.f32 %v23219_v6, %v23154_v25  ;;  %v23419_v26 = vadd.f32 %v23219_v6, %v23158_v48  ;;  %v23423_v24 = vadd.f32 %v23219_v6, %v23162_v56  ;;  %v24665_v56 = vld [vmem:[#allocation48_spill] sm:$0xff] }
 0xc9c   :  { %v23427_v34 = vadd.f32 %v23219_v6, %v23166_v8  ;;  %v23431_v59 = vadd.f32 %v23219_v6, %v23170_v50  ;;  %v23435_v14 = vadd.f32 %v23219_v6, %v23174_v27  ;;  %v23439_v25 = vadd.f32 %v23219_v6, %v23178_v13 }
 0xc9d   :  { %v23443_v48 = vadd.f32 %v23219_v6, %v23182_v0  ;;  %v23447_v8 = vadd.f32 %v23219_v6, %v24665_v56  ;;  %v23455_v27 = vadd.f32 %v23219_v6, %v23194_v20 }
 0xc9e   :  { %24661 = vst [vmem:[#allocation54_spill] sm:$0xff] %v23427_v34  ;;  %24662 = vst [vmem:[#allocation55_spill] sm:$0xff] %v23435_v14  ;;  %v24667_v34 = vld [vmem:[#allocation49_spill] sm:$0xff]  ;;  %v24669_v14 = vld [vmem:[#allocation43_spill] sm:$0xff] }
 0xc9f   :  { %24663 = vst [vmem:[#allocation56_spill] sm:$0xff] %v23439_v25  ;;  %24664 = vst [vmem:[#allocation57_spill] sm:$0xff] %v23443_v48  ;;  %v23451_v50 = vadd.f32 %v23219_v6, %v24667_v34  ;;  %v23459_v13 = vadd.f32 %v23219_v6, %v24669_v14  ;;  %v24670_v25 = vld [vmem:[#allocation50_spill] sm:$0xff]  ;;  %v24671_v48 = vld [vmem:[#allocation51_spill] sm:$0xff]  ;;  %v23479_v14 = vadd.f32 %v23219_v6, %v23223_v58 }
 0xca0   :  { %24666 = vst [vmem:[#allocation58_spill] sm:$0xff] %v23447_v8  ;;  %v23463_v0 = vadd.f32 %v23219_v6, %v24670_v25  ;;  %v23467_v56 = vadd.f32 %v23219_v6, %v24671_v48  ;;  %v24672_v8 = vld [vmem:[#allocation52_spill] sm:$0xff]  ;;  %v23483_v25 = vadd.f32 %v23219_v6, %v23227_v55  ;;  %v23487_v48 = vadd.f32 %v23219_v6, %v23231_v62 }
 0xca1   :  { %24668 = vst [vmem:[#allocation59_spill] sm:$0xff] %v23451_v50  ;;  %v23471_v34 = vadd.f32 %v23219_v6, %v24672_v8  ;;  %v24673_v50 = vld [vmem:[#allocation53_spill] sm:$0xff]  ;;  %v23491_v8 = vadd.f32 %v23219_v6, %v23235_v46  ;;  %v23499_v58 = vadd.f32 %v23219_v6, %v23243_v43  ;;  %v23503_v55 = vadd.f32 %v23219_v6, %v23247_v36 }
 0xca2   :  { %v23475_v20 = vadd.f32 %v23219_v6, %v24673_v50  ;;  %v23495_v50 = vadd.f32 %v23219_v6, %v23239_v52  ;;  %v23507_v62 = vadd.f32 %v23219_v6, %v23251_v2  ;;  %v23511_v46 = vadd.f32 %v23219_v6, %v23255_v28 }
 0xca3   :  { %24674 = vst [vmem:[#allocation62_spill] sm:$0xff] %v23503_v55  ;;  %v23515_v52 = vadd.f32 %v23219_v6, %v23259_v33  ;;  %v23519_v43 = vadd.f32 %v23219_v6, %v23263_v60  ;;  %v23523_v36 = vadd.f32 %v23219_v6, %v23267_v38  ;;  %v10649_v55 = vmax.f32 %v23271_v15, 0.0 }
 0xca4   :  { %24675 = vst [vmem:[#allocation63_spill] sm:$0xff] %v23507_v62  ;;  %24676 = vst [vmem:[#allocation64_spill] sm:$0xff] %v23511_v46  ;;  %v10650_v2 = vmax.f32 %v23275_v9, 0.0  ;;  %v10651_v62 = vmax.f32 %v23279_v40, 0.0  ;;  %v10652_v28 = vmax.f32 %v23283_v3, 0.0  ;;  %v10653_v46 = vmax.f32 %v23287_v63, 0.0 }
 0xca5   :  { %24677 = vst [vmem:[#allocation65_spill] sm:$0xff] %v23515_v52  ;;  %24678 = vst [vmem:[#allocation3_spill] sm:$0xff] %v23519_v43  ;;  %v10654_v33 = vmax.f32 %v23291_v35, 0.0  ;;  %v10655_v52 = vmax.f32 %v23295_v61, 0.0  ;;  %v10656_v60 = vmax.f32 %v23299_v18, 0.0  ;;  %v10657_v43 = vmax.f32 %v23303_v17, 0.0 }
 0xca6   :  { %v10658_v6 = vmax.f32 %v23307_v44, 0.0  ;;  %v10659_v38 = vmax.f32 %v23311_v29, 0.0  ;;  %v10660_v15 = vmax.f32 %v23315_v30, 0.0  ;;  %10713 = vst [vmem:[%s23790_s9] sm:$0xff] %v10649_v55  ;;  %10714 = vst [vmem:[%s23790_s9 + $0x8] sm:$0xff] %v10650_v2  ;;  %v10661_v9 = vmax.f32 %v23319_v23, 0.0 }
 0xca7   :  { %10715 = vst [vmem:[%s23790_s9 + $0x10] sm:$0xff] %v10651_v62  ;;  %10716 = vst [vmem:[%s23790_s9 + $0x18] sm:$0xff] %v10652_v28  ;;  %v10662_v40 = vmax.f32 %v23323_v31, 0.0  ;;  %v10663_v3 = vmax.f32 %v23327_v22, 0.0  ;;  %v10664_v63 = vmax.f32 %v23331_v37, 0.0  ;;  %v10665_v35 = vmax.f32 %v23335_v16, 0.0 }
 0xca8   :  { %10717 = vst [vmem:[%s23790_s9 + $0x20] sm:$0xff] %v10653_v46  ;;  %10718 = vst [vmem:[%s23790_s9 + $0x28] sm:$0xff] %v10654_v33  ;;  %v10666_v61 = vmax.f32 %v23339_v45, 0.0  ;;  %v10667_v18 = vmax.f32 %v23343_v54, 0.0  ;;  %v10668_v17 = vmax.f32 %v23347_v10, 0.0  ;;  %v10669_v44 = vmax.f32 %v23351_v41, 0.0 }
 0xca9   :  { %10719 = vst [vmem:[%s23790_s9 + $0x30] sm:$0xff] %v10655_v52  ;;  %10720 = vst [vmem:[%s23790_s9 + $0x38] sm:$0xff] %v10656_v60  ;;  %v10670_v29 = vmax.f32 %v23355_v32, 0.0  ;;  %v10671_v30 = vmax.f32 %v23359_v11, 0.0  ;;  %v10672_v23 = vmax.f32 %v23363_v1, 0.0  ;;  %v10673_v31 = vmax.f32 %v23367_v21, 0.0 }
 0xcaa   :  { %10721 = vst [vmem:[%s23790_s9 + $0x40] sm:$0xff] %v10657_v43  ;;  %10722 = vst [vmem:[%s23790_s9 + $0x48] sm:$0xff] %v10658_v6  ;;  %v10674_v22 = vmax.f32 %v23371_v12, 0.0  ;;  %v10675_v37 = vmax.f32 %v23375_v57, 0.0  ;;  %v10676_v16 = vmax.f32 %v23379_v51, 0.0  ;;  %v10677_v45 = vmax.f32 %v23383_v42, 0.0 }
 0xcab   :  { %10723 = vst [vmem:[%s23790_s9 + $0x50] sm:$0xff] %v10659_v38  ;;  %10724 = vst [vmem:[%s23790_s9 + $0x58] sm:$0xff] %v10660_v15  ;;  %v10678_v54 = vmax.f32 %v23387_v5, 0.0  ;;  %v10679_v10 = vmax.f32 %v23391_v39, 0.0  ;;  %v10680_v41 = vmax.f32 %v23395_v49, 0.0  ;;  %v10681_v32 = vmax.f32 %v23399_v7, 0.0 }
 0xcac   :  { %10725 = vst [vmem:[%s23790_s9 + $0x60] sm:$0xff] %v10661_v9  ;;  %10726 = vst [vmem:[%s23790_s9 + $0x68] sm:$0xff] %v10662_v40  ;;  %v10682_v11 = vmax.f32 %v23403_v47, 0.0  ;;  %v10683_v1 = vmax.f32 %v23407_v4, 0.0  ;;  %v10684_v21 = vmax.f32 %v23411_v19, 0.0  ;;  %v10685_v12 = vmax.f32 %v23415_v53, 0.0 }
 0xcad   :  { %10727 = vst [vmem:[%s23790_s9 + $0x70] sm:$0xff] %v10663_v3  ;;  %10728 = vst [vmem:[%s23790_s9 + $0x78] sm:$0xff] %v10664_v63  ;;  %v10686_v57 = vmax.f32 %v23419_v26, 0.0  ;;  %v10687_v51 = vmax.f32 %v23423_v24, 0.0  ;;  %v24679_v42 = vld [vmem:[#allocation54_spill] sm:$0xff]  ;;  %v10689_v39 = vmax.f32 %v23431_v59, 0.0 }
 0xcae   :  { %10729 = vst [vmem:[%s23790_s9 + $0x80] sm:$0xff] %v10665_v35  ;;  %10730 = vst [vmem:[%s23790_s9 + $0x88] sm:$0xff] %v10666_v61  ;;  %v10688_v5 = vmax.f32 %v24679_v42, 0.0  ;;  %v24680_v49 = vld [vmem:[#allocation55_spill] sm:$0xff]  ;;  %v24681_v47 = vld [vmem:[#allocation56_spill] sm:$0xff]  ;;  %v10695_v62 = vmax.f32 %v23455_v27, 0.0 }
 0xcaf   :  { %10731 = vst [vmem:[%s23790_s9 + $0x90] sm:$0xff] %v10667_v18  ;;  %10732 = vst [vmem:[%s23790_s9 + $0x98] sm:$0xff] %v10668_v17  ;;  %v10690_v7 = vmax.f32 %v24680_v49, 0.0  ;;  %v10691_v4 = vmax.f32 %v24681_v47, 0.0  ;;  %v24682_v19 = vld [vmem:[#allocation57_spill] sm:$0xff]  ;;  %v24683_v26 = vld [vmem:[#allocation58_spill] sm:$0xff] }
 0xcb0   :  { %10733 = vst [vmem:[%s23790_s9 + $0xa0] sm:$0xff] %v10669_v44  ;;  %10734 = vst [vmem:[%s23790_s9 + $0xa8] sm:$0xff] %v10670_v29  ;;  %v10692_v53 = vmax.f32 %v24682_v19, 0.0  ;;  %v10693_v24 = vmax.f32 %v24683_v26, 0.0  ;;  %v24684_v59 = vld [vmem:[#allocation59_spill] sm:$0xff]  ;;  %v10696_v46 = vmax.f32 %v23459_v13, 0.0 }
 0xcb1   :  { %10735 = vst [vmem:[%s23790_s9 + $0xb0] sm:$0xff] %v10671_v30  ;;  %10736 = vst [vmem:[%s23790_s9 + $0xb8] sm:$0xff] %v10672_v23  ;;  %v10694_v55 = vmax.f32 %v24684_v59, 0.0  ;;  %v10697_v27 = vmax.f32 %v23463_v0, 0.0  ;;  %v10698_v13 = vmax.f32 %v23467_v56, 0.0  ;;  %v10699_v52 = vmax.f32 %v23471_v34, 0.0 }
 0xcb2   :  { %10737 = vst [vmem:[%s23790_s9 + $0xc0] sm:$0xff] %v10673_v31  ;;  %10738 = vst [vmem:[%s23790_s9 + $0xc8] sm:$0xff] %v10674_v22  ;;  %v10700_v43 = vmax.f32 %v23475_v20, 0.0  ;;  %v10701_v0 = vmax.f32 %v23479_v14, 0.0  ;;  %v10702_v56 = vmax.f32 %v23483_v25, 0.0  ;;  %v10703_v34 = vmax.f32 %v23487_v48, 0.0 }
 0xcb3   :  { %10739 = vst [vmem:[%s23790_s9 + $0xd0] sm:$0xff] %v10675_v37  ;;  %10740 = vst [vmem:[%s23790_s9 + $0xd8] sm:$0xff] %v10676_v16  ;;  %v10704_v20 = vmax.f32 %v23491_v8, 0.0  ;;  %v10705_v14 = vmax.f32 %v23495_v50, 0.0  ;;  %v10706_v25 = vmax.f32 %v23499_v58, 0.0  ;;  %v24685_v48 = vld [vmem:[#allocation62_spill] sm:$0xff] }
 0xcb4   :  { %10741 = vst [vmem:[%s23790_s9 + $0xe0] sm:$0xff] %v10677_v45  ;;  %10742 = vst [vmem:[%s23790_s9 + $0xe8] sm:$0xff] %v10678_v54  ;;  %v10707_v8 = vmax.f32 %v24685_v48, 0.0  ;;  %v24686_v2 = vld [vmem:[#allocation63_spill] sm:$0xff]  ;;  %v24687_v50 = vld [vmem:[#allocation64_spill] sm:$0xff]  ;;  %v10712_v15 = vmax.f32 %v23523_v36, 0.0 }
 0xcb5   :  { %10743 = vst [vmem:[%s23790_s9 + $0xf0] sm:$0xff] %v10679_v10  ;;  %10744 = vst [vmem:[%s23790_s9 + $0xf8] sm:$0xff] %v10680_v41  ;;  %v10708_v28 = vmax.f32 %v24686_v2, 0.0  ;;  %v10709_v58 = vmax.f32 %v24687_v50, 0.0  ;;  %v24688_v33 = vld [vmem:[#allocation65_spill] sm:$0xff]  ;;  %v24689_v6 = vld [vmem:[#allocation3_spill] sm:$0xff] }
 0xcb6   :  { %10745 = vst [vmem:[%s23790_s9 + $0x100] sm:$0xff] %v10681_v32  ;;  %10746 = vst [vmem:[%s23790_s9 + $0x108] sm:$0xff] %v10682_v11  ;;  %v10710_v60 = vmax.f32 %v24688_v33, 0.0  ;;  %v10711_v38 = vmax.f32 %v24689_v6, 0.0 }
 0xcb7   :  { %10747 = vst [vmem:[%s23790_s9 + $0x110] sm:$0xff] %v10683_v1  ;;  %10748 = vst [vmem:[%s23790_s9 + $0x118] sm:$0xff] %v10684_v21 }
 0xcb8   :  { %10749 = vst [vmem:[%s23790_s9 + $0x120] sm:$0xff] %v10685_v12  ;;  %10750 = vst [vmem:[%s23790_s9 + $0x128] sm:$0xff] %v10686_v57 }
 0xcb9   :  { %10751 = vst [vmem:[%s23790_s9 + $0x130] sm:$0xff] %v10687_v51  ;;  %10752 = vst [vmem:[%s23790_s9 + $0x138] sm:$0xff] %v10688_v5 }
 0xcba   :  { %10753 = vst [vmem:[%s23790_s9 + $0x140] sm:$0xff] %v10689_v39  ;;  %10754 = vst [vmem:[%s23790_s9 + $0x148] sm:$0xff] %v10690_v7 }
 0xcbb   :  { %10755 = vst [vmem:[%s23790_s9 + $0x150] sm:$0xff] %v10691_v4  ;;  %10756 = vst [vmem:[%s23790_s9 + $0x158] sm:$0xff] %v10692_v53 }
 0xcbc   :  { %10757 = vst [vmem:[%s23790_s9 + $0x160] sm:$0xff] %v10693_v24  ;;  %10758 = vst [vmem:[%s23790_s9 + $0x168] sm:$0xff] %v10694_v55 }
 0xcbd   :  { %10759 = vst [vmem:[%s23790_s9 + $0x170] sm:$0xff] %v10695_v62  ;;  %10760 = vst [vmem:[%s23790_s9 + $0x178] sm:$0xff] %v10696_v46 }
 0xcbe   :  { %10761 = vst [vmem:[%s23790_s9 + $0x180] sm:$0xff] %v10697_v27  ;;  %10762 = vst [vmem:[%s23790_s9 + $0x188] sm:$0xff] %v10698_v13 }
 0xcbf   :  { %10763 = vst [vmem:[%s23790_s9 + $0x190] sm:$0xff] %v10699_v52  ;;  %10764 = vst [vmem:[%s23790_s9 + $0x198] sm:$0xff] %v10700_v43 }
 0xcc0   :  { %10765 = vst [vmem:[%s23790_s9 + $0x1a0] sm:$0xff] %v10701_v0  ;;  %10766 = vst [vmem:[%s23790_s9 + $0x1a8] sm:$0xff] %v10702_v56 }
 0xcc1   :  { %10767 = vst [vmem:[%s23790_s9 + $0x1b0] sm:$0xff] %v10703_v34  ;;  %10768 = vst [vmem:[%s23790_s9 + $0x1b8] sm:$0xff] %v10704_v20 }
 0xcc2   :  { %10769 = vst [vmem:[%s23790_s9 + $0x1c0] sm:$0xff] %v10705_v14  ;;  %10770 = vst [vmem:[%s23790_s9 + $0x1c8] sm:$0xff] %v10706_v25 }
 0xcc3   :  { %10771 = vst [vmem:[%s23790_s9 + $0x1d0] sm:$0xff] %v10707_v8  ;;  %10772 = vst [vmem:[%s23790_s9 + $0x1d8] sm:$0xff] %v10708_v28 }
 0xcc4   :  { %10773 = vst [vmem:[%s23790_s9 + $0x1e0] sm:$0xff] %v10709_v58  ;;  %10774 = vst [vmem:[%s23790_s9 + $0x1e8] sm:$0xff] %v10710_v60 }
 0xcc5   :  { %10775 = vst [vmem:[%s23790_s9 + $0x1f0] sm:$0xff] %v10711_v38  ;;  %10776 = vst [vmem:[%s23790_s9 + $0x1f8] sm:$0xff] %v10712_v15 }

</bundles_post_ra>
